<compile_context>
chip_gen: v7x
topology: tpu7x:2x2x1
jax: 0.10.0
libtpu: 0.0.40
codegen_flags: <defaults>
</compile_context>

<pallas_src>
import functools

import jax
import jax.numpy as jnp
from jax.experimental import pallas as pl
from jax.experimental.pallas import tpu as pltpu

BN_EPS = 1e-5


# ----------------------------------------------------------------------------
# Hardware-aware knobs
# ----------------------------------------------------------------------------
@functools.lru_cache(maxsize=1)
def _vmem_limit_bytes():
    try:
        cap = getattr(pltpu.get_tpu_info(), "vmem_capacity_bytes", None)
        if cap:
            return int(cap) * 3 // 4          # leave headroom for double buffers
    except Exception:
        pass
    return None


def _compiler_params():
    kw = dict(dimension_semantics=("parallel",))
    limit = _vmem_limit_bytes()
    if limit is not None:
        kw["vmem_limit_bytes"] = limit
    return pltpu.CompilerParams(**kw)


def _row_tile(m, row_bytes):
    """Largest 8-aligned divisor of m below a VMEM-capacity-aware row target."""
    limit = _vmem_limit_bytes() or (64 << 20)     # assume v7x-class if unknown
    target = 1024 if limit >= (80 << 20) else 512  # smaller tiles on 64 MiB chips
    cap = max(8, limit // (8 * max(row_bytes, 1)))
    target = min(m, target, cap)
    for t in range(target, 7, -1):
        if m % t == 0 and t % 8 == 0:
            return t
    return m                                      # full-extent block is always legal


# ----------------------------------------------------------------------------
# Kernels
# ----------------------------------------------------------------------------
def _colstats(y):
    # per-column (sum, sum-of-squares) partials for exact cross-tile BatchNorm
    return jnp.concatenate([jnp.sum(y, axis=0, keepdims=True),
                            jnp.sum(y * y, axis=0, keepdims=True)], axis=0)


def _head_kernel(x_ref, w1_ref, y1_ref, st_ref):
    # conv1 (1x1) as bf16 matmul with f32 accumulation; raw output + BN1 partials.
    acc = jnp.dot(x_ref[...], w1_ref[...], preferred_element_type=jnp.float32)
    y1_ref[...] = acc.astype(y1_ref.dtype)
    st_ref[...] = _colstats(acc)


def _conv2_kernel(xph_ref, w2g_ref, y2_ref, st_ref, *, stride, oh, ow, cmid):
    # 3x3/stride conv on one image: 3 grouped matmuls (K = 3*cmid), taps read
    # from the zero-padded, stride-phase-decomposed activation.
    mo = oh * ow
    acc = jnp.zeros((mo, cmid), jnp.float32)
    for i in range(3):
        taps = []
        for j in range(3):
            pi = (i % stride) * stride + (j % stride)   # stride phase
            p, q = i // stride, j // stride             # offset inside the phase
            taps.append(xph_ref[pi, p:p + oh, q:q + ow, :])
        lhs = jnp.concatenate(taps, axis=-1).reshape(mo, 3 * cmid)
        acc = acc + jnp.dot(lhs, w2g_ref[i], preferred_element_type=jnp.float32)
    y2_ref[...] = acc.reshape(oh, ow, cmid).astype(y2_ref.dtype)
    st_ref[...] = _colstats(acc)


def _mid_kernel(y2_ref, s2_ref, b2_ref, w3_ref, y3_ref, st_ref):
    # BN2 (folded scale/shift) + ReLU + conv3 (1x1); raw output + BN3 partials.
    t2 = jnp.maximum(y2_ref[...].astype(jnp.float32) * s2_ref[...] + b2_ref[...], 0.0)
    y3 = jnp.dot(t2.astype(jnp.bfloat16), w3_ref[...],
                 preferred_element_type=jnp.float32)
    y3_ref[...] = y3.astype(y3_ref.dtype)
    st_ref[...] = _colstats(y3)


def _mid_ds_kernel(y2_ref, s2_ref, b2_ref, w3_ref, xds_ref, wd_ref,
                   y3_ref, st3_ref, yd_ref, std_ref):
    # Same as _mid_kernel plus the fused projection-shortcut 1x1 strided conv.
    t2 = jnp.maximum(y2_ref[...].astype(jnp.float32) * s2_ref[...] + b2_ref[...], 0.0)
    y3 = jnp.dot(t2.astype(jnp.bfloat16), w3_ref[...],
                 preferred_element_type=jnp.float32)
    y3_ref[...] = y3.astype(y3_ref.dtype)
    st3_ref[...] = _colstats(y3)
    yd = jnp.dot(xds_ref[...], wd_ref[...], preferred_element_type=jnp.float32)
    yd_ref[...] = yd.astype(yd_ref.dtype)
    std_ref[...] = _colstats(yd)


def _final_id_kernel(y3_ref, s3_ref, b3_ref, res_ref, o_ref):
    # BN3 (folded) + identity residual + final ReLU.
    y = y3_ref[...].astype(jnp.float32) * s3_ref[...] + b3_ref[...]
    o_ref[...] = jnp.maximum(y + res_ref[...].astype(jnp.float32), 0.0
                             ).astype(o_ref.dtype)


def _final_ds_kernel(y3_ref, s3_ref, b3_ref, yd_ref, sd_ref, bd_ref, o_ref):
    # BN3 (folded) + BN_d (folded) projection residual + final ReLU.
    y = y3_ref[...].astype(jnp.float32) * s3_ref[...] + b3_ref[...]
    r = yd_ref[...].astype(jnp.float32) * sd_ref[...] + bd_ref[...]
    o_ref[...] = jnp.maximum(y + r, 0.0).astype(o_ref.dtype)


# ----------------------------------------------------------------------------
# XLA-side glue
# ----------------------------------------------------------------------------
def _bn_affine(partial_stats, m, gamma, beta):
    # partial_stats: (tiles, 2, C) -> folded (scale, shift); biased var as torch.
    s = jnp.sum(partial_stats.astype(jnp.float32), axis=0)
    mean = s[0] / m
    var = s[1] / m - mean * mean
    scale = gamma.astype(jnp.float32) * jax.lax.rsqrt(var + BN_EPS)
    shift = beta.astype(jnp.float32) - mean * scale
    return scale.reshape(1, -1), shift.reshape(1, -1)


# ----------------------------------------------------------------------------
# Wrapper
# ----------------------------------------------------------------------------
def bottleneck_forward(params, x_nchw, *, stride=1, out_dtype=jnp.float32):
    assert stride in (1, 2), "stride-phase decomposition derived for stride in {1,2}"
    x = jnp.transpose(x_nchw, (0, 2, 3, 1)).astype(jnp.float32)      # NCHW -> NHWC
    n, h, w, cin = x.shape
    cmid = params["w1"].shape[-1]
    cout = params["w3"].shape[-1]
    oh = (h + 2 - 3) // stride + 1
    ow = (w + 2 - 3) // stride + 1
    m1, mo = n * h * w, n * oh * ow
    cparams = _compiler_params()
    f32 = jnp.float32

    # ---- stage 1: conv1 (1x1), raw output + BN1 partial stats -----------------
    tm1 = _row_tile(m1, row_bytes=4 * (cin + cmid))
    nt1 = m1 // tm1
    y1_raw, st1 = pl.pallas_call(
        _head_kernel,
        grid=(nt1,),
        in_specs=[pl.BlockSpec((tm1, cin), lambda i: (i, 0)),
                  pl.BlockSpec((cin, cmid), lambda i: (0, 0))],
        out_specs=[pl.BlockSpec((tm1, cmid), lambda i: (i, 0)),
                   pl.BlockSpec((None, 2, cmid), lambda i: (i, 0, 0))],
        out_shape=[jax.ShapeDtypeStruct((m1, cmid), jnp.bfloat16),
                   jax.ShapeDtypeStruct((nt1, 2, cmid), f32)],
        compiler_params=cparams,
        cost_estimate=pl.CostEstimate(
            flops=2 * m1 * cin * cmid, transcendentals=0,
            bytes_accessed=2 * m1 * (cin + cmid) + 2 * cin * cmid),
    )(x.reshape(m1, cin).astype(jnp.bfloat16), params["w1"].astype(jnp.bfloat16))
    sc1, sh1 = _bn_affine(st1, m1, params["g1"], params["b1"])

    # ---- BN1 normalize + ReLU fused into the zero-pad / phase-decompose pass --
    t1 = jnp.maximum(y1_raw.reshape(n, h, w, cmid).astype(f32) * sc1 + sh1, 0.0)
    t1_pad = jnp.pad(t1, ((0, 0), (1, 1), (1, 1), (0, 0))).astype(jnp.bfloat16)
    shift = 2 // stride
    ph, pw = oh + shift, ow + shift
    if stride == 1:
        xph = t1_pad[None]                        # decomposition is the identity
    else:
        xph = jnp.stack([t1_pad[:, a::stride, b::stride, :][:, :ph, :pw, :]
                         for a in range(stride) for b in range(stride)], axis=0)
    s2 = stride * stride
    # TODO(synk): for very large images, tile conv2 over output-row blocks with an
    # explicit halo and use pltpu.roll for the unaligned width-tap slices.

    # ---- stage 2: conv2 (3x3/stride), one image per grid step, grouped taps ---
    w2g = params["w2"].reshape(3, 3 * cmid, cmid).astype(jnp.bfloat16)
    y2_raw, st2 = pl.pallas_call(
        functools.partial(_conv2_kernel, stride=stride, oh=oh, ow=ow, cmid=cmid),
        grid=(n,),
        in_specs=[pl.BlockSpec((s2, None, ph, pw, cmid),
                               lambda b: (0, b, 0, 0, 0)),
                  pl.BlockSpec((3, 3 * cmid, cmid), lambda b: (0, 0, 0))],
        out_specs=[pl.BlockSpec((None, oh, ow, cmid), lambda b: (b, 0, 0, 0)),
                   pl.BlockSpec((None, 2, cmid), lambda b: (b, 0, 0))],
        out_shape=[jax.ShapeDtypeStruct((n, oh, ow, cmid), jnp.bfloat16),
                   jax.ShapeDtypeStruct((n, 2, cmid), f32)],
        compiler_params=cparams,
        cost_estimate=pl.CostEstimate(
            flops=2 * mo * 9 * cmid * cmid, transcendentals=0,
            bytes_accessed=2 * (s2 * n * ph * pw * cmid + mo * cmid
                                + 9 * cmid * cmid)),
    )(xph, w2g)
    sc2, sh2 = _bn_affine(st2, mo, params["g2"], params["b2"])

    # ---- stage 3: BN2+ReLU fold + conv3 (1x1) [+ projection shortcut] ---------
    y2_flat = y2_raw.reshape(mo, cmid)
    w3 = params["w3"].astype(jnp.bfloat16)
    downsample = "wd" in params
    tmo = _row_tile(mo, row_bytes=4 * (cmid + 2 * cout + (cin if downsample else cout)))
    nto = mo // tmo

    def rows(c):
        return pl.BlockSpec((tmo, c), lambda i: (i, 0))

    def vec(c):
        return pl.BlockSpec((1, c), lambda i: (0, 0))

    def stat(c):
        return pl.BlockSpec((None, 2, c), lambda i: (i, 0, 0))

    if downsample:
        xds = x[:, ::stride, ::stride, :].reshape(mo, cin).astype(jnp.bfloat16)
        wd = params["wd"].astype(jnp.bfloat16)
        y3_raw, st3, yd_raw, std = pl.pallas_call(
            _mid_ds_kernel,
            grid=(nto,),
            in_specs=[rows(cmid), vec(cmid), vec(cmid),
                      pl.BlockSpec((cmid, cout), lambda i: (0, 0)),
                      rows(cin),
                      pl.BlockSpec((cin, cout), lambda i: (0, 0))],
            out_specs=[rows(cout), stat(cout), rows(cout), stat(cout)],
            out_shape=[jax.ShapeDtypeStruct((mo, cout), jnp.bfloat16),
                       jax.ShapeDtypeStruct((nto, 2, cout), f32),
                       jax.ShapeDtypeStruct((mo, cout), jnp.bfloat16),
                       jax.ShapeDtypeStruct((nto, 2, cout), f32)],
            compiler_params=cparams,
            cost_estimate=pl.CostEstimate(
                flops=2 * mo * (cmid + cin) * cout, transcendentals=0,
                bytes_accessed=2 * mo * (cmid + cin + 2 * cout)
                + 2 * (cmid + cin) * cout),
        )(y2_flat, sc2, sh2, w3, xds, wd)
        sc3, sh3 = _bn_affine(st3, mo, params["g3"], params["b3"])
        scd, shd = _bn_affine(std, mo, params["gd"], params["bd"])
        out = pl.pallas_call(
            _final_ds_kernel,
            grid=(nto,),
            in_specs=[rows(cout), vec(cout), vec(cout),
                      rows(cout), vec(cout), vec(cout)],
            out_specs=rows(cout),
            out_shape=jax.ShapeDtypeStruct((mo, cout), out_dtype),
            compiler_params=cparams,
            cost_estimate=pl.CostEstimate(
                flops=6 * mo * cout, transcendentals=0,
                bytes_accessed=mo * cout * (4 + jnp.dtype(out_dtype).itemsize)),
        )(y3_raw, sc3, sh3, yd_raw, scd, shd)
    else:
        assert stride == 1 and cin == cout, "identity shortcut requires matching shapes"
        y3_raw, st3 = pl.pallas_call(
            _mid_kernel,
            grid=(nto,),
            in_specs=[rows(cmid), vec(cmid), vec(cmid),
                      pl.BlockSpec((cmid, cout), lambda i: (0, 0))],
            out_specs=[rows(cout), stat(cout)],
            out_shape=[jax.ShapeDtypeStruct((mo, cout), jnp.bfloat16),
                       jax.ShapeDtypeStruct((nto, 2, cout), f32)],
            compiler_params=cparams,
            cost_estimate=pl.CostEstimate(
                flops=2 * mo * cmid * cout, transcendentals=0,
                bytes_accessed=2 * mo * (cmid + cout) + 2 * cmid * cout),
        )(y2_flat, sc2, sh2, w3)
        sc3, sh3 = _bn_affine(st3, mo, params["g3"], params["b3"])
        out = pl.pallas_call(
            _final_id_kernel,
            grid=(nto,),
            in_specs=[rows(cout), vec(cout), vec(cout), rows(cout)],
            out_specs=rows(cout),
            out_shape=jax.ShapeDtypeStruct((mo, cout), out_dtype),
            compiler_params=cparams,
            cost_estimate=pl.CostEstimate(
                flops=4 * mo * cout, transcendentals=0,
                bytes_accessed=mo * cout * (6 + jnp.dtype(out_dtype).itemsize)),
        )(y3_raw, sc3, sh3, x.reshape(mo, cout))

    return jnp.transpose(out.reshape(n, oh, ow, cout), (0, 3, 1, 2))   # back to NCHW


# ----------------------------------------------------------------------------
# Deterministic parameter init (kaiming-normal fan_out, BN gamma=1 beta=0)
# ----------------------------------------------------------------------------
def _kaiming_conv(key, kh, kw, cin, cout):
    std = (2.0 / (cout * kh * kw)) ** 0.5
    return jax.random.normal(key, (kh, kw, cin, cout), jnp.float32) * std


def init_bottleneck_params(key, in_channel, out_channel, with_downsample):
    cout = 4 * out_channel      # expansion = 4
    ks = jax.random.split(key, 4)
    p = {
        "w1": _kaiming_conv(ks[0], 1, 1, in_channel, out_channel)[0, 0],
        "g1": jnp.ones((out_channel,), jnp.float32),
        "b1": jnp.zeros((out_channel,), jnp.float32),
        "w2": _kaiming_conv(ks[1], 3, 3, out_channel, out_channel),
        "g2": jnp.ones((out_channel,), jnp.float32),
        "b2": jnp.zeros((out_channel,), jnp.float32),
        "w3": _kaiming_conv(ks[2], 1, 1, out_channel, cout)[0, 0],
        "g3": jnp.ones((cout,), jnp.float32),
        "b3": jnp.zeros((cout,), jnp.float32),
    }
    if with_downsample:
        p["wd"] = _kaiming_conv(ks[3], 1, 1, in_channel, cout)[0, 0]
        p["gd"] = jnp.ones((cout,), jnp.float32)
        p["bd"] = jnp.zeros((cout,), jnp.float32)
    return p


if __name__ == "__main__":
    key = jax.random.PRNGKey(0)
    k1, k2, kx1, kx2 = jax.random.split(key, 4)
    fwd = jax.jit(bottleneck_forward, static_argnames=("stride", "out_dtype"))

    # Config A: identity shortcut (stride=1, in_channel == 4 * out_channel).
    pa = init_bottleneck_params(k1, in_channel=512, out_channel=128,
                                with_downsample=False)
    xa = jax.random.normal(kx1, (2, 512, 16, 16), jnp.float32)
    ya = jax.block_until_ready(fwd(pa, xa, stride=1))
    assert ya.shape == (2, 512, 16, 16), ya.shape
    assert bool(jnp.all(jnp.isfinite(ya)))
    assert bool(jnp.all(ya >= 0.0))

    # Config B: projection (downsample) shortcut, stride=2.
    pb = init_bottleneck_params(k2, in_channel=256, out_channel=128,
                                with_downsample=True)
    xb = jax.random.normal(kx2, (2, 256, 32, 32), jnp.float32)
    yb = jax.block_until_ready(fwd(pb, xb, stride=2))
    assert yb.shape == (2, 512, 16, 16), yb.shape
    assert bool(jnp.all(jnp.isfinite(yb)))
    assert bool(jnp.all(yb >= 0.0))

    print("KERNEL_OK")
</pallas_src>

<mosaic_0001>
module attributes {stable_mosaic.version = 11 : i64} {
  func.func @_head_kernel(%arg0: i32, %arg1: memref<512x512xbf16, #tpu.memory_space<vmem>>, %arg2: memref<512x128xbf16, #tpu.memory_space<vmem>>, %arg3: memref<512x128xbf16, #tpu.memory_space<vmem>>, %arg4: memref<1x2x128xf32, #tpu.memory_space<vmem>>) attributes {dimension_semantics = [#tpu.dimension_semantics<parallel>], iteration_bounds = array<i64: 1>, scalar_prefetch = 0 : i64, scratch_operands = 0 : i64, tpu.core_type = #tpu.core_type<tc>, window_params = [{transform_indices = @transform_0, window_bounds = array<i64: 512, 512>}, {pipeline_mode = #tpu.pipeline_mode<synchronous>, transform_indices = @transform_1, window_bounds = array<i64: 512, 128>}, {transform_indices = @transform_2, window_bounds = array<i64: 512, 128>}, {transform_indices = @transform_3, window_bounds = array<i64: 1, 2, 128>}]} {
    %c0 = arith.constant 0 : index
    %c0_0 = arith.constant 0 : index
    %0 = vector.load %arg1[%c0, %c0_0] : memref<512x512xbf16, #tpu.memory_space<vmem>>, vector<512x512xbf16>
    %c0_1 = arith.constant 0 : index
    %c0_2 = arith.constant 0 : index
    %1 = vector.load %arg2[%c0_1, %c0_2] : memref<512x128xbf16, #tpu.memory_space<vmem>>, vector<512x128xbf16>
    %cst = arith.constant dense<0.000000e+00> : vector<512x128xf32>
    %2 = tpu.matmul %0, %1, %cst {dimension_numbers = #tpu.dot_dimension_numbers<[1], [0], [0], [1], [0, 0, 1, 1], [], []>} : vector<512x512xbf16>, vector<512x128xbf16>, vector<512x128xf32> -> vector<512x128xf32>
    %3 = arith.truncf %2 : vector<512x128xf32> to vector<512x128xbf16>
    %c0_3 = arith.constant 0 : index
    %c0_4 = arith.constant 0 : index
    %4 = vector.load %arg3[%c0_3, %c0_4] : memref<512x128xbf16, #tpu.memory_space<vmem>>, vector<512x128xbf16>
    tpu.vector_store %arg3[%c0_3, %c0_4], %3 {strides = array<i32>} : memref<512x128xbf16, #tpu.memory_space<vmem>>, vector<512x128xbf16>,
    %cst_5 = arith.constant dense<0.000000e+00> : vector<128xf32>
    %5 = vector.multi_reduction <add>, %2, %cst_5 [0] : vector<512x128xf32> to vector<128xf32>
    %6 = vector.shape_cast %5 : vector<128xf32> to vector<1x128xf32>
    %7 = arith.mulf %2, %2 : vector<512x128xf32>
    %cst_6 = arith.constant dense<0.000000e+00> : vector<128xf32>
    %8 = vector.multi_reduction <add>, %7, %cst_6 [0] : vector<512x128xf32> to vector<128xf32>
    %9 = vector.shape_cast %8 : vector<128xf32> to vector<1x128xf32>
    %10 = tpu.concatenate %6, %9 in 0 : vector<1x128xf32>, vector<1x128xf32> -> vector<2x128xf32>
    %c0_7 = arith.constant 0 : index
    %c0_8 = arith.constant 0 : index
    %c0_9 = arith.constant 0 : index
    %11 = vector.load %arg4[%c0_7, %c0_8, %c0_9] : memref<1x2x128xf32, #tpu.memory_space<vmem>>, vector<1x2x128xf32>
    %12 = vector.shape_cast %11 : vector<1x2x128xf32> to vector<2x128xf32>
    %13 = vector.shape_cast %10 : vector<2x128xf32> to vector<1x2x128xf32>
    tpu.vector_store %arg4[%c0_7, %c0_8, %c0_9], %13 {strides = array<i32>} : memref<1x2x128xf32, #tpu.memory_space<vmem>>, vector<1x2x128xf32>,
    return
  }
  func.func @transform_0(%arg0: i32) -> (i32, i32) {
    %c0_i32 = arith.constant 0 : i32
    %c0_i32_0 = arith.constant 0 : i32
    return %arg0, %c0_i32 : i32, i32
  }
  func.func @transform_1(%arg0: i32) -> (i32, i32) {
    %c0_i32 = arith.constant 0 : i32
    %c0_i32_0 = arith.constant 0 : i32
    %c0_i32_1 = arith.constant 0 : i32
    return %c0_i32, %c0_i32_0 : i32, i32
  }
  func.func @transform_2(%arg0: i32) -> (i32, i32) {
    %c0_i32 = arith.constant 0 : i32
    %c0_i32_0 = arith.constant 0 : i32
    return %arg0, %c0_i32 : i32, i32
  }
  func.func @transform_3(%arg0: i32) -> (i32, i32, i32) {
    %c0_i32 = arith.constant 0 : i32
    %c0_i32_0 = arith.constant 0 : i32
    %c0_i32_1 = arith.constant 0 : i32
    return %arg0, %c0_i32, %c0_i32_0 : i32, i32, i32
  }
}

module attributes {stable_mosaic.version = 11 : i64} {
  func.func @_conv2_kernel(%arg0: i32, %arg1: memref<1x1x18x18x128xbf16, #tpu.memory_space<vmem>>, %arg2: memref<3x384x128xbf16, #tpu.memory_space<vmem>>, %arg3: memref<1x16x16x128xbf16, #tpu.memory_space<vmem>>, %arg4: memref<1x2x128xf32, #tpu.memory_space<vmem>>) attributes {dimension_semantics = [#tpu.dimension_semantics<parallel>], iteration_bounds = array<i64: 2>, scalar_prefetch = 0 : i64, scratch_operands = 0 : i64, tpu.core_type = #tpu.core_type<tc>, window_params = [{transform_indices = @transform_0, window_bounds = array<i64: 1, 1, 18, 18, 128>}, {pipeline_mode = #tpu.pipeline_mode<synchronous>, transform_indices = @transform_1, window_bounds = array<i64: 3, 384, 128>}, {transform_indices = @transform_2, window_bounds = array<i64: 1, 16, 16, 128>}, {transform_indices = @transform_3, window_bounds = array<i64: 1, 2, 128>}]} {
    %cst = arith.constant 0.000000e+00 : f32
    %0 = vector.broadcast %cst : f32 to vector<256x128xf32>
    %c0 = arith.constant 0 : index
    %c0_0 = arith.constant 0 : index
    %c0_1 = arith.constant 0 : index
    %c0_2 = arith.constant 0 : index
    %c0_3 = arith.constant 0 : index
    %1 = vector.load %arg1[%c0, %c0_0, %c0_1, %c0_2, %c0_3] : memref<1x1x18x18x128xbf16, #tpu.memory_space<vmem>>, vector<1x1x16x16x128xbf16>
    %2 = vector.shape_cast %1 : vector<1x1x16x16x128xbf16> to vector<16x16x128xbf16>
    %c0_4 = arith.constant 0 : index
    %c0_5 = arith.constant 0 : index
    %c0_6 = arith.constant 0 : index
    %c1 = arith.constant 1 : index
    %c0_7 = arith.constant 0 : index
    %3 = vector.load %arg1[%c0_4, %c0_5, %c0_6, %c1, %c0_7] : memref<1x1x18x18x128xbf16, #tpu.memory_space<vmem>>, vector<1x1x16x16x128xbf16>
    %4 = vector.shape_cast %3 : vector<1x1x16x16x128xbf16> to vector<16x16x128xbf16>
    %c0_8 = arith.constant 0 : index
    %c0_9 = arith.constant 0 : index
    %c0_10 = arith.constant 0 : index
    %c2 = arith.constant 2 : index
    %c0_11 = arith.constant 0 : index
    %5 = vector.load %arg1[%c0_8, %c0_9, %c0_10, %c2, %c0_11] : memref<1x1x18x18x128xbf16, #tpu.memory_space<vmem>>, vector<1x1x16x16x128xbf16>
    %6 = vector.shape_cast %5 : vector<1x1x16x16x128xbf16> to vector<16x16x128xbf16>
    %7 = tpu.concatenate %2, %4, %6 in 2 : vector<16x16x128xbf16>, vector<16x16x128xbf16>, vector<16x16x128xbf16> -> vector<16x16x384xbf16>
    %8 = vector.shape_cast %7 : vector<16x16x384xbf16> to vector<256x384xbf16>
    %c0_12 = arith.constant 0 : index
    %c0_13 = arith.constant 0 : index
    %c0_14 = arith.constant 0 : index
    %9 = vector.load %arg2[%c0_12, %c0_13, %c0_14] : memref<3x384x128xbf16, #tpu.memory_space<vmem>>, vector<1x384x128xbf16>
    %10 = vector.shape_cast %9 : vector<1x384x128xbf16> to vector<384x128xbf16>
    %cst_15 = arith.constant dense<0.000000e+00> : vector<256x128xf32>
    %11 = tpu.matmul %8, %10, %cst_15 {dimension_numbers = #tpu.dot_dimension_numbers<[1], [0], [0], [1], [0, 0, 1, 1], [], []>} : vector<256x384xbf16>, vector<384x128xbf16>, vector<256x128xf32> -> vector<256x128xf32>
    %12 = arith.addf %0, %11 : vector<256x128xf32>
    %c0_16 = arith.constant 0 : index
    %c0_17 = arith.constant 0 : index
    %c1_18 = arith.constant 1 : index
    %c0_19 = arith.constant 0 : index
    %c0_20 = arith.constant 0 : index
    %13 = vector.load %arg1[%c0_16, %c0_17, %c1_18, %c0_19, %c0_20] : memref<1x1x18x18x128xbf16, #tpu.memory_space<vmem>>, vector<1x1x16x16x128xbf16>
    %14 = vector.shape_cast %13 : vector<1x1x16x16x128xbf16> to vector<16x16x128xbf16>
    %c0_21 = arith.constant 0 : index
    %c0_22 = arith.constant 0 : index
    %c1_23 = arith.constant 1 : index
    %c1_24 = arith.constant 1 : index
    %c0_25 = arith.constant 0 : index
    %15 = vector.load %arg1[%c0_21, %c0_22, %c1_23, %c1_24, %c0_25] : memref<1x1x18x18x128xbf16, #tpu.memory_space<vmem>>, vector<1x1x16x16x128xbf16>
    %16 = vector.shape_cast %15 : vector<1x1x16x16x128xbf16> to vector<16x16x128xbf16>
    %c0_26 = arith.constant 0 : index
    %c0_27 = arith.constant 0 : index
    %c1_28 = arith.constant 1 : index
    %c2_29 = arith.constant 2 : index
    %c0_30 = arith.constant 0 : index
    %17 = vector.load %arg1[%c0_26, %c0_27, %c1_28, %c2_29, %c0_30] : memref<1x1x18x18x128xbf16, #tpu.memory_space<vmem>>, vector<1x1x16x16x128xbf16>
    %18 = vector.shape_cast %17 : vector<1x1x16x16x128xbf16> to vector<16x16x128xbf16>
    %19 = tpu.concatenate %14, %16, %18 in 2 : vector<16x16x128xbf16>, vector<16x16x128xbf16>, vector<16x16x128xbf16> -> vector<16x16x384xbf16>
    %20 = vector.shape_cast %19 : vector<16x16x384xbf16> to vector<256x384xbf16>
    %c1_31 = arith.constant 1 : index
    %c0_32 = arith.constant 0 : index
    %c0_33 = arith.constant 0 : index
    %21 = vector.load %arg2[%c1_31, %c0_32, %c0_33] : memref<3x384x128xbf16, #tpu.memory_space<vmem>>, vector<1x384x128xbf16>
    %22 = vector.shape_cast %21 : vector<1x384x128xbf16> to vector<384x128xbf16>
    %cst_34 = arith.constant dense<0.000000e+00> : vector<256x128xf32>
    %23 = tpu.matmul %20, %22, %cst_34 {dimension_numbers = #tpu.dot_dimension_numbers<[1], [0], [0], [1], [0, 0, 1, 1], [], []>} : vector<256x384xbf16>, vector<384x128xbf16>, vector<256x128xf32> -> vector<256x128xf32>
    %24 = arith.addf %12, %23 : vector<256x128xf32>
    %c0_35 = arith.constant 0 : index
    %c0_36 = arith.constant 0 : index
    %c2_37 = arith.constant 2 : index
    %c0_38 = arith.constant 0 : index
    %c0_39 = arith.constant 0 : index
    %25 = vector.load %arg1[%c0_35, %c0_36, %c2_37, %c0_38, %c0_39] : memref<1x1x18x18x128xbf16, #tpu.memory_space<vmem>>, vector<1x1x16x16x128xbf16>
    %26 = vector.shape_cast %25 : vector<1x1x16x16x128xbf16> to vector<16x16x128xbf16>
    %c0_40 = arith.constant 0 : index
    %c0_41 = arith.constant 0 : index
    %c2_42 = arith.constant 2 : index
    %c1_43 = arith.constant 1 : index
    %c0_44 = arith.constant 0 : index
    %27 = vector.load %arg1[%c0_40, %c0_41, %c2_42, %c1_43, %c0_44] : memref<1x1x18x18x128xbf16, #tpu.memory_space<vmem>>, vector<1x1x16x16x128xbf16>
    %28 = vector.shape_cast %27 : vector<1x1x16x16x128xbf16> to vector<16x16x128xbf16>
    %c0_45 = arith.constant 0 : index
    %c0_46 = arith.constant 0 : index
    %c2_47 = arith.constant 2 : index
    %c2_48 = arith.constant 2 : index
    %c0_49 = arith.constant 0 : index
    %29 = vector.load %arg1[%c0_45, %c0_46, %c2_47, %c2_48, %c0_49] : memref<1x1x18x18x128xbf16, #tpu.memory_space<vmem>>, vector<1x1x16x16x128xbf16>
    %30 = vector.shape_cast %29 : vector<1x1x16x16x128xbf16> to vector<16x16x128xbf16>
    %31 = tpu.concatenate %26, %28, %30 in 2 : vector<16x16x128xbf16>, vector<16x16x128xbf16>, vector<16x16x128xbf16> -> vector<16x16x384xbf16>
    %32 = vector.shape_cast %31 : vector<16x16x384xbf16> to vector<256x384xbf16>
    %c2_50 = arith.constant 2 : index
    %c0_51 = arith.constant 0 : index
    %c0_52 = arith.constant 0 : index
    %33 = vector.load %arg2[%c2_50, %c0_51, %c0_52] : memref<3x384x128xbf16, #tpu.memory_space<vmem>>, vector<1x384x128xbf16>
    %34 = vector.shape_cast %33 : vector<1x384x128xbf16> to vector<384x128xbf16>
    %cst_53 = arith.constant dense<0.000000e+00> : vector<256x128xf32>
    %35 = tpu.matmul %32, %34, %cst_53 {dimension_numbers = #tpu.dot_dimension_numbers<[1], [0], [0], [1], [0, 0, 1, 1], [], []>} : vector<256x384xbf16>, vector<384x128xbf16>, vector<256x128xf32> -> vector<256x128xf32>
    %36 = arith.addf %24, %35 : vector<256x128xf32>
    %37 = vector.shape_cast %36 : vector<256x128xf32> to vector<16x16x128xf32>
    %38 = arith.truncf %37 : vector<16x16x128xf32> to vector<16x16x128xbf16>
    %c0_54 = arith.constant 0 : index
    %c0_55 = arith.constant 0 : index
    %c0_56 = arith.constant 0 : index
    %c0_57 = arith.constant 0 : index
    %39 = vector.load %arg3[%c0_54, %c0_55, %c0_56, %c0_57] : memref<1x16x16x128xbf16, #tpu.memory_space<vmem>>, vector<1x16x16x128xbf16>
    %40 = vector.shape_cast %39 : vector<1x16x16x128xbf16> to vector<16x16x128xbf16>
    %41 = vector.shape_cast %38 : vector<16x16x128xbf16> to vector<1x16x16x128xbf16>
    tpu.vector_store %arg3[%c0_54, %c0_55, %c0_56, %c0_57], %41 {strides = array<i32>} : memref<1x16x16x128xbf16, #tpu.memory_space<vmem>>, vector<1x16x16x128xbf16>,
    %cst_58 = arith.constant dense<0.000000e+00> : vector<128xf32>
    %42 = vector.multi_reduction <add>, %36, %cst_58 [0] : vector<256x128xf32> to vector<128xf32>
    %43 = vector.shape_cast %42 : vector<128xf32> to vector<1x128xf32>
    %44 = arith.mulf %36, %36 : vector<256x128xf32>
    %cst_59 = arith.constant dense<0.000000e+00> : vector<128xf32>
    %45 = vector.multi_reduction <add>, %44, %cst_59 [0] : vector<256x128xf32> to vector<128xf32>
    %46 = vector.shape_cast %45 : vector<128xf32> to vector<1x128xf32>
    %47 = tpu.concatenate %43, %46 in 0 : vector<1x128xf32>, vector<1x128xf32> -> vector<2x128xf32>
    %c0_60 = arith.constant 0 : index
    %c0_61 = arith.constant 0 : index
    %c0_62 = arith.constant 0 : index
    %48 = vector.load %arg4[%c0_60, %c0_61, %c0_62] : memref<1x2x128xf32, #tpu.memory_space<vmem>>, vector<1x2x128xf32>
    %49 = vector.shape_cast %48 : vector<1x2x128xf32> to vector<2x128xf32>
    %50 = vector.shape_cast %47 : vector<2x128xf32> to vector<1x2x128xf32>
    tpu.vector_store %arg4[%c0_60, %c0_61, %c0_62], %50 {strides = array<i32>} : memref<1x2x128xf32, #tpu.memory_space<vmem>>, vector<1x2x128xf32>,
    return
  }
  func.func @transform_0(%arg0: i32) -> (i32, i32, i32, i32, i32) {
    %c0_i32 = arith.constant 0 : i32
    %c0_i32_0 = arith.constant 0 : i32
    %c0_i32_1 = arith.constant 0 : i32
    %c0_i32_2 = arith.constant 0 : i32
    %c0_i32_3 = arith.constant 0 : i32
    return %c0_i32, %arg0, %c0_i32_0, %c0_i32_1, %c0_i32_2 : i32, i32, i32, i32, i32
  }
  func.func @transform_1(%arg0: i32) -> (i32, i32, i32) {
    %c0_i32 = arith.constant 0 : i32
    %c0_i32_0 = arith.constant 0 : i32
    %c0_i32_1 = arith.constant 0 : i32
    %c0_i32_2 = arith.constant 0 : i32
    return %c0_i32, %c0_i32_0, %c0_i32_1 : i32, i32, i32
  }
  func.func @transform_2(%arg0: i32) -> (i32, i32, i32, i32) {
    %c0_i32 = arith.constant 0 : i32
    %c0_i32_0 = arith.constant 0 : i32
    %c0_i32_1 = arith.constant 0 : i32
    %c0_i32_2 = arith.constant 0 : i32
    return %arg0, %c0_i32, %c0_i32_0, %c0_i32_1 : i32, i32, i32, i32
  }
  func.func @transform_3(%arg0: i32) -> (i32, i32, i32) {
    %c0_i32 = arith.constant 0 : i32
    %c0_i32_0 = arith.constant 0 : i32
    %c0_i32_1 = arith.constant 0 : i32
    return %arg0, %c0_i32, %c0_i32_0 : i32, i32, i32
  }
}

module attributes {stable_mosaic.version = 11 : i64} {
  func.func @_mid_kernel(%arg0: i32, %arg1: memref<512x128xbf16, #tpu.memory_space<vmem>>, %arg2: memref<1x128xf32, #tpu.memory_space<vmem>>, %arg3: memref<1x128xf32, #tpu.memory_space<vmem>>, %arg4: memref<128x512xbf16, #tpu.memory_space<vmem>>, %arg5: memref<512x512xbf16, #tpu.memory_space<vmem>>, %arg6: memref<1x2x512xf32, #tpu.memory_space<vmem>>) attributes {dimension_semantics = [#tpu.dimension_semantics<parallel>], iteration_bounds = array<i64: 1>, scalar_prefetch = 0 : i64, scratch_operands = 0 : i64, tpu.core_type = #tpu.core_type<tc>, window_params = [{transform_indices = @transform_0, window_bounds = array<i64: 512, 128>}, {pipeline_mode = #tpu.pipeline_mode<synchronous>, transform_indices = @transform_1, window_bounds = array<i64: 1, 128>}, {pipeline_mode = #tpu.pipeline_mode<synchronous>, transform_indices = @transform_2, window_bounds = array<i64: 1, 128>}, {pipeline_mode = #tpu.pipeline_mode<synchronous>, transform_indices = @transform_3, window_bounds = array<i64: 128, 512>}, {transform_indices = @transform_4, window_bounds = array<i64: 512, 512>}, {transform_indices = @transform_5, window_bounds = array<i64: 1, 2, 512>}]} {
    %c0 = arith.constant 0 : index
    %c0_0 = arith.constant 0 : index
    %0 = vector.load %arg1[%c0, %c0_0] : memref<512x128xbf16, #tpu.memory_space<vmem>>, vector<512x128xbf16>
    %1 = arith.extf %0 : vector<512x128xbf16> to vector<512x128xf32>
    %c0_1 = arith.constant 0 : index
    %c0_2 = arith.constant 0 : index
    %2 = vector.load %arg2[%c0_1, %c0_2] : memref<1x128xf32, #tpu.memory_space<vmem>>, vector<1x128xf32>
    %3 = vector.broadcast %2 : vector<1x128xf32> to vector<512x128xf32>
    %4 = arith.mulf %1, %3 : vector<512x128xf32>
    %c0_3 = arith.constant 0 : index
    %c0_4 = arith.constant 0 : index
    %5 = vector.load %arg3[%c0_3, %c0_4] : memref<1x128xf32, #tpu.memory_space<vmem>>, vector<1x128xf32>
    %6 = vector.broadcast %5 : vector<1x128xf32> to vector<512x128xf32>
    %7 = arith.addf %4, %6 : vector<512x128xf32>
    %cst = arith.constant 0.000000e+00 : f32
    %8 = vector.broadcast %cst : f32 to vector<512x128xf32>
    %9 = arith.maximumf %7, %8 : vector<512x128xf32>
    %10 = arith.truncf %9 : vector<512x128xf32> to vector<512x128xbf16>
    %c0_5 = arith.constant 0 : index
    %c0_6 = arith.constant 0 : index
    %11 = vector.load %arg4[%c0_5, %c0_6] : memref<128x512xbf16, #tpu.memory_space<vmem>>, vector<128x512xbf16>
    %cst_7 = arith.constant dense<0.000000e+00> : vector<512x512xf32>
    %12 = tpu.matmul %10, %11, %cst_7 {dimension_numbers = #tpu.dot_dimension_numbers<[1], [0], [0], [1], [0, 0, 1, 1], [], []>} : vector<512x128xbf16>, vector<128x512xbf16>, vector<512x512xf32> -> vector<512x512xf32>
    %13 = arith.truncf %12 : vector<512x512xf32> to vector<512x512xbf16>
    %c0_8 = arith.constant 0 : index
    %c0_9 = arith.constant 0 : index
    %14 = vector.load %arg5[%c0_8, %c0_9] : memref<512x512xbf16, #tpu.memory_space<vmem>>, vector<512x512xbf16>
    tpu.vector_store %arg5[%c0_8, %c0_9], %13 {strides = array<i32>} : memref<512x512xbf16, #tpu.memory_space<vmem>>, vector<512x512xbf16>,
    %cst_10 = arith.constant dense<0.000000e+00> : vector<512xf32>
    %15 = vector.multi_reduction <add>, %12, %cst_10 [0] : vector<512x512xf32> to vector<512xf32>
    %16 = vector.shape_cast %15 : vector<512xf32> to vector<1x512xf32>
    %17 = arith.mulf %12, %12 : vector<512x512xf32>
    %cst_11 = arith.constant dense<0.000000e+00> : vector<512xf32>
    %18 = vector.multi_reduction <add>, %17, %cst_11 [0] : vector<512x512xf32> to vector<512xf32>
    %19 = vector.shape_cast %18 : vector<512xf32> to vector<1x512xf32>
    %20 = tpu.concatenate %16, %19 in 0 : vector<1x512xf32>, vector<1x512xf32> -> vector<2x512xf32>
    %c0_12 = arith.constant 0 : index
    %c0_13 = arith.constant 0 : index
    %c0_14 = arith.constant 0 : index
    %21 = vector.load %arg6[%c0_12, %c0_13, %c0_14] : memref<1x2x512xf32, #tpu.memory_space<vmem>>, vector<1x2x512xf32>
    %22 = vector.shape_cast %21 : vector<1x2x512xf32> to vector<2x512xf32>
    %23 = vector.shape_cast %20 : vector<2x512xf32> to vector<1x2x512xf32>
    tpu.vector_store %arg6[%c0_12, %c0_13, %c0_14], %23 {strides = array<i32>} : memref<1x2x512xf32, #tpu.memory_space<vmem>>, vector<1x2x512xf32>,
    return
  }
  func.func @transform_0(%arg0: i32) -> (i32, i32) {
    %c0_i32 = arith.constant 0 : i32
    %c0_i32_0 = arith.constant 0 : i32
    return %arg0, %c0_i32 : i32, i32
  }
  func.func @transform_1(%arg0: i32) -> (i32, i32) {
    %c0_i32 = arith.constant 0 : i32
    %c0_i32_0 = arith.constant 0 : i32
    %c0_i32_1 = arith.constant 0 : i32
    return %c0_i32, %c0_i32_0 : i32, i32
  }
  func.func @transform_2(%arg0: i32) -> (i32, i32) {
    %c0_i32 = arith.constant 0 : i32
    %c0_i32_0 = arith.constant 0 : i32
    %c0_i32_1 = arith.constant 0 : i32
    return %c0_i32, %c0_i32_0 : i32, i32
  }
  func.func @transform_3(%arg0: i32) -> (i32, i32) {
    %c0_i32 = arith.constant 0 : i32
    %c0_i32_0 = arith.constant 0 : i32
    %c0_i32_1 = arith.constant 0 : i32
    return %c0_i32, %c0_i32_0 : i32, i32
  }
  func.func @transform_4(%arg0: i32) -> (i32, i32) {
    %c0_i32 = arith.constant 0 : i32
    %c0_i32_0 = arith.constant 0 : i32
    return %arg0, %c0_i32 : i32, i32
  }
  func.func @transform_5(%arg0: i32) -> (i32, i32, i32) {
    %c0_i32 = arith.constant 0 : i32
    %c0_i32_0 = arith.constant 0 : i32
    %c0_i32_1 = arith.constant 0 : i32
    return %arg0, %c0_i32, %c0_i32_0 : i32, i32, i32
  }
}

module attributes {stable_mosaic.version = 11 : i64} {
  func.func @_final_id_kernel(%arg0: i32, %arg1: memref<512x512xbf16, #tpu.memory_space<vmem>>, %arg2: memref<1x512xf32, #tpu.memory_space<vmem>>, %arg3: memref<1x512xf32, #tpu.memory_space<vmem>>, %arg4: memref<512x512xf32, #tpu.memory_space<vmem>>, %arg5: memref<512x512xf32, #tpu.memory_space<vmem>>) attributes {dimension_semantics = [#tpu.dimension_semantics<parallel>], iteration_bounds = array<i64: 1>, scalar_prefetch = 0 : i64, scratch_operands = 0 : i64, tpu.core_type = #tpu.core_type<tc>, window_params = [{transform_indices = @transform_0, window_bounds = array<i64: 512, 512>}, {pipeline_mode = #tpu.pipeline_mode<synchronous>, transform_indices = @transform_1, window_bounds = array<i64: 1, 512>}, {pipeline_mode = #tpu.pipeline_mode<synchronous>, transform_indices = @transform_2, window_bounds = array<i64: 1, 512>}, {transform_indices = @transform_3, window_bounds = array<i64: 512, 512>}, {transform_indices = @transform_4, window_bounds = array<i64: 512, 512>}]} {
    %c0 = arith.constant 0 : index
    %c0_0 = arith.constant 0 : index
    %0 = vector.load %arg1[%c0, %c0_0] : memref<512x512xbf16, #tpu.memory_space<vmem>>, vector<512x512xbf16>
    %1 = arith.extf %0 : vector<512x512xbf16> to vector<512x512xf32>
    %c0_1 = arith.constant 0 : index
    %c0_2 = arith.constant 0 : index
    %2 = vector.load %arg2[%c0_1, %c0_2] : memref<1x512xf32, #tpu.memory_space<vmem>>, vector<1x512xf32>
    %3 = vector.broadcast %2 : vector<1x512xf32> to vector<512x512xf32>
    %4 = arith.mulf %1, %3 : vector<512x512xf32>
    %c0_3 = arith.constant 0 : index
    %c0_4 = arith.constant 0 : index
    %5 = vector.load %arg3[%c0_3, %c0_4] : memref<1x512xf32, #tpu.memory_space<vmem>>, vector<1x512xf32>
    %6 = vector.broadcast %5 : vector<1x512xf32> to vector<512x512xf32>
    %7 = arith.addf %4, %6 : vector<512x512xf32>
    %c0_5 = arith.constant 0 : index
    %c0_6 = arith.constant 0 : index
    %8 = vector.load %arg4[%c0_5, %c0_6] : memref<512x512xf32, #tpu.memory_space<vmem>>, vector<512x512xf32>
    %9 = arith.addf %7, %8 : vector<512x512xf32>
    %cst = arith.constant 0.000000e+00 : f32
    %10 = vector.broadcast %cst : f32 to vector<512x512xf32>
    %11 = arith.maximumf %9, %10 : vector<512x512xf32>
    %c0_7 = arith.constant 0 : index
    %c0_8 = arith.constant 0 : index
    %12 = vector.load %arg5[%c0_7, %c0_8] : memref<512x512xf32, #tpu.memory_space<vmem>>, vector<512x512xf32>
    tpu.vector_store %arg5[%c0_7, %c0_8], %11 {strides = array<i32>} : memref<512x512xf32, #tpu.memory_space<vmem>>, vector<512x512xf32>,
    return
  }
  func.func @transform_0(%arg0: i32) -> (i32, i32) {
    %c0_i32 = arith.constant 0 : i32
    %c0_i32_0 = arith.constant 0 : i32
    return %arg0, %c0_i32 : i32, i32
  }
  func.func @transform_1(%arg0: i32) -> (i32, i32) {
    %c0_i32 = arith.constant 0 : i32
    %c0_i32_0 = arith.constant 0 : i32
    %c0_i32_1 = arith.constant 0 : i32
    return %c0_i32, %c0_i32_0 : i32, i32
  }
  func.func @transform_2(%arg0: i32) -> (i32, i32) {
    %c0_i32 = arith.constant 0 : i32
    %c0_i32_0 = arith.constant 0 : i32
    %c0_i32_1 = arith.constant 0 : i32
    return %c0_i32, %c0_i32_0 : i32, i32
  }
  func.func @transform_3(%arg0: i32) -> (i32, i32) {
    %c0_i32 = arith.constant 0 : i32
    %c0_i32_0 = arith.constant 0 : i32
    return %arg0, %c0_i32 : i32, i32
  }
  func.func @transform_4(%arg0: i32) -> (i32, i32) {
    %c0_i32 = arith.constant 0 : i32
    %c0_i32_0 = arith.constant 0 : i32
    return %arg0, %c0_i32 : i32, i32
  }
}

</mosaic_0001>

<bundles_post_ra>
// kernel: bottleneck_forward.4
= control target key start
LH: loop header
LB: loop body
LE: loop exit
PB: predicated region body
PF: predicated region fallthrough
CT: control target
= control target key end

     0   :  { %v2917_v0 = vmov 0   ;;  %vm2138_vm0 = vcmask 1040384   ;;  %s3549_s1 = inlined_call_operand.vmem [shape: bf16[512,128], index: 1, kind: input, shape index: {}]   ;;  %s3550_s0 = inlined_call_operand.vmem [shape: bf16[512,512], index: 0, kind: input, shape index: {}]   ;;  %s3551_s2 = inlined_call_operand.vmem [shape: bf16[512,128], index: 2, kind: output, shape index: {0}]   ;;  %s3552_s3 = inlined_call_operand.vmem [shape: f32[1,2,128], index: 3, kind: output, shape index: {1}]  }
   0x1   :  { %1038 = vmatprep.subr.bf16.mxu1 %v2917_v0  ;;  %1327 = vmatprep.subr.bf16.mxu0 %v2917_v0  ;;  %v2693_v1 = vld [vmem:[%s3549_s1] sm:$0xff]   ;;  %v2695_v3 = vld [vmem:[%s3549_s1 + $0x8] sm:$0xff]   ;;  %v2697_v5 = vld [vmem:[%s3549_s1 + $0x10] sm:$0xff]  }
   0x2   :  { %v2694_v2 = vld [vmem:[%s3549_s1 + $0x80] sm:$0xff]   ;;  %1039 = vmatpush1.bf16.msra.mxu1 %v2693_v1  ;;  %v2696_v4 = vld [vmem:[%s3549_s1 + $0x88] sm:$0xff]   ;;  %v2698_v6 = vld [vmem:[%s3549_s1 + $0x90] sm:$0xff]  }
   0x3   :  { %1328 = vmatpush1.bf16.msra.mxu0 %v2694_v2  ;;  %1040 = vmatprep.subr.bf16.mxu1 %v2917_v0  ;;  %v2699_v7 = vld [vmem:[%s3549_s1 + $0x18] sm:$0xff]   ;;  %v2701_v9 = vld [vmem:[%s3549_s1 + $0x20] sm:$0xff]   ;;  %v2703_v11 = vld [vmem:[%s3549_s1 + $0x28] sm:$0xff]  }
   0x4   :  { %1329 = vmatprep.subr.bf16.mxu0 %v2917_v0  ;;  %v2700_v8 = vld [vmem:[%s3549_s1 + $0x98] sm:$0xff]   ;;  %v2702_v10 = vld [vmem:[%s3549_s1 + $0xa0] sm:$0xff]   ;;  %v2704_v12 = vld [vmem:[%s3549_s1 + $0xa8] sm:$0xff]  }
   0x5   :  { %v2705_v13 = vld [vmem:[%s3549_s1 + $0x30] sm:$0xff]   ;;  %v2707_v15 = vld [vmem:[%s3549_s1 + $0x38] sm:$0xff]   ;;  %v2709_v17 = vld [vmem:[%s3549_s1 + $0x40] sm:$0xff]  }
   0x6   :  { %1041 = vmatpush1.bf16.msra.mxu1 %v2695_v3  ;;  %v2706_v14 = vld [vmem:[%s3549_s1 + $0xb0] sm:$0xff]   ;;  %v2708_v16 = vld [vmem:[%s3549_s1 + $0xb8] sm:$0xff]   ;;  %v2710_v18 = vld [vmem:[%s3549_s1 + $0xc0] sm:$0xff]  }
   0x7   :  { %1330 = vmatpush1.bf16.msra.mxu0 %v2696_v4  ;;  %1042 = vmatprep.subr.bf16.mxu1 %v2917_v0  ;;  %v2727_v19 = vld [vmem:[%s3550_s0 + $0x4] ss:$16 sps:$4 sm:$0xff]   ;;  %v2711_v20 = vld [vmem:[%s3549_s1 + $0x48] sm:$0xff]   ;;  %v2715_v25 = vld [vmem:[%s3549_s1 + $0x58] sm:$0xff]  }
   0x8   :  { %1331 = vmatprep.subr.bf16.mxu0 %v2917_v0  ;;  %v2730_v21 = vld [vmem:[%s3550_s0 + $0xc] ss:$16 sps:$4 sm:$0xff]   ;;  %1070 = vmatprep.mubr.bf16.mxu1 %v2727_v19  ;;  %v2713_v23 = vld [vmem:[%s3549_s1 + $0x50] sm:$0xff]   ;;  %v2717_v27 = vld [vmem:[%s3549_s1 + $0x60] sm:$0xff]  }
   0x9   :  { %v2712_v22 = vld [vmem:[%s3549_s1 + $0xc8] sm:$0xff]   ;;  %1359 = vmatprep.mubr.bf16.mxu0 %v2730_v21  ;;  %v2714_v24 = vld [vmem:[%s3549_s1 + $0xd0] sm:$0xff]   ;;  %v2716_v26 = vld [vmem:[%s3549_s1 + $0xd8] sm:$0xff]  }
   0xa   :  { %1043 = vmatpush1.bf16.msra.mxu1 %v2697_v5  ;;  %v2718_v28 = vld [vmem:[%s3549_s1 + $0xe0] sm:$0xff]   ;;  %v2719_v29 = vld [vmem:[%s3549_s1 + $0x68] sm:$0xff]   ;;  %v2721_v31 = vld [vmem:[%s3549_s1 + $0x70] sm:$0xff]  }
   0xb   :  { %1332 = vmatpush1.bf16.msra.mxu0 %v2698_v6  ;;  %1044 = vmatprep.subr.bf16.mxu1 %v2917_v0  ;;  %v2720_v30 = vld [vmem:[%s3549_s1 + $0xe8] sm:$0xff]   ;;  %v2722_v32 = vld [vmem:[%s3549_s1 + $0xf0] sm:$0xff]   ;;  %v2723_v33 = vld [vmem:[%s3549_s1 + $0x78] sm:$0xff]  }
   0xc   :  { %1333 = vmatprep.subr.bf16.mxu0 %v2917_v0  ;;  %v2724_v34 = vld [vmem:[%s3549_s1 + $0xf8] sm:$0xff]   ;;  %v2725_v35 = vld [vmem:[%s3550_s0] ss:$16 sps:$4 sm:$0xff]   ;;  %v2731_v37 = vld [vmem:[%s3550_s0 + $0x24] ss:$16 sps:$4 sm:$0xff]  }
   0xd   :  { %v2728_v36 = vld [vmem:[%s3550_s0 + $0x8] ss:$16 sps:$4 sm:$0xff]   ;;  %v2733_v38 = vld [vmem:[%s3550_s0 + $0x2c] ss:$16 sps:$4 sm:$0xff]   ;;  %v2735_v39 = vld [vmem:[%s3550_s0 + $0x20] ss:$16 sps:$4 sm:$0xff]  }
   0xe   :  { %1045 = vmatpush1.bf16.msra.mxu1 %v2699_v7  ;;  %v2736_v40 = vld [vmem:[%s3550_s0 + $0x28] ss:$16 sps:$4 sm:$0xff]   ;;  %v2737_v41 = vld [vmem:[%s3550_s0 + $0x44] ss:$16 sps:$4 sm:$0xff]   ;;  %v2739_v42 = vld [vmem:[%s3550_s0 + $0x4c] ss:$16 sps:$4 sm:$0xff]  }
   0xf   :  { %1334 = vmatpush1.bf16.msra.mxu0 %v2700_v8  ;;  %1046 = vmatprep.subr.bf16.mxu1 %v2917_v0  ;;  %v2741_v43 = vld [vmem:[%s3550_s0 + $0x40] ss:$16 sps:$4 sm:$0xff]   ;;  %v2742_v44 = vld [vmem:[%s3550_s0 + $0x48] ss:$16 sps:$4 sm:$0xff]   ;;  %v2743_v45 = vld [vmem:[%s3550_s0 + $0x64] ss:$16 sps:$4 sm:$0xff]  }
  0x10   :  { %1335 = vmatprep.subr.bf16.mxu0 %v2917_v0  ;;  %v2745_v46 = vld [vmem:[%s3550_s0 + $0x6c] ss:$16 sps:$4 sm:$0xff]   ;;  %v2747_v47 = vld [vmem:[%s3550_s0 + $0x60] ss:$16 sps:$4 sm:$0xff]   ;;  %v2748_v48 = vld [vmem:[%s3550_s0 + $0x68] ss:$16 sps:$4 sm:$0xff]  }
  0x11   :  { %v2749_v49 = vld [vmem:[%s3550_s0 + $0x84] ss:$16 sps:$4 sm:$0xff]   ;;  %v2751_v50 = vld [vmem:[%s3550_s0 + $0x8c] ss:$16 sps:$4 sm:$0xff]   ;;  %v2753_v51 = vld [vmem:[%s3550_s0 + $0x80] ss:$16 sps:$4 sm:$0xff]  }
  0x12   :  { %1047 = vmatpush1.bf16.msra.mxu1 %v2701_v9  ;;  %v2754_v52 = vld [vmem:[%s3550_s0 + $0x88] ss:$16 sps:$4 sm:$0xff]   ;;  %v2755_v53 = vld [vmem:[%s3550_s0 + $0xa4] ss:$16 sps:$4 sm:$0xff]   ;;  %v2757_v54 = vld [vmem:[%s3550_s0 + $0xac] ss:$16 sps:$4 sm:$0xff]  }
  0x13   :  { %1336 = vmatpush1.bf16.msra.mxu0 %v2702_v10  ;;  %1048 = vmatprep.subr.bf16.mxu1 %v2917_v0  ;;  %v2759_v55 = vld [vmem:[%s3550_s0 + $0xa0] ss:$16 sps:$4 sm:$0xff]   ;;  %v2760_v56 = vld [vmem:[%s3550_s0 + $0xa8] ss:$16 sps:$4 sm:$0xff]   ;;  %v2761_v57 = vld [vmem:[%s3550_s0 + $0xc4] ss:$16 sps:$4 sm:$0xff]  }
  0x14   :  { %1337 = vmatprep.subr.bf16.mxu0 %v2917_v0  ;;  %v2763_v58 = vld [vmem:[%s3550_s0 + $0xcc] ss:$16 sps:$4 sm:$0xff]   ;;  %v2765_v59 = vld [vmem:[%s3550_s0 + $0xc0] ss:$16 sps:$4 sm:$0xff]   ;;  %v2766_v60 = vld [vmem:[%s3550_s0 + $0xc8] ss:$16 sps:$4 sm:$0xff]  }
  0x15   :  { %v2767_v61 = vld [vmem:[%s3550_s0 + $0xe4] ss:$16 sps:$4 sm:$0xff]   ;;  %v2769_v62 = vld [vmem:[%s3550_s0 + $0xec] ss:$16 sps:$4 sm:$0xff]   ;;  %v2771_v63 = vld [vmem:[%s3550_s0 + $0xe0] ss:$16 sps:$4 sm:$0xff]  }
  0x16   :  { %1049 = vmatpush1.bf16.msra.mxu1 %v2703_v11  ;;  %v2773_v1 = vld [vmem:[%s3550_s0 + $0x104] ss:$16 sps:$4 sm:$0xff]   ;;  %v2775_v2 = vld [vmem:[%s3550_s0 + $0x10c] ss:$16 sps:$4 sm:$0xff]   ;;  %v2777_v3 = vld [vmem:[%s3550_s0 + $0x100] ss:$16 sps:$4 sm:$0xff]  }
  0x17   :  { %1338 = vmatpush1.bf16.msra.mxu0 %v2704_v12  ;;  %1050 = vmatprep.subr.bf16.mxu1 %v2917_v0  ;;  %v2778_v4 = vld [vmem:[%s3550_s0 + $0x108] ss:$16 sps:$4 sm:$0xff]   ;;  %v2779_v5 = vld [vmem:[%s3550_s0 + $0x124] ss:$16 sps:$4 sm:$0xff]   ;;  %v2781_v6 = vld [vmem:[%s3550_s0 + $0x12c] ss:$16 sps:$4 sm:$0xff]  }
  0x18   :  { %1339 = vmatprep.subr.bf16.mxu0 %v2917_v0  ;;  %v2783_v7 = vld [vmem:[%s3550_s0 + $0x120] ss:$16 sps:$4 sm:$0xff]   ;;  %v2784_v8 = vld [vmem:[%s3550_s0 + $0x128] ss:$16 sps:$4 sm:$0xff]   ;;  %v2785_v9 = vld [vmem:[%s3550_s0 + $0x144] ss:$16 sps:$4 sm:$0xff]  }
  0x19   :  { %v2787_v10 = vld [vmem:[%s3550_s0 + $0x14c] ss:$16 sps:$4 sm:$0xff]   ;;  %v2789_v11 = vld [vmem:[%s3550_s0 + $0x140] ss:$16 sps:$4 sm:$0xff]   ;;  %v2790_v12 = vld [vmem:[%s3550_s0 + $0x148] ss:$16 sps:$4 sm:$0xff]  }
  0x1a   :  { %1051 = vmatpush1.bf16.msra.mxu1 %v2705_v13  ;;  %v2791_v13 = vld [vmem:[%s3550_s0 + $0x164] ss:$16 sps:$4 sm:$0xff]   ;;  %v2801_v19 = vld [vmem:[%s3550_s0 + $0x180] ss:$16 sps:$4 sm:$0xff]  }
  0x1b   :  { %1340 = vmatpush1.bf16.msra.mxu0 %v2706_v14  ;;  %1052 = vmatprep.subr.bf16.mxu1 %v2917_v0  ;;  %v2793_v14 = vld [vmem:[%s3550_s0 + $0x16c] ss:$16 sps:$4 sm:$0xff]   ;;  %v2803_v21 = vld [vmem:[%s3550_s0 + $0x1a4] ss:$16 sps:$4 sm:$0xff]  }
  0x1c   :  { %1341 = vmatprep.subr.bf16.mxu0 %v2917_v0 }
  0x1e   :  { %1053 = vmatpush1.bf16.msra.mxu1 %v2707_v15  ;;  %v2795_v15 = vld [vmem:[%s3550_s0 + $0x160] ss:$16 sps:$4 sm:$0xff]  }
  0x1f   :  { %1342 = vmatpush1.bf16.msra.mxu0 %v2708_v16  ;;  %1054 = vmatprep.subr.bf16.mxu1 %v2917_v0  ;;  %v2796_v16 = vld [vmem:[%s3550_s0 + $0x168] ss:$16 sps:$4 sm:$0xff]  }
  0x20   :  { %1343 = vmatprep.subr.bf16.mxu0 %v2917_v0 }
  0x22   :  { %1055 = vmatpush1.bf16.msra.mxu1 %v2709_v17  ;;  %v2797_v17 = vld [vmem:[%s3550_s0 + $0x184] ss:$16 sps:$4 sm:$0xff]  }
  0x23   :  { %1344 = vmatpush1.bf16.msra.mxu0 %v2710_v18  ;;  %1056 = vmatprep.subr.bf16.mxu1 %v2917_v0  ;;  %v2799_v18 = vld [vmem:[%s3550_s0 + $0x18c] ss:$16 sps:$4 sm:$0xff]  }
  0x24   :  { %1345 = vmatprep.subr.bf16.mxu0 %v2917_v0 }
  0x26   :  { %1057 = vmatpush1.bf16.msra.mxu1 %v2711_v20  ;;  %v2802_v20 = vld [vmem:[%s3550_s0 + $0x188] ss:$16 sps:$4 sm:$0xff]  }
  0x27   :  { %1346 = vmatpush1.bf16.msra.mxu0 %v2712_v22  ;;  %1058 = vmatprep.subr.bf16.mxu1 %v2917_v0  ;;  %v2805_v22 = vld [vmem:[%s3550_s0 + $0x1ac] ss:$16 sps:$4 sm:$0xff]  }
  0x28   :  { %1347 = vmatprep.subr.bf16.mxu0 %v2917_v0 }
  0x2a   :  { %1059 = vmatpush1.bf16.msra.mxu1 %v2713_v23  ;;  %v2807_v23 = vld [vmem:[%s3550_s0 + $0x1a0] ss:$16 sps:$4 sm:$0xff]  }
  0x2b   :  { %1348 = vmatpush1.bf16.msra.mxu0 %v2714_v24  ;;  %1060 = vmatprep.subr.bf16.mxu1 %v2917_v0  ;;  %v2808_v24 = vld [vmem:[%s3550_s0 + $0x1a8] ss:$16 sps:$4 sm:$0xff]  }
  0x2c   :  { %1349 = vmatprep.subr.bf16.mxu0 %v2917_v0 }
  0x2e   :  { %1061 = vmatpush1.bf16.msra.mxu1 %v2715_v25  ;;  %v2809_v25 = vld [vmem:[%s3550_s0 + $0x1c4] ss:$16 sps:$4 sm:$0xff]  }
  0x2f   :  { %1350 = vmatpush1.bf16.msra.mxu0 %v2716_v26  ;;  %1062 = vmatprep.subr.bf16.mxu1 %v2917_v0  ;;  %v2811_v26 = vld [vmem:[%s3550_s0 + $0x1cc] ss:$16 sps:$4 sm:$0xff]  }
  0x30   :  { %1351 = vmatprep.subr.bf16.mxu0 %v2917_v0 }
  0x32   :  { %1063 = vmatpush1.bf16.msra.mxu1 %v2717_v27  ;;  %v2813_v27 = vld [vmem:[%s3550_s0 + $0x1c0] ss:$16 sps:$4 sm:$0xff]  }
  0x33   :  { %1352 = vmatpush1.bf16.msra.mxu0 %v2718_v28  ;;  %1064 = vmatprep.subr.bf16.mxu1 %v2917_v0  ;;  %v2814_v28 = vld [vmem:[%s3550_s0 + $0x1c8] ss:$16 sps:$4 sm:$0xff]  }
  0x34   :  { %1353 = vmatprep.subr.bf16.mxu0 %v2917_v0 }
  0x36   :  { %1065 = vmatpush1.bf16.msra.mxu1 %v2719_v29  ;;  %v2815_v29 = vld [vmem:[%s3550_s0 + $0x1e4] ss:$16 sps:$4 sm:$0xff]  }
  0x37   :  { %1354 = vmatpush1.bf16.msra.mxu0 %v2720_v30  ;;  %1066 = vmatprep.subr.bf16.mxu1 %v2917_v0  ;;  %v2817_v30 = vld [vmem:[%s3550_s0 + $0x1ec] ss:$16 sps:$4 sm:$0xff]  }
  0x38   :  { %1355 = vmatprep.subr.bf16.mxu0 %v2917_v0 }
  0x3a   :  { %1067 = vmatpush1.bf16.msra.mxu1 %v2721_v31  ;;  %v2819_v31 = vld [vmem:[%s3550_s0 + $0x1e0] ss:$16 sps:$4 sm:$0xff]  }
  0x3b   :  { %1356 = vmatpush1.bf16.msra.mxu0 %v2722_v32  ;;  %1068 = vmatprep.subr.bf16.mxu1 %v2917_v0  ;;  %v2820_v32 = vld [vmem:[%s3550_s0 + $0x1e8] ss:$16 sps:$4 sm:$0xff]  }
  0x3c   :  { %1357 = vmatprep.subr.bf16.mxu0 %v2917_v0  ;;  %v2772_v0 = vld [vmem:[%s3550_s0 + $0xe8] ss:$16 sps:$4 sm:$0xff]  }
  0x3e   :  { %1069 = vmatpush1.bf16.msra.mxu1 %v2723_v33  ;;  %v2821_v33 = vld [vmem:[%s3550_s0 + $0x204] ss:$16 sps:$4 sm:$0xff]  }
  0x3f   :  { %1358 = vmatpush1.bf16.msra.mxu0 %v2724_v34  ;;  %v2823_v34 = vld [vmem:[%s3550_s0 + $0x20c] ss:$16 sps:$4 sm:$0xff]  }
  0x41   :  { %1071 = vmatmul.mubr.bf16.vlgmr.msra.gmra.mrb[0].mxu1 %v2725_v35  ;;  %v2825_v35 = vld [vmem:[%s3550_s0 + $0x200] ss:$16 sps:$4 sm:$0xff]  }
  0x42   :  { %1360 = vmatmul.mubr.bf16.vlgmr.msra.gmra.mrb[0].mxu0 %v2728_v36  ;;  %1078 = vmatprep.mubr.bf16.mxu1 %v2731_v37  ;;  %v2826_v36 = vld [vmem:[%s3550_s0 + $0x208] ss:$16 sps:$4 sm:$0xff]   ;;  %v2827_v37 = vld [vmem:[%s3550_s0 + $0x224] ss:$16 sps:$4 sm:$0xff]  }
  0x43   :  { %1367 = vmatprep.mubr.bf16.mxu0 %v2733_v38  ;;  %v2829_v38 = vld [vmem:[%s3550_s0 + $0x22c] ss:$16 sps:$4 sm:$0xff]  }
  0x49   :  { %1079 = vmatmul.mubr.bf16.gmra.mrb[4].mxu1 %v2735_v39  ;;  %v2831_v39 = vld [vmem:[%s3550_s0 + $0x220] ss:$16 sps:$4 sm:$0xff]  }
  0x4a   :  { %1368 = vmatmul.mubr.bf16.gmra.mrb[4].mxu0 %v2736_v40  ;;  %1086 = vmatprep.mubr.bf16.mxu1 %v2737_v41  ;;  %v2832_v40 = vld [vmem:[%s3550_s0 + $0x228] ss:$16 sps:$4 sm:$0xff]   ;;  %v2833_v41 = vld [vmem:[%s3550_s0 + $0x244] ss:$16 sps:$4 sm:$0xff]  }
  0x4b   :  { %1375 = vmatprep.mubr.bf16.mxu0 %v2739_v42  ;;  %v2835_v42 = vld [vmem:[%s3550_s0 + $0x24c] ss:$16 sps:$4 sm:$0xff]  }
  0x51   :  { %1087 = vmatmul.mubr.bf16.gmra.mrb[8].mxu1 %v2741_v43  ;;  %v2837_v43 = vld [vmem:[%s3550_s0 + $0x240] ss:$16 sps:$4 sm:$0xff]  }
  0x52   :  { %1376 = vmatmul.mubr.bf16.gmra.mrb[8].mxu0 %v2742_v44  ;;  %1094 = vmatprep.mubr.bf16.mxu1 %v2743_v45  ;;  %v2838_v44 = vld [vmem:[%s3550_s0 + $0x248] ss:$16 sps:$4 sm:$0xff]   ;;  %v2839_v45 = vld [vmem:[%s3550_s0 + $0x264] ss:$16 sps:$4 sm:$0xff]  }
  0x53   :  { %1383 = vmatprep.mubr.bf16.mxu0 %v2745_v46  ;;  %v2841_v46 = vld [vmem:[%s3550_s0 + $0x26c] ss:$16 sps:$4 sm:$0xff]  }
  0x59   :  { %1095 = vmatmul.mubr.bf16.gmra.mrb[12].mxu1 %v2747_v47  ;;  %v2843_v47 = vld [vmem:[%s3550_s0 + $0x260] ss:$16 sps:$4 sm:$0xff]  }
  0x5a   :  { %1384 = vmatmul.mubr.bf16.gmra.mrb[12].mxu0 %v2748_v48  ;;  %1102 = vmatprep.mubr.bf16.mxu1 %v2749_v49  ;;  %v2844_v48 = vld [vmem:[%s3550_s0 + $0x268] ss:$16 sps:$4 sm:$0xff]   ;;  %v2845_v49 = vld [vmem:[%s3550_s0 + $0x284] ss:$16 sps:$4 sm:$0xff]  }
  0x5b   :  { %1391 = vmatprep.mubr.bf16.mxu0 %v2751_v50  ;;  %v2847_v50 = vld [vmem:[%s3550_s0 + $0x28c] ss:$16 sps:$4 sm:$0xff]  }
  0x61   :  { %1103 = vmatmul.mubr.bf16.gmra.mrb[16].mxu1 %v2753_v51  ;;  %v2849_v51 = vld [vmem:[%s3550_s0 + $0x280] ss:$16 sps:$4 sm:$0xff]  }
  0x62   :  { %1392 = vmatmul.mubr.bf16.gmra.mrb[16].mxu0 %v2754_v52  ;;  %1110 = vmatprep.mubr.bf16.mxu1 %v2755_v53  ;;  %v2850_v52 = vld [vmem:[%s3550_s0 + $0x288] ss:$16 sps:$4 sm:$0xff]   ;;  %v2851_v53 = vld [vmem:[%s3550_s0 + $0x2a4] ss:$16 sps:$4 sm:$0xff]  }
  0x63   :  { %1399 = vmatprep.mubr.bf16.mxu0 %v2757_v54  ;;  %v2853_v54 = vld [vmem:[%s3550_s0 + $0x2ac] ss:$16 sps:$4 sm:$0xff]  }
  0x69   :  { %1111 = vmatmul.mubr.bf16.gmra.mrb[20].mxu1 %v2759_v55  ;;  %v2855_v55 = vld [vmem:[%s3550_s0 + $0x2a0] ss:$16 sps:$4 sm:$0xff]  }
  0x6a   :  { %1400 = vmatmul.mubr.bf16.gmra.mrb[20].mxu0 %v2760_v56  ;;  %1118 = vmatprep.mubr.bf16.mxu1 %v2761_v57  ;;  %v2856_v56 = vld [vmem:[%s3550_s0 + $0x2a8] ss:$16 sps:$4 sm:$0xff]   ;;  %v2857_v57 = vld [vmem:[%s3550_s0 + $0x2c4] ss:$16 sps:$4 sm:$0xff]  }
  0x6b   :  { %1407 = vmatprep.mubr.bf16.mxu0 %v2763_v58  ;;  %v2859_v58 = vld [vmem:[%s3550_s0 + $0x2cc] ss:$16 sps:$4 sm:$0xff]  }
  0x71   :  { %1119 = vmatmul.mubr.bf16.gmra.mrb[24].mxu1 %v2765_v59  ;;  %v2861_v59 = vld [vmem:[%s3550_s0 + $0x2c0] ss:$16 sps:$4 sm:$0xff]  }
  0x72   :  { %1408 = vmatmul.mubr.bf16.gmra.mrb[24].mxu0 %v2766_v60  ;;  %1126 = vmatprep.mubr.bf16.mxu1 %v2767_v61  ;;  %v2862_v60 = vld [vmem:[%s3550_s0 + $0x2c8] ss:$16 sps:$4 sm:$0xff]   ;;  %v2863_v61 = vld [vmem:[%s3550_s0 + $0x2e4] ss:$16 sps:$4 sm:$0xff]  }
  0x73   :  { %1415 = vmatprep.mubr.bf16.mxu0 %v2769_v62  ;;  %v2865_v62 = vld [vmem:[%s3550_s0 + $0x2ec] ss:$16 sps:$4 sm:$0xff]  }
  0x79   :  { %1127 = vmatmul.mubr.bf16.gmra.mrb[28].mxu1 %v2771_v63  ;;  %v2867_v63 = vld [vmem:[%s3550_s0 + $0x2e0] ss:$16 sps:$4 sm:$0xff]  }
  0x7a   :  { %1416 = vmatmul.mubr.bf16.gmra.mrb[28].mxu0 %v2772_v0  ;;  %1134 = vmatprep.mubr.bf16.mxu1 %v2773_v1  ;;  %v2868_v0 = vld [vmem:[%s3550_s0 + $0x2e8] ss:$16 sps:$4 sm:$0xff]   ;;  %v2869_v1 = vld [vmem:[%s3550_s0 + $0x304] ss:$16 sps:$4 sm:$0xff]  }
  0x7b   :  { %1423 = vmatprep.mubr.bf16.mxu0 %v2775_v2  ;;  %v2871_v2 = vld [vmem:[%s3550_s0 + $0x30c] ss:$16 sps:$4 sm:$0xff]  }
  0x81   :  { %1135 = vmatmul.mubr.bf16.gmra.mrb[32].mxu1 %v2777_v3  ;;  %v2873_v3 = vld [vmem:[%s3550_s0 + $0x300] ss:$16 sps:$4 sm:$0xff]  }
  0x82   :  { %1424 = vmatmul.mubr.bf16.gmra.mrb[32].mxu0 %v2778_v4  ;;  %1142 = vmatprep.mubr.bf16.mxu1 %v2779_v5  ;;  %v2874_v4 = vld [vmem:[%s3550_s0 + $0x308] ss:$16 sps:$4 sm:$0xff]   ;;  %v2875_v5 = vld [vmem:[%s3550_s0 + $0x324] ss:$16 sps:$4 sm:$0xff]  }
  0x83   :  { %1431 = vmatprep.mubr.bf16.mxu0 %v2781_v6  ;;  %v2877_v6 = vld [vmem:[%s3550_s0 + $0x32c] ss:$16 sps:$4 sm:$0xff]  }
  0x89   :  { %1143 = vmatmul.mubr.bf16.gmra.mrb[36].mxu1 %v2783_v7  ;;  %v2879_v7 = vld [vmem:[%s3550_s0 + $0x320] ss:$16 sps:$4 sm:$0xff]  }
  0x8a   :  { %1432 = vmatmul.mubr.bf16.gmra.mrb[36].mxu0 %v2784_v8  ;;  %1150 = vmatprep.mubr.bf16.mxu1 %v2785_v9  ;;  %v2880_v8 = vld [vmem:[%s3550_s0 + $0x328] ss:$16 sps:$4 sm:$0xff]   ;;  %v2881_v9 = vld [vmem:[%s3550_s0 + $0x344] ss:$16 sps:$4 sm:$0xff]  }
  0x8b   :  { %1439 = vmatprep.mubr.bf16.mxu0 %v2787_v10  ;;  %v2883_v10 = vld [vmem:[%s3550_s0 + $0x34c] ss:$16 sps:$4 sm:$0xff]  }
  0x91   :  { %1151 = vmatmul.mubr.bf16.gmra.mrb[40].mxu1 %v2789_v11  ;;  %v2885_v11 = vld [vmem:[%s3550_s0 + $0x340] ss:$16 sps:$4 sm:$0xff]  }
  0x92   :  { %1440 = vmatmul.mubr.bf16.gmra.mrb[40].mxu0 %v2790_v12  ;;  %1158 = vmatprep.mubr.bf16.mxu1 %v2791_v13  ;;  %v2886_v12 = vld [vmem:[%s3550_s0 + $0x348] ss:$16 sps:$4 sm:$0xff]   ;;  %v2887_v13 = vld [vmem:[%s3550_s0 + $0x364] ss:$16 sps:$4 sm:$0xff]  }
  0x93   :  { %1447 = vmatprep.mubr.bf16.mxu0 %v2793_v14  ;;  %v2889_v14 = vld [vmem:[%s3550_s0 + $0x36c] ss:$16 sps:$4 sm:$0xff]  }
  0x99   :  { %1159 = vmatmul.mubr.bf16.gmra.mrb[44].mxu1 %v2795_v15 }
  0x9a   :  { %1448 = vmatmul.mubr.bf16.gmra.mrb[44].mxu0 %v2796_v16  ;;  %1166 = vmatprep.mubr.bf16.mxu1 %v2797_v17 }
  0x9b   :  { %1455 = vmatprep.mubr.bf16.mxu0 %v2799_v18  ;;  %v2891_v18 = vld [vmem:[%s3550_s0 + $0x360] ss:$16 sps:$4 sm:$0xff]  }
  0xa1   :  { %1167 = vmatmul.mubr.bf16.gmra.mrb[48].mxu1 %v2801_v19 }
  0xa2   :  { %1456 = vmatmul.mubr.bf16.gmra.mrb[48].mxu0 %v2802_v20  ;;  %1174 = vmatprep.mubr.bf16.mxu1 %v2803_v21 }
  0xa3   :  { %1463 = vmatprep.mubr.bf16.mxu0 %v2805_v22  ;;  %v2892_v22 = vld [vmem:[%s3550_s0 + $0x368] ss:$16 sps:$4 sm:$0xff]  }
  0xa9   :  { %1175 = vmatmul.mubr.bf16.gmra.mrb[52].mxu1 %v2807_v23  ;;  %v2893_v23 = vld [vmem:[%s3550_s0 + $0x384] ss:$16 sps:$4 sm:$0xff]  }
  0xaa   :  { %1464 = vmatmul.mubr.bf16.gmra.mrb[52].mxu0 %v2808_v24  ;;  %1182 = vmatprep.mubr.bf16.mxu1 %v2809_v25 }
  0xab   :  { %1471 = vmatprep.mubr.bf16.mxu0 %v2811_v26  ;;  %v2895_v26 = vld [vmem:[%s3550_s0 + $0x38c] ss:$16 sps:$4 sm:$0xff]  }
  0xb1   :  { %1183 = vmatmul.mubr.bf16.gmra.mrb[56].mxu1 %v2813_v27 }
  0xb2   :  { %1472 = vmatmul.mubr.bf16.gmra.mrb[56].mxu0 %v2814_v28  ;;  %1190 = vmatprep.mubr.bf16.mxu1 %v2815_v29 }
  0xb3   :  { %1479 = vmatprep.mubr.bf16.mxu0 %v2817_v30 }
  0xb9   :  { %1191 = vmatmul.mubr.bf16.gmra.mrb[60].mxu1 %v2819_v31 }
  0xba   :  { %1480 = vmatmul.mubr.bf16.gmra.mrb[60].mxu0 %v2820_v32  ;;  %1198 = vmatprep.mubr.bf16.mxu1 %v2821_v33 }
  0xbb   :  { %1487 = vmatprep.mubr.bf16.mxu0 %v2823_v34 }
  0xc1   :  { %1199 = vmatmul.mubr.bf16.gmra.mrb[64].mxu1 %v2825_v35 }
  0xc2   :  { %1488 = vmatmul.mubr.bf16.gmra.mrb[64].mxu0 %v2826_v36  ;;  %1206 = vmatprep.mubr.bf16.mxu1 %v2827_v37  ;;  %v2897_v37 = vld [vmem:[%s3550_s0 + $0x380] ss:$16 sps:$4 sm:$0xff]  }
  0xc3   :  { %1495 = vmatprep.mubr.bf16.mxu0 %v2829_v38 }
  0xc9   :  { %1207 = vmatmul.mubr.bf16.gmra.mrb[68].mxu1 %v2831_v39 }
  0xca   :  { %1496 = vmatmul.mubr.bf16.gmra.mrb[68].mxu0 %v2832_v40  ;;  %1214 = vmatprep.mubr.bf16.mxu1 %v2833_v41  ;;  %v2898_v41 = vld [vmem:[%s3550_s0 + $0x388] ss:$16 sps:$4 sm:$0xff]  }
  0xcb   :  { %1503 = vmatprep.mubr.bf16.mxu0 %v2835_v42 }
  0xd1   :  { %1215 = vmatmul.mubr.bf16.gmra.mrb[72].mxu1 %v2837_v43 }
  0xd2   :  { %1504 = vmatmul.mubr.bf16.gmra.mrb[72].mxu0 %v2838_v44  ;;  %1222 = vmatprep.mubr.bf16.mxu1 %v2839_v45  ;;  %v2899_v44 = vld [vmem:[%s3550_s0 + $0x3a4] ss:$16 sps:$4 sm:$0xff]   ;;  %v2901_v45 = vld [vmem:[%s3550_s0 + $0x3ac] ss:$16 sps:$4 sm:$0xff]  }
  0xd3   :  { %1511 = vmatprep.mubr.bf16.mxu0 %v2841_v46 }
  0xd9   :  { %1223 = vmatmul.mubr.bf16.gmra.mrb[76].mxu1 %v2843_v47 }
  0xda   :  { %1512 = vmatmul.mubr.bf16.gmra.mrb[76].mxu0 %v2844_v48  ;;  %1230 = vmatprep.mubr.bf16.mxu1 %v2845_v49 }
  0xdb   :  { %1519 = vmatprep.mubr.bf16.mxu0 %v2847_v50 }
  0xe1   :  { %1231 = vmatmul.mubr.bf16.gmra.mrb[80].mxu1 %v2849_v51 }
  0xe2   :  { %1520 = vmatmul.mubr.bf16.gmra.mrb[80].mxu0 %v2850_v52  ;;  %1238 = vmatprep.mubr.bf16.mxu1 %v2851_v53 }
  0xe3   :  { %1527 = vmatprep.mubr.bf16.mxu0 %v2853_v54 }
  0xe9   :  { %1239 = vmatmul.mubr.bf16.gmra.mrb[84].mxu1 %v2855_v55 }
  0xea   :  { %1528 = vmatmul.mubr.bf16.gmra.mrb[84].mxu0 %v2856_v56  ;;  %1246 = vmatprep.mubr.bf16.mxu1 %v2857_v57 }
  0xeb   :  { %1535 = vmatprep.mubr.bf16.mxu0 %v2859_v58  ;;  %v2903_v58 = vld [vmem:[%s3550_s0 + $0x3a0] ss:$16 sps:$4 sm:$0xff]  }
  0xf1   :  { %1247 = vmatmul.mubr.bf16.gmra.mrb[88].mxu1 %v2861_v59 }
  0xf2   :  { %1536 = vmatmul.mubr.bf16.gmra.mrb[88].mxu0 %v2862_v60  ;;  %1254 = vmatprep.mubr.bf16.mxu1 %v2863_v61 }
  0xf3   :  { %1543 = vmatprep.mubr.bf16.mxu0 %v2865_v62  ;;  %v2904_v62 = vld [vmem:[%s3550_s0 + $0x3a8] ss:$16 sps:$4 sm:$0xff]  }
  0xf9   :  { %1255 = vmatmul.mubr.bf16.gmra.mrb[92].mxu1 %v2867_v63 }
  0xfa   :  { %1544 = vmatmul.mubr.bf16.gmra.mrb[92].mxu0 %v2868_v0  ;;  %1262 = vmatprep.mubr.bf16.mxu1 %v2869_v1  ;;  %v2905_v1 = vld [vmem:[%s3550_s0 + $0x3c4] ss:$16 sps:$4 sm:$0xff]  }
  0xfb   :  { %1551 = vmatprep.mubr.bf16.mxu0 %v2871_v2  ;;  %v2907_v2 = vld [vmem:[%s3550_s0 + $0x3cc] ss:$16 sps:$4 sm:$0xff]  }
 0x101   :  { %1263 = vmatmul.mubr.bf16.gmra.mrb[96].mxu1 %v2873_v3 }
 0x102   :  { %1552 = vmatmul.mubr.bf16.gmra.mrb[96].mxu0 %v2874_v4  ;;  %1270 = vmatprep.mubr.bf16.mxu1 %v2875_v5 }
 0x103   :  { %1559 = vmatprep.mubr.bf16.mxu0 %v2877_v6 }
 0x109   :  { %1271 = vmatmul.mubr.bf16.gmra.mrb[100].mxu1 %v2879_v7 }
 0x10a   :  { %1560 = vmatmul.mubr.bf16.gmra.mrb[100].mxu0 %v2880_v8  ;;  %1278 = vmatprep.mubr.bf16.mxu1 %v2881_v9 }
 0x10b   :  { %1567 = vmatprep.mubr.bf16.mxu0 %v2883_v10 }
 0x111   :  { %1279 = vmatmul.mubr.bf16.gmra.mrb[104].mxu1 %v2885_v11 }
 0x112   :  { %1568 = vmatmul.mubr.bf16.gmra.mrb[104].mxu0 %v2886_v12  ;;  %1286 = vmatprep.mubr.bf16.mxu1 %v2887_v13 }
 0x113   :  { %1575 = vmatprep.mubr.bf16.mxu0 %v2889_v14 }
 0x114   :  { %v1072_v15 = vpop.f32.mrb[0].mxu1 }
 0x115   :  { %v1361_v16 = vpop.f32.mrb[0].mxu0  ;;  %v1074_v17 = vpop.f32.mrb[1].mxu1 }
 0x116   :  { %v1362_v19 = vadd.f32 %v1361_v16, %v1072_v15  ;;  %v1363_v20 = vpop.f32.mrb[1].mxu0  ;;  %v1075_v21 = vpop.f32.mrb[2].mxu1  ;;  %v2909_v15 = vld [vmem:[%s3550_s0 + $0x3c0] ss:$16 sps:$4 sm:$0xff]  }
 0x117   :  { %v1364_v24 = vpop.f32.mrb[2].mxu0  ;;  %v1077_v25 = vpop.f32.mrb[3].mxu1 }
 0x118   :  { %v1365_v27 = vadd.f32 %v1364_v24, %v1075_v21  ;;  %v1366_v28 = vpop.f32.mrb[3].mxu0  ;;  %v2005_v29 = vmul.f32 %v1362_v19, %v1362_v19 }
 0x119   :  { %1287 = vmatmul.mubr.bf16.gmra.mrb[108].mxu1 %v2891_v18 }
 0x11a   :  { %v2440_v30 = vpack.c.bf16 %v1365_v27, %v1362_v19  ;;  %v1936_v31 = vadd.f32 %v1365_v27, %v1362_v19  ;;  %v2006_v32 = vmul.f32 %v1365_v27, %v1365_v27  ;;  %1576 = vmatmul.mubr.bf16.gmra.mrb[108].mxu0 %v2892_v22  ;;  %1294 = vmatprep.mubr.bf16.mxu1 %v2893_v23  ;;  %v2910_v19 = vld [vmem:[%s3550_s0 + $0x3c8] ss:$16 sps:$4 sm:$0xff]   ;;  %v2911_v22 = vld [vmem:[%s3550_s0 + $0x3e4] ss:$16 sps:$4 sm:$0xff]   ;;  %v2913_v23 = vld [vmem:[%s3550_s0 + $0x3ec] ss:$16 sps:$4 sm:$0xff]  }
 0x11b   :  { %1583 = vmatprep.mubr.bf16.mxu0 %v2895_v26 }
 0x11c   :  { %2441 = vst [vmem:[%s3551_s2] sm:$0xff] %v2440_v30   ;;  %v2069_v33 = vadd.f32 %v2006_v32, %v2005_v29  ;;  %v1080_v34 = vpop.f32.mrb[4].mxu1 }
 0x11d   :  { %v1369_v35 = vpop.f32.mrb[4].mxu0  ;;  %v1082_v36 = vpop.f32.mrb[5].mxu1 }
 0x11e   :  { %v1370_v38 = vadd.f32 %v1369_v35, %v1080_v34  ;;  %v1371_v39 = vpop.f32.mrb[5].mxu0  ;;  %v1083_v40 = vpop.f32.mrb[6].mxu1  ;;  %v2915_v36 = vld [vmem:[%s3550_s0 + $0x3e0] ss:$16 sps:$4 sm:$0xff]  }
 0x11f   :  { %v1372_v42 = vpop.f32.mrb[6].mxu0  ;;  %v1085_v43 = vpop.f32.mrb[7].mxu1 }
 0x120   :  { %v1937_v46 = vadd.f32 %v1936_v31, %v1370_v38  ;;  %v2007_v47 = vmul.f32 %v1370_v38, %v1370_v38  ;;  %v1373_v48 = vadd.f32 %v1372_v42, %v1083_v40  ;;  %v1374_v49 = vpop.f32.mrb[7].mxu0  ;;  %v2916_v40 = vld [vmem:[%s3550_s0 + $0x3e8] ss:$16 sps:$4 sm:$0xff]  }
 0x121   :  { %1295 = vmatmul.mubr.bf16.gmra.mrb[112].mxu1 %v2897_v37 }
 0x122   :  { %v2070_v50 = vadd.f32 %v2069_v33, %v2007_v47  ;;  %v2445_v51 = vpack.c.bf16 %v1373_v48, %v1370_v38  ;;  %v1938_v52 = vadd.f32 %v1937_v46, %v1373_v48  ;;  %v2008_v53 = vmul.f32 %v1373_v48, %v1373_v48  ;;  %1584 = vmatmul.mubr.bf16.gmra.mrb[112].mxu0 %v2898_v41 }
 0x123   :  { %1302 = vmatprep.mubr.bf16.mxu1 %v2899_v44  ;;  %1591 = vmatprep.mubr.bf16.mxu0 %v2901_v45 }
 0x124   :  { %2597 = vst [vmem:[%s3551_s2 + $0x8] sm:$0xff] %v2445_v51   ;;  %v2071_v54 = vadd.f32 %v2070_v50, %v2008_v53  ;;  %v1088_v55 = vpop.f32.mrb[8].mxu1 }
 0x125   :  { %v1377_v56 = vpop.f32.mrb[8].mxu0  ;;  %v1090_v57 = vpop.f32.mrb[9].mxu1 }
 0x126   :  { %v1378_v59 = vadd.f32 %v1377_v56, %v1088_v55  ;;  %v1379_v60 = vpop.f32.mrb[9].mxu0  ;;  %v1091_v61 = vpop.f32.mrb[10].mxu1 }
 0x127   :  { %v1380_v63 = vpop.f32.mrb[10].mxu0  ;;  %v1093_v0 = vpop.f32.mrb[11].mxu1 }
 0x128   :  { %v1939_v3 = vadd.f32 %v1938_v52, %v1378_v59  ;;  %v2009_v4 = vmul.f32 %v1378_v59, %v1378_v59  ;;  %v1381_v5 = vadd.f32 %v1380_v63, %v1091_v61  ;;  %v1382_v6 = vpop.f32.mrb[11].mxu0 }
 0x129   :  { %1303 = vmatmul.mubr.bf16.gmra.mrb[116].mxu1 %v2903_v58 }
 0x12a   :  { %v2072_v7 = vadd.f32 %v2071_v54, %v2009_v4  ;;  %v2450_v8 = vpack.c.bf16 %v1381_v5, %v1378_v59  ;;  %v1940_v9 = vadd.f32 %v1939_v3, %v1381_v5  ;;  %v2010_v10 = vmul.f32 %v1381_v5, %v1381_v5  ;;  %1592 = vmatmul.mubr.bf16.gmra.mrb[116].mxu0 %v2904_v62 }
 0x12b   :  { %1310 = vmatprep.mubr.bf16.mxu1 %v2905_v1  ;;  %1599 = vmatprep.mubr.bf16.mxu0 %v2907_v2 }
 0x12c   :  { %2598 = vst [vmem:[%s3551_s2 + $0x10] sm:$0xff] %v2450_v8   ;;  %v2073_v11 = vadd.f32 %v2072_v7, %v2010_v10  ;;  %v1096_v12 = vpop.f32.mrb[12].mxu1 }
 0x12d   :  { %v1385_v13 = vpop.f32.mrb[12].mxu0  ;;  %v1098_v14 = vpop.f32.mrb[13].mxu1 }
 0x12e   :  { %v1386_v16 = vadd.f32 %v1385_v13, %v1096_v12  ;;  %v1387_v17 = vpop.f32.mrb[13].mxu0  ;;  %v1099_v18 = vpop.f32.mrb[14].mxu1 }
 0x12f   :  { %v1388_v20 = vpop.f32.mrb[14].mxu0  ;;  %v1101_v21 = vpop.f32.mrb[15].mxu1 }
 0x130   :  { %v1941_v24 = vadd.f32 %v1940_v9, %v1386_v16  ;;  %v2011_v25 = vmul.f32 %v1386_v16, %v1386_v16  ;;  %v1389_v26 = vadd.f32 %v1388_v20, %v1099_v18  ;;  %v1390_v27 = vpop.f32.mrb[15].mxu0 }
 0x131   :  { %1311 = vmatmul.mubr.bf16.gmra.mrb[120].mxu1 %v2909_v15 }
 0x132   :  { %v2074_v28 = vadd.f32 %v2073_v11, %v2011_v25  ;;  %v2455_v29 = vpack.c.bf16 %v1389_v26, %v1386_v16  ;;  %v1942_v30 = vadd.f32 %v1941_v24, %v1389_v26  ;;  %v2012_v31 = vmul.f32 %v1389_v26, %v1389_v26  ;;  %1600 = vmatmul.mubr.bf16.gmra.mrb[120].mxu0 %v2910_v19 }
 0x133   :  { %1318 = vmatprep.mubr.bf16.mxu1 %v2911_v22  ;;  %1607 = vmatprep.mubr.bf16.mxu0 %v2913_v23 }
 0x134   :  { %2599 = vst [vmem:[%s3551_s2 + $0x18] sm:$0xff] %v2455_v29   ;;  %v2075_v32 = vadd.f32 %v2074_v28, %v2012_v31  ;;  %v1104_v33 = vpop.f32.mrb[16].mxu1 }
 0x135   :  { %v1393_v34 = vpop.f32.mrb[16].mxu0  ;;  %v1106_v35 = vpop.f32.mrb[17].mxu1 }
 0x136   :  { %v1394_v37 = vadd.f32 %v1393_v34, %v1104_v33  ;;  %v1395_v38 = vpop.f32.mrb[17].mxu0  ;;  %v1107_v39 = vpop.f32.mrb[18].mxu1 }
 0x137   :  { %v1396_v41 = vpop.f32.mrb[18].mxu0  ;;  %v1109_v42 = vpop.f32.mrb[19].mxu1 }
 0x138   :  { %v1943_v43 = vadd.f32 %v1942_v30, %v1394_v37  ;;  %v2013_v44 = vmul.f32 %v1394_v37, %v1394_v37  ;;  %v1397_v45 = vadd.f32 %v1396_v41, %v1107_v39  ;;  %v1398_v46 = vpop.f32.mrb[19].mxu0 }
 0x139   :  { %1319 = vmatmul.mubr.bf16.gmra.mrb[124].mxu1 %v2915_v36 }
 0x13a   :  { %v2076_v47 = vadd.f32 %v2075_v32, %v2013_v44  ;;  %v2460_v48 = vpack.c.bf16 %v1397_v45, %v1394_v37  ;;  %v1944_v49 = vadd.f32 %v1943_v43, %v1397_v45  ;;  %v2014_v50 = vmul.f32 %v1397_v45, %v1397_v45  ;;  %1608 = vmatmul.mubr.bf16.gmra.mrb[124].mxu0 %v2916_v40 }
 0x13c   :  { %2600 = vst [vmem:[%s3551_s2 + $0x20] sm:$0xff] %v2460_v48   ;;  %v2077_v51 = vadd.f32 %v2076_v47, %v2014_v50  ;;  %v1112_v52 = vpop.f32.mrb[20].mxu1 }
 0x13d   :  { %v1401_v53 = vpop.f32.mrb[20].mxu0  ;;  %v1114_v54 = vpop.f32.mrb[21].mxu1 }
 0x13e   :  { %v1402_v55 = vadd.f32 %v1401_v53, %v1112_v52  ;;  %v1403_v56 = vpop.f32.mrb[21].mxu0  ;;  %v1115_v57 = vpop.f32.mrb[22].mxu1 }
 0x13f   :  { %v1404_v58 = vpop.f32.mrb[22].mxu0  ;;  %v1117_v59 = vpop.f32.mrb[23].mxu1 }
 0x140   :  { %v1945_v60 = vadd.f32 %v1944_v49, %v1402_v55  ;;  %v2015_v61 = vmul.f32 %v1402_v55, %v1402_v55  ;;  %v1405_v62 = vadd.f32 %v1404_v58, %v1115_v57  ;;  %v1406_v63 = vpop.f32.mrb[23].mxu0 }
 0x142   :  { %v2078_v0 = vadd.f32 %v2077_v51, %v2015_v61  ;;  %v2465_v1 = vpack.c.bf16 %v1405_v62, %v1402_v55  ;;  %v1946_v2 = vadd.f32 %v1945_v60, %v1405_v62  ;;  %v2016_v3 = vmul.f32 %v1405_v62, %v1405_v62 }
 0x144   :  { %2601 = vst [vmem:[%s3551_s2 + $0x28] sm:$0xff] %v2465_v1   ;;  %v2079_v4 = vadd.f32 %v2078_v0, %v2016_v3  ;;  %v1120_v5 = vpop.f32.mrb[24].mxu1 }
 0x145   :  { %v1409_v6 = vpop.f32.mrb[24].mxu0  ;;  %v1122_v7 = vpop.f32.mrb[25].mxu1 }
 0x146   :  { %v1410_v8 = vadd.f32 %v1409_v6, %v1120_v5  ;;  %v1411_v9 = vpop.f32.mrb[25].mxu0  ;;  %v1123_v10 = vpop.f32.mrb[26].mxu1 }
 0x147   :  { %v1412_v11 = vpop.f32.mrb[26].mxu0  ;;  %v1125_v12 = vpop.f32.mrb[27].mxu1 }
 0x148   :  { %v1947_v13 = vadd.f32 %v1946_v2, %v1410_v8  ;;  %v2017_v14 = vmul.f32 %v1410_v8, %v1410_v8  ;;  %v1413_v15 = vadd.f32 %v1412_v11, %v1123_v10  ;;  %v1414_v16 = vpop.f32.mrb[27].mxu0 }
 0x14a   :  { %v2080_v17 = vadd.f32 %v2079_v4, %v2017_v14  ;;  %v2470_v18 = vpack.c.bf16 %v1413_v15, %v1410_v8  ;;  %v1948_v19 = vadd.f32 %v1947_v13, %v1413_v15  ;;  %v2018_v20 = vmul.f32 %v1413_v15, %v1413_v15 }
 0x14c   :  { %2602 = vst [vmem:[%s3551_s2 + $0x30] sm:$0xff] %v2470_v18   ;;  %v2081_v21 = vadd.f32 %v2080_v17, %v2018_v20  ;;  %v1128_v22 = vpop.f32.mrb[28].mxu1 }
 0x14d   :  { %v1417_v23 = vpop.f32.mrb[28].mxu0  ;;  %v1130_v24 = vpop.f32.mrb[29].mxu1 }
 0x14e   :  { %v1418_v25 = vadd.f32 %v1417_v23, %v1128_v22  ;;  %v1419_v26 = vpop.f32.mrb[29].mxu0  ;;  %v1131_v27 = vpop.f32.mrb[30].mxu1 }
 0x14f   :  { %v1420_v28 = vpop.f32.mrb[30].mxu0  ;;  %v1133_v29 = vpop.f32.mrb[31].mxu1 }
 0x150   :  { %v1949_v30 = vadd.f32 %v1948_v19, %v1418_v25  ;;  %v2019_v31 = vmul.f32 %v1418_v25, %v1418_v25  ;;  %v1421_v32 = vadd.f32 %v1420_v28, %v1131_v27  ;;  %v1422_v33 = vpop.f32.mrb[31].mxu0 }
 0x152   :  { %v2082_v34 = vadd.f32 %v2081_v21, %v2019_v31  ;;  %v2475_v35 = vpack.c.bf16 %v1421_v32, %v1418_v25  ;;  %v1950_v36 = vadd.f32 %v1949_v30, %v1421_v32  ;;  %v2020_v37 = vmul.f32 %v1421_v32, %v1421_v32 }
 0x154   :  { %2603 = vst [vmem:[%s3551_s2 + $0x38] sm:$0xff] %v2475_v35   ;;  %v2083_v38 = vadd.f32 %v2082_v34, %v2020_v37  ;;  %v1136_v39 = vpop.f32.mrb[32].mxu1 }
 0x155   :  { %v1425_v40 = vpop.f32.mrb[32].mxu0  ;;  %v1138_v41 = vpop.f32.mrb[33].mxu1 }
 0x156   :  { %v1426_v42 = vadd.f32 %v1425_v40, %v1136_v39  ;;  %v1427_v43 = vpop.f32.mrb[33].mxu0  ;;  %v1139_v44 = vpop.f32.mrb[34].mxu1 }
 0x157   :  { %v1428_v45 = vpop.f32.mrb[34].mxu0  ;;  %v1141_v46 = vpop.f32.mrb[35].mxu1 }
 0x158   :  { %v1951_v47 = vadd.f32 %v1950_v36, %v1426_v42  ;;  %v2021_v48 = vmul.f32 %v1426_v42, %v1426_v42  ;;  %v1429_v49 = vadd.f32 %v1428_v45, %v1139_v44  ;;  %v1430_v50 = vpop.f32.mrb[35].mxu0 }
 0x15a   :  { %v2084_v51 = vadd.f32 %v2083_v38, %v2021_v48  ;;  %v2480_v52 = vpack.c.bf16 %v1429_v49, %v1426_v42  ;;  %v1952_v53 = vadd.f32 %v1951_v47, %v1429_v49  ;;  %v2022_v54 = vmul.f32 %v1429_v49, %v1429_v49 }
 0x15c   :  { %2604 = vst [vmem:[%s3551_s2 + $0x40] sm:$0xff] %v2480_v52   ;;  %v2085_v55 = vadd.f32 %v2084_v51, %v2022_v54  ;;  %v1144_v56 = vpop.f32.mrb[36].mxu1 }
 0x15d   :  { %v1433_v57 = vpop.f32.mrb[36].mxu0  ;;  %v1146_v58 = vpop.f32.mrb[37].mxu1 }
 0x15e   :  { %v1434_v59 = vadd.f32 %v1433_v57, %v1144_v56  ;;  %v1435_v60 = vpop.f32.mrb[37].mxu0  ;;  %v1147_v61 = vpop.f32.mrb[38].mxu1 }
 0x15f   :  { %v1436_v62 = vpop.f32.mrb[38].mxu0  ;;  %v1149_v63 = vpop.f32.mrb[39].mxu1 }
 0x160   :  { %v1953_v0 = vadd.f32 %v1952_v53, %v1434_v59  ;;  %v2023_v1 = vmul.f32 %v1434_v59, %v1434_v59  ;;  %v1437_v2 = vadd.f32 %v1436_v62, %v1147_v61  ;;  %v1438_v3 = vpop.f32.mrb[39].mxu0 }
 0x162   :  { %v2086_v4 = vadd.f32 %v2085_v55, %v2023_v1  ;;  %v2485_v5 = vpack.c.bf16 %v1437_v2, %v1434_v59  ;;  %v1954_v6 = vadd.f32 %v1953_v0, %v1437_v2  ;;  %v2024_v7 = vmul.f32 %v1437_v2, %v1437_v2 }
 0x164   :  { %2605 = vst [vmem:[%s3551_s2 + $0x48] sm:$0xff] %v2485_v5   ;;  %v2087_v8 = vadd.f32 %v2086_v4, %v2024_v7  ;;  %v1152_v9 = vpop.f32.mrb[40].mxu1 }
 0x165   :  { %v1441_v10 = vpop.f32.mrb[40].mxu0  ;;  %v1154_v11 = vpop.f32.mrb[41].mxu1 }
 0x166   :  { %v1442_v12 = vadd.f32 %v1441_v10, %v1152_v9  ;;  %v1443_v13 = vpop.f32.mrb[41].mxu0  ;;  %v1155_v14 = vpop.f32.mrb[42].mxu1 }
 0x167   :  { %v1444_v15 = vpop.f32.mrb[42].mxu0  ;;  %v1157_v16 = vpop.f32.mrb[43].mxu1 }
 0x168   :  { %v1955_v17 = vadd.f32 %v1954_v6, %v1442_v12  ;;  %v2025_v18 = vmul.f32 %v1442_v12, %v1442_v12  ;;  %v1445_v19 = vadd.f32 %v1444_v15, %v1155_v14  ;;  %v1446_v20 = vpop.f32.mrb[43].mxu0 }
 0x16a   :  { %v2088_v21 = vadd.f32 %v2087_v8, %v2025_v18  ;;  %v2490_v22 = vpack.c.bf16 %v1445_v19, %v1442_v12  ;;  %v1956_v23 = vadd.f32 %v1955_v17, %v1445_v19  ;;  %v2026_v24 = vmul.f32 %v1445_v19, %v1445_v19 }
 0x16c   :  { %2606 = vst [vmem:[%s3551_s2 + $0x50] sm:$0xff] %v2490_v22   ;;  %v2089_v25 = vadd.f32 %v2088_v21, %v2026_v24  ;;  %v1160_v26 = vpop.f32.mrb[44].mxu1 }
 0x16d   :  { %v1449_v27 = vpop.f32.mrb[44].mxu0  ;;  %v1162_v28 = vpop.f32.mrb[45].mxu1 }
 0x16e   :  { %v1450_v29 = vadd.f32 %v1449_v27, %v1160_v26  ;;  %v1451_v30 = vpop.f32.mrb[45].mxu0  ;;  %v1163_v31 = vpop.f32.mrb[46].mxu1 }
 0x16f   :  { %v1452_v32 = vpop.f32.mrb[46].mxu0  ;;  %v1165_v33 = vpop.f32.mrb[47].mxu1 }
 0x170   :  { %v1957_v34 = vadd.f32 %v1956_v23, %v1450_v29  ;;  %v2027_v35 = vmul.f32 %v1450_v29, %v1450_v29  ;;  %v1453_v36 = vadd.f32 %v1452_v32, %v1163_v31  ;;  %v1454_v37 = vpop.f32.mrb[47].mxu0 }
 0x172   :  { %v2090_v38 = vadd.f32 %v2089_v25, %v2027_v35  ;;  %v2495_v39 = vpack.c.bf16 %v1453_v36, %v1450_v29  ;;  %v1958_v40 = vadd.f32 %v1957_v34, %v1453_v36  ;;  %v2028_v41 = vmul.f32 %v1453_v36, %v1453_v36 }
 0x174   :  { %2607 = vst [vmem:[%s3551_s2 + $0x58] sm:$0xff] %v2495_v39   ;;  %v2091_v42 = vadd.f32 %v2090_v38, %v2028_v41  ;;  %v1168_v43 = vpop.f32.mrb[48].mxu1 }
 0x175   :  { %v1457_v44 = vpop.f32.mrb[48].mxu0  ;;  %v1170_v45 = vpop.f32.mrb[49].mxu1 }
 0x176   :  { %v1458_v46 = vadd.f32 %v1457_v44, %v1168_v43  ;;  %v1459_v47 = vpop.f32.mrb[49].mxu0  ;;  %v1171_v48 = vpop.f32.mrb[50].mxu1 }
 0x177   :  { %v1460_v49 = vpop.f32.mrb[50].mxu0  ;;  %v1173_v50 = vpop.f32.mrb[51].mxu1 }
 0x178   :  { %v1959_v51 = vadd.f32 %v1958_v40, %v1458_v46  ;;  %v2029_v52 = vmul.f32 %v1458_v46, %v1458_v46  ;;  %v1461_v53 = vadd.f32 %v1460_v49, %v1171_v48  ;;  %v1462_v54 = vpop.f32.mrb[51].mxu0 }
 0x17a   :  { %v2092_v55 = vadd.f32 %v2091_v42, %v2029_v52  ;;  %v2500_v56 = vpack.c.bf16 %v1461_v53, %v1458_v46  ;;  %v1960_v57 = vadd.f32 %v1959_v51, %v1461_v53  ;;  %v2030_v58 = vmul.f32 %v1461_v53, %v1461_v53 }
 0x17c   :  { %2608 = vst [vmem:[%s3551_s2 + $0x60] sm:$0xff] %v2500_v56   ;;  %v2093_v59 = vadd.f32 %v2092_v55, %v2030_v58  ;;  %v1176_v60 = vpop.f32.mrb[52].mxu1 }
 0x17d   :  { %v1465_v61 = vpop.f32.mrb[52].mxu0  ;;  %v1178_v62 = vpop.f32.mrb[53].mxu1 }
 0x17e   :  { %v1466_v63 = vadd.f32 %v1465_v61, %v1176_v60  ;;  %v1467_v0 = vpop.f32.mrb[53].mxu0  ;;  %v1179_v1 = vpop.f32.mrb[54].mxu1 }
 0x17f   :  { %v1468_v2 = vpop.f32.mrb[54].mxu0  ;;  %v1181_v3 = vpop.f32.mrb[55].mxu1 }
 0x180   :  { %v1961_v4 = vadd.f32 %v1960_v57, %v1466_v63  ;;  %v2031_v5 = vmul.f32 %v1466_v63, %v1466_v63  ;;  %v1469_v6 = vadd.f32 %v1468_v2, %v1179_v1  ;;  %v1470_v7 = vpop.f32.mrb[55].mxu0 }
 0x182   :  { %v2094_v8 = vadd.f32 %v2093_v59, %v2031_v5  ;;  %v2505_v9 = vpack.c.bf16 %v1469_v6, %v1466_v63  ;;  %v1962_v10 = vadd.f32 %v1961_v4, %v1469_v6  ;;  %v2032_v11 = vmul.f32 %v1469_v6, %v1469_v6 }
 0x184   :  { %2609 = vst [vmem:[%s3551_s2 + $0x68] sm:$0xff] %v2505_v9   ;;  %v2095_v12 = vadd.f32 %v2094_v8, %v2032_v11  ;;  %v1184_v13 = vpop.f32.mrb[56].mxu1 }
 0x185   :  { %v1473_v14 = vpop.f32.mrb[56].mxu0  ;;  %v1186_v15 = vpop.f32.mrb[57].mxu1 }
 0x186   :  { %v1474_v16 = vadd.f32 %v1473_v14, %v1184_v13  ;;  %v1475_v17 = vpop.f32.mrb[57].mxu0  ;;  %v1187_v18 = vpop.f32.mrb[58].mxu1 }
 0x187   :  { %v1476_v19 = vpop.f32.mrb[58].mxu0  ;;  %v1189_v20 = vpop.f32.mrb[59].mxu1 }
 0x188   :  { %v1963_v21 = vadd.f32 %v1962_v10, %v1474_v16  ;;  %v2033_v22 = vmul.f32 %v1474_v16, %v1474_v16  ;;  %v1477_v23 = vadd.f32 %v1476_v19, %v1187_v18  ;;  %v1478_v24 = vpop.f32.mrb[59].mxu0 }
 0x18a   :  { %v2096_v25 = vadd.f32 %v2095_v12, %v2033_v22  ;;  %v2510_v26 = vpack.c.bf16 %v1477_v23, %v1474_v16  ;;  %v1964_v27 = vadd.f32 %v1963_v21, %v1477_v23  ;;  %v2034_v28 = vmul.f32 %v1477_v23, %v1477_v23 }
 0x18c   :  { %2610 = vst [vmem:[%s3551_s2 + $0x70] sm:$0xff] %v2510_v26   ;;  %v2097_v29 = vadd.f32 %v2096_v25, %v2034_v28  ;;  %v1192_v30 = vpop.f32.mrb[60].mxu1 }
 0x18d   :  { %v1481_v31 = vpop.f32.mrb[60].mxu0  ;;  %v1194_v32 = vpop.f32.mrb[61].mxu1 }
 0x18e   :  { %v1482_v33 = vadd.f32 %v1481_v31, %v1192_v30  ;;  %v1483_v34 = vpop.f32.mrb[61].mxu0  ;;  %v1195_v35 = vpop.f32.mrb[62].mxu1 }
 0x18f   :  { %v1484_v36 = vpop.f32.mrb[62].mxu0  ;;  %v1197_v37 = vpop.f32.mrb[63].mxu1 }
 0x190   :  { %v1965_v38 = vadd.f32 %v1964_v27, %v1482_v33  ;;  %v2035_v39 = vmul.f32 %v1482_v33, %v1482_v33  ;;  %v1485_v40 = vadd.f32 %v1484_v36, %v1195_v35  ;;  %v1486_v41 = vpop.f32.mrb[63].mxu0 }
 0x192   :  { %v2098_v42 = vadd.f32 %v2097_v29, %v2035_v39  ;;  %v2515_v43 = vpack.c.bf16 %v1485_v40, %v1482_v33  ;;  %v1966_v44 = vadd.f32 %v1965_v38, %v1485_v40  ;;  %v2036_v45 = vmul.f32 %v1485_v40, %v1485_v40 }
 0x194   :  { %2611 = vst [vmem:[%s3551_s2 + $0x78] sm:$0xff] %v2515_v43   ;;  %v2099_v46 = vadd.f32 %v2098_v42, %v2036_v45  ;;  %v1200_v47 = vpop.f32.mrb[64].mxu1 }
 0x195   :  { %v1489_v48 = vpop.f32.mrb[64].mxu0  ;;  %v1202_v49 = vpop.f32.mrb[65].mxu1 }
 0x196   :  { %v1490_v50 = vadd.f32 %v1489_v48, %v1200_v47  ;;  %v1491_v51 = vpop.f32.mrb[65].mxu0  ;;  %v1203_v52 = vpop.f32.mrb[66].mxu1 }
 0x197   :  { %v1492_v53 = vpop.f32.mrb[66].mxu0  ;;  %v1205_v54 = vpop.f32.mrb[67].mxu1 }
 0x198   :  { %v1967_v55 = vadd.f32 %v1966_v44, %v1490_v50  ;;  %v2037_v56 = vmul.f32 %v1490_v50, %v1490_v50  ;;  %v1493_v57 = vadd.f32 %v1492_v53, %v1203_v52  ;;  %v1494_v58 = vpop.f32.mrb[67].mxu0 }
 0x19a   :  { %v2100_v59 = vadd.f32 %v2099_v46, %v2037_v56  ;;  %v2520_v60 = vpack.c.bf16 %v1493_v57, %v1490_v50  ;;  %v1968_v61 = vadd.f32 %v1967_v55, %v1493_v57  ;;  %v2038_v62 = vmul.f32 %v1493_v57, %v1493_v57 }
 0x19c   :  { %2612 = vst [vmem:[%s3551_s2 + $0x80] sm:$0xff] %v2520_v60   ;;  %v2101_v63 = vadd.f32 %v2100_v59, %v2038_v62  ;;  %v1208_v0 = vpop.f32.mrb[68].mxu1 }
 0x19d   :  { %v1497_v1 = vpop.f32.mrb[68].mxu0  ;;  %v1210_v2 = vpop.f32.mrb[69].mxu1 }
 0x19e   :  { %v1498_v3 = vadd.f32 %v1497_v1, %v1208_v0  ;;  %v1499_v4 = vpop.f32.mrb[69].mxu0  ;;  %v1211_v5 = vpop.f32.mrb[70].mxu1 }
 0x19f   :  { %v1500_v6 = vpop.f32.mrb[70].mxu0  ;;  %v1213_v7 = vpop.f32.mrb[71].mxu1 }
 0x1a0   :  { %v1969_v8 = vadd.f32 %v1968_v61, %v1498_v3  ;;  %v2039_v9 = vmul.f32 %v1498_v3, %v1498_v3  ;;  %v1501_v10 = vadd.f32 %v1500_v6, %v1211_v5  ;;  %v1502_v11 = vpop.f32.mrb[71].mxu0 }
 0x1a2   :  { %v2102_v12 = vadd.f32 %v2101_v63, %v2039_v9  ;;  %v2525_v13 = vpack.c.bf16 %v1501_v10, %v1498_v3  ;;  %v1970_v14 = vadd.f32 %v1969_v8, %v1501_v10  ;;  %v2040_v15 = vmul.f32 %v1501_v10, %v1501_v10 }
 0x1a4   :  { %2613 = vst [vmem:[%s3551_s2 + $0x88] sm:$0xff] %v2525_v13   ;;  %v2103_v16 = vadd.f32 %v2102_v12, %v2040_v15  ;;  %v1216_v17 = vpop.f32.mrb[72].mxu1 }
 0x1a5   :  { %v1505_v18 = vpop.f32.mrb[72].mxu0  ;;  %v1218_v19 = vpop.f32.mrb[73].mxu1 }
 0x1a6   :  { %v1506_v20 = vadd.f32 %v1505_v18, %v1216_v17  ;;  %v1507_v21 = vpop.f32.mrb[73].mxu0  ;;  %v1219_v22 = vpop.f32.mrb[74].mxu1 }
 0x1a7   :  { %v1508_v23 = vpop.f32.mrb[74].mxu0  ;;  %v1221_v24 = vpop.f32.mrb[75].mxu1 }
 0x1a8   :  { %v1971_v25 = vadd.f32 %v1970_v14, %v1506_v20  ;;  %v2041_v26 = vmul.f32 %v1506_v20, %v1506_v20  ;;  %v1509_v27 = vadd.f32 %v1508_v23, %v1219_v22  ;;  %v1510_v28 = vpop.f32.mrb[75].mxu0 }
 0x1aa   :  { %v2104_v29 = vadd.f32 %v2103_v16, %v2041_v26  ;;  %v2530_v30 = vpack.c.bf16 %v1509_v27, %v1506_v20  ;;  %v1972_v31 = vadd.f32 %v1971_v25, %v1509_v27  ;;  %v2042_v32 = vmul.f32 %v1509_v27, %v1509_v27 }
 0x1ac   :  { %2614 = vst [vmem:[%s3551_s2 + $0x90] sm:$0xff] %v2530_v30   ;;  %v2105_v33 = vadd.f32 %v2104_v29, %v2042_v32  ;;  %v1224_v34 = vpop.f32.mrb[76].mxu1 }
 0x1ad   :  { %v1513_v35 = vpop.f32.mrb[76].mxu0  ;;  %v1226_v36 = vpop.f32.mrb[77].mxu1 }
 0x1ae   :  { %v1514_v37 = vadd.f32 %v1513_v35, %v1224_v34  ;;  %v1515_v38 = vpop.f32.mrb[77].mxu0  ;;  %v1227_v39 = vpop.f32.mrb[78].mxu1 }
 0x1af   :  { %v1516_v40 = vpop.f32.mrb[78].mxu0  ;;  %v1229_v41 = vpop.f32.mrb[79].mxu1 }
 0x1b0   :  { %v1973_v42 = vadd.f32 %v1972_v31, %v1514_v37  ;;  %v2043_v43 = vmul.f32 %v1514_v37, %v1514_v37  ;;  %v1517_v44 = vadd.f32 %v1516_v40, %v1227_v39  ;;  %v1518_v45 = vpop.f32.mrb[79].mxu0 }
 0x1b2   :  { %v2106_v46 = vadd.f32 %v2105_v33, %v2043_v43  ;;  %v2535_v47 = vpack.c.bf16 %v1517_v44, %v1514_v37  ;;  %v1974_v48 = vadd.f32 %v1973_v42, %v1517_v44  ;;  %v2044_v49 = vmul.f32 %v1517_v44, %v1517_v44 }
 0x1b4   :  { %2615 = vst [vmem:[%s3551_s2 + $0x98] sm:$0xff] %v2535_v47   ;;  %v2107_v50 = vadd.f32 %v2106_v46, %v2044_v49  ;;  %v1232_v51 = vpop.f32.mrb[80].mxu1 }
 0x1b5   :  { %v1521_v52 = vpop.f32.mrb[80].mxu0  ;;  %v1234_v53 = vpop.f32.mrb[81].mxu1 }
 0x1b6   :  { %v1522_v54 = vadd.f32 %v1521_v52, %v1232_v51  ;;  %v1523_v55 = vpop.f32.mrb[81].mxu0  ;;  %v1235_v56 = vpop.f32.mrb[82].mxu1 }
 0x1b7   :  { %v1524_v57 = vpop.f32.mrb[82].mxu0  ;;  %v1237_v58 = vpop.f32.mrb[83].mxu1 }
 0x1b8   :  { %v1975_v59 = vadd.f32 %v1974_v48, %v1522_v54  ;;  %v2045_v60 = vmul.f32 %v1522_v54, %v1522_v54  ;;  %v1525_v61 = vadd.f32 %v1524_v57, %v1235_v56  ;;  %v1526_v62 = vpop.f32.mrb[83].mxu0 }
 0x1ba   :  { %v2108_v63 = vadd.f32 %v2107_v50, %v2045_v60  ;;  %v2540_v0 = vpack.c.bf16 %v1525_v61, %v1522_v54  ;;  %v1976_v1 = vadd.f32 %v1975_v59, %v1525_v61  ;;  %v2046_v2 = vmul.f32 %v1525_v61, %v1525_v61 }
 0x1bc   :  { %2616 = vst [vmem:[%s3551_s2 + $0xa0] sm:$0xff] %v2540_v0   ;;  %v2109_v3 = vadd.f32 %v2108_v63, %v2046_v2  ;;  %v1240_v4 = vpop.f32.mrb[84].mxu1 }
 0x1bd   :  { %v1529_v5 = vpop.f32.mrb[84].mxu0  ;;  %v1242_v6 = vpop.f32.mrb[85].mxu1 }
 0x1be   :  { %v1530_v7 = vadd.f32 %v1529_v5, %v1240_v4  ;;  %v1531_v8 = vpop.f32.mrb[85].mxu0  ;;  %v1243_v9 = vpop.f32.mrb[86].mxu1 }
 0x1bf   :  { %v1532_v10 = vpop.f32.mrb[86].mxu0  ;;  %v1245_v11 = vpop.f32.mrb[87].mxu1 }
 0x1c0   :  { %v1977_v12 = vadd.f32 %v1976_v1, %v1530_v7  ;;  %v2047_v13 = vmul.f32 %v1530_v7, %v1530_v7  ;;  %v1533_v14 = vadd.f32 %v1532_v10, %v1243_v9  ;;  %v1534_v15 = vpop.f32.mrb[87].mxu0 }
 0x1c2   :  { %v2110_v16 = vadd.f32 %v2109_v3, %v2047_v13  ;;  %v2545_v17 = vpack.c.bf16 %v1533_v14, %v1530_v7  ;;  %v1978_v18 = vadd.f32 %v1977_v12, %v1533_v14  ;;  %v2048_v19 = vmul.f32 %v1533_v14, %v1533_v14 }
 0x1c4   :  { %2617 = vst [vmem:[%s3551_s2 + $0xa8] sm:$0xff] %v2545_v17   ;;  %v2111_v20 = vadd.f32 %v2110_v16, %v2048_v19  ;;  %v1248_v21 = vpop.f32.mrb[88].mxu1 }
 0x1c5   :  { %v1537_v22 = vpop.f32.mrb[88].mxu0  ;;  %v1250_v23 = vpop.f32.mrb[89].mxu1 }
 0x1c6   :  { %v1538_v24 = vadd.f32 %v1537_v22, %v1248_v21  ;;  %v1539_v25 = vpop.f32.mrb[89].mxu0  ;;  %v1251_v26 = vpop.f32.mrb[90].mxu1 }
 0x1c7   :  { %v1540_v27 = vpop.f32.mrb[90].mxu0  ;;  %v1253_v28 = vpop.f32.mrb[91].mxu1 }
 0x1c8   :  { %v1979_v29 = vadd.f32 %v1978_v18, %v1538_v24  ;;  %v2049_v30 = vmul.f32 %v1538_v24, %v1538_v24  ;;  %v1541_v31 = vadd.f32 %v1540_v27, %v1251_v26  ;;  %v1542_v32 = vpop.f32.mrb[91].mxu0 }
 0x1ca   :  { %v2112_v33 = vadd.f32 %v2111_v20, %v2049_v30  ;;  %v2550_v34 = vpack.c.bf16 %v1541_v31, %v1538_v24  ;;  %v1980_v35 = vadd.f32 %v1979_v29, %v1541_v31  ;;  %v2050_v36 = vmul.f32 %v1541_v31, %v1541_v31 }
 0x1cc   :  { %2618 = vst [vmem:[%s3551_s2 + $0xb0] sm:$0xff] %v2550_v34   ;;  %v2113_v37 = vadd.f32 %v2112_v33, %v2050_v36  ;;  %v1256_v38 = vpop.f32.mrb[92].mxu1 }
 0x1cd   :  { %v1545_v39 = vpop.f32.mrb[92].mxu0  ;;  %v1258_v40 = vpop.f32.mrb[93].mxu1 }
 0x1ce   :  { %v1546_v41 = vadd.f32 %v1545_v39, %v1256_v38  ;;  %v1547_v42 = vpop.f32.mrb[93].mxu0  ;;  %v1259_v43 = vpop.f32.mrb[94].mxu1 }
 0x1cf   :  { %v1548_v44 = vpop.f32.mrb[94].mxu0  ;;  %v1261_v45 = vpop.f32.mrb[95].mxu1 }
 0x1d0   :  { %v1981_v46 = vadd.f32 %v1980_v35, %v1546_v41  ;;  %v2051_v47 = vmul.f32 %v1546_v41, %v1546_v41  ;;  %v1549_v48 = vadd.f32 %v1548_v44, %v1259_v43  ;;  %v1550_v49 = vpop.f32.mrb[95].mxu0 }
 0x1d2   :  { %v2114_v50 = vadd.f32 %v2113_v37, %v2051_v47  ;;  %v2555_v51 = vpack.c.bf16 %v1549_v48, %v1546_v41  ;;  %v1982_v52 = vadd.f32 %v1981_v46, %v1549_v48  ;;  %v2052_v53 = vmul.f32 %v1549_v48, %v1549_v48 }
 0x1d4   :  { %2619 = vst [vmem:[%s3551_s2 + $0xb8] sm:$0xff] %v2555_v51   ;;  %v2115_v54 = vadd.f32 %v2114_v50, %v2052_v53  ;;  %v1264_v55 = vpop.f32.mrb[96].mxu1 }
 0x1d5   :  { %v1553_v56 = vpop.f32.mrb[96].mxu0  ;;  %v1266_v57 = vpop.f32.mrb[97].mxu1 }
 0x1d6   :  { %v1554_v58 = vadd.f32 %v1553_v56, %v1264_v55  ;;  %v1555_v59 = vpop.f32.mrb[97].mxu0  ;;  %v1267_v60 = vpop.f32.mrb[98].mxu1 }
 0x1d7   :  { %v1556_v61 = vpop.f32.mrb[98].mxu0  ;;  %v1269_v62 = vpop.f32.mrb[99].mxu1 }
 0x1d8   :  { %v1983_v63 = vadd.f32 %v1982_v52, %v1554_v58  ;;  %v2053_v0 = vmul.f32 %v1554_v58, %v1554_v58  ;;  %v1557_v1 = vadd.f32 %v1556_v61, %v1267_v60  ;;  %v1558_v2 = vpop.f32.mrb[99].mxu0 }
 0x1da   :  { %v2116_v3 = vadd.f32 %v2115_v54, %v2053_v0  ;;  %v2560_v4 = vpack.c.bf16 %v1557_v1, %v1554_v58  ;;  %v1984_v5 = vadd.f32 %v1983_v63, %v1557_v1  ;;  %v2054_v6 = vmul.f32 %v1557_v1, %v1557_v1 }
 0x1dc   :  { %2620 = vst [vmem:[%s3551_s2 + $0xc0] sm:$0xff] %v2560_v4   ;;  %v2117_v7 = vadd.f32 %v2116_v3, %v2054_v6  ;;  %v1272_v8 = vpop.f32.mrb[100].mxu1 }
 0x1dd   :  { %v1561_v9 = vpop.f32.mrb[100].mxu0  ;;  %v1274_v10 = vpop.f32.mrb[101].mxu1 }
 0x1de   :  { %v1562_v11 = vadd.f32 %v1561_v9, %v1272_v8  ;;  %v1563_v12 = vpop.f32.mrb[101].mxu0  ;;  %v1275_v13 = vpop.f32.mrb[102].mxu1 }
 0x1df   :  { %v1564_v14 = vpop.f32.mrb[102].mxu0  ;;  %v1277_v15 = vpop.f32.mrb[103].mxu1 }
 0x1e0   :  { %v1985_v16 = vadd.f32 %v1984_v5, %v1562_v11  ;;  %v2055_v17 = vmul.f32 %v1562_v11, %v1562_v11  ;;  %v1565_v18 = vadd.f32 %v1564_v14, %v1275_v13  ;;  %v1566_v19 = vpop.f32.mrb[103].mxu0 }
 0x1e2   :  { %v2118_v20 = vadd.f32 %v2117_v7, %v2055_v17  ;;  %v2565_v21 = vpack.c.bf16 %v1565_v18, %v1562_v11  ;;  %v1986_v22 = vadd.f32 %v1985_v16, %v1565_v18  ;;  %v2056_v23 = vmul.f32 %v1565_v18, %v1565_v18 }
 0x1e4   :  { %2621 = vst [vmem:[%s3551_s2 + $0xc8] sm:$0xff] %v2565_v21   ;;  %v2119_v24 = vadd.f32 %v2118_v20, %v2056_v23  ;;  %v1280_v25 = vpop.f32.mrb[104].mxu1 }
 0x1e5   :  { %v1569_v26 = vpop.f32.mrb[104].mxu0  ;;  %v1282_v27 = vpop.f32.mrb[105].mxu1 }
 0x1e6   :  { %v1570_v28 = vadd.f32 %v1569_v26, %v1280_v25  ;;  %v1571_v29 = vpop.f32.mrb[105].mxu0  ;;  %v1283_v30 = vpop.f32.mrb[106].mxu1 }
 0x1e7   :  { %v1572_v31 = vpop.f32.mrb[106].mxu0  ;;  %v1285_v32 = vpop.f32.mrb[107].mxu1 }
 0x1e8   :  { %v1987_v33 = vadd.f32 %v1986_v22, %v1570_v28  ;;  %v2057_v34 = vmul.f32 %v1570_v28, %v1570_v28  ;;  %v1573_v35 = vadd.f32 %v1572_v31, %v1283_v30  ;;  %v1574_v36 = vpop.f32.mrb[107].mxu0 }
 0x1ea   :  { %v2120_v37 = vadd.f32 %v2119_v24, %v2057_v34  ;;  %v2570_v38 = vpack.c.bf16 %v1573_v35, %v1570_v28  ;;  %v1988_v39 = vadd.f32 %v1987_v33, %v1573_v35  ;;  %v2058_v40 = vmul.f32 %v1573_v35, %v1573_v35 }
 0x1ec   :  { %2622 = vst [vmem:[%s3551_s2 + $0xd0] sm:$0xff] %v2570_v38   ;;  %v2121_v41 = vadd.f32 %v2120_v37, %v2058_v40  ;;  %v1288_v42 = vpop.f32.mrb[108].mxu1 }
 0x1ed   :  { %v1577_v43 = vpop.f32.mrb[108].mxu0  ;;  %v1290_v44 = vpop.f32.mrb[109].mxu1 }
 0x1ee   :  { %v1578_v45 = vadd.f32 %v1577_v43, %v1288_v42  ;;  %v1579_v46 = vpop.f32.mrb[109].mxu0  ;;  %v1291_v47 = vpop.f32.mrb[110].mxu1 }
 0x1ef   :  { %v1580_v48 = vpop.f32.mrb[110].mxu0  ;;  %v1293_v49 = vpop.f32.mrb[111].mxu1 }
 0x1f0   :  { %v1989_v50 = vadd.f32 %v1988_v39, %v1578_v45  ;;  %v2059_v51 = vmul.f32 %v1578_v45, %v1578_v45  ;;  %v1581_v52 = vadd.f32 %v1580_v48, %v1291_v47  ;;  %v1582_v53 = vpop.f32.mrb[111].mxu0 }
 0x1f2   :  { %v2122_v54 = vadd.f32 %v2121_v41, %v2059_v51  ;;  %v2575_v55 = vpack.c.bf16 %v1581_v52, %v1578_v45  ;;  %v1990_v56 = vadd.f32 %v1989_v50, %v1581_v52  ;;  %v2060_v57 = vmul.f32 %v1581_v52, %v1581_v52 }
 0x1f4   :  { %2623 = vst [vmem:[%s3551_s2 + $0xd8] sm:$0xff] %v2575_v55   ;;  %v2123_v58 = vadd.f32 %v2122_v54, %v2060_v57  ;;  %v1296_v59 = vpop.f32.mrb[112].mxu1 }
 0x1f5   :  { %v1585_v60 = vpop.f32.mrb[112].mxu0  ;;  %v1298_v61 = vpop.f32.mrb[113].mxu1 }
 0x1f6   :  { %v1586_v62 = vadd.f32 %v1585_v60, %v1296_v59  ;;  %v1587_v63 = vpop.f32.mrb[113].mxu0  ;;  %v1299_v0 = vpop.f32.mrb[114].mxu1 }
 0x1f7   :  { %v1588_v1 = vpop.f32.mrb[114].mxu0  ;;  %v1301_v2 = vpop.f32.mrb[115].mxu1 }
 0x1f8   :  { %v1991_v3 = vadd.f32 %v1990_v56, %v1586_v62  ;;  %v2061_v4 = vmul.f32 %v1586_v62, %v1586_v62  ;;  %v1589_v5 = vadd.f32 %v1588_v1, %v1299_v0  ;;  %v1590_v6 = vpop.f32.mrb[115].mxu0 }
 0x1fa   :  { %v2124_v7 = vadd.f32 %v2123_v58, %v2061_v4  ;;  %v2580_v8 = vpack.c.bf16 %v1589_v5, %v1586_v62  ;;  %v1992_v9 = vadd.f32 %v1991_v3, %v1589_v5  ;;  %v2062_v10 = vmul.f32 %v1589_v5, %v1589_v5 }
 0x1fc   :  { %2624 = vst [vmem:[%s3551_s2 + $0xe0] sm:$0xff] %v2580_v8   ;;  %v2125_v11 = vadd.f32 %v2124_v7, %v2062_v10  ;;  %v1304_v12 = vpop.f32.mrb[116].mxu1 }
 0x1fd   :  { %v1593_v13 = vpop.f32.mrb[116].mxu0  ;;  %v1306_v14 = vpop.f32.mrb[117].mxu1 }
 0x1fe   :  { %v1594_v15 = vadd.f32 %v1593_v13, %v1304_v12  ;;  %v1595_v16 = vpop.f32.mrb[117].mxu0  ;;  %v1307_v17 = vpop.f32.mrb[118].mxu1 }
 0x1ff   :  { %v1596_v18 = vpop.f32.mrb[118].mxu0  ;;  %v1309_v19 = vpop.f32.mrb[119].mxu1 }
 0x200   :  { %v1993_v20 = vadd.f32 %v1992_v9, %v1594_v15  ;;  %v2063_v21 = vmul.f32 %v1594_v15, %v1594_v15  ;;  %v1597_v22 = vadd.f32 %v1596_v18, %v1307_v17  ;;  %v1598_v23 = vpop.f32.mrb[119].mxu0 }
 0x202   :  { %v2126_v24 = vadd.f32 %v2125_v11, %v2063_v21  ;;  %v2585_v25 = vpack.c.bf16 %v1597_v22, %v1594_v15  ;;  %v1994_v26 = vadd.f32 %v1993_v20, %v1597_v22  ;;  %v2064_v27 = vmul.f32 %v1597_v22, %v1597_v22 }
 0x204   :  { %2625 = vst [vmem:[%s3551_s2 + $0xe8] sm:$0xff] %v2585_v25   ;;  %v2127_v28 = vadd.f32 %v2126_v24, %v2064_v27  ;;  %v1312_v29 = vpop.f32.mrb[120].mxu1 }
 0x205   :  { %v1601_v30 = vpop.f32.mrb[120].mxu0  ;;  %v1314_v31 = vpop.f32.mrb[121].mxu1 }
 0x206   :  { %v1602_v32 = vadd.f32 %v1601_v30, %v1312_v29  ;;  %v1603_v33 = vpop.f32.mrb[121].mxu0  ;;  %v1315_v34 = vpop.f32.mrb[122].mxu1 }
 0x207   :  { %v1604_v35 = vpop.f32.mrb[122].mxu0  ;;  %v1317_v36 = vpop.f32.mrb[123].mxu1 }
 0x208   :  { %v1995_v37 = vadd.f32 %v1994_v26, %v1602_v32  ;;  %v2065_v38 = vmul.f32 %v1602_v32, %v1602_v32  ;;  %v1605_v39 = vadd.f32 %v1604_v35, %v1315_v34  ;;  %v1606_v40 = vpop.f32.mrb[123].mxu0 }
 0x20a   :  { %v2128_v41 = vadd.f32 %v2127_v28, %v2065_v38  ;;  %v2590_v42 = vpack.c.bf16 %v1605_v39, %v1602_v32  ;;  %v1996_v43 = vadd.f32 %v1995_v37, %v1605_v39  ;;  %v2066_v44 = vmul.f32 %v1605_v39, %v1605_v39 }
 0x20c   :  { %2626 = vst [vmem:[%s3551_s2 + $0xf0] sm:$0xff] %v2590_v42   ;;  %v2129_v45 = vadd.f32 %v2128_v41, %v2066_v44  ;;  %v1320_v46 = vpop.f32.mrb[124].mxu1 }
 0x20d   :  { %v1609_v47 = vpop.f32.mrb[124].mxu0  ;;  %v1322_v48 = vpop.f32.mrb[125].mxu1 }
 0x20e   :  { %v1610_v49 = vadd.f32 %v1609_v47, %v1320_v46  ;;  %v1611_v50 = vpop.f32.mrb[125].mxu0  ;;  %v1323_v51 = vpop.f32.mrb[126].mxu1 }
 0x20f   :  { %v1612_v52 = vpop.f32.mrb[126].mxu0  ;;  %v1325_v53 = vpop.f32.mrb[127].mxu1 }
 0x210   :  { %v1997_v54 = vadd.f32 %v1996_v43, %v1610_v49  ;;  %v2067_v55 = vmul.f32 %v1610_v49, %v1610_v49  ;;  %v1613_v56 = vadd.f32 %v1612_v52, %v1323_v51  ;;  %v1614_v57 = vpop.f32.mrb[127].mxu0 }
 0x212   :  { %v2130_v58 = vadd.f32 %v2129_v45, %v2067_v55  ;;  %v2595_v59 = vpack.c.bf16 %v1613_v56, %v1610_v49  ;;  %v1998_v60 = vadd.f32 %v1997_v54, %v1613_v56  ;;  %v2068_v61 = vmul.f32 %v1613_v56, %v1613_v56 }
 0x214   :  { %2627 = vst [vmem:[%s3551_s2 + $0xf8] sm:$0xff] %v2595_v59   ;;  %v1999_v62 = vrot.slane %v1998_v60, 4  ;;  %v2131_v63 = vadd.f32 %v2130_v58, %v2068_v61 }
 0x216   :  { %v2000_v0 = vadd.f32 %v1999_v62, %v1998_v60  ;;  %v2132_v1 = vrot.slane %v2131_v63, 4 }
 0x218   :  { %v2001_v2 = vrot.slane %v2000_v0, 2  ;;  %v2133_v3 = vadd.f32 %v2132_v1, %v2131_v63 }
 0x21a   :  { %v2002_v4 = vadd.f32 %v2001_v2, %v2000_v0  ;;  %v2134_v5 = vrot.slane %v2133_v3, 2 }
 0x21c   :  { %v2003_v6 = vrot.slane %v2002_v4, 1  ;;  %v2135_v7 = vadd.f32 %v2134_v5, %v2133_v3 }
 0x21e   :  { %v2136_v8 = vrot.slane %v2135_v7, 1  ;;  %v2004_v9 = vadd.f32 %v2003_v6, %v2002_v4 }
 0x220   :  { %v2137_v10 = vadd.f32 %v2136_v8, %v2135_v7 }
 0x222   :  { %v2139_v11 = vsel %vm2138_vm0, %v2004_v9, %v2137_v10 }
 0x223   :  { %2140 = vst [vmem:[%s3552_s3] sm:$0x3] %v2139_v11 }

// kernel: bottleneck_forward.6
= control target key start
LH: loop header
LB: loop body
LE: loop exit
PB: predicated region body
PF: predicated region fallthrough
CT: control target
= control target key end

     0   :  { %v3524_v1 = vmov 0   ;;  %vm2988_vm0 = vcmask 1040384   ;;  %s4364_s3 = inlined_call_operand.vmem [shape: bf16[128,512], index: 3, kind: input, shape index: {}]   ;;  %s4365_s0 = inlined_call_operand.vmem [shape: bf16[512,128], index: 0, kind: input, shape index: {}]   ;;  %s4366_s1 = inlined_call_operand.vmem [shape: f32[1,128], index: 1, kind: input, shape index: {}]   ;;  %s4367_s2 = inlined_call_operand.vmem [shape: f32[1,128], index: 2, kind: input, shape index: {}]   ;;  %s4368_s4 = inlined_call_operand.vmem [shape: bf16[512,512], index: 4, kind: output, shape index: {0}]   ;;  %s4369_s5 = inlined_call_operand.vmem [shape: f32[1,2,512], index: 5, kind: output, shape index: {1}]  }
   0x1   :  { %v3475_v0 = vld [vmem:[%s4364_s3 + $0x4] ss:$16 sps:$4 sm:$0xff]   ;;  %610 = vmatprep.mubr.bf16.mxu0 %v3524_v1  ;;  %963 = vmatprep.mubr.bf16.mxu1 %v3524_v1  ;;  %v3477_v2 = vld [vmem:[%s4364_s3 + $0xc] ss:$16 sps:$4 sm:$0xff]   ;;  %v3479_v3 = vld [vmem:[%s4364_s3] ss:$16 sps:$4 sm:$0xff]  }
   0x2   :  { %578 = vmatprep.subr.bf16.mxu0 %v3475_v0  ;;  %v3480_v4 = vld [vmem:[%s4364_s3 + $0x8] ss:$16 sps:$4 sm:$0xff]   ;;  %931 = vmatprep.subr.bf16.mxu1 %v3477_v2  ;;  %v3481_v5 = vld [vmem:[%s4364_s3 + $0x24] ss:$16 sps:$4 sm:$0xff]   ;;  %v3483_v6 = vld [vmem:[%s4364_s3 + $0x2c] ss:$16 sps:$4 sm:$0xff]  }
   0x3   :  { %579 = vmatpush1.bf16.msra.mxu0 %v3479_v3  ;;  %932 = vmatpush1.bf16.msra.mxu1 %v3480_v4  ;;  %v3485_v7 = vld [vmem:[%s4364_s3 + $0x20] ss:$16 sps:$4 sm:$0xff]   ;;  %v3486_v8 = vld [vmem:[%s4364_s3 + $0x28] ss:$16 sps:$4 sm:$0xff]   ;;  %v3487_v9 = vld [vmem:[%s4364_s3 + $0x44] ss:$16 sps:$4 sm:$0xff]  }
   0x4   :  { %580 = vmatprep.subr.bf16.mxu0 %v3481_v5  ;;  %933 = vmatprep.subr.bf16.mxu1 %v3483_v6  ;;  %v3489_v10 = vld [vmem:[%s4364_s3 + $0x4c] ss:$16 sps:$4 sm:$0xff]   ;;  %v3491_v11 = vld [vmem:[%s4364_s3 + $0x40] ss:$16 sps:$4 sm:$0xff]   ;;  %v3492_v12 = vld [vmem:[%s4364_s3 + $0x48] ss:$16 sps:$4 sm:$0xff]  }
   0x5   :  { %v3493_v13 = vld [vmem:[%s4364_s3 + $0x64] ss:$16 sps:$4 sm:$0xff]   ;;  %v3495_v14 = vld [vmem:[%s4364_s3 + $0x6c] ss:$16 sps:$4 sm:$0xff]   ;;  %v3497_v15 = vld [vmem:[%s4364_s3 + $0x60] ss:$16 sps:$4 sm:$0xff]  }
   0x6   :  { %v3498_v16 = vld [vmem:[%s4364_s3 + $0x68] ss:$16 sps:$4 sm:$0xff]   ;;  %v3499_v17 = vld [vmem:[%s4364_s3 + $0x84] ss:$16 sps:$4 sm:$0xff]   ;;  %v3501_v18 = vld [vmem:[%s4364_s3 + $0x8c] ss:$16 sps:$4 sm:$0xff]  }
   0x7   :  { %581 = vmatpush1.bf16.msra.mxu0 %v3485_v7  ;;  %934 = vmatpush1.bf16.msra.mxu1 %v3486_v8  ;;  %v3503_v19 = vld [vmem:[%s4364_s3 + $0x80] ss:$16 sps:$4 sm:$0xff]   ;;  %v3504_v20 = vld [vmem:[%s4364_s3 + $0x88] ss:$16 sps:$4 sm:$0xff]   ;;  %v3505_v21 = vld [vmem:[%s4364_s3 + $0xa4] ss:$16 sps:$4 sm:$0xff]  }
   0x8   :  { %582 = vmatprep.subr.bf16.mxu0 %v3487_v9  ;;  %935 = vmatprep.subr.bf16.mxu1 %v3489_v10  ;;  %v3507_v22 = vld [vmem:[%s4364_s3 + $0xac] ss:$16 sps:$4 sm:$0xff]   ;;  %v3509_v23 = vld [vmem:[%s4364_s3 + $0xa0] ss:$16 sps:$4 sm:$0xff]   ;;  %v3510_v24 = vld [vmem:[%s4364_s3 + $0xa8] ss:$16 sps:$4 sm:$0xff]  }
   0x9   :  { %v3511_v25 = vld [vmem:[%s4364_s3 + $0xc4] ss:$16 sps:$4 sm:$0xff]   ;;  %v3513_v26 = vld [vmem:[%s4364_s3 + $0xcc] ss:$16 sps:$4 sm:$0xff]   ;;  %v3642_v28 = vld [vmem:[%s4366_s1] ss:$0 sm:$0xff] }
   0xa   :  { %v3315_v27 = vld [vmem:[%s4365_s0] sm:$0xff]   ;;  %v3442_v31 = vld [vmem:[%s4365_s0 + $0x8] sm:$0xff]   ;;  %v3443_v45 = vld [vmem:[%s4365_s0 + $0x10] sm:$0xff]  }
   0xb   :  { %583 = vmatpush1.bf16.msra.mxu0 %v3491_v11  ;;  %936 = vmatpush1.bf16.msra.mxu1 %v3492_v12  ;;  %v3316_v29 = vunpack.c.l.bf16 %v3315_v27  ;;  %v3317_v30 = vunpack.c.h.bf16 %v3315_v27  ;;  %v3650_v32 = vld [vmem:[%s4367_s2] ss:$0 sm:$0xff]  ;;  %v3320_v33 = vunpack.c.l.bf16 %v3442_v31  ;;  %v3321_v34 = vunpack.c.h.bf16 %v3442_v31  ;;  %v3516_v36 = vld [vmem:[%s4364_s3 + $0xc8] ss:$16 sps:$4 sm:$0xff]   ;;  %v3517_v39 = vld [vmem:[%s4364_s3 + $0xe4] ss:$16 sps:$4 sm:$0xff]  }
   0xc   :  { %584 = vmatprep.subr.bf16.mxu0 %v3493_v13  ;;  %937 = vmatprep.subr.bf16.mxu1 %v3495_v14  ;;  %v3515_v35 = vld [vmem:[%s4364_s3 + $0xc0] ss:$16 sps:$4 sm:$0xff]   ;;  %v3519_v40 = vld [vmem:[%s4364_s3 + $0xec] ss:$16 sps:$4 sm:$0xff]   ;;  %v3522_v47 = vld [vmem:[%s4364_s3 + $0xe8] ss:$16 sps:$4 sm:$0xff]   ;;  %v3324_v50 = vunpack.c.l.bf16 %v3443_v45  ;;  %v3325_v54 = vunpack.c.h.bf16 %v3443_v45 }
   0xd   :  { %v155_v37 = vmul.f32 %v3316_v29, %v3642_v28  ;;  %v156_v38 = vmul.f32 %v3317_v30, %v3642_v28  ;;  %v157_v43 = vmul.f32 %v3320_v33, %v3642_v28  ;;  %v158_v44 = vmul.f32 %v3321_v34, %v3642_v28  ;;  %v3521_v46 = vld [vmem:[%s4364_s3 + $0xe0] ss:$16 sps:$4 sm:$0xff]   ;;  %v3444_v59 = vld [vmem:[%s4365_s0 + $0x18] sm:$0xff]  }
   0xe   :  { %v159_v57 = vmul.f32 %v3324_v50, %v3642_v28  ;;  %v160_v58 = vmul.f32 %v3325_v54, %v3642_v28  ;;  %v3328_v60 = vunpack.c.l.bf16 %v3444_v59  ;;  %v3329_v0 = vunpack.c.h.bf16 %v3444_v59  ;;  %v3445_v6 = vld [vmem:[%s4365_s0 + $0x20] sm:$0xff]  }
   0xf   :  { %585 = vmatpush1.bf16.msra.mxu0 %v3497_v15  ;;  %938 = vmatpush1.bf16.msra.mxu1 %v3498_v16  ;;  %v226_v41 = vadd.f32 %v3650_v32, %v155_v37  ;;  %v227_v42 = vadd.f32 %v3650_v32, %v156_v38  ;;  %v228_v52 = vadd.f32 %v3650_v32, %v157_v43  ;;  %v3332_v7 = vunpack.c.l.bf16 %v3445_v6  ;;  %v3446_v16 = vld [vmem:[%s4365_s0 + $0x28] sm:$0xff]   ;;  %v3448_v38 = vld [vmem:[%s4365_s0 + $0x38] sm:$0xff]  }
  0x10   :  { %586 = vmatprep.subr.bf16.mxu0 %v3499_v17  ;;  %939 = vmatprep.subr.bf16.mxu1 %v3501_v18  ;;  %v229_v53 = vadd.f32 %v3650_v32, %v158_v44  ;;  %v230_v62 = vadd.f32 %v3650_v32, %v159_v57  ;;  %v231_v63 = vadd.f32 %v3650_v32, %v160_v58  ;;  %v3333_v11 = vunpack.c.h.bf16 %v3445_v6  ;;  %v3450_v58 = vld [vmem:[%s4365_s0 + $0x48] sm:$0xff]  }
  0x11   :  { %v290_v48 = vmax.f32 %v226_v41, 0.0  ;;  %v291_v49 = vmax.f32 %v227_v42, 0.0  ;;  %v292_v55 = vmax.f32 %v228_v52, 0.0  ;;  %v161_v4 = vmul.f32 %v3328_v60, %v3642_v28 }
  0x12   :  { %v293_v56 = vmax.f32 %v229_v53, 0.0  ;;  %v294_v2 = vmax.f32 %v230_v62, 0.0  ;;  %v295_v3 = vmax.f32 %v231_v63, 0.0  ;;  %v162_v5 = vmul.f32 %v3329_v0, %v3642_v28 }
  0x13   :  { %587 = vmatpush1.bf16.msra.mxu0 %v3503_v19  ;;  %940 = vmatpush1.bf16.msra.mxu1 %v3504_v20  ;;  %v354_v51 = vpack.c.bf16 %v291_v49, %v290_v48  ;;  %v232_v9 = vadd.f32 %v3650_v32, %v161_v4  ;;  %v163_v14 = vmul.f32 %v3332_v7, %v3642_v28  ;;  %v3336_v17 = vunpack.c.l.bf16 %v3446_v16  ;;  %v3449_v48 = vld [vmem:[%s4365_s0 + $0x40] sm:$0xff]  }
  0x14   :  { %588 = vmatprep.subr.bf16.mxu0 %v3505_v21  ;;  %941 = vmatprep.subr.bf16.mxu1 %v3507_v22  ;;  %v355_v61 = vpack.c.bf16 %v293_v56, %v292_v55  ;;  %v356_v8 = vpack.c.bf16 %v295_v3, %v294_v2  ;;  %v233_v10 = vadd.f32 %v3650_v32, %v162_v5  ;;  %v3337_v21 = vunpack.c.h.bf16 %v3446_v16  ;;  %v3451_v5 = vld [vmem:[%s4365_s0 + $0x50] sm:$0xff]  }
  0x15   :  { %v296_v12 = vmax.f32 %v232_v9, 0.0  ;;  %v164_v15 = vmul.f32 %v3333_v11, %v3642_v28  ;;  %v234_v19 = vadd.f32 %v3650_v32, %v163_v14  ;;  %v3345_v43 = vunpack.c.h.bf16 %v3448_v38 }
  0x16   :  { %v297_v13 = vmax.f32 %v233_v10, 0.0  ;;  %v3348_v49 = vunpack.c.l.bf16 %v3449_v48  ;;  %v3349_v53 = vunpack.c.h.bf16 %v3449_v48  ;;  %v3352_v59 = vunpack.c.l.bf16 %v3450_v58 }
  0x17   :  { %589 = vmatpush1.bf16.msra.mxu0 %v3509_v23  ;;  %942 = vmatpush1.bf16.msra.mxu1 %v3510_v24  ;;  %v235_v20 = vadd.f32 %v3650_v32, %v164_v15  ;;  %v298_v22 = vmax.f32 %v234_v19, 0.0  ;;  %v165_v24 = vmul.f32 %v3336_v17, %v3642_v28  ;;  %v3353_v63 = vunpack.c.h.bf16 %v3450_v58  ;;  %v3452_v15 = vld [vmem:[%s4365_s0 + $0x58] sm:$0xff]  }
  0x18   :  { %590 = vmatprep.subr.bf16.mxu0 %v3511_v25  ;;  %943 = vmatprep.subr.bf16.mxu1 %v3513_v26  ;;  %v357_v18 = vpack.c.bf16 %v297_v13, %v296_v12  ;;  %v166_v25 = vmul.f32 %v3337_v21, %v3642_v28  ;;  %v3447_v26 = vld [vmem:[%s4365_s0 + $0x30] sm:$0xff]   ;;  %v171_v56 = vmul.f32 %v3348_v49, %v3642_v28  ;;  %v3356_v6 = vunpack.c.l.bf16 %v3451_v5 }
  0x19   :  { %v299_v23 = vmax.f32 %v235_v20, 0.0  ;;  %v3340_v27 = vunpack.c.l.bf16 %v3447_v26  ;;  %v236_v30 = vadd.f32 %v3650_v32, %v165_v24  ;;  %v3341_v33 = vunpack.c.h.bf16 %v3447_v26 }
  0x1a   :  { %v237_v31 = vadd.f32 %v3650_v32, %v166_v25  ;;  %v172_v57 = vmul.f32 %v3349_v53, %v3642_v28  ;;  %v173_v3 = vmul.f32 %v3352_v59, %v3642_v28  ;;  %v174_v4 = vmul.f32 %v3353_v63, %v3642_v28  ;;  %v3453_v25 = vld [vmem:[%s4365_s0 + $0x60] sm:$0xff]  }
  0x1b   :  { %591 = vmatpush1.bf16.msra.mxu0 %v3515_v35  ;;  %944 = vmatpush1.bf16.msra.mxu1 %v3516_v36  ;;  %v358_v29 = vpack.c.bf16 %v299_v23, %v298_v22  ;;  %v300_v34 = vmax.f32 %v236_v30, 0.0  ;;  %v167_v36 = vmul.f32 %v3340_v27, %v3642_v28  ;;  %v168_v37 = vmul.f32 %v3341_v33, %v3642_v28 }
  0x1c   :  { %592 = vmatprep.subr.bf16.mxu0 %v3517_v39  ;;  %945 = vmatprep.subr.bf16.mxu1 %v3519_v40  ;;  %v301_v35 = vmax.f32 %v237_v31, 0.0  ;;  %v3344_v39 = vunpack.c.l.bf16 %v3448_v38  ;;  %v243_v62 = vadd.f32 %v3650_v32, %v172_v57  ;;  %v245_v9 = vadd.f32 %v3650_v32, %v174_v4  ;;  %v3456_v57 = vld [vmem:[%s4365_s0 + $0x78] sm:$0xff]   ;;  %v3457_v4 = vld [vmem:[%s4365_s0 + $0x80] sm:$0xff]  }
  0x1d   :  { %v238_v41 = vadd.f32 %v3650_v32, %v167_v36  ;;  %v239_v42 = vadd.f32 %v3650_v32, %v168_v37  ;;  %v3357_v10 = vunpack.c.h.bf16 %v3451_v5  ;;  %v175_v13 = vmul.f32 %v3356_v6, %v3642_v28  ;;  %v3454_v37 = vld [vmem:[%s4365_s0 + $0x68] sm:$0xff]  }
  0x1e   :  { %v359_v40 = vpack.c.bf16 %v301_v35, %v300_v34  ;;  %v307_v2 = vmax.f32 %v243_v62, 0.0  ;;  %v309_v12 = vmax.f32 %v245_v9, 0.0  ;;  %v3360_v16 = vunpack.c.l.bf16 %v3452_v15 }
  0x1f   :  { %593 = vmatpush1.bf16.msra.mxu0 %v3521_v46  ;;  %946 = vmatpush1.bf16.msra.mxu1 %v3522_v47  ;;  %v302_v44 = vmax.f32 %v238_v41, 0.0  ;;  %v303_v45 = vmax.f32 %v239_v42, 0.0  ;;  %v169_v46 = vmul.f32 %v3344_v39, %v3642_v28  ;;  %v170_v47 = vmul.f32 %v3345_v43, %v3642_v28 }
  0x20   :  { %v176_v14 = vmul.f32 %v3357_v10, %v3642_v28  ;;  %v3361_v20 = vunpack.c.h.bf16 %v3452_v15  ;;  %v177_v23 = vmul.f32 %v3360_v16, %v3642_v28  ;;  %v3364_v26 = vunpack.c.l.bf16 %v3453_v25 }
  0x21   :  { %v360_v50 = vpack.c.bf16 %v303_v45, %v302_v44  ;;  %v241_v52 = vadd.f32 %v3650_v32, %v170_v47  ;;  %v3365_v31 = vunpack.c.h.bf16 %v3453_v25  ;;  %v3368_v38 = vunpack.c.l.bf16 %v3454_v37  ;;  %v3455_v47 = vld [vmem:[%s4365_s0 + $0x70] sm:$0xff]  }
  0x22   :  { %611 = vmatmul.mubr.bf16.vlgmr.msra.gmra.mrb[0].mxu0 %v354_v51  ;;  %964 = vmatmul.mubr.bf16.vlgmr.msra.gmra.mrb[0].mxu1 %v354_v51  ;;  %v240_v51 = vadd.f32 %v3650_v32, %v169_v46  ;;  %v247_v19 = vadd.f32 %v3650_v32, %v176_v14  ;;  %v178_v24 = vmul.f32 %v3361_v20, %v3642_v28  ;;  %v3369_v42 = vunpack.c.h.bf16 %v3454_v37  ;;  %v3458_v14 = vld [vmem:[%s4365_s0 + $0x88] sm:$0xff]  }
  0x23   :  { %620 = vmatprep.mubr.bf16.mxu0 %v3524_v1  ;;  %973 = vmatprep.mubr.bf16.mxu1 %v3524_v1  ;;  %v305_v55 = vmax.f32 %v241_v52, 0.0  ;;  %v179_v35 = vmul.f32 %v3364_v26, %v3642_v28  ;;  %v180_v36 = vmul.f32 %v3365_v31, %v3642_v28  ;;  %v181_v45 = vmul.f32 %v3368_v38, %v3642_v28 }
  0x24   :  { %v304_v54 = vmax.f32 %v240_v51, 0.0  ;;  %v311_v22 = vmax.f32 %v247_v19, 0.0  ;;  %v249_v30 = vadd.f32 %v3650_v32, %v178_v24  ;;  %v182_v46 = vmul.f32 %v3369_v42, %v3642_v28  ;;  %v3459_v24 = vld [vmem:[%s4365_s0 + $0x90] sm:$0xff]  }
  0x25   :  { %v251_v41 = vadd.f32 %v3650_v32, %v180_v36  ;;  %v3372_v48 = vunpack.c.l.bf16 %v3455_v47  ;;  %v3373_v52 = vunpack.c.h.bf16 %v3455_v47  ;;  %v3376_v58 = vunpack.c.l.bf16 %v3456_v57  ;;  %v3460_v36 = vld [vmem:[%s4365_s0 + $0x98] sm:$0xff]  }
  0x26   :  { %v361_v60 = vpack.c.bf16 %v305_v55, %v304_v54  ;;  %v313_v34 = vmax.f32 %v249_v30, 0.0  ;;  %v253_v51 = vadd.f32 %v3650_v32, %v182_v46  ;;  %v3377_v62 = vunpack.c.h.bf16 %v3456_v57  ;;  %v3461_v46 = vld [vmem:[%s4365_s0 + $0xa0] sm:$0xff]  }
  0x27   :  { %v315_v44 = vmax.f32 %v251_v41, 0.0  ;;  %v183_v55 = vmul.f32 %v3372_v48, %v3642_v28  ;;  %v3380_v5 = vunpack.c.l.bf16 %v3457_v4  ;;  %v3381_v9 = vunpack.c.h.bf16 %v3457_v4 }
  0x28   :  { %v317_v54 = vmax.f32 %v253_v51, 0.0  ;;  %v3384_v15 = vunpack.c.l.bf16 %v3458_v14  ;;  %v3385_v19 = vunpack.c.h.bf16 %v3458_v14  ;;  %v3388_v25 = vunpack.c.l.bf16 %v3459_v24 }
  0x29   :  { %v3389_v30 = vunpack.c.h.bf16 %v3459_v24  ;;  %v3392_v37 = vunpack.c.l.bf16 %v3460_v36  ;;  %v3393_v41 = vunpack.c.h.bf16 %v3460_v36  ;;  %v3396_v47 = vunpack.c.l.bf16 %v3461_v46 }
  0x2a   :  { %621 = vmatmul.mubr.bf16.gmra.mrb[4].mxu0 %v355_v61  ;;  %974 = vmatmul.mubr.bf16.gmra.mrb[4].mxu1 %v355_v61  ;;  %v242_v61 = vadd.f32 %v3650_v32, %v171_v56  ;;  %v184_v56 = vmul.f32 %v3373_v52, %v3642_v28  ;;  %v3397_v51 = vunpack.c.h.bf16 %v3461_v46 }
  0x2b   :  { %630 = vmatprep.mubr.bf16.mxu0 %v3524_v1  ;;  %983 = vmatprep.mubr.bf16.mxu1 %v3524_v1 }
  0x2c   :  { %v306_v0 = vmax.f32 %v242_v61, 0.0  ;;  %v255_v61 = vadd.f32 %v3650_v32, %v184_v56  ;;  %v3462_v56 = vld [vmem:[%s4365_s0 + $0xa8] sm:$0xff]  }
  0x2d   :  { %v3400_v57 = vunpack.c.l.bf16 %v3462_v56 }
  0x2e   :  { %v362_v7 = vpack.c.bf16 %v307_v2, %v306_v0  ;;  %v319_v0 = vmax.f32 %v255_v61, 0.0  ;;  %v185_v2 = vmul.f32 %v3376_v58, %v3642_v28  ;;  %v3401_v58 = vunpack.c.h.bf16 %v3462_v56 }
  0x32   :  { %631 = vmatmul.mubr.bf16.gmra.mrb[8].mxu0 %v356_v8  ;;  %984 = vmatmul.mubr.bf16.gmra.mrb[8].mxu1 %v356_v8  ;;  %v244_v8 = vadd.f32 %v3650_v32, %v173_v3  ;;  %v186_v3 = vmul.f32 %v3377_v62, %v3642_v28  ;;  %v197_v62 = vmul.f32 %v3400_v57, %v3642_v28 }
  0x33   :  { %640 = vmatprep.mubr.bf16.mxu0 %v3524_v1  ;;  %993 = vmatprep.mubr.bf16.mxu1 %v3524_v1 }
  0x34   :  { %v308_v11 = vmax.f32 %v244_v8, 0.0  ;;  %v257_v8 = vadd.f32 %v3650_v32, %v186_v3  ;;  %v3463_v3 = vld [vmem:[%s4365_s0 + $0xb0] sm:$0xff]   ;;  %v268_v4 = vadd.f32 %v3650_v32, %v197_v62 }
  0x36   :  { %v363_v17 = vpack.c.bf16 %v309_v12, %v308_v11  ;;  %v321_v11 = vmax.f32 %v257_v8, 0.0  ;;  %v187_v12 = vmul.f32 %v3380_v5, %v3642_v28  ;;  %v3405_v8 = vunpack.c.h.bf16 %v3463_v3 }
  0x3a   :  { %641 = vmatmul.mubr.bf16.gmra.mrb[12].mxu0 %v357_v18  ;;  %994 = vmatmul.mubr.bf16.gmra.mrb[12].mxu1 %v357_v18  ;;  %v246_v18 = vadd.f32 %v3650_v32, %v175_v13  ;;  %v188_v13 = vmul.f32 %v3381_v9, %v3642_v28  ;;  %v332_v9 = vmax.f32 %v268_v4, 0.0 }
  0x3b   :  { %650 = vmatprep.mubr.bf16.mxu0 %v3524_v1  ;;  %1003 = vmatprep.mubr.bf16.mxu1 %v3524_v1 }
  0x3c   :  { %v310_v21 = vmax.f32 %v246_v18, 0.0  ;;  %v259_v18 = vadd.f32 %v3650_v32, %v188_v13  ;;  %v3464_v13 = vld [vmem:[%s4365_s0 + $0xb8] sm:$0xff]  }
  0x3e   :  { %v364_v27 = vpack.c.bf16 %v311_v22, %v310_v21  ;;  %v323_v21 = vmax.f32 %v259_v18, 0.0  ;;  %v189_v22 = vmul.f32 %v3384_v15, %v3642_v28  ;;  %v3409_v18 = vunpack.c.h.bf16 %v3464_v13 }
  0x42   :  { %651 = vmatmul.mubr.bf16.gmra.mrb[16].mxu0 %v358_v29  ;;  %1004 = vmatmul.mubr.bf16.gmra.mrb[16].mxu1 %v358_v29  ;;  %v248_v29 = vadd.f32 %v3650_v32, %v177_v23  ;;  %v190_v23 = vmul.f32 %v3385_v19, %v3642_v28 }
  0x43   :  { %660 = vmatprep.mubr.bf16.mxu0 %v3524_v1  ;;  %1013 = vmatprep.mubr.bf16.mxu1 %v3524_v1 }
  0x44   :  { %v312_v33 = vmax.f32 %v248_v29, 0.0  ;;  %v261_v29 = vadd.f32 %v3650_v32, %v190_v23  ;;  %v3465_v23 = vld [vmem:[%s4365_s0 + $0xc0] sm:$0xff]  }
  0x45   :  { %v3412_v24 = vunpack.c.l.bf16 %v3465_v23 }
  0x46   :  { %v365_v39 = vpack.c.bf16 %v313_v34, %v312_v33  ;;  %v325_v33 = vmax.f32 %v261_v29, 0.0  ;;  %v191_v34 = vmul.f32 %v3388_v25, %v3642_v28  ;;  %v3413_v25 = vunpack.c.h.bf16 %v3465_v23 }
  0x4a   :  { %661 = vmatmul.mubr.bf16.gmra.mrb[20].mxu0 %v359_v40  ;;  %1014 = vmatmul.mubr.bf16.gmra.mrb[20].mxu1 %v359_v40  ;;  %v250_v40 = vadd.f32 %v3650_v32, %v179_v35  ;;  %v192_v35 = vmul.f32 %v3389_v30, %v3642_v28  ;;  %v203_v30 = vmul.f32 %v3412_v24, %v3642_v28 }
  0x4b   :  { %670 = vmatprep.mubr.bf16.mxu0 %v3524_v1  ;;  %1023 = vmatprep.mubr.bf16.mxu1 %v3524_v1 }
  0x4c   :  { %v314_v43 = vmax.f32 %v250_v40, 0.0  ;;  %v263_v40 = vadd.f32 %v3650_v32, %v192_v35  ;;  %v3466_v35 = vld [vmem:[%s4365_s0 + $0xc8] sm:$0xff]   ;;  %v274_v36 = vadd.f32 %v3650_v32, %v203_v30 }
  0x4e   :  { %v366_v49 = vpack.c.bf16 %v315_v44, %v314_v43  ;;  %v327_v43 = vmax.f32 %v263_v40, 0.0  ;;  %v193_v44 = vmul.f32 %v3392_v37, %v3642_v28  ;;  %v3417_v40 = vunpack.c.h.bf16 %v3466_v35 }
  0x52   :  { %671 = vmatmul.mubr.bf16.gmra.mrb[24].mxu0 %v360_v50  ;;  %1024 = vmatmul.mubr.bf16.gmra.mrb[24].mxu1 %v360_v50  ;;  %v252_v50 = vadd.f32 %v3650_v32, %v181_v45  ;;  %v194_v45 = vmul.f32 %v3393_v41, %v3642_v28  ;;  %v338_v41 = vmax.f32 %v274_v36, 0.0 }
  0x53   :  { %680 = vmatprep.mubr.bf16.mxu0 %v3524_v1  ;;  %1033 = vmatprep.mubr.bf16.mxu1 %v3524_v1 }
  0x54   :  { %v316_v53 = vmax.f32 %v252_v50, 0.0  ;;  %v265_v50 = vadd.f32 %v3650_v32, %v194_v45  ;;  %v3467_v45 = vld [vmem:[%s4365_s0 + $0xd0] sm:$0xff]  }
  0x56   :  { %v367_v59 = vpack.c.bf16 %v317_v54, %v316_v53  ;;  %v329_v53 = vmax.f32 %v265_v50, 0.0  ;;  %v195_v54 = vmul.f32 %v3396_v47, %v3642_v28  ;;  %v3421_v50 = vunpack.c.h.bf16 %v3467_v45 }
  0x5a   :  { %681 = vmatmul.mubr.bf16.gmra.mrb[28].mxu0 %v361_v60  ;;  %1034 = vmatmul.mubr.bf16.gmra.mrb[28].mxu1 %v361_v60  ;;  %v254_v60 = vadd.f32 %v3650_v32, %v183_v55  ;;  %v196_v55 = vmul.f32 %v3397_v51, %v3642_v28  ;;  %v3468_v51 = vld [vmem:[%s4365_s0 + $0xd8] sm:$0xff]  }
  0x5b   :  { %690 = vmatprep.mubr.bf16.mxu0 %v3524_v1  ;;  %1043 = vmatprep.mubr.bf16.mxu1 %v3524_v1  ;;  %v3424_v56 = vunpack.c.l.bf16 %v3468_v51  ;;  %v3425_v57 = vunpack.c.h.bf16 %v3468_v51 }
  0x5c   :  { %v318_v63 = vmax.f32 %v254_v60, 0.0  ;;  %v266_v60 = vadd.f32 %v3650_v32, %v195_v54  ;;  %v267_v61 = vadd.f32 %v3650_v32, %v196_v55  ;;  %v208_v55 = vmul.f32 %v3421_v50, %v3642_v28 }
  0x5d   :  { %v209_v62 = vmul.f32 %v3424_v56, %v3642_v28 }
  0x5e   :  { %v368_v6 = vpack.c.bf16 %v319_v0, %v318_v63  ;;  %v198_v63 = vmul.f32 %v3401_v58, %v3642_v28  ;;  %v330_v0 = vmax.f32 %v266_v60, 0.0  ;;  %v3469_v58 = vld [vmem:[%s4365_s0 + $0xe0] sm:$0xff]  }
  0x60   :  { %v269_v5 = vadd.f32 %v3650_v32, %v198_v63  ;;  %v210_v63 = vmul.f32 %v3425_v57, %v3642_v28 }
  0x62   :  { %691 = vmatmul.mubr.bf16.gmra.mrb[32].mxu0 %v362_v7  ;;  %1044 = vmatmul.mubr.bf16.gmra.mrb[32].mxu1 %v362_v7  ;;  %v256_v7 = vadd.f32 %v3650_v32, %v185_v2  ;;  %v331_v2 = vmax.f32 %v267_v61, 0.0  ;;  %v279_v61 = vadd.f32 %v3650_v32, %v208_v55 }
  0x63   :  { %700 = vmatprep.mubr.bf16.mxu0 %v3524_v1  ;;  %1053 = vmatprep.mubr.bf16.mxu1 %v3524_v1 }
  0x64   :  { %v320_v10 = vmax.f32 %v256_v7, 0.0  ;;  %v3404_v7 = vunpack.c.l.bf16 %v3463_v3  ;;  %v343_v4 = vmax.f32 %v279_v61, 0.0 }
  0x66   :  { %v369_v16 = vpack.c.bf16 %v321_v11, %v320_v10  ;;  %v333_v10 = vmax.f32 %v269_v5, 0.0  ;;  %v199_v11 = vmul.f32 %v3404_v7, %v3642_v28  ;;  %v3470_v5 = vld [vmem:[%s4365_s0 + $0xe8] sm:$0xff]   ;;  %v281_v7 = vadd.f32 %v3650_v32, %v210_v63 }
  0x68   :  { %v375_v14 = vpack.c.bf16 %v333_v10, %v332_v9  ;;  %v270_v15 = vadd.f32 %v3650_v32, %v199_v11  ;;  %v3432_v10 = vunpack.c.l.bf16 %v3470_v5  ;;  %v3433_v11 = vunpack.c.h.bf16 %v3470_v5 }
  0x6a   :  { %701 = vmatmul.mubr.bf16.gmra.mrb[36].mxu0 %v363_v17  ;;  %1054 = vmatmul.mubr.bf16.gmra.mrb[36].mxu1 %v363_v17  ;;  %v258_v17 = vadd.f32 %v3650_v32, %v187_v12  ;;  %v200_v12 = vmul.f32 %v3405_v8, %v3642_v28  ;;  %v334_v19 = vmax.f32 %v270_v15, 0.0  ;;  %v345_v15 = vmax.f32 %v281_v7, 0.0 }
  0x6b   :  { %710 = vmatprep.mubr.bf16.mxu0 %v3524_v1  ;;  %1063 = vmatprep.mubr.bf16.mxu1 %v3524_v1 }
  0x6c   :  { %v322_v20 = vmax.f32 %v258_v17, 0.0  ;;  %v3408_v17 = vunpack.c.l.bf16 %v3464_v13  ;;  %v3471_v13 = vld [vmem:[%s4365_s0 + $0xf0] sm:$0xff]  }
  0x6e   :  { %v370_v26 = vpack.c.bf16 %v323_v21, %v322_v20  ;;  %v201_v21 = vmul.f32 %v3408_v17, %v3642_v28 }
  0x72   :  { %711 = vmatmul.mubr.bf16.gmra.mrb[40].mxu0 %v364_v27  ;;  %1064 = vmatmul.mubr.bf16.gmra.mrb[40].mxu1 %v364_v27  ;;  %v260_v27 = vadd.f32 %v3650_v32, %v189_v22  ;;  %v202_v22 = vmul.f32 %v3409_v18, %v3642_v28  ;;  %v213_v18 = vmul.f32 %v3432_v10, %v3642_v28 }
  0x73   :  { %720 = vmatprep.mubr.bf16.mxu0 %v3524_v1  ;;  %1073 = vmatprep.mubr.bf16.mxu1 %v3524_v1 }
  0x74   :  { %v324_v31 = vmax.f32 %v260_v27, 0.0  ;;  %v272_v27 = vadd.f32 %v3650_v32, %v201_v21  ;;  %v273_v29 = vadd.f32 %v3650_v32, %v202_v22  ;;  %v3437_v21 = vunpack.c.h.bf16 %v3471_v13  ;;  %v3472_v22 = vld [vmem:[%s4365_s0 + $0xf8] sm:$0xff]  }
  0x76   :  { %v371_v38 = vpack.c.bf16 %v325_v33, %v324_v31  ;;  %v204_v31 = vmul.f32 %v3413_v25, %v3642_v28  ;;  %v336_v33 = vmax.f32 %v272_v27, 0.0 }
  0x78   :  { %v275_v37 = vadd.f32 %v3650_v32, %v204_v31 }
  0x7a   :  { %721 = vmatmul.mubr.bf16.gmra.mrb[44].mxu0 %v365_v39  ;;  %1074 = vmatmul.mubr.bf16.gmra.mrb[44].mxu1 %v365_v39  ;;  %v262_v39 = vadd.f32 %v3650_v32, %v191_v34  ;;  %v337_v34 = vmax.f32 %v273_v29, 0.0  ;;  %v3933_v29 = vadd.f32 %v3650_v32, %v213_v18 }
  0x7b   :  { %730 = vmatprep.mubr.bf16.mxu0 %v3524_v1  ;;  %1083 = vmatprep.mubr.bf16.mxu1 %v3524_v1 }
  0x7c   :  { %v326_v42 = vmax.f32 %v262_v39, 0.0  ;;  %v3416_v39 = vunpack.c.l.bf16 %v3466_v35  ;;  %v348_v63 = vmax.f32 %v3933_v29, 0.0 }
  0x7e   :  { %v372_v48 = vpack.c.bf16 %v327_v43, %v326_v42  ;;  %v339_v42 = vmax.f32 %v275_v37, 0.0  ;;  %v205_v43 = vmul.f32 %v3416_v39, %v3642_v28  ;;  %v3441_v39 = vunpack.c.h.bf16 %v3472_v22 }
  0x80   :  { %v378_v46 = vpack.c.bf16 %v339_v42, %v338_v41  ;;  %v276_v47 = vadd.f32 %v3650_v32, %v205_v43  ;;  %v218_v7 = vmul.f32 %v3441_v39, %v3642_v28 }
  0x82   :  { %731 = vmatmul.mubr.bf16.gmra.mrb[48].mxu0 %v366_v49  ;;  %1084 = vmatmul.mubr.bf16.gmra.mrb[48].mxu1 %v366_v49  ;;  %v264_v49 = vadd.f32 %v3650_v32, %v193_v44  ;;  %v206_v44 = vmul.f32 %v3417_v40, %v3642_v28 }
  0x83   :  { %740 = vmatprep.mubr.bf16.mxu0 %v3524_v1  ;;  %1093 = vmatprep.mubr.bf16.mxu1 %v3524_v1 }
  0x84   :  { %v328_v52 = vmax.f32 %v264_v49, 0.0  ;;  %v3420_v49 = vunpack.c.l.bf16 %v3467_v45 }
  0x86   :  { %v207_v54 = vmul.f32 %v3420_v49, %v3642_v28 }
  0x88   :  { %v278_v60 = vadd.f32 %v3650_v32, %v207_v54 }
  0x8a   :  { %741 = vmatmul.mubr.bf16.gmra.mrb[52].mxu0 %v367_v59  ;;  %1094 = vmatmul.mubr.bf16.gmra.mrb[52].mxu1 %v367_v59  ;;  %v373_v59 = vpack.c.bf16 %v329_v53, %v328_v52  ;;  %v340_v52 = vmax.f32 %v276_v47, 0.0  ;;  %v342_v3 = vmax.f32 %v278_v60, 0.0 }
  0x8b   :  { %750 = vmatprep.mubr.bf16.mxu0 %v3524_v1  ;;  %1103 = vmatprep.mubr.bf16.mxu1 %v3524_v1 }
  0x92   :  { %751 = vmatmul.mubr.bf16.gmra.mrb[56].mxu0 %v368_v6  ;;  %1104 = vmatmul.mubr.bf16.gmra.mrb[56].mxu1 %v368_v6  ;;  %v374_v6 = vpack.c.bf16 %v331_v2, %v330_v0  ;;  %v3428_v0 = vunpack.c.l.bf16 %v3469_v58  ;;  %v3429_v2 = vunpack.c.h.bf16 %v3469_v58 }
  0x93   :  { %760 = vmatprep.mubr.bf16.mxu0 %v3524_v1  ;;  %1113 = vmatprep.mubr.bf16.mxu1 %v3524_v1 }
  0x94   :  { %v211_v8 = vmul.f32 %v3428_v0, %v3642_v28  ;;  %v212_v9 = vmul.f32 %v3429_v2, %v3642_v28 }
  0x96   :  { %v283_v17 = vadd.f32 %v3650_v32, %v212_v9 }
  0x98   :  { %v347_v25 = vmax.f32 %v283_v17, 0.0 }
  0x9a   :  { %761 = vmatmul.mubr.bf16.gmra.mrb[60].mxu0 %v369_v16  ;;  %1114 = vmatmul.mubr.bf16.gmra.mrb[60].mxu1 %v369_v16  ;;  %v271_v16 = vadd.f32 %v3650_v32, %v200_v12  ;;  %v380_v12 = vpack.c.bf16 %v343_v4, %v342_v3 }
  0x9b   :  { %770 = vmatprep.mubr.bf16.mxu0 %v3524_v1  ;;  %1123 = vmatprep.mubr.bf16.mxu1 %v3524_v1 }
  0x9c   :  { %v335_v20 = vmax.f32 %v271_v16, 0.0  ;;  %v282_v16 = vadd.f32 %v3650_v32, %v211_v8 }
  0x9e   :  { %v346_v24 = vmax.f32 %v282_v16, 0.0 }
  0xa2   :  { %771 = vmatmul.mubr.bf16.gmra.mrb[64].mxu0 %v370_v26  ;;  %1124 = vmatmul.mubr.bf16.gmra.mrb[64].mxu1 %v370_v26  ;;  %v376_v26 = vpack.c.bf16 %v335_v20, %v334_v19  ;;  %v214_v19 = vmul.f32 %v3433_v11, %v3642_v28  ;;  %v3436_v20 = vunpack.c.l.bf16 %v3471_v13 }
  0xa3   :  { %780 = vmatprep.mubr.bf16.mxu0 %v3524_v1  ;;  %1133 = vmatprep.mubr.bf16.mxu1 %v3524_v1 }
  0xa4   :  { %v3936_v30 = vadd.f32 %v3650_v32, %v214_v19  ;;  %v215_v31 = vmul.f32 %v3436_v20, %v3642_v28 }
  0xa6   :  { %v349_v0 = vmax.f32 %v3936_v30, 0.0  ;;  %v3957_v4 = vadd.f32 %v3650_v32, %v215_v31 }
  0xaa   :  { %781 = vmatmul.mubr.bf16.gmra.mrb[68].mxu0 %v371_v38  ;;  %1134 = vmatmul.mubr.bf16.gmra.mrb[68].mxu1 %v371_v38  ;;  %v377_v38 = vpack.c.bf16 %v337_v34, %v336_v33  ;;  %v216_v33 = vmul.f32 %v3437_v21, %v3642_v28 }
  0xab   :  { %790 = vmatprep.mubr.bf16.mxu0 %v3524_v1  ;;  %1143 = vmatprep.mubr.bf16.mxu1 %v3524_v1 }
  0xac   :  { %v3960_v5 = vadd.f32 %v3650_v32, %v216_v33 }
  0xb2   :  { %791 = vmatmul.mubr.bf16.gmra.mrb[72].mxu0 %v372_v48  ;;  %1144 = vmatmul.mubr.bf16.gmra.mrb[72].mxu1 %v372_v48  ;;  %v277_v48 = vadd.f32 %v3650_v32, %v206_v44 }
  0xb3   :  { %800 = vmatprep.mubr.bf16.mxu0 %v3524_v1  ;;  %1153 = vmatprep.mubr.bf16.mxu1 %v3524_v1 }
  0xb4   :  { %v341_v53 = vmax.f32 %v277_v48, 0.0 }
  0xba   :  { %801 = vmatmul.mubr.bf16.gmra.mrb[76].mxu0 %v373_v59  ;;  %1154 = vmatmul.mubr.bf16.gmra.mrb[76].mxu1 %v373_v59  ;;  %v379_v59 = vpack.c.bf16 %v341_v53, %v340_v52 }
  0xbb   :  { %810 = vmatprep.mubr.bf16.mxu0 %v3524_v1  ;;  %1163 = vmatprep.mubr.bf16.mxu1 %v3524_v1 }
  0xc2   :  { %811 = vmatmul.mubr.bf16.gmra.mrb[80].mxu0 %v374_v6  ;;  %1164 = vmatmul.mubr.bf16.gmra.mrb[80].mxu1 %v374_v6  ;;  %v280_v6 = vadd.f32 %v3650_v32, %v209_v62  ;;  %v382_v62 = vpack.c.bf16 %v347_v25, %v346_v24 }
  0xc3   :  { %820 = vmatprep.mubr.bf16.mxu0 %v3524_v1  ;;  %1173 = vmatprep.mubr.bf16.mxu1 %v3524_v1 }
  0xca   :  { %821 = vmatmul.mubr.bf16.gmra.mrb[84].mxu0 %v375_v14  ;;  %1174 = vmatmul.mubr.bf16.gmra.mrb[84].mxu1 %v375_v14  ;;  %v344_v14 = vmax.f32 %v280_v6, 0.0 }
  0xcb   :  { %830 = vmatprep.mubr.bf16.mxu0 %v3524_v1  ;;  %1183 = vmatprep.mubr.bf16.mxu1 %v3524_v1 }
  0xcc   :  { %v381_v23 = vpack.c.bf16 %v345_v15, %v344_v14 }
  0xd2   :  { %831 = vmatmul.mubr.bf16.gmra.mrb[88].mxu0 %v376_v26  ;;  %1184 = vmatmul.mubr.bf16.gmra.mrb[88].mxu1 %v376_v26 }
  0xd3   :  { %840 = vmatprep.mubr.bf16.mxu0 %v3524_v1  ;;  %1193 = vmatprep.mubr.bf16.mxu1 %v3524_v1 }
  0xda   :  { %841 = vmatmul.mubr.bf16.gmra.mrb[92].mxu0 %v377_v38  ;;  %1194 = vmatmul.mubr.bf16.gmra.mrb[92].mxu1 %v377_v38  ;;  %v3440_v38 = vunpack.c.l.bf16 %v3472_v22 }
  0xdb   :  { %850 = vmatprep.mubr.bf16.mxu0 %v3524_v1  ;;  %1203 = vmatprep.mubr.bf16.mxu1 %v3524_v1 }
  0xdc   :  { %v217_v6 = vmul.f32 %v3440_v38, %v3642_v28 }
  0xe2   :  { %851 = vmatmul.mubr.bf16.gmra.mrb[96].mxu0 %v378_v46  ;;  %1204 = vmatmul.mubr.bf16.gmra.mrb[96].mxu1 %v378_v46 }
  0xe3   :  { %860 = vmatprep.mubr.bf16.mxu0 %v3524_v1  ;;  %1213 = vmatprep.mubr.bf16.mxu1 %v3524_v1 }
  0xea   :  { %861 = vmatmul.mubr.bf16.gmra.mrb[100].mxu0 %v379_v59  ;;  %1214 = vmatmul.mubr.bf16.gmra.mrb[100].mxu1 %v379_v59 }
  0xeb   :  { %870 = vmatprep.mubr.bf16.mxu0 %v3524_v1  ;;  %1223 = vmatprep.mubr.bf16.mxu1 %v3524_v1 }
  0xf2   :  { %871 = vmatmul.mubr.bf16.gmra.mrb[104].mxu0 %v380_v12  ;;  %1224 = vmatmul.mubr.bf16.gmra.mrb[104].mxu1 %v380_v12 }
  0xf3   :  { %880 = vmatprep.mubr.bf16.mxu0 %v3524_v1  ;;  %1233 = vmatprep.mubr.bf16.mxu1 %v3524_v1 }
  0xf5   :  { %v612_v26 = vpop.f32.mrb[0].mxu0  ;;  %v965_v27 = vpop.f32.mrb[0].mxu1 }
  0xf6   :  { %v2456_v34 = vmul.f32 %v612_v26, %v612_v26  ;;  %v2458_v35 = vmul.f32 %v965_v27, %v965_v27  ;;  %v614_v36 = vpop.f32.mrb[1].mxu0  ;;  %v967_v37 = vpop.f32.mrb[1].mxu1 }
  0xf7   :  { %v3186_v40 = vpack.c.bf16 %v614_v36, %v612_v26  ;;  %v2457_v41 = vmul.f32 %v614_v36, %v614_v36  ;;  %v3187_v42 = vpack.c.bf16 %v967_v37, %v965_v27  ;;  %v2459_v43 = vmul.f32 %v967_v37, %v967_v37  ;;  %v616_v44 = vpop.f32.mrb[2].mxu0  ;;  %v969_v45 = vpop.f32.mrb[2].mxu1 }
  0xf8   :  { %v2180_v46 = vadd.f32 %v616_v44, %v612_v26  ;;  %v2460_v47 = vmul.f32 %v616_v44, %v616_v44  ;;  %v2318_v48 = vadd.f32 %v969_v45, %v965_v27  ;;  %v2462_v49 = vmul.f32 %v969_v45, %v969_v45  ;;  %v618_v50 = vpop.f32.mrb[3].mxu0  ;;  %v971_v51 = vpop.f32.mrb[3].mxu1 }
  0xf9   :  { %2052 = vst [vmem:[%s4368_s4] sm:$0xff] %v3186_v40  ;;  %2053 = vst [vmem:[%s4368_s4 + $0x8] sm:$0xff] %v3187_v42  ;;  %v3188_v52 = vpack.c.bf16 %v618_v50, %v616_v44  ;;  %v2249_v53 = vadd.f32 %v618_v50, %v614_v36  ;;  %v2461_v54 = vmul.f32 %v618_v50, %v618_v50 }
  0xfa   :  { %v3189_v55 = vpack.c.bf16 %v971_v51, %v969_v45  ;;  %v2712_v56 = vadd.f32 %v2460_v47, %v2456_v34  ;;  %v2850_v57 = vadd.f32 %v2462_v49, %v2458_v35  ;;  %v2387_v58 = vadd.f32 %v971_v51, %v967_v37  ;;  %881 = vmatmul.mubr.bf16.gmra.mrb[108].mxu0 %v381_v23 }
  0xfb   :  { %v2463_v59 = vmul.f32 %v971_v51, %v971_v51  ;;  %2054 = vst [vmem:[%s4368_s4 + $0x10] sm:$0xff] %v3188_v52  ;;  %v2781_v60 = vadd.f32 %v2461_v54, %v2457_v41  ;;  %1234 = vmatmul.mubr.bf16.gmra.mrb[108].mxu1 %v381_v23  ;;  %890 = vmatprep.mubr.bf16.mxu0 %v3524_v1  ;;  %v350_v41 = vmax.f32 %v3957_v4, 0.0  ;;  %v351_v45 = vmax.f32 %v3960_v5, 0.0 }
  0xfc   :  { %2055 = vst [vmem:[%s4368_s4 + $0x18] sm:$0xff] %v3189_v55  ;;  %1243 = vmatprep.mubr.bf16.mxu1 %v3524_v1  ;;  %v383_v40 = vpack.c.bf16 %v349_v0, %v348_v63 }
  0xfd   :  { %v2919_v61 = vadd.f32 %v2463_v59, %v2459_v43  ;;  %v622_v2 = vpop.f32.mrb[4].mxu0  ;;  %v975_v3 = vpop.f32.mrb[4].mxu1 }
  0xfe   :  { %v2181_v8 = vadd.f32 %v2180_v46, %v622_v2  ;;  %v2464_v9 = vmul.f32 %v622_v2, %v622_v2  ;;  %v2319_v10 = vadd.f32 %v2318_v48, %v975_v3  ;;  %v2466_v11 = vmul.f32 %v975_v3, %v975_v3  ;;  %v624_v12 = vpop.f32.mrb[5].mxu0  ;;  %v977_v13 = vpop.f32.mrb[5].mxu1  ;;  %v3523_v46 = vld [vmem:[%s4367_s2] ss:$0 sm:$0xff] }
  0xff   :  { %v3190_v14 = vpack.c.bf16 %v624_v12, %v622_v2  ;;  %v2250_v15 = vadd.f32 %v2249_v53, %v624_v12  ;;  %v2465_v16 = vmul.f32 %v624_v12, %v624_v12  ;;  %v3191_v17 = vpack.c.bf16 %v977_v13, %v975_v3  ;;  %v626_v18 = vpop.f32.mrb[6].mxu0  ;;  %v979_v19 = vpop.f32.mrb[6].mxu1 }
 0x100   :  { %v2713_v20 = vadd.f32 %v2712_v56, %v2464_v9  ;;  %v2851_v21 = vadd.f32 %v2850_v57, %v2466_v11  ;;  %v2388_v32 = vadd.f32 %v2387_v58, %v977_v13  ;;  %v2467_v22 = vmul.f32 %v977_v13, %v977_v13  ;;  %v628_v23 = vpop.f32.mrb[7].mxu0  ;;  %v981_v24 = vpop.f32.mrb[7].mxu1 }
 0x101   :  { %2056 = vst [vmem:[%s4368_s4 + $0x20] sm:$0xff] %v3190_v14  ;;  %v2782_v28 = vadd.f32 %v2781_v60, %v2465_v16  ;;  %2057 = vst [vmem:[%s4368_s4 + $0x28] sm:$0xff] %v3191_v17  ;;  %v2182_v25 = vadd.f32 %v2181_v8, %v626_v18  ;;  %v2468_v26 = vmul.f32 %v626_v18, %v626_v18 }
 0x102   :  { %v2320_v27 = vadd.f32 %v2319_v10, %v979_v19  ;;  %v2920_v29 = vadd.f32 %v2919_v61, %v2467_v22  ;;  %v2470_v30 = vmul.f32 %v979_v19, %v979_v19  ;;  %v3192_v31 = vpack.c.bf16 %v628_v23, %v626_v18  ;;  %891 = vmatmul.mubr.bf16.gmra.mrb[112].mxu0 %v382_v62 }
 0x103   :  { %v2251_v33 = vadd.f32 %v2250_v15, %v628_v23  ;;  %v2714_v34 = vadd.f32 %v2713_v20, %v2468_v26  ;;  %v2469_v35 = vmul.f32 %v628_v23, %v628_v23  ;;  %v3193_v36 = vpack.c.bf16 %v981_v24, %v979_v19  ;;  %1244 = vmatmul.mubr.bf16.gmra.mrb[112].mxu1 %v382_v62 }
 0x104   :  { %v2389_v37 = vadd.f32 %v2388_v32, %v981_v24  ;;  %v2852_v38 = vadd.f32 %v2851_v21, %v2470_v30  ;;  %2058 = vst [vmem:[%s4368_s4 + $0x30] sm:$0xff] %v3192_v31  ;;  %v2471_v39 = vmul.f32 %v981_v24, %v981_v24  ;;  %900 = vmatprep.mubr.bf16.mxu0 %v3524_v1 }
 0x105   :  { %1253 = vmatprep.mubr.bf16.mxu1 %v3524_v1  ;;  %v2783_v42 = vadd.f32 %v2782_v28, %v2469_v35  ;;  %2059 = vst [vmem:[%s4368_s4 + $0x38] sm:$0xff] %v3193_v36  ;;  %v632_v43 = vpop.f32.mrb[8].mxu0  ;;  %v985_v44 = vpop.f32.mrb[8].mxu1  ;;  %v3983_v47 = vadd.f32 %v3523_v46, %v217_v6  ;;  %v3985_v48 = vadd.f32 %v3523_v46, %v218_v7 }
 0x106   :  { %v2921_v49 = vadd.f32 %v2920_v29, %v2471_v39  ;;  %v2183_v50 = vadd.f32 %v2182_v25, %v632_v43  ;;  %v2472_v51 = vmul.f32 %v632_v43, %v632_v43  ;;  %v2321_v52 = vadd.f32 %v2320_v27, %v985_v44  ;;  %v634_v53 = vpop.f32.mrb[9].mxu0  ;;  %v987_v54 = vpop.f32.mrb[9].mxu1 }
 0x107   :  { %v2474_v55 = vmul.f32 %v985_v44, %v985_v44  ;;  %v3194_v56 = vpack.c.bf16 %v634_v53, %v632_v43  ;;  %v2252_v57 = vadd.f32 %v2251_v33, %v634_v53  ;;  %v2473_v58 = vmul.f32 %v634_v53, %v634_v53  ;;  %v636_v59 = vpop.f32.mrb[10].mxu0  ;;  %v989_v60 = vpop.f32.mrb[10].mxu1 }
 0x108   :  { %v2715_v61 = vadd.f32 %v2714_v34, %v2472_v51  ;;  %v3195_v62 = vpack.c.bf16 %v987_v54, %v985_v44  ;;  %v2390_v63 = vadd.f32 %v2389_v37, %v987_v54  ;;  %v2475_v0 = vmul.f32 %v987_v54, %v987_v54  ;;  %v638_v2 = vpop.f32.mrb[11].mxu0  ;;  %v991_v3 = vpop.f32.mrb[11].mxu1 }
 0x109   :  { %v2853_v4 = vadd.f32 %v2852_v38, %v2474_v55  ;;  %2060 = vst [vmem:[%s4368_s4 + $0x40] sm:$0xff] %v3194_v56  ;;  %v2784_v5 = vadd.f32 %v2783_v42, %v2473_v58  ;;  %v2184_v6 = vadd.f32 %v2183_v50, %v636_v59  ;;  %v2476_v7 = vmul.f32 %v636_v59, %v636_v59 }
 0x10a   :  { %2061 = vst [vmem:[%s4368_s4 + $0x48] sm:$0xff] %v3195_v62  ;;  %v2922_v8 = vadd.f32 %v2921_v49, %v2475_v0  ;;  %v2322_v9 = vadd.f32 %v2321_v52, %v989_v60  ;;  %v2478_v10 = vmul.f32 %v989_v60, %v989_v60  ;;  %v3196_v11 = vpack.c.bf16 %v638_v2, %v636_v59 }
 0x10b   :  { %901 = vmatmul.mubr.bf16.gmra.mrb[116].mxu0 %v383_v40  ;;  %v2716_v12 = vadd.f32 %v2715_v61, %v2476_v7  ;;  %v2253_v13 = vadd.f32 %v2252_v57, %v638_v2  ;;  %v2477_v14 = vmul.f32 %v638_v2, %v638_v2  ;;  %v3197_v15 = vpack.c.bf16 %v991_v3, %v989_v60 }
 0x10c   :  { %1254 = vmatmul.mubr.bf16.gmra.mrb[116].mxu1 %v383_v40  ;;  %v2854_v16 = vadd.f32 %v2853_v4, %v2478_v10  ;;  %2062 = vst [vmem:[%s4368_s4 + $0x50] sm:$0xff] %v3196_v11  ;;  %v2391_v17 = vadd.f32 %v2390_v63, %v991_v3  ;;  %v2479_v18 = vmul.f32 %v991_v3, %v991_v3  ;;  %v352_v22 = vmax.f32 %v3983_v47, 0.0 }
 0x10d   :  { %910 = vmatprep.mubr.bf16.mxu0 %v3524_v1  ;;  %1263 = vmatprep.mubr.bf16.mxu1 %v3524_v1  ;;  %v2785_v19 = vadd.f32 %v2784_v5, %v2477_v14  ;;  %2063 = vst [vmem:[%s4368_s4 + $0x58] sm:$0xff] %v3197_v15  ;;  %v642_v20 = vpop.f32.mrb[12].mxu0  ;;  %v995_v21 = vpop.f32.mrb[12].mxu1  ;;  %v384_v32 = vpack.c.bf16 %v351_v45, %v350_v41  ;;  %v353_v23 = vmax.f32 %v3985_v48, 0.0 }
 0x10e   :  { %v2923_v24 = vadd.f32 %v2922_v8, %v2479_v18  ;;  %v2185_v28 = vadd.f32 %v2184_v6, %v642_v20  ;;  %v2480_v25 = vmul.f32 %v642_v20, %v642_v20  ;;  %v2323_v26 = vadd.f32 %v2322_v9, %v995_v21  ;;  %v644_v27 = vpop.f32.mrb[13].mxu0  ;;  %v997_v29 = vpop.f32.mrb[13].mxu1 }
 0x10f   :  { %v2482_v30 = vmul.f32 %v995_v21, %v995_v21  ;;  %v3198_v31 = vpack.c.bf16 %v644_v27, %v642_v20  ;;  %v2254_v33 = vadd.f32 %v2253_v13, %v644_v27  ;;  %v2481_v34 = vmul.f32 %v644_v27, %v644_v27  ;;  %v646_v35 = vpop.f32.mrb[14].mxu0  ;;  %v999_v36 = vpop.f32.mrb[14].mxu1 }
 0x110   :  { %v2717_v37 = vadd.f32 %v2716_v12, %v2480_v25  ;;  %v3199_v38 = vpack.c.bf16 %v997_v29, %v995_v21  ;;  %v2392_v39 = vadd.f32 %v2391_v17, %v997_v29  ;;  %v2483_v40 = vmul.f32 %v997_v29, %v997_v29  ;;  %v648_v41 = vpop.f32.mrb[15].mxu0  ;;  %v1001_v42 = vpop.f32.mrb[15].mxu1 }
 0x111   :  { %v2855_v43 = vadd.f32 %v2854_v16, %v2482_v30  ;;  %2064 = vst [vmem:[%s4368_s4 + $0x60] sm:$0xff] %v3198_v31  ;;  %v2786_v44 = vadd.f32 %v2785_v19, %v2481_v34  ;;  %v2186_v45 = vadd.f32 %v2185_v28, %v646_v35  ;;  %v2484_v46 = vmul.f32 %v646_v35, %v646_v35 }
 0x112   :  { %2065 = vst [vmem:[%s4368_s4 + $0x68] sm:$0xff] %v3199_v38  ;;  %v2924_v47 = vadd.f32 %v2923_v24, %v2483_v40  ;;  %v2324_v48 = vadd.f32 %v2323_v26, %v999_v36  ;;  %v2486_v49 = vmul.f32 %v999_v36, %v999_v36  ;;  %v3200_v50 = vpack.c.bf16 %v648_v41, %v646_v35 }
 0x113   :  { %911 = vmatmul.mubr.bf16.gmra.mrb[120].mxu0 %v384_v32  ;;  %v2718_v51 = vadd.f32 %v2717_v37, %v2484_v46  ;;  %v2255_v52 = vadd.f32 %v2254_v33, %v648_v41  ;;  %v2485_v53 = vmul.f32 %v648_v41, %v648_v41  ;;  %v3201_v54 = vpack.c.bf16 %v1001_v42, %v999_v36 }
 0x114   :  { %1264 = vmatmul.mubr.bf16.gmra.mrb[120].mxu1 %v384_v32  ;;  %v2856_v55 = vadd.f32 %v2855_v43, %v2486_v49  ;;  %2066 = vst [vmem:[%s4368_s4 + $0x70] sm:$0xff] %v3200_v50  ;;  %v2393_v56 = vadd.f32 %v2392_v39, %v1001_v42  ;;  %v2487_v57 = vmul.f32 %v1001_v42, %v1001_v42 }
 0x115   :  { %920 = vmatprep.mubr.bf16.mxu0 %v3524_v1  ;;  %1273 = vmatprep.mubr.bf16.mxu1 %v3524_v1  ;;  %v2787_v58 = vadd.f32 %v2786_v44, %v2485_v53  ;;  %2067 = vst [vmem:[%s4368_s4 + $0x78] sm:$0xff] %v3201_v54  ;;  %v652_v59 = vpop.f32.mrb[16].mxu0  ;;  %v1005_v60 = vpop.f32.mrb[16].mxu1  ;;  %v385_v61 = vpack.c.bf16 %v353_v23, %v352_v22 }
 0x116   :  { %v2925_v62 = vadd.f32 %v2924_v47, %v2487_v57  ;;  %v2187_v63 = vadd.f32 %v2186_v45, %v652_v59  ;;  %v2488_v0 = vmul.f32 %v652_v59, %v652_v59  ;;  %v2325_v2 = vadd.f32 %v2324_v48, %v1005_v60  ;;  %v654_v3 = vpop.f32.mrb[17].mxu0  ;;  %v1007_v4 = vpop.f32.mrb[17].mxu1 }
 0x117   :  { %v2490_v5 = vmul.f32 %v1005_v60, %v1005_v60  ;;  %v3202_v6 = vpack.c.bf16 %v654_v3, %v652_v59  ;;  %v2256_v7 = vadd.f32 %v2255_v52, %v654_v3  ;;  %v2489_v8 = vmul.f32 %v654_v3, %v654_v3  ;;  %v656_v9 = vpop.f32.mrb[18].mxu0  ;;  %v1009_v1 = vpop.f32.mrb[18].mxu1 }
 0x118   :  { %v2719_v10 = vadd.f32 %v2718_v51, %v2488_v0  ;;  %v3203_v11 = vpack.c.bf16 %v1007_v4, %v1005_v60  ;;  %v2394_v12 = vadd.f32 %v2393_v56, %v1007_v4  ;;  %v2491_v13 = vmul.f32 %v1007_v4, %v1007_v4  ;;  %v658_v14 = vpop.f32.mrb[19].mxu0  ;;  %v1011_v15 = vpop.f32.mrb[19].mxu1 }
 0x119   :  { %v2857_v16 = vadd.f32 %v2856_v55, %v2490_v5  ;;  %2068 = vst [vmem:[%s4368_s4 + $0x80] sm:$0xff] %v3202_v6  ;;  %v2788_v17 = vadd.f32 %v2787_v58, %v2489_v8  ;;  %v2188_v18 = vadd.f32 %v2187_v63, %v656_v9  ;;  %v2492_v19 = vmul.f32 %v656_v9, %v656_v9 }
 0x11a   :  { %2069 = vst [vmem:[%s4368_s4 + $0x88] sm:$0xff] %v3203_v11  ;;  %v2926_v20 = vadd.f32 %v2925_v62, %v2491_v13  ;;  %v2326_v21 = vadd.f32 %v2325_v2, %v1009_v1  ;;  %v2494_v32 = vmul.f32 %v1009_v1, %v1009_v1  ;;  %v3204_v22 = vpack.c.bf16 %v658_v14, %v656_v9 }
 0x11b   :  { %921 = vmatmul.mubr.bf16.gmra.mrb[124].mxu0 %v385_v61  ;;  %v2720_v23 = vadd.f32 %v2719_v10, %v2492_v19  ;;  %v2257_v24 = vadd.f32 %v2256_v7, %v658_v14  ;;  %v2493_v28 = vmul.f32 %v658_v14, %v658_v14  ;;  %v3205_v25 = vpack.c.bf16 %v1011_v15, %v1009_v1 }
 0x11c   :  { %1274 = vmatmul.mubr.bf16.gmra.mrb[124].mxu1 %v385_v61  ;;  %v2858_v26 = vadd.f32 %v2857_v16, %v2494_v32  ;;  %2070 = vst [vmem:[%s4368_s4 + $0x90] sm:$0xff] %v3204_v22  ;;  %v2395_v27 = vadd.f32 %v2394_v12, %v1011_v15  ;;  %v2495_v29 = vmul.f32 %v1011_v15, %v1011_v15 }
 0x11d   :  { %v2789_v30 = vadd.f32 %v2788_v17, %v2493_v28  ;;  %2071 = vst [vmem:[%s4368_s4 + $0x98] sm:$0xff] %v3205_v25  ;;  %v662_v31 = vpop.f32.mrb[20].mxu0  ;;  %v1015_v33 = vpop.f32.mrb[20].mxu1 }
 0x11e   :  { %v2927_v34 = vadd.f32 %v2926_v20, %v2495_v29  ;;  %v2189_v35 = vadd.f32 %v2188_v18, %v662_v31  ;;  %v2496_v36 = vmul.f32 %v662_v31, %v662_v31  ;;  %v2327_v37 = vadd.f32 %v2326_v21, %v1015_v33  ;;  %v664_v38 = vpop.f32.mrb[21].mxu0  ;;  %v1017_v39 = vpop.f32.mrb[21].mxu1 }
 0x11f   :  { %v2498_v40 = vmul.f32 %v1015_v33, %v1015_v33  ;;  %v3206_v41 = vpack.c.bf16 %v664_v38, %v662_v31  ;;  %v2258_v42 = vadd.f32 %v2257_v24, %v664_v38  ;;  %v2497_v43 = vmul.f32 %v664_v38, %v664_v38  ;;  %v666_v44 = vpop.f32.mrb[22].mxu0  ;;  %v1019_v45 = vpop.f32.mrb[22].mxu1 }
 0x120   :  { %v2721_v46 = vadd.f32 %v2720_v23, %v2496_v36  ;;  %v3207_v47 = vpack.c.bf16 %v1017_v39, %v1015_v33  ;;  %v2396_v48 = vadd.f32 %v2395_v27, %v1017_v39  ;;  %v2499_v49 = vmul.f32 %v1017_v39, %v1017_v39  ;;  %v668_v50 = vpop.f32.mrb[23].mxu0  ;;  %v1021_v51 = vpop.f32.mrb[23].mxu1 }
 0x121   :  { %v2859_v52 = vadd.f32 %v2858_v26, %v2498_v40  ;;  %2072 = vst [vmem:[%s4368_s4 + $0xa0] sm:$0xff] %v3206_v41  ;;  %v2790_v53 = vadd.f32 %v2789_v30, %v2497_v43  ;;  %v2190_v54 = vadd.f32 %v2189_v35, %v666_v44  ;;  %v2500_v55 = vmul.f32 %v666_v44, %v666_v44 }
 0x122   :  { %2073 = vst [vmem:[%s4368_s4 + $0xa8] sm:$0xff] %v3207_v47  ;;  %v2928_v56 = vadd.f32 %v2927_v34, %v2499_v49  ;;  %v2328_v57 = vadd.f32 %v2327_v37, %v1019_v45  ;;  %v2502_v58 = vmul.f32 %v1019_v45, %v1019_v45  ;;  %v3208_v59 = vpack.c.bf16 %v668_v50, %v666_v44 }
 0x123   :  { %v2722_v60 = vadd.f32 %v2721_v46, %v2500_v55  ;;  %v2259_v61 = vadd.f32 %v2258_v42, %v668_v50  ;;  %v2501_v62 = vmul.f32 %v668_v50, %v668_v50  ;;  %v3209_v63 = vpack.c.bf16 %v1021_v51, %v1019_v45 }
 0x124   :  { %v2860_v0 = vadd.f32 %v2859_v52, %v2502_v58  ;;  %2074 = vst [vmem:[%s4368_s4 + $0xb0] sm:$0xff] %v3208_v59  ;;  %v2397_v2 = vadd.f32 %v2396_v48, %v1021_v51  ;;  %v2503_v3 = vmul.f32 %v1021_v51, %v1021_v51 }
 0x125   :  { %v2791_v4 = vadd.f32 %v2790_v53, %v2501_v62  ;;  %2075 = vst [vmem:[%s4368_s4 + $0xb8] sm:$0xff] %v3209_v63  ;;  %v672_v5 = vpop.f32.mrb[24].mxu0  ;;  %v1025_v6 = vpop.f32.mrb[24].mxu1 }
 0x126   :  { %v2929_v7 = vadd.f32 %v2928_v56, %v2503_v3  ;;  %v2191_v8 = vadd.f32 %v2190_v54, %v672_v5  ;;  %v2504_v9 = vmul.f32 %v672_v5, %v672_v5  ;;  %v2329_v1 = vadd.f32 %v2328_v57, %v1025_v6  ;;  %v674_v10 = vpop.f32.mrb[25].mxu0  ;;  %v1027_v11 = vpop.f32.mrb[25].mxu1 }
 0x127   :  { %v2506_v12 = vmul.f32 %v1025_v6, %v1025_v6  ;;  %v3210_v13 = vpack.c.bf16 %v674_v10, %v672_v5  ;;  %v2260_v14 = vadd.f32 %v2259_v61, %v674_v10  ;;  %v2505_v15 = vmul.f32 %v674_v10, %v674_v10  ;;  %v676_v16 = vpop.f32.mrb[26].mxu0  ;;  %v1029_v17 = vpop.f32.mrb[26].mxu1 }
 0x128   :  { %v2723_v18 = vadd.f32 %v2722_v60, %v2504_v9  ;;  %v3211_v19 = vpack.c.bf16 %v1027_v11, %v1025_v6  ;;  %v2398_v20 = vadd.f32 %v2397_v2, %v1027_v11  ;;  %v2507_v21 = vmul.f32 %v1027_v11, %v1027_v11  ;;  %v678_v32 = vpop.f32.mrb[27].mxu0  ;;  %v1031_v22 = vpop.f32.mrb[27].mxu1 }
 0x129   :  { %v2861_v23 = vadd.f32 %v2860_v0, %v2506_v12  ;;  %2076 = vst [vmem:[%s4368_s4 + $0xc0] sm:$0xff] %v3210_v13  ;;  %v2792_v24 = vadd.f32 %v2791_v4, %v2505_v15  ;;  %v2192_v28 = vadd.f32 %v2191_v8, %v676_v16  ;;  %v2508_v25 = vmul.f32 %v676_v16, %v676_v16 }
 0x12a   :  { %2077 = vst [vmem:[%s4368_s4 + $0xc8] sm:$0xff] %v3211_v19  ;;  %v2930_v26 = vadd.f32 %v2929_v7, %v2507_v21  ;;  %v2330_v27 = vadd.f32 %v2329_v1, %v1029_v17  ;;  %v2510_v29 = vmul.f32 %v1029_v17, %v1029_v17  ;;  %v3212_v30 = vpack.c.bf16 %v678_v32, %v676_v16 }
 0x12b   :  { %v2724_v31 = vadd.f32 %v2723_v18, %v2508_v25  ;;  %v2261_v33 = vadd.f32 %v2260_v14, %v678_v32  ;;  %v2509_v34 = vmul.f32 %v678_v32, %v678_v32  ;;  %v3213_v35 = vpack.c.bf16 %v1031_v22, %v1029_v17 }
 0x12c   :  { %v2862_v36 = vadd.f32 %v2861_v23, %v2510_v29  ;;  %2078 = vst [vmem:[%s4368_s4 + $0xd0] sm:$0xff] %v3212_v30  ;;  %v2399_v37 = vadd.f32 %v2398_v20, %v1031_v22  ;;  %v2511_v38 = vmul.f32 %v1031_v22, %v1031_v22 }
 0x12d   :  { %v2793_v39 = vadd.f32 %v2792_v24, %v2509_v34  ;;  %2079 = vst [vmem:[%s4368_s4 + $0xd8] sm:$0xff] %v3213_v35  ;;  %v682_v40 = vpop.f32.mrb[28].mxu0  ;;  %v1035_v41 = vpop.f32.mrb[28].mxu1 }
 0x12e   :  { %v2931_v42 = vadd.f32 %v2930_v26, %v2511_v38  ;;  %v2193_v43 = vadd.f32 %v2192_v28, %v682_v40  ;;  %v2512_v44 = vmul.f32 %v682_v40, %v682_v40  ;;  %v2331_v45 = vadd.f32 %v2330_v27, %v1035_v41  ;;  %v684_v46 = vpop.f32.mrb[29].mxu0  ;;  %v1037_v47 = vpop.f32.mrb[29].mxu1 }
 0x12f   :  { %v2514_v48 = vmul.f32 %v1035_v41, %v1035_v41  ;;  %v3214_v49 = vpack.c.bf16 %v684_v46, %v682_v40  ;;  %v2262_v50 = vadd.f32 %v2261_v33, %v684_v46  ;;  %v2513_v51 = vmul.f32 %v684_v46, %v684_v46  ;;  %v686_v52 = vpop.f32.mrb[30].mxu0  ;;  %v1039_v53 = vpop.f32.mrb[30].mxu1 }
 0x130   :  { %v2725_v54 = vadd.f32 %v2724_v31, %v2512_v44  ;;  %v3215_v55 = vpack.c.bf16 %v1037_v47, %v1035_v41  ;;  %v2400_v56 = vadd.f32 %v2399_v37, %v1037_v47  ;;  %v2515_v57 = vmul.f32 %v1037_v47, %v1037_v47  ;;  %v688_v58 = vpop.f32.mrb[31].mxu0  ;;  %v1041_v59 = vpop.f32.mrb[31].mxu1 }
 0x131   :  { %v2863_v60 = vadd.f32 %v2862_v36, %v2514_v48  ;;  %2080 = vst [vmem:[%s4368_s4 + $0xe0] sm:$0xff] %v3214_v49  ;;  %v2794_v61 = vadd.f32 %v2793_v39, %v2513_v51  ;;  %v2194_v62 = vadd.f32 %v2193_v43, %v686_v52  ;;  %v2516_v63 = vmul.f32 %v686_v52, %v686_v52 }
 0x132   :  { %2081 = vst [vmem:[%s4368_s4 + $0xe8] sm:$0xff] %v3215_v55  ;;  %v2932_v0 = vadd.f32 %v2931_v42, %v2515_v57  ;;  %v2332_v2 = vadd.f32 %v2331_v45, %v1039_v53  ;;  %v2518_v3 = vmul.f32 %v1039_v53, %v1039_v53  ;;  %v3216_v4 = vpack.c.bf16 %v688_v58, %v686_v52 }
 0x133   :  { %v2726_v5 = vadd.f32 %v2725_v54, %v2516_v63  ;;  %v2263_v6 = vadd.f32 %v2262_v50, %v688_v58  ;;  %v2517_v7 = vmul.f32 %v688_v58, %v688_v58  ;;  %v3217_v8 = vpack.c.bf16 %v1041_v59, %v1039_v53 }
 0x134   :  { %v2864_v9 = vadd.f32 %v2863_v60, %v2518_v3  ;;  %2082 = vst [vmem:[%s4368_s4 + $0xf0] sm:$0xff] %v3216_v4  ;;  %v2401_v1 = vadd.f32 %v2400_v56, %v1041_v59  ;;  %v2519_v10 = vmul.f32 %v1041_v59, %v1041_v59 }
 0x135   :  { %v2795_v11 = vadd.f32 %v2794_v61, %v2517_v7  ;;  %2083 = vst [vmem:[%s4368_s4 + $0xf8] sm:$0xff] %v3217_v8  ;;  %v692_v12 = vpop.f32.mrb[32].mxu0  ;;  %v1045_v13 = vpop.f32.mrb[32].mxu1 }
 0x136   :  { %v2933_v14 = vadd.f32 %v2932_v0, %v2519_v10  ;;  %v2195_v15 = vadd.f32 %v2194_v62, %v692_v12  ;;  %v2520_v16 = vmul.f32 %v692_v12, %v692_v12  ;;  %v2333_v17 = vadd.f32 %v2332_v2, %v1045_v13  ;;  %v694_v18 = vpop.f32.mrb[33].mxu0  ;;  %v1047_v19 = vpop.f32.mrb[33].mxu1 }
 0x137   :  { %v2522_v20 = vmul.f32 %v1045_v13, %v1045_v13  ;;  %v3218_v21 = vpack.c.bf16 %v694_v18, %v692_v12  ;;  %v2264_v32 = vadd.f32 %v2263_v6, %v694_v18  ;;  %v2521_v22 = vmul.f32 %v694_v18, %v694_v18  ;;  %v696_v23 = vpop.f32.mrb[34].mxu0  ;;  %v1049_v24 = vpop.f32.mrb[34].mxu1 }
 0x138   :  { %v2727_v28 = vadd.f32 %v2726_v5, %v2520_v16  ;;  %v3219_v25 = vpack.c.bf16 %v1047_v19, %v1045_v13  ;;  %v2402_v26 = vadd.f32 %v2401_v1, %v1047_v19  ;;  %v2523_v27 = vmul.f32 %v1047_v19, %v1047_v19  ;;  %v698_v29 = vpop.f32.mrb[35].mxu0  ;;  %v1051_v30 = vpop.f32.mrb[35].mxu1 }
 0x139   :  { %v2865_v31 = vadd.f32 %v2864_v9, %v2522_v20  ;;  %2084 = vst [vmem:[%s4368_s4 + $0x100] sm:$0xff] %v3218_v21  ;;  %v2796_v33 = vadd.f32 %v2795_v11, %v2521_v22  ;;  %v2196_v34 = vadd.f32 %v2195_v15, %v696_v23  ;;  %v2524_v35 = vmul.f32 %v696_v23, %v696_v23 }
 0x13a   :  { %2085 = vst [vmem:[%s4368_s4 + $0x108] sm:$0xff] %v3219_v25  ;;  %v2934_v36 = vadd.f32 %v2933_v14, %v2523_v27  ;;  %v2334_v37 = vadd.f32 %v2333_v17, %v1049_v24  ;;  %v2526_v38 = vmul.f32 %v1049_v24, %v1049_v24  ;;  %v3220_v39 = vpack.c.bf16 %v698_v29, %v696_v23 }
 0x13b   :  { %v2728_v40 = vadd.f32 %v2727_v28, %v2524_v35  ;;  %v2265_v41 = vadd.f32 %v2264_v32, %v698_v29  ;;  %v2525_v42 = vmul.f32 %v698_v29, %v698_v29  ;;  %v3221_v43 = vpack.c.bf16 %v1051_v30, %v1049_v24 }
 0x13c   :  { %v2866_v44 = vadd.f32 %v2865_v31, %v2526_v38  ;;  %2086 = vst [vmem:[%s4368_s4 + $0x110] sm:$0xff] %v3220_v39  ;;  %v2403_v45 = vadd.f32 %v2402_v26, %v1051_v30  ;;  %v2527_v46 = vmul.f32 %v1051_v30, %v1051_v30 }
 0x13d   :  { %v2797_v47 = vadd.f32 %v2796_v33, %v2525_v42  ;;  %2087 = vst [vmem:[%s4368_s4 + $0x118] sm:$0xff] %v3221_v43  ;;  %v702_v48 = vpop.f32.mrb[36].mxu0  ;;  %v1055_v49 = vpop.f32.mrb[36].mxu1 }
 0x13e   :  { %v2935_v50 = vadd.f32 %v2934_v36, %v2527_v46  ;;  %v2197_v51 = vadd.f32 %v2196_v34, %v702_v48  ;;  %v2528_v52 = vmul.f32 %v702_v48, %v702_v48  ;;  %v2335_v53 = vadd.f32 %v2334_v37, %v1055_v49  ;;  %v704_v54 = vpop.f32.mrb[37].mxu0  ;;  %v1057_v55 = vpop.f32.mrb[37].mxu1 }
 0x13f   :  { %v2530_v56 = vmul.f32 %v1055_v49, %v1055_v49  ;;  %v3222_v57 = vpack.c.bf16 %v704_v54, %v702_v48  ;;  %v2266_v58 = vadd.f32 %v2265_v41, %v704_v54  ;;  %v2529_v59 = vmul.f32 %v704_v54, %v704_v54  ;;  %v706_v60 = vpop.f32.mrb[38].mxu0  ;;  %v1059_v61 = vpop.f32.mrb[38].mxu1 }
 0x140   :  { %v2729_v62 = vadd.f32 %v2728_v40, %v2528_v52  ;;  %v3223_v63 = vpack.c.bf16 %v1057_v55, %v1055_v49  ;;  %v2404_v0 = vadd.f32 %v2403_v45, %v1057_v55  ;;  %v2531_v2 = vmul.f32 %v1057_v55, %v1057_v55  ;;  %v708_v3 = vpop.f32.mrb[39].mxu0  ;;  %v1061_v4 = vpop.f32.mrb[39].mxu1 }
 0x141   :  { %v2867_v5 = vadd.f32 %v2866_v44, %v2530_v56  ;;  %2088 = vst [vmem:[%s4368_s4 + $0x120] sm:$0xff] %v3222_v57  ;;  %v2798_v6 = vadd.f32 %v2797_v47, %v2529_v59  ;;  %v2198_v7 = vadd.f32 %v2197_v51, %v706_v60  ;;  %v2532_v8 = vmul.f32 %v706_v60, %v706_v60 }
 0x142   :  { %2089 = vst [vmem:[%s4368_s4 + $0x128] sm:$0xff] %v3223_v63  ;;  %v2936_v9 = vadd.f32 %v2935_v50, %v2531_v2  ;;  %v2336_v1 = vadd.f32 %v2335_v53, %v1059_v61  ;;  %v2534_v10 = vmul.f32 %v1059_v61, %v1059_v61  ;;  %v3224_v11 = vpack.c.bf16 %v708_v3, %v706_v60 }
 0x143   :  { %v2730_v12 = vadd.f32 %v2729_v62, %v2532_v8  ;;  %v2267_v13 = vadd.f32 %v2266_v58, %v708_v3  ;;  %v2533_v14 = vmul.f32 %v708_v3, %v708_v3  ;;  %v3225_v15 = vpack.c.bf16 %v1061_v4, %v1059_v61 }
 0x144   :  { %v2868_v16 = vadd.f32 %v2867_v5, %v2534_v10  ;;  %2090 = vst [vmem:[%s4368_s4 + $0x130] sm:$0xff] %v3224_v11  ;;  %v2405_v17 = vadd.f32 %v2404_v0, %v1061_v4  ;;  %v2535_v18 = vmul.f32 %v1061_v4, %v1061_v4 }
 0x145   :  { %v2799_v19 = vadd.f32 %v2798_v6, %v2533_v14  ;;  %2091 = vst [vmem:[%s4368_s4 + $0x138] sm:$0xff] %v3225_v15  ;;  %v712_v20 = vpop.f32.mrb[40].mxu0  ;;  %v1065_v21 = vpop.f32.mrb[40].mxu1 }
 0x146   :  { %v2937_v32 = vadd.f32 %v2936_v9, %v2535_v18  ;;  %v2199_v22 = vadd.f32 %v2198_v7, %v712_v20  ;;  %v2536_v23 = vmul.f32 %v712_v20, %v712_v20  ;;  %v2337_v24 = vadd.f32 %v2336_v1, %v1065_v21  ;;  %v714_v28 = vpop.f32.mrb[41].mxu0  ;;  %v1067_v25 = vpop.f32.mrb[41].mxu1 }
 0x147   :  { %v2538_v26 = vmul.f32 %v1065_v21, %v1065_v21  ;;  %v3226_v27 = vpack.c.bf16 %v714_v28, %v712_v20  ;;  %v2268_v29 = vadd.f32 %v2267_v13, %v714_v28  ;;  %v2537_v30 = vmul.f32 %v714_v28, %v714_v28  ;;  %v716_v31 = vpop.f32.mrb[42].mxu0  ;;  %v1069_v33 = vpop.f32.mrb[42].mxu1 }
 0x148   :  { %v2731_v34 = vadd.f32 %v2730_v12, %v2536_v23  ;;  %v3227_v35 = vpack.c.bf16 %v1067_v25, %v1065_v21  ;;  %v2406_v36 = vadd.f32 %v2405_v17, %v1067_v25  ;;  %v2539_v37 = vmul.f32 %v1067_v25, %v1067_v25  ;;  %v718_v38 = vpop.f32.mrb[43].mxu0  ;;  %v1071_v39 = vpop.f32.mrb[43].mxu1 }
 0x149   :  { %v2869_v40 = vadd.f32 %v2868_v16, %v2538_v26  ;;  %2092 = vst [vmem:[%s4368_s4 + $0x140] sm:$0xff] %v3226_v27  ;;  %v2800_v41 = vadd.f32 %v2799_v19, %v2537_v30  ;;  %v2200_v42 = vadd.f32 %v2199_v22, %v716_v31  ;;  %v2540_v43 = vmul.f32 %v716_v31, %v716_v31 }
 0x14a   :  { %2093 = vst [vmem:[%s4368_s4 + $0x148] sm:$0xff] %v3227_v35  ;;  %v2938_v44 = vadd.f32 %v2937_v32, %v2539_v37  ;;  %v2338_v45 = vadd.f32 %v2337_v24, %v1069_v33  ;;  %v2542_v46 = vmul.f32 %v1069_v33, %v1069_v33  ;;  %v3228_v47 = vpack.c.bf16 %v718_v38, %v716_v31 }
 0x14b   :  { %v2732_v48 = vadd.f32 %v2731_v34, %v2540_v43  ;;  %v2269_v49 = vadd.f32 %v2268_v29, %v718_v38  ;;  %v2541_v50 = vmul.f32 %v718_v38, %v718_v38  ;;  %v3229_v51 = vpack.c.bf16 %v1071_v39, %v1069_v33 }
 0x14c   :  { %v2870_v52 = vadd.f32 %v2869_v40, %v2542_v46  ;;  %2094 = vst [vmem:[%s4368_s4 + $0x150] sm:$0xff] %v3228_v47  ;;  %v2407_v53 = vadd.f32 %v2406_v36, %v1071_v39  ;;  %v2543_v54 = vmul.f32 %v1071_v39, %v1071_v39 }
 0x14d   :  { %v2801_v55 = vadd.f32 %v2800_v41, %v2541_v50  ;;  %2095 = vst [vmem:[%s4368_s4 + $0x158] sm:$0xff] %v3229_v51  ;;  %v722_v56 = vpop.f32.mrb[44].mxu0  ;;  %v1075_v57 = vpop.f32.mrb[44].mxu1 }
 0x14e   :  { %v2939_v58 = vadd.f32 %v2938_v44, %v2543_v54  ;;  %v2201_v59 = vadd.f32 %v2200_v42, %v722_v56  ;;  %v2544_v60 = vmul.f32 %v722_v56, %v722_v56  ;;  %v2339_v61 = vadd.f32 %v2338_v45, %v1075_v57  ;;  %v724_v62 = vpop.f32.mrb[45].mxu0  ;;  %v1077_v63 = vpop.f32.mrb[45].mxu1 }
 0x14f   :  { %v2546_v0 = vmul.f32 %v1075_v57, %v1075_v57  ;;  %v3230_v2 = vpack.c.bf16 %v724_v62, %v722_v56  ;;  %v2270_v3 = vadd.f32 %v2269_v49, %v724_v62  ;;  %v2545_v4 = vmul.f32 %v724_v62, %v724_v62  ;;  %v726_v5 = vpop.f32.mrb[46].mxu0  ;;  %v1079_v6 = vpop.f32.mrb[46].mxu1 }
 0x150   :  { %v2733_v7 = vadd.f32 %v2732_v48, %v2544_v60  ;;  %v3231_v8 = vpack.c.bf16 %v1077_v63, %v1075_v57  ;;  %v2408_v9 = vadd.f32 %v2407_v53, %v1077_v63  ;;  %v2547_v1 = vmul.f32 %v1077_v63, %v1077_v63  ;;  %v728_v10 = vpop.f32.mrb[47].mxu0  ;;  %v1081_v11 = vpop.f32.mrb[47].mxu1 }
 0x151   :  { %v2871_v12 = vadd.f32 %v2870_v52, %v2546_v0  ;;  %2096 = vst [vmem:[%s4368_s4 + $0x160] sm:$0xff] %v3230_v2  ;;  %v2802_v13 = vadd.f32 %v2801_v55, %v2545_v4  ;;  %v2202_v14 = vadd.f32 %v2201_v59, %v726_v5  ;;  %v2548_v15 = vmul.f32 %v726_v5, %v726_v5 }
 0x152   :  { %2097 = vst [vmem:[%s4368_s4 + $0x168] sm:$0xff] %v3231_v8  ;;  %v2940_v16 = vadd.f32 %v2939_v58, %v2547_v1  ;;  %v2340_v17 = vadd.f32 %v2339_v61, %v1079_v6  ;;  %v2550_v18 = vmul.f32 %v1079_v6, %v1079_v6  ;;  %v3232_v19 = vpack.c.bf16 %v728_v10, %v726_v5 }
 0x153   :  { %v2734_v20 = vadd.f32 %v2733_v7, %v2548_v15  ;;  %v2271_v21 = vadd.f32 %v2270_v3, %v728_v10  ;;  %v2549_v32 = vmul.f32 %v728_v10, %v728_v10  ;;  %v3233_v22 = vpack.c.bf16 %v1081_v11, %v1079_v6 }
 0x154   :  { %v2872_v23 = vadd.f32 %v2871_v12, %v2550_v18  ;;  %2098 = vst [vmem:[%s4368_s4 + $0x170] sm:$0xff] %v3232_v19  ;;  %v2409_v24 = vadd.f32 %v2408_v9, %v1081_v11  ;;  %v2551_v28 = vmul.f32 %v1081_v11, %v1081_v11 }
 0x155   :  { %v2803_v25 = vadd.f32 %v2802_v13, %v2549_v32  ;;  %2099 = vst [vmem:[%s4368_s4 + $0x178] sm:$0xff] %v3233_v22  ;;  %v732_v26 = vpop.f32.mrb[48].mxu0  ;;  %v1085_v27 = vpop.f32.mrb[48].mxu1 }
 0x156   :  { %v2941_v29 = vadd.f32 %v2940_v16, %v2551_v28  ;;  %v2203_v30 = vadd.f32 %v2202_v14, %v732_v26  ;;  %v2552_v31 = vmul.f32 %v732_v26, %v732_v26  ;;  %v2341_v33 = vadd.f32 %v2340_v17, %v1085_v27  ;;  %v734_v34 = vpop.f32.mrb[49].mxu0  ;;  %v1087_v35 = vpop.f32.mrb[49].mxu1 }
 0x157   :  { %v2554_v36 = vmul.f32 %v1085_v27, %v1085_v27  ;;  %v3234_v37 = vpack.c.bf16 %v734_v34, %v732_v26  ;;  %v2272_v38 = vadd.f32 %v2271_v21, %v734_v34  ;;  %v2553_v39 = vmul.f32 %v734_v34, %v734_v34  ;;  %v736_v40 = vpop.f32.mrb[50].mxu0  ;;  %v1089_v41 = vpop.f32.mrb[50].mxu1 }
 0x158   :  { %v2735_v42 = vadd.f32 %v2734_v20, %v2552_v31  ;;  %v3235_v43 = vpack.c.bf16 %v1087_v35, %v1085_v27  ;;  %v2410_v44 = vadd.f32 %v2409_v24, %v1087_v35  ;;  %v2555_v45 = vmul.f32 %v1087_v35, %v1087_v35  ;;  %v738_v46 = vpop.f32.mrb[51].mxu0  ;;  %v1091_v47 = vpop.f32.mrb[51].mxu1 }
 0x159   :  { %v2873_v48 = vadd.f32 %v2872_v23, %v2554_v36  ;;  %2100 = vst [vmem:[%s4368_s4 + $0x180] sm:$0xff] %v3234_v37  ;;  %v2804_v49 = vadd.f32 %v2803_v25, %v2553_v39  ;;  %v2204_v50 = vadd.f32 %v2203_v30, %v736_v40  ;;  %v2556_v51 = vmul.f32 %v736_v40, %v736_v40 }
 0x15a   :  { %2101 = vst [vmem:[%s4368_s4 + $0x188] sm:$0xff] %v3235_v43  ;;  %v2942_v52 = vadd.f32 %v2941_v29, %v2555_v45  ;;  %v2342_v53 = vadd.f32 %v2341_v33, %v1089_v41  ;;  %v2558_v54 = vmul.f32 %v1089_v41, %v1089_v41  ;;  %v3236_v55 = vpack.c.bf16 %v738_v46, %v736_v40 }
 0x15b   :  { %v2736_v56 = vadd.f32 %v2735_v42, %v2556_v51  ;;  %v2273_v57 = vadd.f32 %v2272_v38, %v738_v46  ;;  %v2557_v58 = vmul.f32 %v738_v46, %v738_v46  ;;  %v3237_v59 = vpack.c.bf16 %v1091_v47, %v1089_v41 }
 0x15c   :  { %v2874_v60 = vadd.f32 %v2873_v48, %v2558_v54  ;;  %2102 = vst [vmem:[%s4368_s4 + $0x190] sm:$0xff] %v3236_v55  ;;  %v2411_v61 = vadd.f32 %v2410_v44, %v1091_v47  ;;  %v2559_v62 = vmul.f32 %v1091_v47, %v1091_v47 }
 0x15d   :  { %v2805_v63 = vadd.f32 %v2804_v49, %v2557_v58  ;;  %2103 = vst [vmem:[%s4368_s4 + $0x198] sm:$0xff] %v3237_v59  ;;  %v742_v0 = vpop.f32.mrb[52].mxu0  ;;  %v1095_v2 = vpop.f32.mrb[52].mxu1 }
 0x15e   :  { %v2943_v3 = vadd.f32 %v2942_v52, %v2559_v62  ;;  %v2205_v4 = vadd.f32 %v2204_v50, %v742_v0  ;;  %v2560_v5 = vmul.f32 %v742_v0, %v742_v0  ;;  %v2343_v6 = vadd.f32 %v2342_v53, %v1095_v2  ;;  %v744_v7 = vpop.f32.mrb[53].mxu0  ;;  %v1097_v8 = vpop.f32.mrb[53].mxu1 }
 0x15f   :  { %v2562_v9 = vmul.f32 %v1095_v2, %v1095_v2  ;;  %v3238_v1 = vpack.c.bf16 %v744_v7, %v742_v0  ;;  %v2274_v10 = vadd.f32 %v2273_v57, %v744_v7  ;;  %v2561_v11 = vmul.f32 %v744_v7, %v744_v7  ;;  %v746_v12 = vpop.f32.mrb[54].mxu0  ;;  %v1099_v13 = vpop.f32.mrb[54].mxu1 }
 0x160   :  { %v2737_v14 = vadd.f32 %v2736_v56, %v2560_v5  ;;  %v3239_v15 = vpack.c.bf16 %v1097_v8, %v1095_v2  ;;  %v2412_v16 = vadd.f32 %v2411_v61, %v1097_v8  ;;  %v2563_v17 = vmul.f32 %v1097_v8, %v1097_v8  ;;  %v748_v18 = vpop.f32.mrb[55].mxu0  ;;  %v1101_v19 = vpop.f32.mrb[55].mxu1 }
 0x161   :  { %v2875_v20 = vadd.f32 %v2874_v60, %v2562_v9  ;;  %2104 = vst [vmem:[%s4368_s4 + $0x1a0] sm:$0xff] %v3238_v1  ;;  %v2806_v21 = vadd.f32 %v2805_v63, %v2561_v11  ;;  %v2206_v32 = vadd.f32 %v2205_v4, %v746_v12  ;;  %v2564_v22 = vmul.f32 %v746_v12, %v746_v12 }
 0x162   :  { %2105 = vst [vmem:[%s4368_s4 + $0x1a8] sm:$0xff] %v3239_v15  ;;  %v2944_v23 = vadd.f32 %v2943_v3, %v2563_v17  ;;  %v2344_v24 = vadd.f32 %v2343_v6, %v1099_v13  ;;  %v2566_v28 = vmul.f32 %v1099_v13, %v1099_v13  ;;  %v3240_v25 = vpack.c.bf16 %v748_v18, %v746_v12 }
 0x163   :  { %v2738_v26 = vadd.f32 %v2737_v14, %v2564_v22  ;;  %v2275_v27 = vadd.f32 %v2274_v10, %v748_v18  ;;  %v2565_v29 = vmul.f32 %v748_v18, %v748_v18  ;;  %v3241_v30 = vpack.c.bf16 %v1101_v19, %v1099_v13 }
 0x164   :  { %v2876_v31 = vadd.f32 %v2875_v20, %v2566_v28  ;;  %2106 = vst [vmem:[%s4368_s4 + $0x1b0] sm:$0xff] %v3240_v25  ;;  %v2413_v33 = vadd.f32 %v2412_v16, %v1101_v19  ;;  %v2567_v34 = vmul.f32 %v1101_v19, %v1101_v19 }
 0x165   :  { %v2807_v35 = vadd.f32 %v2806_v21, %v2565_v29  ;;  %2107 = vst [vmem:[%s4368_s4 + $0x1b8] sm:$0xff] %v3241_v30  ;;  %v752_v36 = vpop.f32.mrb[56].mxu0  ;;  %v1105_v37 = vpop.f32.mrb[56].mxu1 }
 0x166   :  { %v2945_v38 = vadd.f32 %v2944_v23, %v2567_v34  ;;  %v2207_v39 = vadd.f32 %v2206_v32, %v752_v36  ;;  %v2568_v40 = vmul.f32 %v752_v36, %v752_v36  ;;  %v2345_v41 = vadd.f32 %v2344_v24, %v1105_v37  ;;  %v754_v42 = vpop.f32.mrb[57].mxu0  ;;  %v1107_v43 = vpop.f32.mrb[57].mxu1 }
 0x167   :  { %v2570_v44 = vmul.f32 %v1105_v37, %v1105_v37  ;;  %v3242_v45 = vpack.c.bf16 %v754_v42, %v752_v36  ;;  %v2276_v46 = vadd.f32 %v2275_v27, %v754_v42  ;;  %v2569_v47 = vmul.f32 %v754_v42, %v754_v42  ;;  %v756_v48 = vpop.f32.mrb[58].mxu0  ;;  %v1109_v49 = vpop.f32.mrb[58].mxu1 }
 0x168   :  { %v2739_v50 = vadd.f32 %v2738_v26, %v2568_v40  ;;  %v3243_v51 = vpack.c.bf16 %v1107_v43, %v1105_v37  ;;  %v2414_v52 = vadd.f32 %v2413_v33, %v1107_v43  ;;  %v2571_v53 = vmul.f32 %v1107_v43, %v1107_v43  ;;  %v758_v54 = vpop.f32.mrb[59].mxu0  ;;  %v1111_v55 = vpop.f32.mrb[59].mxu1 }
 0x169   :  { %v2877_v56 = vadd.f32 %v2876_v31, %v2570_v44  ;;  %2108 = vst [vmem:[%s4368_s4 + $0x1c0] sm:$0xff] %v3242_v45  ;;  %v2808_v57 = vadd.f32 %v2807_v35, %v2569_v47  ;;  %v2208_v58 = vadd.f32 %v2207_v39, %v756_v48  ;;  %v2572_v59 = vmul.f32 %v756_v48, %v756_v48 }
 0x16a   :  { %2109 = vst [vmem:[%s4368_s4 + $0x1c8] sm:$0xff] %v3243_v51  ;;  %v2946_v60 = vadd.f32 %v2945_v38, %v2571_v53  ;;  %v2346_v61 = vadd.f32 %v2345_v41, %v1109_v49  ;;  %v2574_v62 = vmul.f32 %v1109_v49, %v1109_v49  ;;  %v3244_v63 = vpack.c.bf16 %v758_v54, %v756_v48 }
 0x16b   :  { %v2740_v0 = vadd.f32 %v2739_v50, %v2572_v59  ;;  %v2277_v2 = vadd.f32 %v2276_v46, %v758_v54  ;;  %v2573_v3 = vmul.f32 %v758_v54, %v758_v54  ;;  %v3245_v4 = vpack.c.bf16 %v1111_v55, %v1109_v49 }
 0x16c   :  { %v2878_v5 = vadd.f32 %v2877_v56, %v2574_v62  ;;  %2110 = vst [vmem:[%s4368_s4 + $0x1d0] sm:$0xff] %v3244_v63  ;;  %v2415_v6 = vadd.f32 %v2414_v52, %v1111_v55  ;;  %v2575_v7 = vmul.f32 %v1111_v55, %v1111_v55 }
 0x16d   :  { %v2809_v8 = vadd.f32 %v2808_v57, %v2573_v3  ;;  %2111 = vst [vmem:[%s4368_s4 + $0x1d8] sm:$0xff] %v3245_v4  ;;  %v762_v9 = vpop.f32.mrb[60].mxu0  ;;  %v1115_v1 = vpop.f32.mrb[60].mxu1 }
 0x16e   :  { %v2947_v10 = vadd.f32 %v2946_v60, %v2575_v7  ;;  %v2209_v11 = vadd.f32 %v2208_v58, %v762_v9  ;;  %v2576_v12 = vmul.f32 %v762_v9, %v762_v9  ;;  %v2347_v13 = vadd.f32 %v2346_v61, %v1115_v1  ;;  %v764_v14 = vpop.f32.mrb[61].mxu0  ;;  %v1117_v15 = vpop.f32.mrb[61].mxu1 }
 0x16f   :  { %v2578_v16 = vmul.f32 %v1115_v1, %v1115_v1  ;;  %v3246_v17 = vpack.c.bf16 %v764_v14, %v762_v9  ;;  %v2278_v18 = vadd.f32 %v2277_v2, %v764_v14  ;;  %v2577_v19 = vmul.f32 %v764_v14, %v764_v14  ;;  %v766_v20 = vpop.f32.mrb[62].mxu0  ;;  %v1119_v21 = vpop.f32.mrb[62].mxu1 }
 0x170   :  { %v2741_v32 = vadd.f32 %v2740_v0, %v2576_v12  ;;  %v3247_v22 = vpack.c.bf16 %v1117_v15, %v1115_v1  ;;  %v2416_v23 = vadd.f32 %v2415_v6, %v1117_v15  ;;  %v2579_v24 = vmul.f32 %v1117_v15, %v1117_v15  ;;  %v768_v28 = vpop.f32.mrb[63].mxu0  ;;  %v1121_v25 = vpop.f32.mrb[63].mxu1 }
 0x171   :  { %v2879_v26 = vadd.f32 %v2878_v5, %v2578_v16  ;;  %2112 = vst [vmem:[%s4368_s4 + $0x1e0] sm:$0xff] %v3246_v17  ;;  %v2810_v27 = vadd.f32 %v2809_v8, %v2577_v19  ;;  %v2210_v29 = vadd.f32 %v2209_v11, %v766_v20  ;;  %v2580_v30 = vmul.f32 %v766_v20, %v766_v20 }
 0x172   :  { %2113 = vst [vmem:[%s4368_s4 + $0x1e8] sm:$0xff] %v3247_v22  ;;  %v2948_v31 = vadd.f32 %v2947_v10, %v2579_v24  ;;  %v2348_v33 = vadd.f32 %v2347_v13, %v1119_v21  ;;  %v2582_v34 = vmul.f32 %v1119_v21, %v1119_v21  ;;  %v3248_v35 = vpack.c.bf16 %v768_v28, %v766_v20 }
 0x173   :  { %v2742_v36 = vadd.f32 %v2741_v32, %v2580_v30  ;;  %v2279_v37 = vadd.f32 %v2278_v18, %v768_v28  ;;  %v2581_v38 = vmul.f32 %v768_v28, %v768_v28  ;;  %v3249_v39 = vpack.c.bf16 %v1121_v25, %v1119_v21 }
 0x174   :  { %v2880_v40 = vadd.f32 %v2879_v26, %v2582_v34  ;;  %2114 = vst [vmem:[%s4368_s4 + $0x1f0] sm:$0xff] %v3248_v35  ;;  %v2417_v41 = vadd.f32 %v2416_v23, %v1121_v25  ;;  %v2583_v42 = vmul.f32 %v1121_v25, %v1121_v25 }
 0x175   :  { %v2811_v43 = vadd.f32 %v2810_v27, %v2581_v38  ;;  %2115 = vst [vmem:[%s4368_s4 + $0x1f8] sm:$0xff] %v3249_v39  ;;  %v772_v44 = vpop.f32.mrb[64].mxu0  ;;  %v1125_v45 = vpop.f32.mrb[64].mxu1 }
 0x176   :  { %v2949_v46 = vadd.f32 %v2948_v31, %v2583_v42  ;;  %v2211_v47 = vadd.f32 %v2210_v29, %v772_v44  ;;  %v2584_v48 = vmul.f32 %v772_v44, %v772_v44  ;;  %v2349_v49 = vadd.f32 %v2348_v33, %v1125_v45  ;;  %v774_v50 = vpop.f32.mrb[65].mxu0  ;;  %v1127_v51 = vpop.f32.mrb[65].mxu1 }
 0x177   :  { %v2586_v52 = vmul.f32 %v1125_v45, %v1125_v45  ;;  %v3250_v53 = vpack.c.bf16 %v774_v50, %v772_v44  ;;  %v2280_v54 = vadd.f32 %v2279_v37, %v774_v50  ;;  %v2585_v55 = vmul.f32 %v774_v50, %v774_v50  ;;  %v776_v56 = vpop.f32.mrb[66].mxu0  ;;  %v1129_v57 = vpop.f32.mrb[66].mxu1 }
 0x178   :  { %v2743_v58 = vadd.f32 %v2742_v36, %v2584_v48  ;;  %v3251_v59 = vpack.c.bf16 %v1127_v51, %v1125_v45  ;;  %v2418_v60 = vadd.f32 %v2417_v41, %v1127_v51  ;;  %v2587_v61 = vmul.f32 %v1127_v51, %v1127_v51  ;;  %v778_v62 = vpop.f32.mrb[67].mxu0  ;;  %v1131_v63 = vpop.f32.mrb[67].mxu1 }
 0x179   :  { %v2881_v0 = vadd.f32 %v2880_v40, %v2586_v52  ;;  %2116 = vst [vmem:[%s4368_s4 + $0x200] sm:$0xff] %v3250_v53  ;;  %v2812_v2 = vadd.f32 %v2811_v43, %v2585_v55  ;;  %v2212_v3 = vadd.f32 %v2211_v47, %v776_v56  ;;  %v2588_v4 = vmul.f32 %v776_v56, %v776_v56 }
 0x17a   :  { %2117 = vst [vmem:[%s4368_s4 + $0x208] sm:$0xff] %v3251_v59  ;;  %v2950_v5 = vadd.f32 %v2949_v46, %v2587_v61  ;;  %v2350_v6 = vadd.f32 %v2349_v49, %v1129_v57  ;;  %v2590_v7 = vmul.f32 %v1129_v57, %v1129_v57  ;;  %v3252_v8 = vpack.c.bf16 %v778_v62, %v776_v56 }
 0x17b   :  { %v2744_v9 = vadd.f32 %v2743_v58, %v2588_v4  ;;  %v2281_v1 = vadd.f32 %v2280_v54, %v778_v62  ;;  %v2589_v10 = vmul.f32 %v778_v62, %v778_v62  ;;  %v3253_v11 = vpack.c.bf16 %v1131_v63, %v1129_v57 }
 0x17c   :  { %v2882_v12 = vadd.f32 %v2881_v0, %v2590_v7  ;;  %2118 = vst [vmem:[%s4368_s4 + $0x210] sm:$0xff] %v3252_v8  ;;  %v2419_v13 = vadd.f32 %v2418_v60, %v1131_v63  ;;  %v2591_v14 = vmul.f32 %v1131_v63, %v1131_v63 }
 0x17d   :  { %v2813_v15 = vadd.f32 %v2812_v2, %v2589_v10  ;;  %2119 = vst [vmem:[%s4368_s4 + $0x218] sm:$0xff] %v3253_v11  ;;  %v782_v16 = vpop.f32.mrb[68].mxu0  ;;  %v1135_v17 = vpop.f32.mrb[68].mxu1 }
 0x17e   :  { %v2951_v18 = vadd.f32 %v2950_v5, %v2591_v14  ;;  %v2213_v19 = vadd.f32 %v2212_v3, %v782_v16  ;;  %v2592_v20 = vmul.f32 %v782_v16, %v782_v16  ;;  %v2351_v21 = vadd.f32 %v2350_v6, %v1135_v17  ;;  %v784_v32 = vpop.f32.mrb[69].mxu0  ;;  %v1137_v22 = vpop.f32.mrb[69].mxu1 }
 0x17f   :  { %v2594_v23 = vmul.f32 %v1135_v17, %v1135_v17  ;;  %v3254_v24 = vpack.c.bf16 %v784_v32, %v782_v16  ;;  %v2282_v28 = vadd.f32 %v2281_v1, %v784_v32  ;;  %v2593_v25 = vmul.f32 %v784_v32, %v784_v32  ;;  %v786_v26 = vpop.f32.mrb[70].mxu0  ;;  %v1139_v27 = vpop.f32.mrb[70].mxu1 }
 0x180   :  { %v2745_v29 = vadd.f32 %v2744_v9, %v2592_v20  ;;  %v3255_v30 = vpack.c.bf16 %v1137_v22, %v1135_v17  ;;  %v2420_v31 = vadd.f32 %v2419_v13, %v1137_v22  ;;  %v2595_v33 = vmul.f32 %v1137_v22, %v1137_v22  ;;  %v788_v34 = vpop.f32.mrb[71].mxu0  ;;  %v1141_v35 = vpop.f32.mrb[71].mxu1 }
 0x181   :  { %v2883_v36 = vadd.f32 %v2882_v12, %v2594_v23  ;;  %2120 = vst [vmem:[%s4368_s4 + $0x220] sm:$0xff] %v3254_v24  ;;  %v2814_v37 = vadd.f32 %v2813_v15, %v2593_v25  ;;  %v2214_v38 = vadd.f32 %v2213_v19, %v786_v26  ;;  %v2596_v39 = vmul.f32 %v786_v26, %v786_v26 }
 0x182   :  { %2121 = vst [vmem:[%s4368_s4 + $0x228] sm:$0xff] %v3255_v30  ;;  %v2952_v40 = vadd.f32 %v2951_v18, %v2595_v33  ;;  %v2352_v41 = vadd.f32 %v2351_v21, %v1139_v27  ;;  %v2598_v42 = vmul.f32 %v1139_v27, %v1139_v27  ;;  %v3256_v43 = vpack.c.bf16 %v788_v34, %v786_v26 }
 0x183   :  { %v2746_v44 = vadd.f32 %v2745_v29, %v2596_v39  ;;  %v2283_v45 = vadd.f32 %v2282_v28, %v788_v34  ;;  %v2597_v46 = vmul.f32 %v788_v34, %v788_v34  ;;  %v3257_v47 = vpack.c.bf16 %v1141_v35, %v1139_v27 }
 0x184   :  { %v2884_v48 = vadd.f32 %v2883_v36, %v2598_v42  ;;  %2122 = vst [vmem:[%s4368_s4 + $0x230] sm:$0xff] %v3256_v43  ;;  %v2421_v49 = vadd.f32 %v2420_v31, %v1141_v35  ;;  %v2599_v50 = vmul.f32 %v1141_v35, %v1141_v35 }
 0x185   :  { %v2815_v51 = vadd.f32 %v2814_v37, %v2597_v46  ;;  %2123 = vst [vmem:[%s4368_s4 + $0x238] sm:$0xff] %v3257_v47  ;;  %v792_v52 = vpop.f32.mrb[72].mxu0  ;;  %v1145_v53 = vpop.f32.mrb[72].mxu1 }
 0x186   :  { %v2953_v54 = vadd.f32 %v2952_v40, %v2599_v50  ;;  %v2215_v55 = vadd.f32 %v2214_v38, %v792_v52  ;;  %v2600_v56 = vmul.f32 %v792_v52, %v792_v52  ;;  %v2353_v57 = vadd.f32 %v2352_v41, %v1145_v53  ;;  %v794_v58 = vpop.f32.mrb[73].mxu0  ;;  %v1147_v59 = vpop.f32.mrb[73].mxu1 }
 0x187   :  { %v2602_v60 = vmul.f32 %v1145_v53, %v1145_v53  ;;  %v3258_v61 = vpack.c.bf16 %v794_v58, %v792_v52  ;;  %v2284_v62 = vadd.f32 %v2283_v45, %v794_v58  ;;  %v2601_v63 = vmul.f32 %v794_v58, %v794_v58  ;;  %v796_v0 = vpop.f32.mrb[74].mxu0  ;;  %v1149_v2 = vpop.f32.mrb[74].mxu1 }
 0x188   :  { %v2747_v3 = vadd.f32 %v2746_v44, %v2600_v56  ;;  %v3259_v4 = vpack.c.bf16 %v1147_v59, %v1145_v53  ;;  %v2422_v5 = vadd.f32 %v2421_v49, %v1147_v59  ;;  %v2603_v6 = vmul.f32 %v1147_v59, %v1147_v59  ;;  %v798_v7 = vpop.f32.mrb[75].mxu0  ;;  %v1151_v8 = vpop.f32.mrb[75].mxu1 }
 0x189   :  { %v2885_v9 = vadd.f32 %v2884_v48, %v2602_v60  ;;  %2124 = vst [vmem:[%s4368_s4 + $0x240] sm:$0xff] %v3258_v61  ;;  %v2816_v1 = vadd.f32 %v2815_v51, %v2601_v63  ;;  %v2216_v10 = vadd.f32 %v2215_v55, %v796_v0  ;;  %v2604_v11 = vmul.f32 %v796_v0, %v796_v0 }
 0x18a   :  { %2125 = vst [vmem:[%s4368_s4 + $0x248] sm:$0xff] %v3259_v4  ;;  %v2954_v12 = vadd.f32 %v2953_v54, %v2603_v6  ;;  %v2354_v13 = vadd.f32 %v2353_v57, %v1149_v2  ;;  %v2606_v14 = vmul.f32 %v1149_v2, %v1149_v2  ;;  %v3260_v15 = vpack.c.bf16 %v798_v7, %v796_v0 }
 0x18b   :  { %v2748_v16 = vadd.f32 %v2747_v3, %v2604_v11  ;;  %v2285_v17 = vadd.f32 %v2284_v62, %v798_v7  ;;  %v2605_v18 = vmul.f32 %v798_v7, %v798_v7  ;;  %v3261_v19 = vpack.c.bf16 %v1151_v8, %v1149_v2 }
 0x18c   :  { %v2886_v20 = vadd.f32 %v2885_v9, %v2606_v14  ;;  %2126 = vst [vmem:[%s4368_s4 + $0x250] sm:$0xff] %v3260_v15  ;;  %v2423_v21 = vadd.f32 %v2422_v5, %v1151_v8  ;;  %v2607_v32 = vmul.f32 %v1151_v8, %v1151_v8 }
 0x18d   :  { %v2817_v22 = vadd.f32 %v2816_v1, %v2605_v18  ;;  %2127 = vst [vmem:[%s4368_s4 + $0x258] sm:$0xff] %v3261_v19  ;;  %v802_v23 = vpop.f32.mrb[76].mxu0  ;;  %v1155_v24 = vpop.f32.mrb[76].mxu1 }
 0x18e   :  { %v2955_v28 = vadd.f32 %v2954_v12, %v2607_v32  ;;  %v2217_v25 = vadd.f32 %v2216_v10, %v802_v23  ;;  %v2608_v26 = vmul.f32 %v802_v23, %v802_v23  ;;  %v2355_v27 = vadd.f32 %v2354_v13, %v1155_v24  ;;  %v804_v29 = vpop.f32.mrb[77].mxu0  ;;  %v1157_v30 = vpop.f32.mrb[77].mxu1 }
 0x18f   :  { %v2610_v31 = vmul.f32 %v1155_v24, %v1155_v24  ;;  %v3262_v33 = vpack.c.bf16 %v804_v29, %v802_v23  ;;  %v2286_v34 = vadd.f32 %v2285_v17, %v804_v29  ;;  %v2609_v35 = vmul.f32 %v804_v29, %v804_v29  ;;  %v806_v36 = vpop.f32.mrb[78].mxu0  ;;  %v1159_v37 = vpop.f32.mrb[78].mxu1 }
 0x190   :  { %v2749_v38 = vadd.f32 %v2748_v16, %v2608_v26  ;;  %v3263_v39 = vpack.c.bf16 %v1157_v30, %v1155_v24  ;;  %v2424_v40 = vadd.f32 %v2423_v21, %v1157_v30  ;;  %v2611_v41 = vmul.f32 %v1157_v30, %v1157_v30  ;;  %v808_v42 = vpop.f32.mrb[79].mxu0  ;;  %v1161_v43 = vpop.f32.mrb[79].mxu1 }
 0x191   :  { %v2887_v44 = vadd.f32 %v2886_v20, %v2610_v31  ;;  %2128 = vst [vmem:[%s4368_s4 + $0x260] sm:$0xff] %v3262_v33  ;;  %v2818_v45 = vadd.f32 %v2817_v22, %v2609_v35  ;;  %v2218_v46 = vadd.f32 %v2217_v25, %v806_v36  ;;  %v2612_v47 = vmul.f32 %v806_v36, %v806_v36 }
 0x192   :  { %2129 = vst [vmem:[%s4368_s4 + $0x268] sm:$0xff] %v3263_v39  ;;  %v2956_v48 = vadd.f32 %v2955_v28, %v2611_v41  ;;  %v2356_v49 = vadd.f32 %v2355_v27, %v1159_v37  ;;  %v2614_v50 = vmul.f32 %v1159_v37, %v1159_v37  ;;  %v3264_v51 = vpack.c.bf16 %v808_v42, %v806_v36 }
 0x193   :  { %v2750_v52 = vadd.f32 %v2749_v38, %v2612_v47  ;;  %v2287_v53 = vadd.f32 %v2286_v34, %v808_v42  ;;  %v2613_v54 = vmul.f32 %v808_v42, %v808_v42  ;;  %v3265_v55 = vpack.c.bf16 %v1161_v43, %v1159_v37 }
 0x194   :  { %v2888_v56 = vadd.f32 %v2887_v44, %v2614_v50  ;;  %2130 = vst [vmem:[%s4368_s4 + $0x270] sm:$0xff] %v3264_v51  ;;  %v2425_v57 = vadd.f32 %v2424_v40, %v1161_v43  ;;  %v2615_v58 = vmul.f32 %v1161_v43, %v1161_v43 }
 0x195   :  { %v2819_v59 = vadd.f32 %v2818_v45, %v2613_v54  ;;  %2131 = vst [vmem:[%s4368_s4 + $0x278] sm:$0xff] %v3265_v55  ;;  %v812_v60 = vpop.f32.mrb[80].mxu0  ;;  %v1165_v61 = vpop.f32.mrb[80].mxu1 }
 0x196   :  { %v2957_v62 = vadd.f32 %v2956_v48, %v2615_v58  ;;  %v2219_v63 = vadd.f32 %v2218_v46, %v812_v60  ;;  %v2616_v0 = vmul.f32 %v812_v60, %v812_v60  ;;  %v2357_v2 = vadd.f32 %v2356_v49, %v1165_v61  ;;  %v814_v3 = vpop.f32.mrb[81].mxu0  ;;  %v1167_v4 = vpop.f32.mrb[81].mxu1 }
 0x197   :  { %v2618_v5 = vmul.f32 %v1165_v61, %v1165_v61  ;;  %v3266_v6 = vpack.c.bf16 %v814_v3, %v812_v60  ;;  %v2288_v7 = vadd.f32 %v2287_v53, %v814_v3  ;;  %v2617_v8 = vmul.f32 %v814_v3, %v814_v3  ;;  %v816_v9 = vpop.f32.mrb[82].mxu0  ;;  %v1169_v1 = vpop.f32.mrb[82].mxu1 }
 0x198   :  { %v2751_v10 = vadd.f32 %v2750_v52, %v2616_v0  ;;  %v3267_v11 = vpack.c.bf16 %v1167_v4, %v1165_v61  ;;  %v2426_v12 = vadd.f32 %v2425_v57, %v1167_v4  ;;  %v2619_v13 = vmul.f32 %v1167_v4, %v1167_v4  ;;  %v818_v14 = vpop.f32.mrb[83].mxu0  ;;  %v1171_v15 = vpop.f32.mrb[83].mxu1 }
 0x199   :  { %v2889_v16 = vadd.f32 %v2888_v56, %v2618_v5  ;;  %2132 = vst [vmem:[%s4368_s4 + $0x280] sm:$0xff] %v3266_v6  ;;  %v2820_v17 = vadd.f32 %v2819_v59, %v2617_v8  ;;  %v2220_v18 = vadd.f32 %v2219_v63, %v816_v9  ;;  %v2620_v19 = vmul.f32 %v816_v9, %v816_v9 }
 0x19a   :  { %2133 = vst [vmem:[%s4368_s4 + $0x288] sm:$0xff] %v3267_v11  ;;  %v2958_v20 = vadd.f32 %v2957_v62, %v2619_v13  ;;  %v2358_v21 = vadd.f32 %v2357_v2, %v1169_v1  ;;  %v2622_v32 = vmul.f32 %v1169_v1, %v1169_v1  ;;  %v3268_v22 = vpack.c.bf16 %v818_v14, %v816_v9 }
 0x19b   :  { %v2752_v23 = vadd.f32 %v2751_v10, %v2620_v19  ;;  %v2289_v24 = vadd.f32 %v2288_v7, %v818_v14  ;;  %v2621_v28 = vmul.f32 %v818_v14, %v818_v14  ;;  %v3269_v25 = vpack.c.bf16 %v1171_v15, %v1169_v1 }
 0x19c   :  { %v2890_v26 = vadd.f32 %v2889_v16, %v2622_v32  ;;  %2134 = vst [vmem:[%s4368_s4 + $0x290] sm:$0xff] %v3268_v22  ;;  %v2427_v27 = vadd.f32 %v2426_v12, %v1171_v15  ;;  %v2623_v29 = vmul.f32 %v1171_v15, %v1171_v15 }
 0x19d   :  { %v2821_v30 = vadd.f32 %v2820_v17, %v2621_v28  ;;  %2135 = vst [vmem:[%s4368_s4 + $0x298] sm:$0xff] %v3269_v25  ;;  %v822_v31 = vpop.f32.mrb[84].mxu0  ;;  %v1175_v33 = vpop.f32.mrb[84].mxu1 }
 0x19e   :  { %v2959_v34 = vadd.f32 %v2958_v20, %v2623_v29  ;;  %v2221_v35 = vadd.f32 %v2220_v18, %v822_v31  ;;  %v2624_v36 = vmul.f32 %v822_v31, %v822_v31  ;;  %v2359_v37 = vadd.f32 %v2358_v21, %v1175_v33  ;;  %v824_v38 = vpop.f32.mrb[85].mxu0  ;;  %v1177_v39 = vpop.f32.mrb[85].mxu1 }
 0x19f   :  { %v2626_v40 = vmul.f32 %v1175_v33, %v1175_v33  ;;  %v3270_v41 = vpack.c.bf16 %v824_v38, %v822_v31  ;;  %v2290_v42 = vadd.f32 %v2289_v24, %v824_v38  ;;  %v2625_v43 = vmul.f32 %v824_v38, %v824_v38  ;;  %v826_v44 = vpop.f32.mrb[86].mxu0  ;;  %v1179_v45 = vpop.f32.mrb[86].mxu1 }
 0x1a0   :  { %v2753_v46 = vadd.f32 %v2752_v23, %v2624_v36  ;;  %v3271_v47 = vpack.c.bf16 %v1177_v39, %v1175_v33  ;;  %v2428_v48 = vadd.f32 %v2427_v27, %v1177_v39  ;;  %v2627_v49 = vmul.f32 %v1177_v39, %v1177_v39  ;;  %v828_v50 = vpop.f32.mrb[87].mxu0  ;;  %v1181_v51 = vpop.f32.mrb[87].mxu1 }
 0x1a1   :  { %v2891_v52 = vadd.f32 %v2890_v26, %v2626_v40  ;;  %2136 = vst [vmem:[%s4368_s4 + $0x2a0] sm:$0xff] %v3270_v41  ;;  %v2822_v53 = vadd.f32 %v2821_v30, %v2625_v43  ;;  %v2222_v54 = vadd.f32 %v2221_v35, %v826_v44  ;;  %v2628_v55 = vmul.f32 %v826_v44, %v826_v44 }
 0x1a2   :  { %2137 = vst [vmem:[%s4368_s4 + $0x2a8] sm:$0xff] %v3271_v47  ;;  %v2960_v56 = vadd.f32 %v2959_v34, %v2627_v49  ;;  %v2360_v57 = vadd.f32 %v2359_v37, %v1179_v45  ;;  %v2630_v58 = vmul.f32 %v1179_v45, %v1179_v45  ;;  %v3272_v59 = vpack.c.bf16 %v828_v50, %v826_v44 }
 0x1a3   :  { %v2754_v60 = vadd.f32 %v2753_v46, %v2628_v55  ;;  %v2291_v61 = vadd.f32 %v2290_v42, %v828_v50  ;;  %v2629_v62 = vmul.f32 %v828_v50, %v828_v50  ;;  %v3273_v63 = vpack.c.bf16 %v1181_v51, %v1179_v45 }
 0x1a4   :  { %v2892_v0 = vadd.f32 %v2891_v52, %v2630_v58  ;;  %2138 = vst [vmem:[%s4368_s4 + $0x2b0] sm:$0xff] %v3272_v59  ;;  %v2429_v2 = vadd.f32 %v2428_v48, %v1181_v51  ;;  %v2631_v3 = vmul.f32 %v1181_v51, %v1181_v51 }
 0x1a5   :  { %v2823_v4 = vadd.f32 %v2822_v53, %v2629_v62  ;;  %2139 = vst [vmem:[%s4368_s4 + $0x2b8] sm:$0xff] %v3273_v63  ;;  %v832_v5 = vpop.f32.mrb[88].mxu0  ;;  %v1185_v6 = vpop.f32.mrb[88].mxu1 }
 0x1a6   :  { %v2961_v7 = vadd.f32 %v2960_v56, %v2631_v3  ;;  %v2223_v8 = vadd.f32 %v2222_v54, %v832_v5  ;;  %v2632_v9 = vmul.f32 %v832_v5, %v832_v5  ;;  %v2361_v1 = vadd.f32 %v2360_v57, %v1185_v6  ;;  %v834_v10 = vpop.f32.mrb[89].mxu0  ;;  %v1187_v11 = vpop.f32.mrb[89].mxu1 }
 0x1a7   :  { %v2634_v12 = vmul.f32 %v1185_v6, %v1185_v6  ;;  %v3274_v13 = vpack.c.bf16 %v834_v10, %v832_v5  ;;  %v2292_v14 = vadd.f32 %v2291_v61, %v834_v10  ;;  %v2633_v15 = vmul.f32 %v834_v10, %v834_v10  ;;  %v836_v16 = vpop.f32.mrb[90].mxu0  ;;  %v1189_v17 = vpop.f32.mrb[90].mxu1 }
 0x1a8   :  { %v2755_v18 = vadd.f32 %v2754_v60, %v2632_v9  ;;  %v3275_v19 = vpack.c.bf16 %v1187_v11, %v1185_v6  ;;  %v2430_v20 = vadd.f32 %v2429_v2, %v1187_v11  ;;  %v2635_v21 = vmul.f32 %v1187_v11, %v1187_v11  ;;  %v838_v32 = vpop.f32.mrb[91].mxu0  ;;  %v1191_v22 = vpop.f32.mrb[91].mxu1 }
 0x1a9   :  { %v2893_v23 = vadd.f32 %v2892_v0, %v2634_v12  ;;  %2140 = vst [vmem:[%s4368_s4 + $0x2c0] sm:$0xff] %v3274_v13  ;;  %v2824_v24 = vadd.f32 %v2823_v4, %v2633_v15  ;;  %v2224_v28 = vadd.f32 %v2223_v8, %v836_v16  ;;  %v2636_v25 = vmul.f32 %v836_v16, %v836_v16 }
 0x1aa   :  { %2141 = vst [vmem:[%s4368_s4 + $0x2c8] sm:$0xff] %v3275_v19  ;;  %v2962_v26 = vadd.f32 %v2961_v7, %v2635_v21  ;;  %v2362_v27 = vadd.f32 %v2361_v1, %v1189_v17  ;;  %v2638_v29 = vmul.f32 %v1189_v17, %v1189_v17  ;;  %v3276_v30 = vpack.c.bf16 %v838_v32, %v836_v16 }
 0x1ab   :  { %v2756_v31 = vadd.f32 %v2755_v18, %v2636_v25  ;;  %v2293_v33 = vadd.f32 %v2292_v14, %v838_v32  ;;  %v2637_v34 = vmul.f32 %v838_v32, %v838_v32  ;;  %v3277_v35 = vpack.c.bf16 %v1191_v22, %v1189_v17 }
 0x1ac   :  { %v2894_v36 = vadd.f32 %v2893_v23, %v2638_v29  ;;  %2142 = vst [vmem:[%s4368_s4 + $0x2d0] sm:$0xff] %v3276_v30  ;;  %v2431_v37 = vadd.f32 %v2430_v20, %v1191_v22  ;;  %v2639_v38 = vmul.f32 %v1191_v22, %v1191_v22 }
 0x1ad   :  { %v2825_v39 = vadd.f32 %v2824_v24, %v2637_v34  ;;  %2143 = vst [vmem:[%s4368_s4 + $0x2d8] sm:$0xff] %v3277_v35  ;;  %v842_v40 = vpop.f32.mrb[92].mxu0  ;;  %v1195_v41 = vpop.f32.mrb[92].mxu1 }
 0x1ae   :  { %v2963_v42 = vadd.f32 %v2962_v26, %v2639_v38  ;;  %v2225_v43 = vadd.f32 %v2224_v28, %v842_v40  ;;  %v2640_v44 = vmul.f32 %v842_v40, %v842_v40  ;;  %v2363_v45 = vadd.f32 %v2362_v27, %v1195_v41  ;;  %v844_v46 = vpop.f32.mrb[93].mxu0  ;;  %v1197_v47 = vpop.f32.mrb[93].mxu1 }
 0x1af   :  { %v2642_v48 = vmul.f32 %v1195_v41, %v1195_v41  ;;  %v3278_v49 = vpack.c.bf16 %v844_v46, %v842_v40  ;;  %v2294_v50 = vadd.f32 %v2293_v33, %v844_v46  ;;  %v2641_v51 = vmul.f32 %v844_v46, %v844_v46  ;;  %v846_v52 = vpop.f32.mrb[94].mxu0  ;;  %v1199_v53 = vpop.f32.mrb[94].mxu1 }
 0x1b0   :  { %v2757_v54 = vadd.f32 %v2756_v31, %v2640_v44  ;;  %v3279_v55 = vpack.c.bf16 %v1197_v47, %v1195_v41  ;;  %v2432_v56 = vadd.f32 %v2431_v37, %v1197_v47  ;;  %v2643_v57 = vmul.f32 %v1197_v47, %v1197_v47  ;;  %v848_v58 = vpop.f32.mrb[95].mxu0  ;;  %v1201_v59 = vpop.f32.mrb[95].mxu1 }
 0x1b1   :  { %v2895_v60 = vadd.f32 %v2894_v36, %v2642_v48  ;;  %2144 = vst [vmem:[%s4368_s4 + $0x2e0] sm:$0xff] %v3278_v49  ;;  %v2826_v61 = vadd.f32 %v2825_v39, %v2641_v51  ;;  %v2226_v62 = vadd.f32 %v2225_v43, %v846_v52  ;;  %v2644_v63 = vmul.f32 %v846_v52, %v846_v52 }
 0x1b2   :  { %2145 = vst [vmem:[%s4368_s4 + $0x2e8] sm:$0xff] %v3279_v55  ;;  %v2964_v0 = vadd.f32 %v2963_v42, %v2643_v57  ;;  %v2364_v2 = vadd.f32 %v2363_v45, %v1199_v53  ;;  %v2646_v3 = vmul.f32 %v1199_v53, %v1199_v53  ;;  %v3280_v4 = vpack.c.bf16 %v848_v58, %v846_v52 }
 0x1b3   :  { %v2758_v5 = vadd.f32 %v2757_v54, %v2644_v63  ;;  %v2295_v6 = vadd.f32 %v2294_v50, %v848_v58  ;;  %v2645_v7 = vmul.f32 %v848_v58, %v848_v58  ;;  %v3281_v8 = vpack.c.bf16 %v1201_v59, %v1199_v53 }
 0x1b4   :  { %v2896_v9 = vadd.f32 %v2895_v60, %v2646_v3  ;;  %2146 = vst [vmem:[%s4368_s4 + $0x2f0] sm:$0xff] %v3280_v4  ;;  %v2433_v1 = vadd.f32 %v2432_v56, %v1201_v59  ;;  %v2647_v10 = vmul.f32 %v1201_v59, %v1201_v59 }
 0x1b5   :  { %v2827_v11 = vadd.f32 %v2826_v61, %v2645_v7  ;;  %2147 = vst [vmem:[%s4368_s4 + $0x2f8] sm:$0xff] %v3281_v8  ;;  %v852_v12 = vpop.f32.mrb[96].mxu0  ;;  %v1205_v13 = vpop.f32.mrb[96].mxu1 }
 0x1b6   :  { %v2965_v14 = vadd.f32 %v2964_v0, %v2647_v10  ;;  %v2227_v15 = vadd.f32 %v2226_v62, %v852_v12  ;;  %v2648_v16 = vmul.f32 %v852_v12, %v852_v12  ;;  %v2365_v17 = vadd.f32 %v2364_v2, %v1205_v13  ;;  %v854_v18 = vpop.f32.mrb[97].mxu0  ;;  %v1207_v19 = vpop.f32.mrb[97].mxu1 }
 0x1b7   :  { %v2650_v20 = vmul.f32 %v1205_v13, %v1205_v13  ;;  %v3282_v21 = vpack.c.bf16 %v854_v18, %v852_v12  ;;  %v2296_v32 = vadd.f32 %v2295_v6, %v854_v18  ;;  %v2649_v22 = vmul.f32 %v854_v18, %v854_v18  ;;  %v856_v23 = vpop.f32.mrb[98].mxu0  ;;  %v1209_v24 = vpop.f32.mrb[98].mxu1 }
 0x1b8   :  { %v2759_v28 = vadd.f32 %v2758_v5, %v2648_v16  ;;  %v3283_v25 = vpack.c.bf16 %v1207_v19, %v1205_v13  ;;  %v2434_v26 = vadd.f32 %v2433_v1, %v1207_v19  ;;  %v2651_v27 = vmul.f32 %v1207_v19, %v1207_v19  ;;  %v858_v29 = vpop.f32.mrb[99].mxu0  ;;  %v1211_v30 = vpop.f32.mrb[99].mxu1 }
 0x1b9   :  { %v2897_v31 = vadd.f32 %v2896_v9, %v2650_v20  ;;  %2148 = vst [vmem:[%s4368_s4 + $0x300] sm:$0xff] %v3282_v21  ;;  %v2828_v33 = vadd.f32 %v2827_v11, %v2649_v22  ;;  %v2228_v34 = vadd.f32 %v2227_v15, %v856_v23  ;;  %v2652_v35 = vmul.f32 %v856_v23, %v856_v23 }
 0x1ba   :  { %2149 = vst [vmem:[%s4368_s4 + $0x308] sm:$0xff] %v3283_v25  ;;  %v2966_v36 = vadd.f32 %v2965_v14, %v2651_v27  ;;  %v2366_v37 = vadd.f32 %v2365_v17, %v1209_v24  ;;  %v2654_v38 = vmul.f32 %v1209_v24, %v1209_v24  ;;  %v3284_v39 = vpack.c.bf16 %v858_v29, %v856_v23 }
 0x1bb   :  { %v2760_v40 = vadd.f32 %v2759_v28, %v2652_v35  ;;  %v2297_v41 = vadd.f32 %v2296_v32, %v858_v29  ;;  %v2653_v42 = vmul.f32 %v858_v29, %v858_v29  ;;  %v3285_v43 = vpack.c.bf16 %v1211_v30, %v1209_v24 }
 0x1bc   :  { %v2898_v44 = vadd.f32 %v2897_v31, %v2654_v38  ;;  %2150 = vst [vmem:[%s4368_s4 + $0x310] sm:$0xff] %v3284_v39  ;;  %v2435_v45 = vadd.f32 %v2434_v26, %v1211_v30  ;;  %v2655_v46 = vmul.f32 %v1211_v30, %v1211_v30 }
 0x1bd   :  { %v2829_v47 = vadd.f32 %v2828_v33, %v2653_v42  ;;  %2151 = vst [vmem:[%s4368_s4 + $0x318] sm:$0xff] %v3285_v43  ;;  %v862_v48 = vpop.f32.mrb[100].mxu0  ;;  %v1215_v49 = vpop.f32.mrb[100].mxu1 }
 0x1be   :  { %v2967_v50 = vadd.f32 %v2966_v36, %v2655_v46  ;;  %v2229_v51 = vadd.f32 %v2228_v34, %v862_v48  ;;  %v2656_v52 = vmul.f32 %v862_v48, %v862_v48  ;;  %v2367_v53 = vadd.f32 %v2366_v37, %v1215_v49  ;;  %v864_v54 = vpop.f32.mrb[101].mxu0  ;;  %v1217_v55 = vpop.f32.mrb[101].mxu1 }
 0x1bf   :  { %v2658_v56 = vmul.f32 %v1215_v49, %v1215_v49  ;;  %v3286_v57 = vpack.c.bf16 %v864_v54, %v862_v48  ;;  %v2298_v58 = vadd.f32 %v2297_v41, %v864_v54  ;;  %v2657_v59 = vmul.f32 %v864_v54, %v864_v54  ;;  %v866_v60 = vpop.f32.mrb[102].mxu0  ;;  %v1219_v61 = vpop.f32.mrb[102].mxu1 }
 0x1c0   :  { %v2761_v62 = vadd.f32 %v2760_v40, %v2656_v52  ;;  %v3287_v63 = vpack.c.bf16 %v1217_v55, %v1215_v49  ;;  %v2436_v0 = vadd.f32 %v2435_v45, %v1217_v55  ;;  %v2659_v2 = vmul.f32 %v1217_v55, %v1217_v55  ;;  %v868_v3 = vpop.f32.mrb[103].mxu0  ;;  %v1221_v4 = vpop.f32.mrb[103].mxu1 }
 0x1c1   :  { %v2899_v5 = vadd.f32 %v2898_v44, %v2658_v56  ;;  %2152 = vst [vmem:[%s4368_s4 + $0x320] sm:$0xff] %v3286_v57  ;;  %v2830_v6 = vadd.f32 %v2829_v47, %v2657_v59  ;;  %v2230_v7 = vadd.f32 %v2229_v51, %v866_v60  ;;  %v2660_v8 = vmul.f32 %v866_v60, %v866_v60 }
 0x1c2   :  { %2153 = vst [vmem:[%s4368_s4 + $0x328] sm:$0xff] %v3287_v63  ;;  %v2968_v9 = vadd.f32 %v2967_v50, %v2659_v2  ;;  %v2368_v1 = vadd.f32 %v2367_v53, %v1219_v61  ;;  %v2662_v10 = vmul.f32 %v1219_v61, %v1219_v61  ;;  %v3288_v11 = vpack.c.bf16 %v868_v3, %v866_v60 }
 0x1c3   :  { %v2762_v12 = vadd.f32 %v2761_v62, %v2660_v8  ;;  %v2299_v13 = vadd.f32 %v2298_v58, %v868_v3  ;;  %v2661_v14 = vmul.f32 %v868_v3, %v868_v3  ;;  %v3289_v15 = vpack.c.bf16 %v1221_v4, %v1219_v61 }
 0x1c4   :  { %v2900_v16 = vadd.f32 %v2899_v5, %v2662_v10  ;;  %2154 = vst [vmem:[%s4368_s4 + $0x330] sm:$0xff] %v3288_v11  ;;  %v2437_v17 = vadd.f32 %v2436_v0, %v1221_v4  ;;  %v2663_v18 = vmul.f32 %v1221_v4, %v1221_v4 }
 0x1c5   :  { %v2831_v19 = vadd.f32 %v2830_v6, %v2661_v14  ;;  %2155 = vst [vmem:[%s4368_s4 + $0x338] sm:$0xff] %v3289_v15  ;;  %v872_v20 = vpop.f32.mrb[104].mxu0  ;;  %v1225_v21 = vpop.f32.mrb[104].mxu1 }
 0x1c6   :  { %v2969_v32 = vadd.f32 %v2968_v9, %v2663_v18  ;;  %v2231_v22 = vadd.f32 %v2230_v7, %v872_v20  ;;  %v2664_v23 = vmul.f32 %v872_v20, %v872_v20  ;;  %v2369_v24 = vadd.f32 %v2368_v1, %v1225_v21  ;;  %v874_v28 = vpop.f32.mrb[105].mxu0  ;;  %v1227_v25 = vpop.f32.mrb[105].mxu1 }
 0x1c7   :  { %v2666_v26 = vmul.f32 %v1225_v21, %v1225_v21  ;;  %v3290_v27 = vpack.c.bf16 %v874_v28, %v872_v20  ;;  %v2300_v29 = vadd.f32 %v2299_v13, %v874_v28  ;;  %v2665_v30 = vmul.f32 %v874_v28, %v874_v28  ;;  %v876_v31 = vpop.f32.mrb[106].mxu0  ;;  %v1229_v33 = vpop.f32.mrb[106].mxu1 }
 0x1c8   :  { %v2763_v34 = vadd.f32 %v2762_v12, %v2664_v23  ;;  %v3291_v35 = vpack.c.bf16 %v1227_v25, %v1225_v21  ;;  %v2438_v36 = vadd.f32 %v2437_v17, %v1227_v25  ;;  %v2667_v37 = vmul.f32 %v1227_v25, %v1227_v25  ;;  %v878_v38 = vpop.f32.mrb[107].mxu0  ;;  %v1231_v39 = vpop.f32.mrb[107].mxu1 }
 0x1c9   :  { %v2901_v40 = vadd.f32 %v2900_v16, %v2666_v26  ;;  %2156 = vst [vmem:[%s4368_s4 + $0x340] sm:$0xff] %v3290_v27  ;;  %v2832_v41 = vadd.f32 %v2831_v19, %v2665_v30  ;;  %v2232_v42 = vadd.f32 %v2231_v22, %v876_v31  ;;  %v2668_v43 = vmul.f32 %v876_v31, %v876_v31 }
 0x1ca   :  { %2157 = vst [vmem:[%s4368_s4 + $0x348] sm:$0xff] %v3291_v35  ;;  %v2970_v44 = vadd.f32 %v2969_v32, %v2667_v37  ;;  %v2370_v45 = vadd.f32 %v2369_v24, %v1229_v33  ;;  %v2670_v46 = vmul.f32 %v1229_v33, %v1229_v33  ;;  %v3292_v47 = vpack.c.bf16 %v878_v38, %v876_v31 }
 0x1cb   :  { %v2764_v48 = vadd.f32 %v2763_v34, %v2668_v43  ;;  %v2301_v49 = vadd.f32 %v2300_v29, %v878_v38  ;;  %v2669_v50 = vmul.f32 %v878_v38, %v878_v38  ;;  %v3293_v51 = vpack.c.bf16 %v1231_v39, %v1229_v33 }
 0x1cc   :  { %v2902_v52 = vadd.f32 %v2901_v40, %v2670_v46  ;;  %2158 = vst [vmem:[%s4368_s4 + $0x350] sm:$0xff] %v3292_v47  ;;  %v2439_v53 = vadd.f32 %v2438_v36, %v1231_v39  ;;  %v2671_v54 = vmul.f32 %v1231_v39, %v1231_v39 }
 0x1cd   :  { %v2833_v55 = vadd.f32 %v2832_v41, %v2669_v50  ;;  %2159 = vst [vmem:[%s4368_s4 + $0x358] sm:$0xff] %v3293_v51  ;;  %v882_v56 = vpop.f32.mrb[108].mxu0 }
 0x1ce   :  { %v2971_v57 = vadd.f32 %v2970_v44, %v2671_v54  ;;  %v2233_v58 = vadd.f32 %v2232_v42, %v882_v56  ;;  %v2672_v59 = vmul.f32 %v882_v56, %v882_v56  ;;  %v1235_v60 = vpop.f32.mrb[108].mxu1  ;;  %v884_v61 = vpop.f32.mrb[109].mxu0 }
 0x1cf   :  { %v2371_v62 = vadd.f32 %v2370_v45, %v1235_v60  ;;  %v2674_v63 = vmul.f32 %v1235_v60, %v1235_v60  ;;  %v3294_v0 = vpack.c.bf16 %v884_v61, %v882_v56  ;;  %v2302_v2 = vadd.f32 %v2301_v49, %v884_v61  ;;  %v1237_v3 = vpop.f32.mrb[109].mxu1  ;;  %v886_v4 = vpop.f32.mrb[110].mxu0 }
 0x1d0   :  { %v2765_v5 = vadd.f32 %v2764_v48, %v2672_v59  ;;  %v2673_v6 = vmul.f32 %v884_v61, %v884_v61  ;;  %v3295_v7 = vpack.c.bf16 %v1237_v3, %v1235_v60  ;;  %v2440_v8 = vadd.f32 %v2439_v53, %v1237_v3  ;;  %v1239_v9 = vpop.f32.mrb[110].mxu1  ;;  %v888_v1 = vpop.f32.mrb[111].mxu0 }
 0x1d1   :  { %v2903_v10 = vadd.f32 %v2902_v52, %v2674_v63  ;;  %2160 = vst [vmem:[%s4368_s4 + $0x360] sm:$0xff] %v3294_v0  ;;  %v2675_v11 = vmul.f32 %v1237_v3, %v1237_v3  ;;  %v2234_v12 = vadd.f32 %v2233_v58, %v886_v4  ;;  %v2676_v13 = vmul.f32 %v886_v4, %v886_v4  ;;  %v1241_v14 = vpop.f32.mrb[111].mxu1 }
 0x1d2   :  { %v2834_v15 = vadd.f32 %v2833_v55, %v2673_v6  ;;  %2161 = vst [vmem:[%s4368_s4 + $0x368] sm:$0xff] %v3295_v7  ;;  %v2372_v16 = vadd.f32 %v2371_v62, %v1239_v9  ;;  %v2678_v17 = vmul.f32 %v1239_v9, %v1239_v9  ;;  %v3296_v18 = vpack.c.bf16 %v888_v1, %v886_v4 }
 0x1d3   :  { %v2972_v19 = vadd.f32 %v2971_v57, %v2675_v11  ;;  %v2766_v20 = vadd.f32 %v2765_v5, %v2676_v13  ;;  %v2303_v21 = vadd.f32 %v2302_v2, %v888_v1  ;;  %v2677_v32 = vmul.f32 %v888_v1, %v888_v1 }
 0x1d4   :  { %v2904_v22 = vadd.f32 %v2903_v10, %v2678_v17  ;;  %2162 = vst [vmem:[%s4368_s4 + $0x370] sm:$0xff] %v3296_v18  ;;  %v3297_v23 = vpack.c.bf16 %v1241_v14, %v1239_v9  ;;  %v2441_v24 = vadd.f32 %v2440_v8, %v1241_v14  ;;  %v2679_v28 = vmul.f32 %v1241_v14, %v1241_v14 }
 0x1d5   :  { %v2835_v25 = vadd.f32 %v2834_v15, %v2677_v32  ;;  %v892_v26 = vpop.f32.mrb[112].mxu0 }
 0x1d6   :  { %2163 = vst [vmem:[%s4368_s4 + $0x378] sm:$0xff] %v3297_v23  ;;  %v2973_v27 = vadd.f32 %v2972_v19, %v2679_v28  ;;  %v2235_v29 = vadd.f32 %v2234_v12, %v892_v26  ;;  %v2680_v30 = vmul.f32 %v892_v26, %v892_v26  ;;  %v1245_v31 = vpop.f32.mrb[112].mxu1  ;;  %v894_v33 = vpop.f32.mrb[113].mxu0 }
 0x1d7   :  { %v2373_v34 = vadd.f32 %v2372_v16, %v1245_v31  ;;  %v2682_v35 = vmul.f32 %v1245_v31, %v1245_v31  ;;  %v3298_v36 = vpack.c.bf16 %v894_v33, %v892_v26  ;;  %v2304_v37 = vadd.f32 %v2303_v21, %v894_v33  ;;  %v1247_v38 = vpop.f32.mrb[113].mxu1  ;;  %v896_v39 = vpop.f32.mrb[114].mxu0 }
 0x1d8   :  { %v2767_v40 = vadd.f32 %v2766_v20, %v2680_v30  ;;  %v2681_v41 = vmul.f32 %v894_v33, %v894_v33  ;;  %v3299_v42 = vpack.c.bf16 %v1247_v38, %v1245_v31  ;;  %v2442_v43 = vadd.f32 %v2441_v24, %v1247_v38  ;;  %v1249_v44 = vpop.f32.mrb[114].mxu1  ;;  %v898_v45 = vpop.f32.mrb[115].mxu0 }
 0x1d9   :  { %v2905_v46 = vadd.f32 %v2904_v22, %v2682_v35  ;;  %2164 = vst [vmem:[%s4368_s4 + $0x380] sm:$0xff] %v3298_v36  ;;  %v2683_v47 = vmul.f32 %v1247_v38, %v1247_v38  ;;  %v2236_v48 = vadd.f32 %v2235_v29, %v896_v39  ;;  %v2684_v49 = vmul.f32 %v896_v39, %v896_v39  ;;  %v1251_v50 = vpop.f32.mrb[115].mxu1 }
 0x1da   :  { %v2836_v51 = vadd.f32 %v2835_v25, %v2681_v41  ;;  %2165 = vst [vmem:[%s4368_s4 + $0x388] sm:$0xff] %v3299_v42  ;;  %v2374_v52 = vadd.f32 %v2373_v34, %v1249_v44  ;;  %v2686_v53 = vmul.f32 %v1249_v44, %v1249_v44  ;;  %v3300_v54 = vpack.c.bf16 %v898_v45, %v896_v39 }
 0x1db   :  { %v2974_v55 = vadd.f32 %v2973_v27, %v2683_v47  ;;  %v2768_v56 = vadd.f32 %v2767_v40, %v2684_v49  ;;  %v2305_v57 = vadd.f32 %v2304_v37, %v898_v45  ;;  %v2685_v58 = vmul.f32 %v898_v45, %v898_v45 }
 0x1dc   :  { %v2906_v59 = vadd.f32 %v2905_v46, %v2686_v53  ;;  %2166 = vst [vmem:[%s4368_s4 + $0x390] sm:$0xff] %v3300_v54  ;;  %v3301_v60 = vpack.c.bf16 %v1251_v50, %v1249_v44  ;;  %v2443_v61 = vadd.f32 %v2442_v43, %v1251_v50  ;;  %v2687_v62 = vmul.f32 %v1251_v50, %v1251_v50 }
 0x1dd   :  { %v2837_v63 = vadd.f32 %v2836_v51, %v2685_v58 }
 0x1de   :  { %v902_v0 = vpop.f32.mrb[116].mxu0  ;;  %2167 = vst [vmem:[%s4368_s4 + $0x398] sm:$0xff] %v3301_v60  ;;  %v2975_v2 = vadd.f32 %v2974_v55, %v2687_v62 }
 0x1df   :  { %v2237_v3 = vadd.f32 %v2236_v48, %v902_v0  ;;  %v2688_v4 = vmul.f32 %v902_v0, %v902_v0  ;;  %v1255_v5 = vpop.f32.mrb[116].mxu1  ;;  %v904_v6 = vpop.f32.mrb[117].mxu0 }
 0x1e0   :  { %v2375_v7 = vadd.f32 %v2374_v52, %v1255_v5  ;;  %v2690_v8 = vmul.f32 %v1255_v5, %v1255_v5  ;;  %v3302_v9 = vpack.c.bf16 %v904_v6, %v902_v0  ;;  %v2306_v1 = vadd.f32 %v2305_v57, %v904_v6  ;;  %v1257_v10 = vpop.f32.mrb[117].mxu1  ;;  %v906_v11 = vpop.f32.mrb[118].mxu0 }
 0x1e1   :  { %v2769_v12 = vadd.f32 %v2768_v56, %v2688_v4  ;;  %v2689_v13 = vmul.f32 %v904_v6, %v904_v6  ;;  %v3303_v14 = vpack.c.bf16 %v1257_v10, %v1255_v5  ;;  %v2444_v15 = vadd.f32 %v2443_v61, %v1257_v10  ;;  %v1259_v16 = vpop.f32.mrb[118].mxu1  ;;  %v908_v17 = vpop.f32.mrb[119].mxu0 }
 0x1e2   :  { %v2907_v18 = vadd.f32 %v2906_v59, %v2690_v8  ;;  %2168 = vst [vmem:[%s4368_s4 + $0x3a0] sm:$0xff] %v3302_v9  ;;  %v2691_v19 = vmul.f32 %v1257_v10, %v1257_v10  ;;  %v2238_v20 = vadd.f32 %v2237_v3, %v906_v11  ;;  %v2692_v21 = vmul.f32 %v906_v11, %v906_v11  ;;  %v1261_v32 = vpop.f32.mrb[119].mxu1 }
 0x1e3   :  { %v2838_v22 = vadd.f32 %v2837_v63, %v2689_v13  ;;  %2169 = vst [vmem:[%s4368_s4 + $0x3a8] sm:$0xff] %v3303_v14  ;;  %v2376_v23 = vadd.f32 %v2375_v7, %v1259_v16  ;;  %v2694_v24 = vmul.f32 %v1259_v16, %v1259_v16  ;;  %v3304_v28 = vpack.c.bf16 %v908_v17, %v906_v11 }
 0x1e4   :  { %v2976_v25 = vadd.f32 %v2975_v2, %v2691_v19  ;;  %v2770_v26 = vadd.f32 %v2769_v12, %v2692_v21  ;;  %v2307_v27 = vadd.f32 %v2306_v1, %v908_v17  ;;  %v2693_v29 = vmul.f32 %v908_v17, %v908_v17 }
 0x1e5   :  { %v2908_v30 = vadd.f32 %v2907_v18, %v2694_v24  ;;  %2170 = vst [vmem:[%s4368_s4 + $0x3b0] sm:$0xff] %v3304_v28  ;;  %v3305_v31 = vpack.c.bf16 %v1261_v32, %v1259_v16  ;;  %v2445_v33 = vadd.f32 %v2444_v15, %v1261_v32  ;;  %v2695_v34 = vmul.f32 %v1261_v32, %v1261_v32 }
 0x1e6   :  { %v2839_v35 = vadd.f32 %v2838_v22, %v2693_v29  ;;  %v912_v36 = vpop.f32.mrb[120].mxu0  ;;  %v3002_v1 = vlaneseq  ;;  %v3525_v15 = vmov 1983009808  }
 0x1e7   :  { %2171 = vst [vmem:[%s4368_s4 + $0x3b8] sm:$0xff] %v3305_v31  ;;  %v2977_v37 = vadd.f32 %v2976_v25, %v2695_v34  ;;  %v2239_v38 = vadd.f32 %v2238_v20, %v912_v36  ;;  %v2696_v39 = vmul.f32 %v912_v36, %v912_v36  ;;  %v1265_v40 = vpop.f32.mrb[120].mxu1  ;;  %v914_v41 = vpop.f32.mrb[121].mxu0  ;;  %v4341_v16 = vunpack.c.l.s4 %v3525_v15 }
 0x1e8   :  { %v2377_v42 = vadd.f32 %v2376_v23, %v1265_v40  ;;  %v2698_v43 = vmul.f32 %v1265_v40, %v1265_v40  ;;  %v3306_v44 = vpack.c.bf16 %v914_v41, %v912_v36  ;;  %v2308_v45 = vadd.f32 %v2307_v27, %v914_v41  ;;  %v1267_v46 = vpop.f32.mrb[121].mxu1  ;;  %v916_v47 = vpop.f32.mrb[122].mxu0 }
 0x1e9   :  { %v2771_v48 = vadd.f32 %v2770_v26, %v2696_v39  ;;  %v2697_v49 = vmul.f32 %v914_v41, %v914_v41  ;;  %v3307_v50 = vpack.c.bf16 %v1267_v46, %v1265_v40  ;;  %v2446_v51 = vadd.f32 %v2445_v33, %v1267_v46  ;;  %v1269_v52 = vpop.f32.mrb[122].mxu1  ;;  %v918_v53 = vpop.f32.mrb[123].mxu0 }
 0x1ea   :  { %v2909_v54 = vadd.f32 %v2908_v30, %v2698_v43  ;;  %2172 = vst [vmem:[%s4368_s4 + $0x3c0] sm:$0xff] %v3306_v44  ;;  %v2699_v55 = vmul.f32 %v1267_v46, %v1267_v46  ;;  %v2240_v56 = vadd.f32 %v2239_v38, %v916_v47  ;;  %v2700_v57 = vmul.f32 %v916_v47, %v916_v47  ;;  %v1271_v58 = vpop.f32.mrb[123].mxu1 }
 0x1eb   :  { %v2840_v59 = vadd.f32 %v2839_v35, %v2697_v49  ;;  %2173 = vst [vmem:[%s4368_s4 + $0x3c8] sm:$0xff] %v3307_v50  ;;  %v2378_v60 = vadd.f32 %v2377_v42, %v1269_v52  ;;  %v2702_v61 = vmul.f32 %v1269_v52, %v1269_v52  ;;  %v3308_v62 = vpack.c.bf16 %v918_v53, %v916_v47 }
 0x1ec   :  { %v2978_v63 = vadd.f32 %v2977_v37, %v2699_v55  ;;  %v2772_v0 = vadd.f32 %v2771_v48, %v2700_v57  ;;  %v2309_v2 = vadd.f32 %v2308_v45, %v918_v53  ;;  %v2701_v3 = vmul.f32 %v918_v53, %v918_v53 }
 0x1ed   :  { %v2910_v4 = vadd.f32 %v2909_v54, %v2702_v61  ;;  %2174 = vst [vmem:[%s4368_s4 + $0x3d0] sm:$0xff] %v3308_v62  ;;  %v3309_v5 = vpack.c.bf16 %v1271_v58, %v1269_v52  ;;  %v2447_v6 = vadd.f32 %v2446_v51, %v1271_v58  ;;  %v2703_v7 = vmul.f32 %v1271_v58, %v1271_v58 }
 0x1ee   :  { %v2841_v8 = vadd.f32 %v2840_v59, %v2701_v3  ;;  %v922_v9 = vpop.f32.mrb[124].mxu0 }
 0x1ef   :  { %2175 = vst [vmem:[%s4368_s4 + $0x3d8] sm:$0xff] %v3309_v5  ;;  %v2979_v10 = vadd.f32 %v2978_v63, %v2703_v7  ;;  %v2241_v11 = vadd.f32 %v2240_v56, %v922_v9  ;;  %v2704_v12 = vmul.f32 %v922_v9, %v922_v9  ;;  %v1275_v13 = vpop.f32.mrb[124].mxu1  ;;  %v924_v14 = vpop.f32.mrb[125].mxu0 }
 0x1f0   :  { %v2379_v17 = vadd.f32 %v2378_v60, %v1275_v13  ;;  %v2706_v18 = vmul.f32 %v1275_v13, %v1275_v13  ;;  %v3310_v19 = vpack.c.bf16 %v924_v14, %v922_v9  ;;  %v2310_v20 = vadd.f32 %v2309_v2, %v924_v14  ;;  %v1277_v21 = vpop.f32.mrb[125].mxu1  ;;  %v926_v32 = vpop.f32.mrb[126].mxu0 }
 0x1f1   :  { %v2773_v22 = vadd.f32 %v2772_v0, %v2704_v12  ;;  %v2705_v23 = vmul.f32 %v924_v14, %v924_v14  ;;  %v3311_v24 = vpack.c.bf16 %v1277_v21, %v1275_v13  ;;  %v2448_v28 = vadd.f32 %v2447_v6, %v1277_v21  ;;  %v1279_v25 = vpop.f32.mrb[126].mxu1  ;;  %v928_v26 = vpop.f32.mrb[127].mxu0 }
 0x1f2   :  { %v2911_v27 = vadd.f32 %v2910_v4, %v2706_v18  ;;  %2176 = vst [vmem:[%s4368_s4 + $0x3e0] sm:$0xff] %v3310_v19  ;;  %v2707_v29 = vmul.f32 %v1277_v21, %v1277_v21  ;;  %v2242_v30 = vadd.f32 %v2241_v11, %v926_v32  ;;  %v2708_v31 = vmul.f32 %v926_v32, %v926_v32  ;;  %v1281_v33 = vpop.f32.mrb[127].mxu1 }
 0x1f3   :  { %v2842_v34 = vadd.f32 %v2841_v8, %v2705_v23  ;;  %2177 = vst [vmem:[%s4368_s4 + $0x3e8] sm:$0xff] %v3311_v24  ;;  %v2380_v35 = vadd.f32 %v2379_v17, %v1279_v25  ;;  %v2710_v36 = vmul.f32 %v1279_v25, %v1279_v25  ;;  %v3312_v37 = vpack.c.bf16 %v928_v26, %v926_v32 }
 0x1f4   :  { %v2980_v38 = vadd.f32 %v2979_v10, %v2707_v29  ;;  %v2243_v39 = vrot.slane %v2242_v30, 4  ;;  %v2774_v40 = vadd.f32 %v2773_v22, %v2708_v31  ;;  %v2311_v41 = vadd.f32 %v2310_v20, %v928_v26 }
 0x1f5   :  { %v2381_v42 = vrot.slane %v2380_v35, 4  ;;  %v2912_v43 = vadd.f32 %v2911_v27, %v2710_v36  ;;  %2178 = vst [vmem:[%s4368_s4 + $0x3f0] sm:$0xff] %v3312_v37  ;;  %v2709_v44 = vmul.f32 %v928_v26, %v928_v26  ;;  %v3313_v45 = vpack.c.bf16 %v1281_v33, %v1279_v25 }
 0x1f6   :  { %v2244_v46 = vadd.f32 %v2243_v39, %v2242_v30  ;;  %v2775_v47 = vrot.slane %v2774_v40, 4  ;;  %v2312_v48 = vrot.slane %v2311_v41, 4  ;;  %v2449_v49 = vadd.f32 %v2448_v28, %v1281_v33 }
 0x1f7   :  { %v2382_v50 = vadd.f32 %v2381_v42, %v2380_v35  ;;  %v2913_v51 = vrot.slane %v2912_v43, 4  ;;  %v2843_v52 = vadd.f32 %v2842_v34, %v2709_v44  ;;  %2179 = vst [vmem:[%s4368_s4 + $0x3f8] sm:$0xff] %v3313_v45  ;;  %v2711_v53 = vmul.f32 %v1281_v33, %v1281_v33 }
 0x1f8   :  { %v2245_v54 = vrot.slane %v2244_v46, 2  ;;  %v2776_v55 = vadd.f32 %v2775_v47, %v2774_v40  ;;  %v2313_v56 = vadd.f32 %v2312_v48, %v2311_v41  ;;  %v2450_v57 = vrot.slane %v2449_v49, 4 }
 0x1f9   :  { %v2383_v58 = vrot.slane %v2382_v50, 2  ;;  %v2914_v59 = vadd.f32 %v2913_v51, %v2912_v43  ;;  %v2844_v60 = vrot.slane %v2843_v52, 4  ;;  %v2981_v61 = vadd.f32 %v2980_v38, %v2711_v53 }
 0x1fa   :  { %v2246_v62 = vadd.f32 %v2245_v54, %v2244_v46  ;;  %v2777_v63 = vrot.slane %v2776_v55, 2  ;;  %v2314_v0 = vrot.slane %v2313_v56, 2  ;;  %v2451_v2 = vadd.f32 %v2450_v57, %v2449_v49 }
 0x1fb   :  { %v2384_v3 = vadd.f32 %v2383_v58, %v2382_v50  ;;  %v2915_v4 = vrot.slane %v2914_v59, 2  ;;  %v2845_v5 = vadd.f32 %v2844_v60, %v2843_v52  ;;  %v2982_v6 = vrot.slane %v2981_v61, 4 }
 0x1fc   :  { %v2247_v7 = vrot.slane %v2246_v62, 1  ;;  %v2778_v8 = vadd.f32 %v2777_v63, %v2776_v55  ;;  %v2315_v9 = vadd.f32 %v2314_v0, %v2313_v56  ;;  %v2452_v10 = vrot.slane %v2451_v2, 2 }
 0x1fd   :  { %v2385_v11 = vrot.slane %v2384_v3, 1  ;;  %v2916_v12 = vadd.f32 %v2915_v4, %v2914_v59  ;;  %v2846_v13 = vrot.slane %v2845_v5, 2  ;;  %v2983_v14 = vadd.f32 %v2982_v6, %v2981_v61 }
 0x1fe   :  { %v2779_v15 = vrot.slane %v2778_v8, 1  ;;  %v3003_v17 = vshrl.u32 %v3002_v1, 7  ;;  %v2453_v18 = vadd.f32 %v2452_v10, %v2451_v2  ;;  %v2316_v20 = vrot.slane %v2315_v9, 1 }
 0x1ff   :  { %v2917_v19 = vrot.slane %v2916_v12, 1  ;;  %v2847_v21 = vadd.f32 %v2846_v13, %v2845_v5  ;;  %v2984_v32 = vrot.slane %v2983_v14, 2  ;;  %v2248_v22 = vadd.f32 %v2247_v7, %v2246_v62 }
 0x200   :  { %v2780_v23 = vadd.f32 %v2779_v15, %v2778_v8  ;;  %v2386_v24 = vadd.f32 %v2385_v11, %v2384_v3  ;;  %v3001_v28 = vunpack.c.0.s8 %v4341_v16  ;;  %v2454_v27 = vrot.slane %v2453_v18, 1 }
 0x201   :  { %v2918_v25 = vadd.f32 %v2917_v19, %v2916_v12  ;;  %v2848_v26 = vrot.slane %v2847_v21, 1  ;;  %v2985_v29 = vadd.f32 %v2984_v32, %v2983_v14  ;;  %v2317_v33 = vadd.f32 %v2316_v20, %v2315_v9 }
 0x202   :  { %v2989_v30 = vsel %vm2988_vm0, %v2248_v22, %v2780_v23  ;;  %v3004_v35 = vsub.s32 %v3001_v28, %v3003_v17  ;;  %v2455_v37 = vadd.f32 %v2454_v27, %v2453_v18 }
 0x203   :  { %v2991_v31 = vsel %vm2988_vm0, %v2386_v24, %v2918_v25  ;;  %v2849_v1 = vadd.f32 %v2848_v26, %v2847_v21  ;;  %v2986_v34 = vrot.slane %v2985_v29, 1 }
 0x205   :  { %v2990_v36 = vsel %vm2988_vm0, %v2317_v33, %v2849_v1  ;;  %v2987_v38 = vadd.f32 %v2986_v34, %v2985_v29 }
 0x206   :  { %v2997_v39 = vcombine.low %v2989_v30, %v2990_v36 }
 0x207   :  { %v2992_v40 = vsel %vm2988_vm0, %v2455_v37, %v2987_v38 }
 0x208   :  { %v3005_v16 = vrot.slane %v2997_v39, %v3004_v35  ;;  %v2998_v41 = vcombine.low %v2991_v31, %v2992_v40 }
 0x20a   :  { %v3012_v42 = vrot.slane %v2998_v41, %v3004_v35 }
 0x20c   :  { %v3013_v43 = vcombine.low %v3005_v16, %v3012_v42 }
 0x20e   :  { %3015 = vst [vmem:[%s4369_s5] sm:$0xff] %v3013_v43 }

// kernel: bottleneck_forward.7
= control target key start
LH: loop header
LB: loop body
LE: loop exit
PB: predicated region body
PF: predicated region fallthrough
CT: control target
= control target key end

     0   :  { %v404_v1 = vlaneseq  ;;  %s3758_s0 = inlined_call_operand.vmem [shape: bf16[512,512], index: 0, kind: input, shape index: {}]   ;;  %s3759_s1 = inlined_call_operand.vmem [shape: f32[1,512], index: 1, kind: input, shape index: {}]   ;;  %s3760_s2 = inlined_call_operand.vmem [shape: f32[1,512], index: 2, kind: input, shape index: {}]   ;;  %s3761_s3 = inlined_call_operand.vmem [shape: f32[512,512], index: 3, kind: input, shape index: {}]   ;;  %s3762_s4 = inlined_call_operand.hbm [shape: f32[512,512], index: 4, kind: output, shape index: {}]  }
   0x1   :  { %v18_v0 = vld [vmem:[%s3758_s0] sm:$0xff]  ;;  %v19_v3 = vld [vmem:[%s3758_s0 + $0x8] sm:$0xff]  ;;  %v20_v4 = vld [vmem:[%s3758_s0 + $0x10] sm:$0xff] }
   0x2   :  { %v405_v2 = vshrl.u32 %v404_v1, 7  ;;  %v146_v5 = vunpack.c.l.bf16 %v18_v0  ;;  %v402_v6 = vld [vmem:[%s3759_s1] sm:$0xf]  ;;  %v147_v8 = vunpack.c.h.bf16 %v18_v0  ;;  %v150_v9 = vunpack.c.l.bf16 %v20_v4  ;;  %v21_v11 = vld [vmem:[%s3758_s0 + $0x18] sm:$0xff]  ;;  %v959_v31 = vld [vmem:[%s3761_s3 + $0x8] sm:$0xff] }
   0x3   :  { %v680_v7 = vld [vmem:[%s3760_s2] sm:$0xf]  ;;  %v151_v10 = vunpack.c.h.bf16 %v20_v4  ;;  %v148_v16 = vunpack.c.l.bf16 %v19_v3  ;;  %v149_v17 = vunpack.c.h.bf16 %v19_v3  ;;  %v152_v18 = vunpack.c.l.bf16 %v21_v11  ;;  %v960_v35 = vld [vmem:[%s3761_s3 + $0x10] sm:$0xff]  ;;  %v963_v38 = vld [vmem:[%s3761_s3 + $0x28] sm:$0xff] }
   0x4   :  { %v406_v12 = vsub.s32 0, %v405_v2  ;;  %v410_v13 = vsub.s32 1, %v405_v2  ;;  %v414_v14 = vsub.s32 2, %v405_v2  ;;  %v418_v15 = vsub.s32 3, %v405_v2  ;;  %v958_v29 = vld [vmem:[%s3761_s3] sm:$0xff]  ;;  %v961_v43 = vld [vmem:[%s3761_s3 + $0x18] sm:$0xff] }
   0x5   :  { %v153_v19 = vunpack.c.h.bf16 %v21_v11  ;;  %v962_v37 = vld [vmem:[%s3761_s3 + $0x20] sm:$0xff]  ;;  %v964_v46 = vld [vmem:[%s3761_s3 + $0x30] sm:$0xff]  ;;  %v965_v47 = vld [vmem:[%s3761_s3 + $0x38] sm:$0xff] }
   0x6   :  { %v2071_v20 = vrot.slane %v402_v6, %v406_v12  ;;  %v2073_v21 = vrot.slane %v680_v7, %v406_v12  ;;  %v2075_v22 = vrot.slane %v402_v6, %v410_v13  ;;  %v2077_v23 = vrot.slane %v680_v7, %v410_v13  ;;  %v22_v60 = vld [vmem:[%s3758_s0 + $0x20] sm:$0xff]  ;;  %v23_v61 = vld [vmem:[%s3758_s0 + $0x28] sm:$0xff]  ;;  %v24_v2 = vld [vmem:[%s3758_s0 + $0x30] sm:$0xff] }
   0x7   :  { %v2079_v24 = vrot.slane %v402_v6, %v414_v14  ;;  %v2081_v25 = vrot.slane %v680_v7, %v414_v14  ;;  %v2083_v26 = vrot.slane %v402_v6, %v418_v15  ;;  %v2085_v27 = vrot.slane %v680_v7, %v418_v15  ;;  %v25_v3 = vld [vmem:[%s3758_s0 + $0x38] sm:$0xff] }
   0x8   :  { %v424_v28 = vmul.f32 %v2071_v20, %v146_v5  ;;  %v425_v30 = vmul.f32 %v2075_v22, %v147_v8  ;;  %v428_v32 = vmul.f32 %v2071_v20, %v150_v9  ;;  %v429_v33 = vmul.f32 %v2075_v22, %v151_v10 }
   0x9   :  { %v426_v34 = vmul.f32 %v2079_v24, %v148_v16  ;;  %v427_v36 = vmul.f32 %v2083_v26, %v149_v17  ;;  %v430_v39 = vmul.f32 %v2079_v24, %v152_v18  ;;  %v431_v40 = vmul.f32 %v2083_v26, %v153_v19  ;;  %v966_v17 = vld [vmem:[%s3761_s3 + $0x40] sm:$0xff]  ;;  %v967_v19 = vld [vmem:[%s3761_s3 + $0x48] sm:$0xff] }
   0xa   :  { %v702_v41 = vadd.f32 %v2073_v21, %v424_v28  ;;  %v703_v42 = vadd.f32 %v2077_v23, %v425_v30  ;;  %v706_v44 = vadd.f32 %v2073_v21, %v428_v32  ;;  %v707_v45 = vadd.f32 %v2077_v23, %v429_v33  ;;  %v968_v30 = vld [vmem:[%s3761_s3 + $0x50] sm:$0xff]  ;;  %v970_v33 = vld [vmem:[%s3761_s3 + $0x60] sm:$0xff] }
   0xb   :  { %v704_v48 = vadd.f32 %v2081_v25, %v426_v34  ;;  %v705_v49 = vadd.f32 %v2085_v27, %v427_v36  ;;  %v708_v50 = vadd.f32 %v2081_v25, %v430_v39  ;;  %v709_v51 = vadd.f32 %v2085_v27, %v431_v40 }
   0xc   :  { %v1214_v52 = vadd.f32 %v958_v29, %v702_v41  ;;  %v1215_v53 = vadd.f32 %v959_v31, %v703_v42  ;;  %v1218_v54 = vadd.f32 %v962_v37, %v706_v44  ;;  %v1219_v55 = vadd.f32 %v963_v38, %v707_v45  ;;  %v969_v31 = vld [vmem:[%s3761_s3 + $0x58] sm:$0xff]  ;;  %v971_v41 = vld [vmem:[%s3761_s3 + $0x68] sm:$0xff]  ;;  %v972_v42 = vld [vmem:[%s3761_s3 + $0x70] sm:$0xff] }
   0xd   :  { %v1216_v56 = vadd.f32 %v960_v35, %v704_v48  ;;  %v1217_v57 = vadd.f32 %v961_v43, %v705_v49  ;;  %v1220_v58 = vadd.f32 %v964_v46, %v708_v50  ;;  %v1221_v59 = vadd.f32 %v965_v47, %v709_v51  ;;  %v973_v43 = vld [vmem:[%s3761_s3 + $0x78] sm:$0xff] }
   0xe   :  { %v1470_v62 = vmax.f32 %v1214_v52, 0.0  ;;  %v1471_v63 = vmax.f32 %v1215_v53, 0.0  ;;  %v1474_v0 = vmax.f32 %v1218_v54, 0.0  ;;  %v1475_v1 = vmax.f32 %v1219_v55, 0.0 }
   0xf   :  { %v1472_v4 = vmax.f32 %v1216_v56, 0.0  ;;  %v1473_v5 = vmax.f32 %v1217_v57, 0.0  ;;  %v1476_v6 = vmax.f32 %v1220_v58, 0.0  ;;  %v1477_v7 = vmax.f32 %v1221_v59, 0.0  ;;  %v26_v56 = vld [vmem:[%s3758_s0 + $0x40] sm:$0xff]  ;;  %v27_v57 = vld [vmem:[%s3758_s0 + $0x48] sm:$0xff] }
  0x10   :  { %1726 = vst [vmem:[#allocation2] sm:$0xff] %v1470_v62  ;;  %1727 = vst [vmem:[#allocation2 + $0x8] sm:$0xff] %v1471_v63  ;;  %v154_v8 = vunpack.c.l.bf16 %v22_v60  ;;  %v155_v9 = vunpack.c.h.bf16 %v22_v60  ;;  %v156_v10 = vunpack.c.l.bf16 %v23_v61  ;;  %v157_v11 = vunpack.c.h.bf16 %v23_v61  ;;  %v28_v62 = vld [vmem:[%s3758_s0 + $0x50] sm:$0xff]  ;;  %v29_v63 = vld [vmem:[%s3758_s0 + $0x58] sm:$0xff] }
  0x11   :  { %1730 = vst [vmem:[#allocation2 + $0x20] sm:$0xff] %v1474_v0  ;;  %1731 = vst [vmem:[#allocation2 + $0x28] sm:$0xff] %v1475_v1  ;;  %v158_v12 = vunpack.c.l.bf16 %v24_v2  ;;  %v159_v13 = vunpack.c.h.bf16 %v24_v2  ;;  %v160_v14 = vunpack.c.l.bf16 %v25_v3  ;;  %v161_v15 = vunpack.c.h.bf16 %v25_v3 }
  0x12   :  { %1728 = vst [vmem:[#allocation2 + $0x10] sm:$0xff] %v1472_v4  ;;  %1729 = vst [vmem:[#allocation2 + $0x18] sm:$0xff] %v1473_v5  ;;  %v432_v16 = vmul.f32 %v2071_v20, %v154_v8  ;;  %v433_v18 = vmul.f32 %v2075_v22, %v155_v9  ;;  %v434_v28 = vmul.f32 %v2079_v24, %v156_v10  ;;  %v162_v4 = vunpack.c.l.bf16 %v26_v56 }
  0x13   :  { %1732 = vst [vmem:[#allocation2 + $0x30] sm:$0xff] %v1476_v6  ;;  %1733 = vst [vmem:[#allocation2 + $0x38] sm:$0xff] %v1477_v7  ;;  %v435_v29 = vmul.f32 %v2083_v26, %v157_v11  ;;  %v436_v32 = vmul.f32 %v2071_v20, %v158_v12  ;;  %v437_v34 = vmul.f32 %v2075_v22, %v159_v13  ;;  %v163_v5 = vunpack.c.h.bf16 %v26_v56  ;;  %v974_v13 = vld [vmem:[%s3761_s3 + $0x80] sm:$0xff] }
  0x14   :  { %v438_v35 = vmul.f32 %v2079_v24, %v160_v14  ;;  %v439_v36 = vmul.f32 %v2083_v26, %v161_v15  ;;  %v710_v37 = vadd.f32 %v2073_v21, %v432_v16  ;;  %v711_v38 = vadd.f32 %v2077_v23, %v433_v18  ;;  %v975_v15 = vld [vmem:[%s3761_s3 + $0x88] sm:$0xff]  ;;  %v976_v18 = vld [vmem:[%s3761_s3 + $0x90] sm:$0xff] }
  0x15   :  { %v712_v39 = vadd.f32 %v2081_v25, %v434_v28  ;;  %v713_v40 = vadd.f32 %v2085_v27, %v435_v29  ;;  %v714_v44 = vadd.f32 %v2073_v21, %v436_v32  ;;  %v715_v45 = vadd.f32 %v2077_v23, %v437_v34  ;;  %v978_v29 = vld [vmem:[%s3761_s3 + $0xa0] sm:$0xff] }
  0x16   :  { %v716_v46 = vadd.f32 %v2081_v25, %v438_v35  ;;  %v717_v47 = vadd.f32 %v2085_v27, %v439_v36  ;;  %v1222_v48 = vadd.f32 %v966_v17, %v710_v37  ;;  %v1223_v49 = vadd.f32 %v967_v19, %v711_v38  ;;  %v977_v19 = vld [vmem:[%s3761_s3 + $0x98] sm:$0xff]  ;;  %v979_v37 = vld [vmem:[%s3761_s3 + $0xa8] sm:$0xff]  ;;  %v980_v38 = vld [vmem:[%s3761_s3 + $0xb0] sm:$0xff] }
  0x17   :  { %v1224_v50 = vadd.f32 %v968_v30, %v712_v39  ;;  %v1225_v51 = vadd.f32 %v969_v31, %v713_v40  ;;  %v1226_v52 = vadd.f32 %v970_v33, %v714_v44  ;;  %v1227_v53 = vadd.f32 %v971_v41, %v715_v45  ;;  %v981_v39 = vld [vmem:[%s3761_s3 + $0xb8] sm:$0xff] }
  0x18   :  { %v1228_v54 = vadd.f32 %v972_v42, %v716_v46  ;;  %v1229_v55 = vadd.f32 %v973_v43, %v717_v47  ;;  %v1478_v58 = vmax.f32 %v1222_v48, 0.0  ;;  %v1479_v59 = vmax.f32 %v1223_v49, 0.0 }
  0x19   :  { %v1480_v60 = vmax.f32 %v1224_v50, 0.0  ;;  %v1481_v61 = vmax.f32 %v1225_v51, 0.0  ;;  %v1482_v0 = vmax.f32 %v1226_v52, 0.0  ;;  %v1483_v1 = vmax.f32 %v1227_v53, 0.0  ;;  %v30_v52 = vld [vmem:[%s3758_s0 + $0x60] sm:$0xff]  ;;  %v31_v53 = vld [vmem:[%s3758_s0 + $0x68] sm:$0xff] }
  0x1a   :  { %v1484_v2 = vmax.f32 %v1228_v54, 0.0  ;;  %v1485_v3 = vmax.f32 %v1229_v55, 0.0  ;;  %1734 = vst [vmem:[#allocation2 + $0x40] sm:$0xff] %v1478_v58  ;;  %1735 = vst [vmem:[#allocation2 + $0x48] sm:$0xff] %v1479_v59  ;;  %v164_v6 = vunpack.c.l.bf16 %v27_v57  ;;  %v165_v7 = vunpack.c.h.bf16 %v27_v57  ;;  %v32_v58 = vld [vmem:[%s3758_s0 + $0x70] sm:$0xff]  ;;  %v33_v59 = vld [vmem:[%s3758_s0 + $0x78] sm:$0xff] }
  0x1b   :  { %1736 = vst [vmem:[#allocation2 + $0x50] sm:$0xff] %v1480_v60  ;;  %1737 = vst [vmem:[#allocation2 + $0x58] sm:$0xff] %v1481_v61  ;;  %v166_v8 = vunpack.c.l.bf16 %v28_v62  ;;  %v167_v9 = vunpack.c.h.bf16 %v28_v62  ;;  %v168_v10 = vunpack.c.l.bf16 %v29_v63  ;;  %v169_v11 = vunpack.c.h.bf16 %v29_v63 }
  0x1c   :  { %1738 = vst [vmem:[#allocation2 + $0x60] sm:$0xff] %v1482_v0  ;;  %1739 = vst [vmem:[#allocation2 + $0x68] sm:$0xff] %v1483_v1  ;;  %v440_v12 = vmul.f32 %v2071_v20, %v162_v4  ;;  %v441_v14 = vmul.f32 %v2075_v22, %v163_v5  ;;  %v442_v16 = vmul.f32 %v2079_v24, %v164_v6  ;;  %v170_v0 = vunpack.c.l.bf16 %v30_v52 }
  0x1d   :  { %1740 = vst [vmem:[#allocation2 + $0x70] sm:$0xff] %v1484_v2  ;;  %1741 = vst [vmem:[#allocation2 + $0x78] sm:$0xff] %v1485_v3  ;;  %v443_v17 = vmul.f32 %v2083_v26, %v165_v7  ;;  %v444_v28 = vmul.f32 %v2071_v20, %v166_v8  ;;  %v445_v30 = vmul.f32 %v2075_v22, %v167_v9  ;;  %v171_v1 = vunpack.c.h.bf16 %v30_v52  ;;  %v982_v9 = vld [vmem:[%s3761_s3 + $0xc0] sm:$0xff] }
  0x1e   :  { %v446_v31 = vmul.f32 %v2079_v24, %v168_v10  ;;  %v447_v32 = vmul.f32 %v2083_v26, %v169_v11  ;;  %v718_v33 = vadd.f32 %v2073_v21, %v440_v12  ;;  %v719_v34 = vadd.f32 %v2077_v23, %v441_v14  ;;  %v983_v11 = vld [vmem:[%s3761_s3 + $0xc8] sm:$0xff]  ;;  %v984_v14 = vld [vmem:[%s3761_s3 + $0xd0] sm:$0xff] }
  0x1f   :  { %v720_v35 = vadd.f32 %v2081_v25, %v442_v16  ;;  %v721_v36 = vadd.f32 %v2085_v27, %v443_v17  ;;  %v722_v40 = vadd.f32 %v2073_v21, %v444_v28  ;;  %v723_v41 = vadd.f32 %v2077_v23, %v445_v30  ;;  %v986_v17 = vld [vmem:[%s3761_s3 + $0xe0] sm:$0xff] }
  0x20   :  { %v724_v42 = vadd.f32 %v2081_v25, %v446_v31  ;;  %v725_v43 = vadd.f32 %v2085_v27, %v447_v32  ;;  %v1230_v44 = vadd.f32 %v974_v13, %v718_v33  ;;  %v1231_v45 = vadd.f32 %v975_v15, %v719_v34  ;;  %v985_v15 = vld [vmem:[%s3761_s3 + $0xd8] sm:$0xff]  ;;  %v987_v33 = vld [vmem:[%s3761_s3 + $0xe8] sm:$0xff]  ;;  %v988_v34 = vld [vmem:[%s3761_s3 + $0xf0] sm:$0xff] }
  0x21   :  { %v1232_v46 = vadd.f32 %v976_v18, %v720_v35  ;;  %v1233_v47 = vadd.f32 %v977_v19, %v721_v36  ;;  %v1234_v48 = vadd.f32 %v978_v29, %v722_v40  ;;  %v1235_v49 = vadd.f32 %v979_v37, %v723_v41  ;;  %v989_v35 = vld [vmem:[%s3761_s3 + $0xf8] sm:$0xff] }
  0x22   :  { %v1236_v50 = vadd.f32 %v980_v38, %v724_v42  ;;  %v1237_v51 = vadd.f32 %v981_v39, %v725_v43  ;;  %v1486_v54 = vmax.f32 %v1230_v44, 0.0  ;;  %v1487_v55 = vmax.f32 %v1231_v45, 0.0 }
  0x23   :  { %v1488_v56 = vmax.f32 %v1232_v46, 0.0  ;;  %v1489_v57 = vmax.f32 %v1233_v47, 0.0  ;;  %v1490_v60 = vmax.f32 %v1234_v48, 0.0  ;;  %v1491_v61 = vmax.f32 %v1235_v49, 0.0  ;;  %v34_v48 = vld [vmem:[%s3758_s0 + $0x80] sm:$0xff]  ;;  %v35_v49 = vld [vmem:[%s3758_s0 + $0x88] sm:$0xff] }
  0x24   :  { %v1492_v62 = vmax.f32 %v1236_v50, 0.0  ;;  %v1493_v63 = vmax.f32 %v1237_v51, 0.0  ;;  %1742 = vst [vmem:[#allocation2 + $0x80] sm:$0xff] %v1486_v54  ;;  %1743 = vst [vmem:[#allocation2 + $0x88] sm:$0xff] %v1487_v55  ;;  %v172_v2 = vunpack.c.l.bf16 %v31_v53  ;;  %v173_v3 = vunpack.c.h.bf16 %v31_v53  ;;  %v36_v54 = vld [vmem:[%s3758_s0 + $0x90] sm:$0xff]  ;;  %v37_v55 = vld [vmem:[%s3758_s0 + $0x98] sm:$0xff] }
  0x25   :  { %1744 = vst [vmem:[#allocation2 + $0x90] sm:$0xff] %v1488_v56  ;;  %1745 = vst [vmem:[#allocation2 + $0x98] sm:$0xff] %v1489_v57  ;;  %v174_v4 = vunpack.c.l.bf16 %v32_v58  ;;  %v175_v5 = vunpack.c.h.bf16 %v32_v58  ;;  %v176_v6 = vunpack.c.l.bf16 %v33_v59  ;;  %v177_v7 = vunpack.c.h.bf16 %v33_v59 }
  0x26   :  { %1746 = vst [vmem:[#allocation2 + $0xa0] sm:$0xff] %v1490_v60  ;;  %1747 = vst [vmem:[#allocation2 + $0xa8] sm:$0xff] %v1491_v61  ;;  %v448_v8 = vmul.f32 %v2071_v20, %v170_v0  ;;  %v449_v10 = vmul.f32 %v2075_v22, %v171_v1  ;;  %v450_v12 = vmul.f32 %v2079_v24, %v172_v2  ;;  %v178_v60 = vunpack.c.l.bf16 %v34_v48 }
  0x27   :  { %1748 = vst [vmem:[#allocation2 + $0xb0] sm:$0xff] %v1492_v62  ;;  %1749 = vst [vmem:[#allocation2 + $0xb8] sm:$0xff] %v1493_v63  ;;  %v451_v13 = vmul.f32 %v2083_v26, %v173_v3  ;;  %v452_v16 = vmul.f32 %v2071_v20, %v174_v4  ;;  %v453_v18 = vmul.f32 %v2075_v22, %v175_v5  ;;  %v179_v61 = vunpack.c.h.bf16 %v34_v48  ;;  %v990_v5 = vld [vmem:[%s3761_s3 + $0x100] sm:$0xff] }
  0x28   :  { %v454_v19 = vmul.f32 %v2079_v24, %v176_v6  ;;  %v455_v28 = vmul.f32 %v2083_v26, %v177_v7  ;;  %v726_v29 = vadd.f32 %v2073_v21, %v448_v8  ;;  %v727_v30 = vadd.f32 %v2077_v23, %v449_v10  ;;  %v991_v7 = vld [vmem:[%s3761_s3 + $0x108] sm:$0xff]  ;;  %v992_v10 = vld [vmem:[%s3761_s3 + $0x110] sm:$0xff] }
  0x29   :  { %v728_v31 = vadd.f32 %v2081_v25, %v450_v12  ;;  %v729_v32 = vadd.f32 %v2085_v27, %v451_v13  ;;  %v730_v36 = vadd.f32 %v2073_v21, %v452_v16  ;;  %v731_v37 = vadd.f32 %v2077_v23, %v453_v18  ;;  %v994_v13 = vld [vmem:[%s3761_s3 + $0x120] sm:$0xff] }
  0x2a   :  { %v732_v38 = vadd.f32 %v2081_v25, %v454_v19  ;;  %v733_v39 = vadd.f32 %v2085_v27, %v455_v28  ;;  %v1238_v40 = vadd.f32 %v982_v9, %v726_v29  ;;  %v1239_v41 = vadd.f32 %v983_v11, %v727_v30  ;;  %v993_v11 = vld [vmem:[%s3761_s3 + $0x118] sm:$0xff]  ;;  %v995_v29 = vld [vmem:[%s3761_s3 + $0x128] sm:$0xff]  ;;  %v996_v30 = vld [vmem:[%s3761_s3 + $0x130] sm:$0xff] }
  0x2b   :  { %v1240_v42 = vadd.f32 %v984_v14, %v728_v31  ;;  %v1241_v43 = vadd.f32 %v985_v15, %v729_v32  ;;  %v1242_v44 = vadd.f32 %v986_v17, %v730_v36  ;;  %v1243_v45 = vadd.f32 %v987_v33, %v731_v37  ;;  %v997_v31 = vld [vmem:[%s3761_s3 + $0x138] sm:$0xff] }
  0x2c   :  { %v1244_v46 = vadd.f32 %v988_v34, %v732_v38  ;;  %v1245_v47 = vadd.f32 %v989_v35, %v733_v39  ;;  %v1494_v50 = vmax.f32 %v1238_v40, 0.0  ;;  %v1495_v51 = vmax.f32 %v1239_v41, 0.0 }
  0x2d   :  { %v1496_v52 = vmax.f32 %v1240_v42, 0.0  ;;  %v1497_v53 = vmax.f32 %v1241_v43, 0.0  ;;  %v1498_v56 = vmax.f32 %v1242_v44, 0.0  ;;  %v1499_v57 = vmax.f32 %v1243_v45, 0.0  ;;  %v38_v44 = vld [vmem:[%s3758_s0 + $0xa0] sm:$0xff]  ;;  %v39_v45 = vld [vmem:[%s3758_s0 + $0xa8] sm:$0xff] }
  0x2e   :  { %v1500_v58 = vmax.f32 %v1244_v46, 0.0  ;;  %v1501_v59 = vmax.f32 %v1245_v47, 0.0  ;;  %1750 = vst [vmem:[#allocation2 + $0xc0] sm:$0xff] %v1494_v50  ;;  %1751 = vst [vmem:[#allocation2 + $0xc8] sm:$0xff] %v1495_v51  ;;  %v180_v62 = vunpack.c.l.bf16 %v35_v49  ;;  %v181_v63 = vunpack.c.h.bf16 %v35_v49  ;;  %v40_v50 = vld [vmem:[%s3758_s0 + $0xb0] sm:$0xff]  ;;  %v41_v51 = vld [vmem:[%s3758_s0 + $0xb8] sm:$0xff] }
  0x2f   :  { %1752 = vst [vmem:[#allocation2 + $0xd0] sm:$0xff] %v1496_v52  ;;  %1753 = vst [vmem:[#allocation2 + $0xd8] sm:$0xff] %v1497_v53  ;;  %v182_v0 = vunpack.c.l.bf16 %v36_v54  ;;  %v183_v1 = vunpack.c.h.bf16 %v36_v54  ;;  %v184_v2 = vunpack.c.l.bf16 %v37_v55  ;;  %v185_v3 = vunpack.c.h.bf16 %v37_v55 }
  0x30   :  { %1754 = vst [vmem:[#allocation2 + $0xe0] sm:$0xff] %v1498_v56  ;;  %1755 = vst [vmem:[#allocation2 + $0xe8] sm:$0xff] %v1499_v57  ;;  %v456_v4 = vmul.f32 %v2071_v20, %v178_v60  ;;  %v457_v6 = vmul.f32 %v2075_v22, %v179_v61  ;;  %v458_v8 = vmul.f32 %v2079_v24, %v180_v62  ;;  %v186_v56 = vunpack.c.l.bf16 %v38_v44 }
  0x31   :  { %1756 = vst [vmem:[#allocation2 + $0xf0] sm:$0xff] %v1500_v58  ;;  %1757 = vst [vmem:[#allocation2 + $0xf8] sm:$0xff] %v1501_v59  ;;  %v459_v9 = vmul.f32 %v2083_v26, %v181_v63  ;;  %v460_v12 = vmul.f32 %v2071_v20, %v182_v0  ;;  %v461_v14 = vmul.f32 %v2075_v22, %v183_v1  ;;  %v187_v57 = vunpack.c.h.bf16 %v38_v44  ;;  %v998_v1 = vld [vmem:[%s3761_s3 + $0x140] sm:$0xff] }
  0x32   :  { %v462_v15 = vmul.f32 %v2079_v24, %v184_v2  ;;  %v463_v16 = vmul.f32 %v2083_v26, %v185_v3  ;;  %v734_v17 = vadd.f32 %v2073_v21, %v456_v4  ;;  %v735_v18 = vadd.f32 %v2077_v23, %v457_v6  ;;  %v999_v3 = vld [vmem:[%s3761_s3 + $0x148] sm:$0xff]  ;;  %v1000_v6 = vld [vmem:[%s3761_s3 + $0x150] sm:$0xff] }
  0x33   :  { %v736_v19 = vadd.f32 %v2081_v25, %v458_v8  ;;  %v737_v28 = vadd.f32 %v2085_v27, %v459_v9  ;;  %v738_v32 = vadd.f32 %v2073_v21, %v460_v12  ;;  %v739_v33 = vadd.f32 %v2077_v23, %v461_v14  ;;  %v1002_v9 = vld [vmem:[%s3761_s3 + $0x160] sm:$0xff] }
  0x34   :  { %v740_v34 = vadd.f32 %v2081_v25, %v462_v15  ;;  %v741_v35 = vadd.f32 %v2085_v27, %v463_v16  ;;  %v1246_v36 = vadd.f32 %v990_v5, %v734_v17  ;;  %v1247_v37 = vadd.f32 %v991_v7, %v735_v18  ;;  %v1001_v7 = vld [vmem:[%s3761_s3 + $0x158] sm:$0xff]  ;;  %v1003_v17 = vld [vmem:[%s3761_s3 + $0x168] sm:$0xff]  ;;  %v1004_v18 = vld [vmem:[%s3761_s3 + $0x170] sm:$0xff] }
  0x35   :  { %v1248_v38 = vadd.f32 %v992_v10, %v736_v19  ;;  %v1249_v39 = vadd.f32 %v993_v11, %v737_v28  ;;  %v1250_v40 = vadd.f32 %v994_v13, %v738_v32  ;;  %v1251_v41 = vadd.f32 %v995_v29, %v739_v33  ;;  %v1005_v19 = vld [vmem:[%s3761_s3 + $0x178] sm:$0xff] }
  0x36   :  { %v1252_v42 = vadd.f32 %v996_v30, %v740_v34  ;;  %v1253_v43 = vadd.f32 %v997_v31, %v741_v35  ;;  %v1502_v46 = vmax.f32 %v1246_v36, 0.0  ;;  %v1503_v47 = vmax.f32 %v1247_v37, 0.0 }
  0x37   :  { %v1504_v48 = vmax.f32 %v1248_v38, 0.0  ;;  %v1505_v49 = vmax.f32 %v1249_v39, 0.0  ;;  %v1506_v52 = vmax.f32 %v1250_v40, 0.0  ;;  %v1507_v53 = vmax.f32 %v1251_v41, 0.0  ;;  %v42_v40 = vld [vmem:[%s3758_s0 + $0xc0] sm:$0xff]  ;;  %v43_v41 = vld [vmem:[%s3758_s0 + $0xc8] sm:$0xff] }
  0x38   :  { %v1508_v54 = vmax.f32 %v1252_v42, 0.0  ;;  %v1509_v55 = vmax.f32 %v1253_v43, 0.0  ;;  %1758 = vst [vmem:[#allocation2 + $0x100] sm:$0xff] %v1502_v46  ;;  %1759 = vst [vmem:[#allocation2 + $0x108] sm:$0xff] %v1503_v47  ;;  %v188_v58 = vunpack.c.l.bf16 %v39_v45  ;;  %v189_v59 = vunpack.c.h.bf16 %v39_v45  ;;  %v44_v46 = vld [vmem:[%s3758_s0 + $0xd0] sm:$0xff]  ;;  %v45_v47 = vld [vmem:[%s3758_s0 + $0xd8] sm:$0xff] }
  0x39   :  { %1760 = vst [vmem:[#allocation2 + $0x110] sm:$0xff] %v1504_v48  ;;  %1761 = vst [vmem:[#allocation2 + $0x118] sm:$0xff] %v1505_v49  ;;  %v190_v60 = vunpack.c.l.bf16 %v40_v50  ;;  %v191_v61 = vunpack.c.h.bf16 %v40_v50  ;;  %v192_v62 = vunpack.c.l.bf16 %v41_v51  ;;  %v193_v63 = vunpack.c.h.bf16 %v41_v51 }
  0x3a   :  { %1762 = vst [vmem:[#allocation2 + $0x120] sm:$0xff] %v1506_v52  ;;  %1763 = vst [vmem:[#allocation2 + $0x128] sm:$0xff] %v1507_v53  ;;  %v464_v0 = vmul.f32 %v2071_v20, %v186_v56  ;;  %v465_v2 = vmul.f32 %v2075_v22, %v187_v57  ;;  %v466_v4 = vmul.f32 %v2079_v24, %v188_v58  ;;  %v194_v52 = vunpack.c.l.bf16 %v42_v40 }
  0x3b   :  { %1764 = vst [vmem:[#allocation2 + $0x130] sm:$0xff] %v1508_v54  ;;  %1765 = vst [vmem:[#allocation2 + $0x138] sm:$0xff] %v1509_v55  ;;  %v467_v5 = vmul.f32 %v2083_v26, %v189_v59  ;;  %v468_v8 = vmul.f32 %v2071_v20, %v190_v60  ;;  %v469_v10 = vmul.f32 %v2075_v22, %v191_v61  ;;  %v195_v53 = vunpack.c.h.bf16 %v42_v40  ;;  %v1006_v61 = vld [vmem:[%s3761_s3 + $0x180] sm:$0xff] }
  0x3c   :  { %v470_v11 = vmul.f32 %v2079_v24, %v192_v62  ;;  %v471_v12 = vmul.f32 %v2083_v26, %v193_v63  ;;  %v742_v13 = vadd.f32 %v2073_v21, %v464_v0  ;;  %v743_v14 = vadd.f32 %v2077_v23, %v465_v2  ;;  %v1007_v63 = vld [vmem:[%s3761_s3 + $0x188] sm:$0xff]  ;;  %v1008_v2 = vld [vmem:[%s3761_s3 + $0x190] sm:$0xff] }
  0x3d   :  { %v744_v15 = vadd.f32 %v2081_v25, %v466_v4  ;;  %v745_v16 = vadd.f32 %v2085_v27, %v467_v5  ;;  %v746_v28 = vadd.f32 %v2073_v21, %v468_v8  ;;  %v747_v29 = vadd.f32 %v2077_v23, %v469_v10  ;;  %v1010_v5 = vld [vmem:[%s3761_s3 + $0x1a0] sm:$0xff] }
  0x3e   :  { %v748_v30 = vadd.f32 %v2081_v25, %v470_v11  ;;  %v749_v31 = vadd.f32 %v2085_v27, %v471_v12  ;;  %v1254_v32 = vadd.f32 %v998_v1, %v742_v13  ;;  %v1255_v33 = vadd.f32 %v999_v3, %v743_v14  ;;  %v1009_v3 = vld [vmem:[%s3761_s3 + $0x198] sm:$0xff]  ;;  %v1011_v13 = vld [vmem:[%s3761_s3 + $0x1a8] sm:$0xff]  ;;  %v1012_v14 = vld [vmem:[%s3761_s3 + $0x1b0] sm:$0xff] }
  0x3f   :  { %v1256_v34 = vadd.f32 %v1000_v6, %v744_v15  ;;  %v1257_v35 = vadd.f32 %v1001_v7, %v745_v16  ;;  %v1258_v36 = vadd.f32 %v1002_v9, %v746_v28  ;;  %v1259_v37 = vadd.f32 %v1003_v17, %v747_v29  ;;  %v1013_v15 = vld [vmem:[%s3761_s3 + $0x1b8] sm:$0xff] }
  0x40   :  { %v1260_v38 = vadd.f32 %v1004_v18, %v748_v30  ;;  %v1261_v39 = vadd.f32 %v1005_v19, %v749_v31  ;;  %v1510_v42 = vmax.f32 %v1254_v32, 0.0  ;;  %v1511_v43 = vmax.f32 %v1255_v33, 0.0 }
  0x41   :  { %v1512_v44 = vmax.f32 %v1256_v34, 0.0  ;;  %v1513_v45 = vmax.f32 %v1257_v35, 0.0  ;;  %v1514_v48 = vmax.f32 %v1258_v36, 0.0  ;;  %v1515_v49 = vmax.f32 %v1259_v37, 0.0  ;;  %v46_v36 = vld [vmem:[%s3758_s0 + $0xe0] sm:$0xff]  ;;  %v47_v37 = vld [vmem:[%s3758_s0 + $0xe8] sm:$0xff] }
  0x42   :  { %v1516_v50 = vmax.f32 %v1260_v38, 0.0  ;;  %v1517_v51 = vmax.f32 %v1261_v39, 0.0  ;;  %1766 = vst [vmem:[#allocation2 + $0x140] sm:$0xff] %v1510_v42  ;;  %1767 = vst [vmem:[#allocation2 + $0x148] sm:$0xff] %v1511_v43  ;;  %v196_v54 = vunpack.c.l.bf16 %v43_v41  ;;  %v197_v55 = vunpack.c.h.bf16 %v43_v41  ;;  %v48_v42 = vld [vmem:[%s3758_s0 + $0xf0] sm:$0xff]  ;;  %v49_v43 = vld [vmem:[%s3758_s0 + $0xf8] sm:$0xff] }
  0x43   :  { %1768 = vst [vmem:[#allocation2 + $0x150] sm:$0xff] %v1512_v44  ;;  %1769 = vst [vmem:[#allocation2 + $0x158] sm:$0xff] %v1513_v45  ;;  %v198_v56 = vunpack.c.l.bf16 %v44_v46  ;;  %v199_v57 = vunpack.c.h.bf16 %v44_v46  ;;  %v200_v58 = vunpack.c.l.bf16 %v45_v47  ;;  %v201_v59 = vunpack.c.h.bf16 %v45_v47 }
  0x44   :  { %1770 = vst [vmem:[#allocation2 + $0x160] sm:$0xff] %v1514_v48  ;;  %1771 = vst [vmem:[#allocation2 + $0x168] sm:$0xff] %v1515_v49  ;;  %v472_v60 = vmul.f32 %v2071_v20, %v194_v52  ;;  %v473_v62 = vmul.f32 %v2075_v22, %v195_v53  ;;  %v474_v0 = vmul.f32 %v2079_v24, %v196_v54  ;;  %v202_v48 = vunpack.c.l.bf16 %v46_v36 }
  0x45   :  { %1772 = vst [vmem:[#allocation2 + $0x170] sm:$0xff] %v1516_v50  ;;  %1773 = vst [vmem:[#allocation2 + $0x178] sm:$0xff] %v1517_v51  ;;  %v475_v1 = vmul.f32 %v2083_v26, %v197_v55  ;;  %v476_v4 = vmul.f32 %v2071_v20, %v198_v56  ;;  %v477_v6 = vmul.f32 %v2075_v22, %v199_v57  ;;  %v203_v49 = vunpack.c.h.bf16 %v46_v36  ;;  %v1014_v57 = vld [vmem:[%s3761_s3 + $0x1c0] sm:$0xff] }
  0x46   :  { %v478_v7 = vmul.f32 %v2079_v24, %v200_v58  ;;  %v479_v8 = vmul.f32 %v2083_v26, %v201_v59  ;;  %v750_v9 = vadd.f32 %v2073_v21, %v472_v60  ;;  %v751_v10 = vadd.f32 %v2077_v23, %v473_v62  ;;  %v1015_v59 = vld [vmem:[%s3761_s3 + $0x1c8] sm:$0xff]  ;;  %v1016_v62 = vld [vmem:[%s3761_s3 + $0x1d0] sm:$0xff] }
  0x47   :  { %v752_v11 = vadd.f32 %v2081_v25, %v474_v0  ;;  %v753_v12 = vadd.f32 %v2085_v27, %v475_v1  ;;  %v754_v16 = vadd.f32 %v2073_v21, %v476_v4  ;;  %v755_v17 = vadd.f32 %v2077_v23, %v477_v6  ;;  %v1018_v1 = vld [vmem:[%s3761_s3 + $0x1e0] sm:$0xff] }
  0x48   :  { %v756_v18 = vadd.f32 %v2081_v25, %v478_v7  ;;  %v757_v19 = vadd.f32 %v2085_v27, %v479_v8  ;;  %v1262_v28 = vadd.f32 %v1006_v61, %v750_v9  ;;  %v1263_v29 = vadd.f32 %v1007_v63, %v751_v10  ;;  %v1017_v63 = vld [vmem:[%s3761_s3 + $0x1d8] sm:$0xff]  ;;  %v1019_v9 = vld [vmem:[%s3761_s3 + $0x1e8] sm:$0xff]  ;;  %v1020_v10 = vld [vmem:[%s3761_s3 + $0x1f0] sm:$0xff] }
  0x49   :  { %v1264_v30 = vadd.f32 %v1008_v2, %v752_v11  ;;  %v1265_v31 = vadd.f32 %v1009_v3, %v753_v12  ;;  %v1266_v32 = vadd.f32 %v1010_v5, %v754_v16  ;;  %v1267_v33 = vadd.f32 %v1011_v13, %v755_v17  ;;  %v1021_v11 = vld [vmem:[%s3761_s3 + $0x1f8] sm:$0xff] }
  0x4a   :  { %v1268_v34 = vadd.f32 %v1012_v14, %v756_v18  ;;  %v1269_v35 = vadd.f32 %v1013_v15, %v757_v19  ;;  %v1518_v38 = vmax.f32 %v1262_v28, 0.0  ;;  %v1519_v39 = vmax.f32 %v1263_v29, 0.0 }
  0x4b   :  { %v1520_v40 = vmax.f32 %v1264_v30, 0.0  ;;  %v1521_v41 = vmax.f32 %v1265_v31, 0.0  ;;  %v1522_v44 = vmax.f32 %v1266_v32, 0.0  ;;  %v1523_v45 = vmax.f32 %v1267_v33, 0.0  ;;  %v50_v32 = vld [vmem:[%s3758_s0 + $0x100] sm:$0xff]  ;;  %v51_v33 = vld [vmem:[%s3758_s0 + $0x108] sm:$0xff] }
  0x4c   :  { %v1524_v46 = vmax.f32 %v1268_v34, 0.0  ;;  %v1525_v47 = vmax.f32 %v1269_v35, 0.0  ;;  %1774 = vst [vmem:[#allocation2 + $0x180] sm:$0xff] %v1518_v38  ;;  %1775 = vst [vmem:[#allocation2 + $0x188] sm:$0xff] %v1519_v39  ;;  %v204_v50 = vunpack.c.l.bf16 %v47_v37  ;;  %v205_v51 = vunpack.c.h.bf16 %v47_v37  ;;  %v52_v38 = vld [vmem:[%s3758_s0 + $0x110] sm:$0xff]  ;;  %v53_v39 = vld [vmem:[%s3758_s0 + $0x118] sm:$0xff] }
  0x4d   :  { %1776 = vst [vmem:[#allocation2 + $0x190] sm:$0xff] %v1520_v40  ;;  %1777 = vst [vmem:[#allocation2 + $0x198] sm:$0xff] %v1521_v41  ;;  %v206_v52 = vunpack.c.l.bf16 %v48_v42  ;;  %v207_v53 = vunpack.c.h.bf16 %v48_v42  ;;  %v208_v54 = vunpack.c.l.bf16 %v49_v43  ;;  %v209_v55 = vunpack.c.h.bf16 %v49_v43 }
  0x4e   :  { %1778 = vst [vmem:[#allocation2 + $0x1a0] sm:$0xff] %v1522_v44  ;;  %1779 = vst [vmem:[#allocation2 + $0x1a8] sm:$0xff] %v1523_v45  ;;  %v480_v56 = vmul.f32 %v2071_v20, %v202_v48  ;;  %v481_v58 = vmul.f32 %v2075_v22, %v203_v49  ;;  %v482_v60 = vmul.f32 %v2079_v24, %v204_v50  ;;  %v210_v44 = vunpack.c.l.bf16 %v50_v32 }
  0x4f   :  { %1780 = vst [vmem:[#allocation2 + $0x1b0] sm:$0xff] %v1524_v46  ;;  %1781 = vst [vmem:[#allocation2 + $0x1b8] sm:$0xff] %v1525_v47  ;;  %v483_v61 = vmul.f32 %v2083_v26, %v205_v51  ;;  %v484_v0 = vmul.f32 %v2071_v20, %v206_v52  ;;  %v485_v2 = vmul.f32 %v2075_v22, %v207_v53  ;;  %v211_v45 = vunpack.c.h.bf16 %v50_v32  ;;  %v1022_v53 = vld [vmem:[%s3761_s3 + $0x200] sm:$0xff] }
  0x50   :  { %v486_v3 = vmul.f32 %v2079_v24, %v208_v54  ;;  %v487_v4 = vmul.f32 %v2083_v26, %v209_v55  ;;  %v758_v5 = vadd.f32 %v2073_v21, %v480_v56  ;;  %v759_v6 = vadd.f32 %v2077_v23, %v481_v58  ;;  %v1023_v55 = vld [vmem:[%s3761_s3 + $0x208] sm:$0xff]  ;;  %v1024_v58 = vld [vmem:[%s3761_s3 + $0x210] sm:$0xff] }
  0x51   :  { %v760_v7 = vadd.f32 %v2081_v25, %v482_v60  ;;  %v761_v8 = vadd.f32 %v2085_v27, %v483_v61  ;;  %v762_v12 = vadd.f32 %v2073_v21, %v484_v0  ;;  %v763_v13 = vadd.f32 %v2077_v23, %v485_v2  ;;  %v1026_v61 = vld [vmem:[%s3761_s3 + $0x220] sm:$0xff] }
  0x52   :  { %v764_v14 = vadd.f32 %v2081_v25, %v486_v3  ;;  %v765_v15 = vadd.f32 %v2085_v27, %v487_v4  ;;  %v1270_v16 = vadd.f32 %v1014_v57, %v758_v5  ;;  %v1271_v17 = vadd.f32 %v1015_v59, %v759_v6  ;;  %v1025_v59 = vld [vmem:[%s3761_s3 + $0x218] sm:$0xff]  ;;  %v1027_v5 = vld [vmem:[%s3761_s3 + $0x228] sm:$0xff]  ;;  %v1028_v6 = vld [vmem:[%s3761_s3 + $0x230] sm:$0xff] }
  0x53   :  { %v1272_v18 = vadd.f32 %v1016_v62, %v760_v7  ;;  %v1273_v19 = vadd.f32 %v1017_v63, %v761_v8  ;;  %v1274_v28 = vadd.f32 %v1018_v1, %v762_v12  ;;  %v1275_v29 = vadd.f32 %v1019_v9, %v763_v13  ;;  %v1029_v7 = vld [vmem:[%s3761_s3 + $0x238] sm:$0xff] }
  0x54   :  { %v1276_v30 = vadd.f32 %v1020_v10, %v764_v14  ;;  %v1277_v31 = vadd.f32 %v1021_v11, %v765_v15  ;;  %v1526_v34 = vmax.f32 %v1270_v16, 0.0  ;;  %v1527_v35 = vmax.f32 %v1271_v17, 0.0 }
  0x55   :  { %v1528_v36 = vmax.f32 %v1272_v18, 0.0  ;;  %v1529_v37 = vmax.f32 %v1273_v19, 0.0  ;;  %v1530_v40 = vmax.f32 %v1274_v28, 0.0  ;;  %v1531_v41 = vmax.f32 %v1275_v29, 0.0 }
  0x56   :  { %v1532_v42 = vmax.f32 %v1276_v30, 0.0  ;;  %v1533_v43 = vmax.f32 %v1277_v31, 0.0  ;;  %1782 = vst [vmem:[#allocation2 + $0x1c0] sm:$0xff] %v1526_v34  ;;  %1783 = vst [vmem:[#allocation2 + $0x1c8] sm:$0xff] %v1527_v35  ;;  %v212_v46 = vunpack.c.l.bf16 %v51_v33  ;;  %v213_v47 = vunpack.c.h.bf16 %v51_v33 }
  0x57   :  { %1784 = vst [vmem:[#allocation2 + $0x1d0] sm:$0xff] %v1528_v36  ;;  %1785 = vst [vmem:[#allocation2 + $0x1d8] sm:$0xff] %v1529_v37  ;;  %v214_v48 = vunpack.c.l.bf16 %v52_v38  ;;  %v215_v49 = vunpack.c.h.bf16 %v52_v38  ;;  %v216_v50 = vunpack.c.l.bf16 %v53_v39  ;;  %v217_v51 = vunpack.c.h.bf16 %v53_v39 }
  0x58   :  { %1786 = vst [vmem:[#allocation2 + $0x1e0] sm:$0xff] %v1530_v40  ;;  %1787 = vst [vmem:[#allocation2 + $0x1e8] sm:$0xff] %v1531_v41  ;;  %v488_v52 = vmul.f32 %v2071_v20, %v210_v44  ;;  %v489_v54 = vmul.f32 %v2075_v22, %v211_v45  ;;  %v490_v56 = vmul.f32 %v2079_v24, %v212_v46 }
  0x59   :  { %1788 = vst [vmem:[#allocation2 + $0x1f0] sm:$0xff] %v1532_v42  ;;  %1789 = vst [vmem:[#allocation2 + $0x1f8] sm:$0xff] %v1533_v43  ;;  %v491_v57 = vmul.f32 %v2083_v26, %v213_v47  ;;  %v492_v60 = vmul.f32 %v2071_v20, %v214_v48  ;;  %v493_v62 = vmul.f32 %v2075_v22, %v215_v49 }
  0x5a   :  { %v494_v63 = vmul.f32 %v2079_v24, %v216_v50  ;;  %v495_v0 = vmul.f32 %v2083_v26, %v217_v51  ;;  %v766_v1 = vadd.f32 %v2073_v21, %v488_v52  ;;  %v767_v2 = vadd.f32 %v2077_v23, %v489_v54 }
  0x5b   :  { %v768_v3 = vadd.f32 %v2081_v25, %v490_v56  ;;  %v769_v4 = vadd.f32 %v2085_v27, %v491_v57  ;;  %v770_v8 = vadd.f32 %v2073_v21, %v492_v60  ;;  %v771_v9 = vadd.f32 %v2077_v23, %v493_v62 }
  0x5c   :  { %v772_v10 = vadd.f32 %v2081_v25, %v494_v63  ;;  %v773_v11 = vadd.f32 %v2085_v27, %v495_v0  ;;  %v1278_v12 = vadd.f32 %v1022_v53, %v766_v1  ;;  %v1279_v13 = vadd.f32 %v1023_v55, %v767_v2 }
  0x5d   :  { %v1280_v14 = vadd.f32 %v1024_v58, %v768_v3  ;;  %v1281_v15 = vadd.f32 %v1025_v59, %v769_v4 }
  0x5e   :  { %9 = vsyncpa [#allocation3], 0  ;;  %v1282_v16 = vadd.f32 %v1026_v61, %v770_v8  ;;  %v1283_v17 = vadd.f32 %v1027_v5, %v771_v9  ;;  %v1284_v18 = vadd.f32 %v1028_v6, %v772_v10  ;;  %v1285_v19 = vadd.f32 %v1029_v7, %v773_v11  ;;  %v54_v28 = vld [vmem:[%s3758_s0 + $0x120] sm:$0xff]  ;;  %v55_v29 = vld [vmem:[%s3758_s0 + $0x128] sm:$0xff]  ;;  %s2025_s28 = smov [#allocation2]  }
  0x5f   :  { %v1534_v30 = vmax.f32 %v1278_v12, 0.0  ;;  %v1535_v31 = vmax.f32 %v1279_v13, 0.0  ;;  %v1536_v32 = vmax.f32 %v1280_v14, 0.0  ;;  %v1537_v33 = vmax.f32 %v1281_v15, 0.0  ;;  %v56_v34 = vld [vmem:[%s3758_s0 + $0x130] sm:$0xff]  ;;  %v57_v35 = vld [vmem:[%s3758_s0 + $0x138] sm:$0xff] }
  0x60   :  { %v1538_v36 = vmax.f32 %v1282_v16, 0.0  ;;  %v1539_v37 = vmax.f32 %v1283_v17, 0.0  ;;  %v1540_v38 = vmax.f32 %v1284_v18, 0.0  ;;  %v1541_v39 = vmax.f32 %v1285_v19, 0.0  ;;  %v1030_v49 = vld [vmem:[%s3761_s3 + $0x240] sm:$0xff]  ;;  %v1031_v51 = vld [vmem:[%s3761_s3 + $0x248] sm:$0xff] }
  0x61   :  { %1790 = vst [vmem:[#allocation2 + $0x200] sm:$0xff] %v1534_v30  ;;  %1791 = vst [vmem:[#allocation2 + $0x208] sm:$0xff] %v1535_v31  ;;  %v218_v40 = vunpack.c.l.bf16 %v54_v28  ;;  %v219_v41 = vunpack.c.h.bf16 %v54_v28  ;;  %v220_v42 = vunpack.c.l.bf16 %v55_v29  ;;  %v221_v43 = vunpack.c.h.bf16 %v55_v29  ;;  %v1032_v54 = vld [vmem:[%s3761_s3 + $0x250] sm:$0xff]  ;;  %v1033_v55 = vld [vmem:[%s3761_s3 + $0x258] sm:$0xff]  ;;  %s1987_s29 = sshll.u32 %s2025_s28, 4  ;;  %s3739_s29 = int_to_ptr.vmem [resolvable:$true] %s1987_s29 }
  0x62   :  { %1792 = vst [vmem:[#allocation2 + $0x210] sm:$0xff] %v1536_v32  ;;  %1793 = vst [vmem:[#allocation2 + $0x218] sm:$0xff] %v1537_v33  ;;  %v222_v44 = vunpack.c.l.bf16 %v56_v34  ;;  %v223_v45 = vunpack.c.h.bf16 %v56_v34  ;;  %v224_v46 = vunpack.c.l.bf16 %v57_v35  ;;  %v225_v47 = vunpack.c.h.bf16 %v57_v35  ;;  %v1034_v57 = vld [vmem:[%s3761_s3 + $0x260] sm:$0xff]  ;;  %v1035_v1 = vld [vmem:[%s3761_s3 + $0x268] sm:$0xff]  ;;  %p2006_p1 = scmp.lt.s32.totalorder %s3739_s29, %s3739_s29 }
  0x63   :  { %1794 = vst [vmem:[#allocation2 + $0x220] sm:$0xff] %v1538_v36  ;;  %1795 = vst [vmem:[#allocation2 + $0x228] sm:$0xff] %v1539_v37  ;;  %v496_v48 = vmul.f32 %v2071_v20, %v218_v40  ;;  %v497_v50 = vmul.f32 %v2075_v22, %v219_v41  ;;  %v498_v52 = vmul.f32 %v2079_v24, %v220_v42  ;;  %v1036_v2 = vld [vmem:[%s3761_s3 + $0x270] sm:$0xff]  ;;  %v1037_v3 = vld [vmem:[%s3761_s3 + $0x278] sm:$0xff] }
  0x64   :  { %1796 = vst [vmem:[#allocation2 + $0x230] sm:$0xff] %v1540_v38  ;;  %1797 = vst [vmem:[#allocation2 + $0x238] sm:$0xff] %v1541_v39  ;;  %v499_v53 = vmul.f32 %v2083_v26, %v221_v43  ;;  %v500_v56 = vmul.f32 %v2071_v20, %v222_v44  ;;  %v501_v58 = vmul.f32 %v2075_v22, %v223_v45  ;;  %v58_v16 = vld [vmem:[%s3758_s0 + $0x140] sm:$0xff]  ;;  %v59_v17 = vld [vmem:[%s3758_s0 + $0x148] sm:$0xff] }
  0x65   :  { %v502_v59 = vmul.f32 %v2079_v24, %v224_v46  ;;  %v503_v60 = vmul.f32 %v2083_v26, %v225_v47  ;;  %v774_v61 = vadd.f32 %v2073_v21, %v496_v48  ;;  %v775_v62 = vadd.f32 %v2077_v23, %v497_v50  ;;  %v60_v30 = vld [vmem:[%s3758_s0 + $0x150] sm:$0xff]  ;;  %v61_v31 = vld [vmem:[%s3758_s0 + $0x158] sm:$0xff]  ;;  %v1038_v45 = vld [vmem:[%s3761_s3 + $0x280] sm:$0xff] }
  0x66   :  { %v776_v63 = vadd.f32 %v2081_v25, %v498_v52  ;;  %v777_v0 = vadd.f32 %v2085_v27, %v499_v53  ;;  %v778_v4 = vadd.f32 %v2073_v21, %v500_v56  ;;  %v779_v5 = vadd.f32 %v2077_v23, %v501_v58  ;;  %v1039_v47 = vld [vmem:[%s3761_s3 + $0x288] sm:$0xff]  ;;  %v1040_v50 = vld [vmem:[%s3761_s3 + $0x290] sm:$0xff]  ;;  %v1042_v53 = vld [vmem:[%s3761_s3 + $0x2a0] sm:$0xff] }
  0x67   :  { %v780_v6 = vadd.f32 %v2081_v25, %v502_v59  ;;  %v781_v7 = vadd.f32 %v2085_v27, %v503_v60  ;;  %v1286_v8 = vadd.f32 %v1030_v49, %v774_v61  ;;  %v1287_v9 = vadd.f32 %v1031_v51, %v775_v62  ;;  %v1041_v51 = vld [vmem:[%s3761_s3 + $0x298] sm:$0xff]  ;;  %v1043_v61 = vld [vmem:[%s3761_s3 + $0x2a8] sm:$0xff]  ;;  %v1044_v62 = vld [vmem:[%s3761_s3 + $0x2b0] sm:$0xff] }
  0x68   :  { %v1288_v10 = vadd.f32 %v1032_v54, %v776_v63  ;;  %v1289_v11 = vadd.f32 %v1033_v55, %v777_v0  ;;  %v1290_v12 = vadd.f32 %v1034_v57, %v778_v4  ;;  %v1291_v13 = vadd.f32 %v1035_v1, %v779_v5  ;;  %v1045_v63 = vld [vmem:[%s3761_s3 + $0x2b8] sm:$0xff] }
  0x69   :  { %v1292_v14 = vadd.f32 %v1036_v2, %v780_v6  ;;  %v1293_v15 = vadd.f32 %v1037_v3, %v781_v7  ;;  %v1542_v18 = vmax.f32 %v1286_v8, 0.0  ;;  %v1543_v19 = vmax.f32 %v1287_v9, 0.0 }
  0x6a   :  { %v1544_v28 = vmax.f32 %v1288_v10, 0.0  ;;  %v1545_v29 = vmax.f32 %v1289_v11, 0.0  ;;  %v1546_v32 = vmax.f32 %v1290_v12, 0.0  ;;  %v1547_v33 = vmax.f32 %v1291_v13, 0.0  ;;  %v62_v12 = vld [vmem:[%s3758_s0 + $0x160] sm:$0xff]  ;;  %v63_v13 = vld [vmem:[%s3758_s0 + $0x168] sm:$0xff] }
  0x6b   :  { %v1548_v34 = vmax.f32 %v1292_v14, 0.0  ;;  %v1549_v35 = vmax.f32 %v1293_v15, 0.0  ;;  %1798 = vst [vmem:[#allocation2 + $0x240] sm:$0xff] %v1542_v18  ;;  %1799 = vst [vmem:[#allocation2 + $0x248] sm:$0xff] %v1543_v19  ;;  %v226_v36 = vunpack.c.l.bf16 %v58_v16  ;;  %v227_v37 = vunpack.c.h.bf16 %v58_v16  ;;  %v64_v18 = vld [vmem:[%s3758_s0 + $0x170] sm:$0xff]  ;;  %v65_v19 = vld [vmem:[%s3758_s0 + $0x178] sm:$0xff] }
  0x6c   :  { %1800 = vst [vmem:[#allocation2 + $0x250] sm:$0xff] %v1544_v28  ;;  %1801 = vst [vmem:[#allocation2 + $0x258] sm:$0xff] %v1545_v29  ;;  %v228_v38 = vunpack.c.l.bf16 %v59_v17  ;;  %v229_v39 = vunpack.c.h.bf16 %v59_v17  ;;  %v230_v40 = vunpack.c.l.bf16 %v60_v30  ;;  %v231_v41 = vunpack.c.h.bf16 %v60_v30 }
  0x6d   :  { %1802 = vst [vmem:[#allocation2 + $0x260] sm:$0xff] %v1546_v32  ;;  %1803 = vst [vmem:[#allocation2 + $0x268] sm:$0xff] %v1547_v33  ;;  %v232_v42 = vunpack.c.l.bf16 %v61_v31  ;;  %v233_v43 = vunpack.c.h.bf16 %v61_v31  ;;  %v504_v44 = vmul.f32 %v2071_v20, %v226_v36  ;;  %v505_v46 = vmul.f32 %v2075_v22, %v227_v37 }
  0x6e   :  { %1804 = vst [vmem:[#allocation2 + $0x270] sm:$0xff] %v1548_v34  ;;  %1805 = vst [vmem:[#allocation2 + $0x278] sm:$0xff] %v1549_v35  ;;  %v506_v48 = vmul.f32 %v2079_v24, %v228_v38  ;;  %v507_v49 = vmul.f32 %v2083_v26, %v229_v39  ;;  %v508_v52 = vmul.f32 %v2071_v20, %v230_v40  ;;  %v234_v32 = vunpack.c.l.bf16 %v62_v12 }
  0x6f   :  { %v509_v54 = vmul.f32 %v2075_v22, %v231_v41  ;;  %v510_v55 = vmul.f32 %v2079_v24, %v232_v42  ;;  %v511_v56 = vmul.f32 %v2083_v26, %v233_v43  ;;  %v782_v57 = vadd.f32 %v2073_v21, %v504_v44  ;;  %v1046_v41 = vld [vmem:[%s3761_s3 + $0x2c0] sm:$0xff]  ;;  %v1047_v43 = vld [vmem:[%s3761_s3 + $0x2c8] sm:$0xff] }
  0x70   :  { %v783_v58 = vadd.f32 %v2077_v23, %v505_v46  ;;  %v784_v59 = vadd.f32 %v2081_v25, %v506_v48  ;;  %v785_v60 = vadd.f32 %v2085_v27, %v507_v49  ;;  %v786_v0 = vadd.f32 %v2073_v21, %v508_v52  ;;  %v1048_v46 = vld [vmem:[%s3761_s3 + $0x2d0] sm:$0xff]  ;;  %v1050_v49 = vld [vmem:[%s3761_s3 + $0x2e0] sm:$0xff] }
  0x71   :  { %v787_v1 = vadd.f32 %v2077_v23, %v509_v54  ;;  %v788_v2 = vadd.f32 %v2081_v25, %v510_v55  ;;  %v789_v3 = vadd.f32 %v2085_v27, %v511_v56  ;;  %v1294_v4 = vadd.f32 %v1038_v45, %v782_v57  ;;  %v1051_v57 = vld [vmem:[%s3761_s3 + $0x2e8] sm:$0xff] }
  0x72   :  { %v1295_v5 = vadd.f32 %v1039_v47, %v783_v58  ;;  %v1296_v6 = vadd.f32 %v1040_v50, %v784_v59  ;;  %v1297_v7 = vadd.f32 %v1041_v51, %v785_v60  ;;  %v1298_v8 = vadd.f32 %v1042_v53, %v786_v0  ;;  %v1049_v47 = vld [vmem:[%s3761_s3 + $0x2d8] sm:$0xff]  ;;  %v1052_v58 = vld [vmem:[%s3761_s3 + $0x2f0] sm:$0xff] }
  0x73   :  { %v1299_v9 = vadd.f32 %v1043_v61, %v787_v1  ;;  %v1300_v10 = vadd.f32 %v1044_v62, %v788_v2  ;;  %v1301_v11 = vadd.f32 %v1045_v63, %v789_v3  ;;  %v1550_v14 = vmax.f32 %v1294_v4, 0.0  ;;  %v1053_v59 = vld [vmem:[%s3761_s3 + $0x2f8] sm:$0xff] }
  0x74   :  { %v1551_v15 = vmax.f32 %v1295_v5, 0.0  ;;  %v1552_v16 = vmax.f32 %v1296_v6, 0.0  ;;  %v1553_v17 = vmax.f32 %v1297_v7, 0.0  ;;  %v1554_v28 = vmax.f32 %v1298_v8, 0.0  ;;  %v66_v8 = vld [vmem:[%s3758_s0 + $0x180] sm:$0xff] }
  0x75   :  { %v1555_v29 = vmax.f32 %v1299_v9, 0.0  ;;  %v1556_v30 = vmax.f32 %v1300_v10, 0.0  ;;  %v1557_v31 = vmax.f32 %v1301_v11, 0.0  ;;  %1806 = vst [vmem:[#allocation2 + $0x280] sm:$0xff] %v1550_v14  ;;  %v235_v33 = vunpack.c.h.bf16 %v62_v12  ;;  %v67_v9 = vld [vmem:[%s3758_s0 + $0x188] sm:$0xff]  ;;  %v68_v14 = vld [vmem:[%s3758_s0 + $0x190] sm:$0xff] }
  0x76   :  { %1807 = vst [vmem:[#allocation2 + $0x288] sm:$0xff] %v1551_v15  ;;  %1808 = vst [vmem:[#allocation2 + $0x290] sm:$0xff] %v1552_v16  ;;  %v236_v34 = vunpack.c.l.bf16 %v63_v13  ;;  %v237_v35 = vunpack.c.h.bf16 %v63_v13  ;;  %v238_v36 = vunpack.c.l.bf16 %v64_v18  ;;  %v239_v37 = vunpack.c.h.bf16 %v64_v18  ;;  %v69_v15 = vld [vmem:[%s3758_s0 + $0x198] sm:$0xff] }
  0x77   :  { %1809 = vst [vmem:[#allocation2 + $0x298] sm:$0xff] %v1553_v17  ;;  %1810 = vst [vmem:[#allocation2 + $0x2a0] sm:$0xff] %v1554_v28  ;;  %v240_v38 = vunpack.c.l.bf16 %v65_v19  ;;  %v241_v39 = vunpack.c.h.bf16 %v65_v19  ;;  %v512_v40 = vmul.f32 %v2071_v20, %v234_v32  ;;  %v513_v42 = vmul.f32 %v2075_v22, %v235_v33 }
  0x78   :  { %1811 = vst [vmem:[#allocation2 + $0x2a8] sm:$0xff] %v1555_v29  ;;  %1812 = vst [vmem:[#allocation2 + $0x2b0] sm:$0xff] %v1556_v30  ;;  %v514_v44 = vmul.f32 %v2079_v24, %v236_v34  ;;  %v515_v45 = vmul.f32 %v2083_v26, %v237_v35  ;;  %v516_v48 = vmul.f32 %v2071_v20, %v238_v36  ;;  %v242_v28 = vunpack.c.l.bf16 %v66_v8 }
  0x79   :  { %1813 = vst [vmem:[#allocation2 + $0x2b8] sm:$0xff] %v1557_v31  ;;  %v517_v50 = vmul.f32 %v2075_v22, %v239_v37  ;;  %v518_v51 = vmul.f32 %v2079_v24, %v240_v38  ;;  %v519_v52 = vmul.f32 %v2083_v26, %v241_v39  ;;  %v790_v53 = vadd.f32 %v2073_v21, %v512_v40  ;;  %v1054_v37 = vld [vmem:[%s3761_s3 + $0x300] sm:$0xff]  ;;  %v1055_v39 = vld [vmem:[%s3761_s3 + $0x308] sm:$0xff] }
  0x7a   :  { %v791_v54 = vadd.f32 %v2077_v23, %v513_v42  ;;  %v792_v55 = vadd.f32 %v2081_v25, %v514_v44  ;;  %v793_v56 = vadd.f32 %v2085_v27, %v515_v45  ;;  %v794_v60 = vadd.f32 %v2073_v21, %v516_v48  ;;  %v1056_v42 = vld [vmem:[%s3761_s3 + $0x310] sm:$0xff]  ;;  %v1058_v45 = vld [vmem:[%s3761_s3 + $0x320] sm:$0xff] }
  0x7b   :  { %v795_v61 = vadd.f32 %v2077_v23, %v517_v50  ;;  %v796_v62 = vadd.f32 %v2081_v25, %v518_v51  ;;  %v797_v63 = vadd.f32 %v2085_v27, %v519_v52  ;;  %v1302_v0 = vadd.f32 %v1046_v41, %v790_v53  ;;  %v1059_v53 = vld [vmem:[%s3761_s3 + $0x328] sm:$0xff] }
  0x7c   :  { %v1303_v1 = vadd.f32 %v1047_v43, %v791_v54  ;;  %v1304_v2 = vadd.f32 %v1048_v46, %v792_v55  ;;  %v1305_v3 = vadd.f32 %v1049_v47, %v793_v56  ;;  %v1306_v4 = vadd.f32 %v1050_v49, %v794_v60  ;;  %v1057_v43 = vld [vmem:[%s3761_s3 + $0x318] sm:$0xff]  ;;  %v1060_v54 = vld [vmem:[%s3761_s3 + $0x330] sm:$0xff] }
  0x7d   :  { %v1307_v5 = vadd.f32 %v1051_v57, %v795_v61  ;;  %v1308_v6 = vadd.f32 %v1052_v58, %v796_v62  ;;  %v1309_v7 = vadd.f32 %v1053_v59, %v797_v63  ;;  %v1558_v10 = vmax.f32 %v1302_v0, 0.0  ;;  %v1061_v55 = vld [vmem:[%s3761_s3 + $0x338] sm:$0xff] }
  0x7e   :  { %v1559_v11 = vmax.f32 %v1303_v1, 0.0  ;;  %v1560_v12 = vmax.f32 %v1304_v2, 0.0  ;;  %v1561_v13 = vmax.f32 %v1305_v3, 0.0  ;;  %v1562_v16 = vmax.f32 %v1306_v4, 0.0  ;;  %v70_v4 = vld [vmem:[%s3758_s0 + $0x1a0] sm:$0xff] }
  0x7f   :  { %v1563_v17 = vmax.f32 %v1307_v5, 0.0  ;;  %v1564_v18 = vmax.f32 %v1308_v6, 0.0  ;;  %v1565_v19 = vmax.f32 %v1309_v7, 0.0  ;;  %1814 = vst [vmem:[#allocation2 + $0x2c0] sm:$0xff] %v1558_v10  ;;  %v243_v29 = vunpack.c.h.bf16 %v66_v8  ;;  %v71_v5 = vld [vmem:[%s3758_s0 + $0x1a8] sm:$0xff]  ;;  %v72_v10 = vld [vmem:[%s3758_s0 + $0x1b0] sm:$0xff] }
  0x80   :  { %1815 = vst [vmem:[#allocation2 + $0x2c8] sm:$0xff] %v1559_v11  ;;  %1816 = vst [vmem:[#allocation2 + $0x2d0] sm:$0xff] %v1560_v12  ;;  %v244_v30 = vunpack.c.l.bf16 %v67_v9  ;;  %v245_v31 = vunpack.c.h.bf16 %v67_v9  ;;  %v246_v32 = vunpack.c.l.bf16 %v68_v14  ;;  %v247_v33 = vunpack.c.h.bf16 %v68_v14  ;;  %v73_v11 = vld [vmem:[%s3758_s0 + $0x1b8] sm:$0xff] }
  0x81   :  { %1817 = vst [vmem:[#allocation2 + $0x2d8] sm:$0xff] %v1561_v13  ;;  %1818 = vst [vmem:[#allocation2 + $0x2e0] sm:$0xff] %v1562_v16  ;;  %v248_v34 = vunpack.c.l.bf16 %v69_v15  ;;  %v249_v35 = vunpack.c.h.bf16 %v69_v15  ;;  %v520_v36 = vmul.f32 %v2071_v20, %v242_v28  ;;  %v521_v38 = vmul.f32 %v2075_v22, %v243_v29 }
  0x82   :  { %1819 = vst [vmem:[#allocation2 + $0x2e8] sm:$0xff] %v1563_v17  ;;  %1820 = vst [vmem:[#allocation2 + $0x2f0] sm:$0xff] %v1564_v18  ;;  %v522_v40 = vmul.f32 %v2079_v24, %v244_v30  ;;  %v523_v41 = vmul.f32 %v2083_v26, %v245_v31  ;;  %v524_v44 = vmul.f32 %v2071_v20, %v246_v32  ;;  %v250_v16 = vunpack.c.l.bf16 %v70_v4 }
  0x83   :  { %1821 = vst [vmem:[#allocation2 + $0x2f8] sm:$0xff] %v1565_v19  ;;  %v525_v46 = vmul.f32 %v2075_v22, %v247_v33  ;;  %v526_v47 = vmul.f32 %v2079_v24, %v248_v34  ;;  %v527_v48 = vmul.f32 %v2083_v26, %v249_v35  ;;  %v798_v49 = vadd.f32 %v2073_v21, %v520_v36  ;;  %v1062_v33 = vld [vmem:[%s3761_s3 + $0x340] sm:$0xff]  ;;  %v1063_v35 = vld [vmem:[%s3761_s3 + $0x348] sm:$0xff] }
  0x84   :  { %v799_v50 = vadd.f32 %v2077_v23, %v521_v38  ;;  %v800_v51 = vadd.f32 %v2081_v25, %v522_v40  ;;  %v801_v52 = vadd.f32 %v2085_v27, %v523_v41  ;;  %v802_v56 = vadd.f32 %v2073_v21, %v524_v44  ;;  %v1064_v38 = vld [vmem:[%s3761_s3 + $0x350] sm:$0xff]  ;;  %v1066_v41 = vld [vmem:[%s3761_s3 + $0x360] sm:$0xff] }
  0x85   :  { %v803_v57 = vadd.f32 %v2077_v23, %v525_v46  ;;  %v804_v58 = vadd.f32 %v2081_v25, %v526_v47  ;;  %v805_v59 = vadd.f32 %v2085_v27, %v527_v48  ;;  %v1310_v60 = vadd.f32 %v1054_v37, %v798_v49  ;;  %v1067_v49 = vld [vmem:[%s3761_s3 + $0x368] sm:$0xff] }
  0x86   :  { %v1311_v61 = vadd.f32 %v1055_v39, %v799_v50  ;;  %v1312_v62 = vadd.f32 %v1056_v42, %v800_v51  ;;  %v1313_v63 = vadd.f32 %v1057_v43, %v801_v52  ;;  %v1314_v0 = vadd.f32 %v1058_v45, %v802_v56  ;;  %v1065_v39 = vld [vmem:[%s3761_s3 + $0x358] sm:$0xff]  ;;  %v1068_v50 = vld [vmem:[%s3761_s3 + $0x370] sm:$0xff] }
  0x87   :  { %v1315_v1 = vadd.f32 %v1059_v53, %v803_v57  ;;  %v1316_v2 = vadd.f32 %v1060_v54, %v804_v58  ;;  %v1317_v3 = vadd.f32 %v1061_v55, %v805_v59  ;;  %v1566_v6 = vmax.f32 %v1310_v60, 0.0  ;;  %v1069_v51 = vld [vmem:[%s3761_s3 + $0x378] sm:$0xff] }
  0x88   :  { %v1567_v7 = vmax.f32 %v1311_v61, 0.0  ;;  %v1568_v8 = vmax.f32 %v1312_v62, 0.0  ;;  %v1569_v9 = vmax.f32 %v1313_v63, 0.0  ;;  %v1570_v12 = vmax.f32 %v1314_v0, 0.0  ;;  %v74_v0 = vld [vmem:[%s3758_s0 + $0x1c0] sm:$0xff] }
  0x89   :  { %v1571_v13 = vmax.f32 %v1315_v1, 0.0  ;;  %v1572_v14 = vmax.f32 %v1316_v2, 0.0  ;;  %v1573_v15 = vmax.f32 %v1317_v3, 0.0  ;;  %1822 = vst [vmem:[#allocation2 + $0x300] sm:$0xff] %v1566_v6  ;;  %v251_v17 = vunpack.c.h.bf16 %v70_v4  ;;  %v75_v1 = vld [vmem:[%s3758_s0 + $0x1c8] sm:$0xff]  ;;  %v76_v6 = vld [vmem:[%s3758_s0 + $0x1d0] sm:$0xff] }
  0x8a   :  { %1823 = vst [vmem:[#allocation2 + $0x308] sm:$0xff] %v1567_v7  ;;  %1824 = vst [vmem:[#allocation2 + $0x310] sm:$0xff] %v1568_v8  ;;  %v252_v18 = vunpack.c.l.bf16 %v71_v5  ;;  %v253_v19 = vunpack.c.h.bf16 %v71_v5  ;;  %v254_v28 = vunpack.c.l.bf16 %v72_v10  ;;  %v255_v29 = vunpack.c.h.bf16 %v72_v10  ;;  %v77_v7 = vld [vmem:[%s3758_s0 + $0x1d8] sm:$0xff] }
  0x8b   :  { %1825 = vst [vmem:[#allocation2 + $0x318] sm:$0xff] %v1569_v9  ;;  %1826 = vst [vmem:[#allocation2 + $0x320] sm:$0xff] %v1570_v12  ;;  %v256_v30 = vunpack.c.l.bf16 %v73_v11  ;;  %v257_v31 = vunpack.c.h.bf16 %v73_v11  ;;  %v528_v32 = vmul.f32 %v2071_v20, %v250_v16  ;;  %v529_v34 = vmul.f32 %v2075_v22, %v251_v17 }
  0x8c   :  { %1827 = vst [vmem:[#allocation2 + $0x328] sm:$0xff] %v1571_v13  ;;  %1828 = vst [vmem:[#allocation2 + $0x330] sm:$0xff] %v1572_v14  ;;  %v530_v36 = vmul.f32 %v2079_v24, %v252_v18  ;;  %v531_v37 = vmul.f32 %v2083_v26, %v253_v19  ;;  %v532_v40 = vmul.f32 %v2071_v20, %v254_v28  ;;  %v258_v12 = vunpack.c.l.bf16 %v74_v0 }
  0x8d   :  { %1829 = vst [vmem:[#allocation2 + $0x338] sm:$0xff] %v1573_v15  ;;  %v533_v42 = vmul.f32 %v2075_v22, %v255_v29  ;;  %v534_v43 = vmul.f32 %v2079_v24, %v256_v30  ;;  %v535_v44 = vmul.f32 %v2083_v26, %v257_v31  ;;  %v806_v45 = vadd.f32 %v2073_v21, %v528_v32  ;;  %v1070_v29 = vld [vmem:[%s3761_s3 + $0x380] sm:$0xff]  ;;  %v1071_v31 = vld [vmem:[%s3761_s3 + $0x388] sm:$0xff] }
  0x8e   :  { %v807_v46 = vadd.f32 %v2077_v23, %v529_v34  ;;  %v808_v47 = vadd.f32 %v2081_v25, %v530_v36  ;;  %v809_v48 = vadd.f32 %v2085_v27, %v531_v37  ;;  %v810_v52 = vadd.f32 %v2073_v21, %v532_v40  ;;  %v1072_v34 = vld [vmem:[%s3761_s3 + $0x390] sm:$0xff]  ;;  %v1074_v37 = vld [vmem:[%s3761_s3 + $0x3a0] sm:$0xff] }
  0x8f   :  { %v811_v53 = vadd.f32 %v2077_v23, %v533_v42  ;;  %v812_v54 = vadd.f32 %v2081_v25, %v534_v43  ;;  %v813_v55 = vadd.f32 %v2085_v27, %v535_v44  ;;  %v1318_v56 = vadd.f32 %v1062_v33, %v806_v45  ;;  %v1075_v45 = vld [vmem:[%s3761_s3 + $0x3a8] sm:$0xff] }
  0x90   :  { %v1319_v57 = vadd.f32 %v1063_v35, %v807_v46  ;;  %v1320_v58 = vadd.f32 %v1064_v38, %v808_v47  ;;  %v1321_v59 = vadd.f32 %v1065_v39, %v809_v48  ;;  %v1322_v60 = vadd.f32 %v1066_v41, %v810_v52  ;;  %v1073_v35 = vld [vmem:[%s3761_s3 + $0x398] sm:$0xff]  ;;  %v1076_v46 = vld [vmem:[%s3761_s3 + $0x3b0] sm:$0xff] }
  0x91   :  { %v1323_v61 = vadd.f32 %v1067_v49, %v811_v53  ;;  %v1324_v62 = vadd.f32 %v1068_v50, %v812_v54  ;;  %v1325_v63 = vadd.f32 %v1069_v51, %v813_v55  ;;  %v1574_v2 = vmax.f32 %v1318_v56, 0.0  ;;  %v1077_v47 = vld [vmem:[%s3761_s3 + $0x3b8] sm:$0xff] }
  0x92   :  { %v1575_v3 = vmax.f32 %v1319_v57, 0.0  ;;  %v1576_v4 = vmax.f32 %v1320_v58, 0.0  ;;  %v1577_v5 = vmax.f32 %v1321_v59, 0.0  ;;  %v1578_v8 = vmax.f32 %v1322_v60, 0.0  ;;  %v78_v60 = vld [vmem:[%s3758_s0 + $0x1e0] sm:$0xff] }
  0x93   :  { %v1579_v9 = vmax.f32 %v1323_v61, 0.0  ;;  %v1580_v10 = vmax.f32 %v1324_v62, 0.0  ;;  %v1581_v11 = vmax.f32 %v1325_v63, 0.0  ;;  %1830 = vst [vmem:[#allocation2 + $0x340] sm:$0xff] %v1574_v2  ;;  %v259_v13 = vunpack.c.h.bf16 %v74_v0  ;;  %v79_v61 = vld [vmem:[%s3758_s0 + $0x1e8] sm:$0xff]  ;;  %v80_v2 = vld [vmem:[%s3758_s0 + $0x1f0] sm:$0xff] }
  0x94   :  { %1831 = vst [vmem:[#allocation2 + $0x348] sm:$0xff] %v1575_v3  ;;  %1832 = vst [vmem:[#allocation2 + $0x350] sm:$0xff] %v1576_v4  ;;  %v260_v14 = vunpack.c.l.bf16 %v75_v1  ;;  %v261_v15 = vunpack.c.h.bf16 %v75_v1  ;;  %v262_v16 = vunpack.c.l.bf16 %v76_v6  ;;  %v263_v17 = vunpack.c.h.bf16 %v76_v6  ;;  %v81_v3 = vld [vmem:[%s3758_s0 + $0x1f8] sm:$0xff] }
  0x95   :  { %1833 = vst [vmem:[#allocation2 + $0x358] sm:$0xff] %v1577_v5  ;;  %1834 = vst [vmem:[#allocation2 + $0x360] sm:$0xff] %v1578_v8  ;;  %v264_v18 = vunpack.c.l.bf16 %v77_v7  ;;  %v265_v19 = vunpack.c.h.bf16 %v77_v7  ;;  %v536_v28 = vmul.f32 %v2071_v20, %v258_v12  ;;  %v537_v30 = vmul.f32 %v2075_v22, %v259_v13 }
  0x96   :  { %1835 = vst [vmem:[#allocation2 + $0x368] sm:$0xff] %v1579_v9  ;;  %1836 = vst [vmem:[#allocation2 + $0x370] sm:$0xff] %v1580_v10  ;;  %v538_v32 = vmul.f32 %v2079_v24, %v260_v14  ;;  %v539_v33 = vmul.f32 %v2083_v26, %v261_v15  ;;  %v540_v36 = vmul.f32 %v2071_v20, %v262_v16  ;;  %v266_v8 = vunpack.c.l.bf16 %v78_v60 }
  0x97   :  { %1837 = vst [vmem:[#allocation2 + $0x378] sm:$0xff] %v1581_v11  ;;  %v541_v38 = vmul.f32 %v2075_v22, %v263_v17  ;;  %v542_v39 = vmul.f32 %v2079_v24, %v264_v18  ;;  %v543_v40 = vmul.f32 %v2083_v26, %v265_v19  ;;  %v814_v41 = vadd.f32 %v2073_v21, %v536_v28  ;;  %v1078_v17 = vld [vmem:[%s3761_s3 + $0x3c0] sm:$0xff]  ;;  %v1079_v19 = vld [vmem:[%s3761_s3 + $0x3c8] sm:$0xff] }
  0x98   :  { %v815_v42 = vadd.f32 %v2077_v23, %v537_v30  ;;  %v816_v43 = vadd.f32 %v2081_v25, %v538_v32  ;;  %v817_v44 = vadd.f32 %v2085_v27, %v539_v33  ;;  %v818_v48 = vadd.f32 %v2073_v21, %v540_v36  ;;  %v1080_v30 = vld [vmem:[%s3761_s3 + $0x3d0] sm:$0xff]  ;;  %v1082_v33 = vld [vmem:[%s3761_s3 + $0x3e0] sm:$0xff] }
  0x99   :  { %v819_v49 = vadd.f32 %v2077_v23, %v541_v38  ;;  %v820_v50 = vadd.f32 %v2081_v25, %v542_v39  ;;  %v821_v51 = vadd.f32 %v2085_v27, %v543_v40  ;;  %v1326_v52 = vadd.f32 %v1070_v29, %v814_v41  ;;  %v1083_v41 = vld [vmem:[%s3761_s3 + $0x3e8] sm:$0xff] }
  0x9a   :  { %v1327_v53 = vadd.f32 %v1071_v31, %v815_v42  ;;  %v1328_v54 = vadd.f32 %v1072_v34, %v816_v43  ;;  %v1329_v55 = vadd.f32 %v1073_v35, %v817_v44  ;;  %v1330_v56 = vadd.f32 %v1074_v37, %v818_v48  ;;  %v1081_v31 = vld [vmem:[%s3761_s3 + $0x3d8] sm:$0xff]  ;;  %v1084_v42 = vld [vmem:[%s3761_s3 + $0x3f0] sm:$0xff] }
  0x9b   :  { %v1331_v57 = vadd.f32 %v1075_v45, %v819_v49  ;;  %v1332_v58 = vadd.f32 %v1076_v46, %v820_v50  ;;  %v1333_v59 = vadd.f32 %v1077_v47, %v821_v51  ;;  %v1582_v62 = vmax.f32 %v1326_v52, 0.0  ;;  %v1085_v43 = vld [vmem:[%s3761_s3 + $0x3f8] sm:$0xff] }
  0x9c   :  { %v1583_v63 = vmax.f32 %v1327_v53, 0.0  ;;  %v1584_v0 = vmax.f32 %v1328_v54, 0.0  ;;  %v1585_v1 = vmax.f32 %v1329_v55, 0.0  ;;  %v1586_v4 = vmax.f32 %v1330_v56, 0.0  ;;  %v82_v56 = vld [vmem:[%s3758_s0 + $0x200] sm:$0xff] }
  0x9d   :  { %v1587_v5 = vmax.f32 %v1331_v57, 0.0  ;;  %v1588_v6 = vmax.f32 %v1332_v58, 0.0  ;;  %v1589_v7 = vmax.f32 %v1333_v59, 0.0  ;;  %1838 = vst [vmem:[#allocation2 + $0x380] sm:$0xff] %v1582_v62  ;;  %v267_v9 = vunpack.c.h.bf16 %v78_v60  ;;  %v83_v57 = vld [vmem:[%s3758_s0 + $0x208] sm:$0xff]  ;;  %v84_v62 = vld [vmem:[%s3758_s0 + $0x210] sm:$0xff] }
  0x9e   :  { %1839 = vst [vmem:[#allocation2 + $0x388] sm:$0xff] %v1583_v63  ;;  %1840 = vst [vmem:[#allocation2 + $0x390] sm:$0xff] %v1584_v0  ;;  %v268_v10 = vunpack.c.l.bf16 %v79_v61  ;;  %v269_v11 = vunpack.c.h.bf16 %v79_v61  ;;  %v270_v12 = vunpack.c.l.bf16 %v80_v2  ;;  %v271_v13 = vunpack.c.h.bf16 %v80_v2  ;;  %v85_v63 = vld [vmem:[%s3758_s0 + $0x218] sm:$0xff] }
  0x9f   :  { %1841 = vst [vmem:[#allocation2 + $0x398] sm:$0xff] %v1585_v1  ;;  %1842 = vst [vmem:[#allocation2 + $0x3a0] sm:$0xff] %v1586_v4  ;;  %v272_v14 = vunpack.c.l.bf16 %v81_v3  ;;  %v273_v15 = vunpack.c.h.bf16 %v81_v3  ;;  %v544_v16 = vmul.f32 %v2071_v20, %v266_v8  ;;  %v545_v18 = vmul.f32 %v2075_v22, %v267_v9 }
  0xa0   :  { %1843 = vst [vmem:[#allocation2 + $0x3a8] sm:$0xff] %v1587_v5  ;;  %1844 = vst [vmem:[#allocation2 + $0x3b0] sm:$0xff] %v1588_v6  ;;  %v546_v28 = vmul.f32 %v2079_v24, %v268_v10  ;;  %v547_v29 = vmul.f32 %v2083_v26, %v269_v11  ;;  %v548_v32 = vmul.f32 %v2071_v20, %v270_v12  ;;  %v274_v4 = vunpack.c.l.bf16 %v82_v56 }
  0xa1   :  { %1845 = vst [vmem:[#allocation2 + $0x3b8] sm:$0xff] %v1589_v7  ;;  %v549_v34 = vmul.f32 %v2075_v22, %v271_v13  ;;  %v550_v35 = vmul.f32 %v2079_v24, %v272_v14  ;;  %v551_v36 = vmul.f32 %v2083_v26, %v273_v15  ;;  %v822_v37 = vadd.f32 %v2073_v21, %v544_v16  ;;  %v1086_v13 = vld [vmem:[%s3761_s3 + $0x400] sm:$0xff]  ;;  %v1087_v15 = vld [vmem:[%s3761_s3 + $0x408] sm:$0xff] }
  0xa2   :  { %v823_v38 = vadd.f32 %v2077_v23, %v545_v18  ;;  %v824_v39 = vadd.f32 %v2081_v25, %v546_v28  ;;  %v825_v40 = vadd.f32 %v2085_v27, %v547_v29  ;;  %v826_v44 = vadd.f32 %v2073_v21, %v548_v32  ;;  %v1088_v18 = vld [vmem:[%s3761_s3 + $0x410] sm:$0xff]  ;;  %v1090_v29 = vld [vmem:[%s3761_s3 + $0x420] sm:$0xff] }
  0xa3   :  { %v827_v45 = vadd.f32 %v2077_v23, %v549_v34  ;;  %v828_v46 = vadd.f32 %v2081_v25, %v550_v35  ;;  %v829_v47 = vadd.f32 %v2085_v27, %v551_v36  ;;  %v1334_v48 = vadd.f32 %v1078_v17, %v822_v37  ;;  %v1091_v37 = vld [vmem:[%s3761_s3 + $0x428] sm:$0xff] }
  0xa4   :  { %v1335_v49 = vadd.f32 %v1079_v19, %v823_v38  ;;  %v1336_v50 = vadd.f32 %v1080_v30, %v824_v39  ;;  %v1337_v51 = vadd.f32 %v1081_v31, %v825_v40  ;;  %v1338_v52 = vadd.f32 %v1082_v33, %v826_v44  ;;  %v1089_v19 = vld [vmem:[%s3761_s3 + $0x418] sm:$0xff]  ;;  %v1092_v38 = vld [vmem:[%s3761_s3 + $0x430] sm:$0xff] }
  0xa5   :  { %v1339_v53 = vadd.f32 %v1083_v41, %v827_v45  ;;  %v1340_v54 = vadd.f32 %v1084_v42, %v828_v46  ;;  %v1341_v55 = vadd.f32 %v1085_v43, %v829_v47  ;;  %v1590_v58 = vmax.f32 %v1334_v48, 0.0  ;;  %v1093_v39 = vld [vmem:[%s3761_s3 + $0x438] sm:$0xff] }
  0xa6   :  { %v1591_v59 = vmax.f32 %v1335_v49, 0.0  ;;  %v1592_v60 = vmax.f32 %v1336_v50, 0.0  ;;  %v1593_v61 = vmax.f32 %v1337_v51, 0.0  ;;  %v1594_v0 = vmax.f32 %v1338_v52, 0.0  ;;  %v86_v52 = vld [vmem:[%s3758_s0 + $0x220] sm:$0xff] }
  0xa7   :  { %v1595_v1 = vmax.f32 %v1339_v53, 0.0  ;;  %v1596_v2 = vmax.f32 %v1340_v54, 0.0  ;;  %v1597_v3 = vmax.f32 %v1341_v55, 0.0  ;;  %1846 = vst [vmem:[#allocation2 + $0x3c0] sm:$0xff] %v1590_v58  ;;  %v275_v5 = vunpack.c.h.bf16 %v82_v56  ;;  %v87_v53 = vld [vmem:[%s3758_s0 + $0x228] sm:$0xff]  ;;  %v88_v58 = vld [vmem:[%s3758_s0 + $0x230] sm:$0xff] }
  0xa8   :  { %1847 = vst [vmem:[#allocation2 + $0x3c8] sm:$0xff] %v1591_v59  ;;  %1848 = vst [vmem:[#allocation2 + $0x3d0] sm:$0xff] %v1592_v60  ;;  %v276_v6 = vunpack.c.l.bf16 %v83_v57  ;;  %v277_v7 = vunpack.c.h.bf16 %v83_v57  ;;  %v278_v8 = vunpack.c.l.bf16 %v84_v62  ;;  %v279_v9 = vunpack.c.h.bf16 %v84_v62  ;;  %v89_v59 = vld [vmem:[%s3758_s0 + $0x238] sm:$0xff] }
  0xa9   :  { %1849 = vst [vmem:[#allocation2 + $0x3d8] sm:$0xff] %v1593_v61  ;;  %1850 = vst [vmem:[#allocation2 + $0x3e0] sm:$0xff] %v1594_v0  ;;  %v280_v10 = vunpack.c.l.bf16 %v85_v63  ;;  %v281_v11 = vunpack.c.h.bf16 %v85_v63  ;;  %v552_v12 = vmul.f32 %v2071_v20, %v274_v4  ;;  %v553_v14 = vmul.f32 %v2075_v22, %v275_v5 }
  0xaa   :  { %1851 = vst [vmem:[#allocation2 + $0x3e8] sm:$0xff] %v1595_v1  ;;  %1852 = vst [vmem:[#allocation2 + $0x3f0] sm:$0xff] %v1596_v2  ;;  %v554_v16 = vmul.f32 %v2079_v24, %v276_v6  ;;  %v555_v17 = vmul.f32 %v2083_v26, %v277_v7  ;;  %v556_v28 = vmul.f32 %v2071_v20, %v278_v8  ;;  %v282_v0 = vunpack.c.l.bf16 %v86_v52 }
  0xab   :  { %1853 = vst [vmem:[#allocation2 + $0x3f8] sm:$0xff] %v1597_v3  ;;  %v557_v30 = vmul.f32 %v2075_v22, %v279_v9  ;;  %v558_v31 = vmul.f32 %v2079_v24, %v280_v10  ;;  %v559_v32 = vmul.f32 %v2083_v26, %v281_v11  ;;  %v830_v33 = vadd.f32 %v2073_v21, %v552_v12  ;;  %v1094_v9 = vld [vmem:[%s3761_s3 + $0x440] sm:$0xff]  ;;  %v1095_v11 = vld [vmem:[%s3761_s3 + $0x448] sm:$0xff] }
  0xac   :  { %v831_v34 = vadd.f32 %v2077_v23, %v553_v14  ;;  %v832_v35 = vadd.f32 %v2081_v25, %v554_v16  ;;  %v833_v36 = vadd.f32 %v2085_v27, %v555_v17  ;;  %v834_v40 = vadd.f32 %v2073_v21, %v556_v28  ;;  %v1096_v14 = vld [vmem:[%s3761_s3 + $0x450] sm:$0xff]  ;;  %v1098_v17 = vld [vmem:[%s3761_s3 + $0x460] sm:$0xff] }
  0xad   :  { %v835_v41 = vadd.f32 %v2077_v23, %v557_v30  ;;  %v836_v42 = vadd.f32 %v2081_v25, %v558_v31  ;;  %v837_v43 = vadd.f32 %v2085_v27, %v559_v32  ;;  %v1342_v44 = vadd.f32 %v1086_v13, %v830_v33  ;;  %v1099_v33 = vld [vmem:[%s3761_s3 + $0x468] sm:$0xff] }
  0xae   :  { %v1343_v45 = vadd.f32 %v1087_v15, %v831_v34  ;;  %v1344_v46 = vadd.f32 %v1088_v18, %v832_v35  ;;  %v1345_v47 = vadd.f32 %v1089_v19, %v833_v36  ;;  %v1346_v48 = vadd.f32 %v1090_v29, %v834_v40  ;;  %v1097_v15 = vld [vmem:[%s3761_s3 + $0x458] sm:$0xff]  ;;  %v1100_v34 = vld [vmem:[%s3761_s3 + $0x470] sm:$0xff] }
  0xaf   :  { %v1347_v49 = vadd.f32 %v1091_v37, %v835_v41  ;;  %v1348_v50 = vadd.f32 %v1092_v38, %v836_v42  ;;  %v1349_v51 = vadd.f32 %v1093_v39, %v837_v43  ;;  %v1598_v54 = vmax.f32 %v1342_v44, 0.0  ;;  %v1101_v35 = vld [vmem:[%s3761_s3 + $0x478] sm:$0xff] }
  0xb0   :  { %v1599_v55 = vmax.f32 %v1343_v45, 0.0  ;;  %v1600_v56 = vmax.f32 %v1344_v46, 0.0  ;;  %v1601_v57 = vmax.f32 %v1345_v47, 0.0  ;;  %v1602_v60 = vmax.f32 %v1346_v48, 0.0  ;;  %v90_v48 = vld [vmem:[%s3758_s0 + $0x240] sm:$0xff] }
  0xb1   :  { %v1603_v61 = vmax.f32 %v1347_v49, 0.0  ;;  %v1604_v62 = vmax.f32 %v1348_v50, 0.0  ;;  %v1605_v63 = vmax.f32 %v1349_v51, 0.0  ;;  %1854 = vst [vmem:[#allocation2 + $0x400] sm:$0xff] %v1598_v54  ;;  %v283_v1 = vunpack.c.h.bf16 %v86_v52  ;;  %v91_v49 = vld [vmem:[%s3758_s0 + $0x248] sm:$0xff]  ;;  %v92_v54 = vld [vmem:[%s3758_s0 + $0x250] sm:$0xff] }
  0xb2   :  { %1855 = vst [vmem:[#allocation2 + $0x408] sm:$0xff] %v1599_v55  ;;  %1856 = vst [vmem:[#allocation2 + $0x410] sm:$0xff] %v1600_v56  ;;  %v284_v2 = vunpack.c.l.bf16 %v87_v53  ;;  %v285_v3 = vunpack.c.h.bf16 %v87_v53  ;;  %v286_v4 = vunpack.c.l.bf16 %v88_v58  ;;  %v287_v5 = vunpack.c.h.bf16 %v88_v58  ;;  %v93_v55 = vld [vmem:[%s3758_s0 + $0x258] sm:$0xff] }
  0xb3   :  { %1857 = vst [vmem:[#allocation2 + $0x418] sm:$0xff] %v1601_v57  ;;  %1858 = vst [vmem:[#allocation2 + $0x420] sm:$0xff] %v1602_v60  ;;  %v288_v6 = vunpack.c.l.bf16 %v89_v59  ;;  %v289_v7 = vunpack.c.h.bf16 %v89_v59  ;;  %v560_v8 = vmul.f32 %v2071_v20, %v282_v0  ;;  %v561_v10 = vmul.f32 %v2075_v22, %v283_v1 }
  0xb4   :  { %1859 = vst [vmem:[#allocation2 + $0x428] sm:$0xff] %v1603_v61  ;;  %1860 = vst [vmem:[#allocation2 + $0x430] sm:$0xff] %v1604_v62  ;;  %v562_v12 = vmul.f32 %v2079_v24, %v284_v2  ;;  %v563_v13 = vmul.f32 %v2083_v26, %v285_v3  ;;  %v564_v16 = vmul.f32 %v2071_v20, %v286_v4  ;;  %v290_v60 = vunpack.c.l.bf16 %v90_v48 }
  0xb5   :  { %1861 = vst [vmem:[#allocation2 + $0x438] sm:$0xff] %v1605_v63  ;;  %v565_v18 = vmul.f32 %v2075_v22, %v287_v5  ;;  %v566_v19 = vmul.f32 %v2079_v24, %v288_v6  ;;  %v567_v28 = vmul.f32 %v2083_v26, %v289_v7  ;;  %v838_v29 = vadd.f32 %v2073_v21, %v560_v8  ;;  %v1102_v5 = vld [vmem:[%s3761_s3 + $0x480] sm:$0xff]  ;;  %v1103_v7 = vld [vmem:[%s3761_s3 + $0x488] sm:$0xff] }
  0xb6   :  { %v839_v30 = vadd.f32 %v2077_v23, %v561_v10  ;;  %v840_v31 = vadd.f32 %v2081_v25, %v562_v12  ;;  %v841_v32 = vadd.f32 %v2085_v27, %v563_v13  ;;  %v842_v36 = vadd.f32 %v2073_v21, %v564_v16  ;;  %v1104_v10 = vld [vmem:[%s3761_s3 + $0x490] sm:$0xff]  ;;  %v1106_v13 = vld [vmem:[%s3761_s3 + $0x4a0] sm:$0xff] }
  0xb7   :  { %v843_v37 = vadd.f32 %v2077_v23, %v565_v18  ;;  %v844_v38 = vadd.f32 %v2081_v25, %v566_v19  ;;  %v845_v39 = vadd.f32 %v2085_v27, %v567_v28  ;;  %v1350_v40 = vadd.f32 %v1094_v9, %v838_v29  ;;  %v1107_v29 = vld [vmem:[%s3761_s3 + $0x4a8] sm:$0xff] }
  0xb8   :  { %v1351_v41 = vadd.f32 %v1095_v11, %v839_v30  ;;  %v1352_v42 = vadd.f32 %v1096_v14, %v840_v31  ;;  %v1353_v43 = vadd.f32 %v1097_v15, %v841_v32  ;;  %v1354_v44 = vadd.f32 %v1098_v17, %v842_v36  ;;  %v1105_v11 = vld [vmem:[%s3761_s3 + $0x498] sm:$0xff]  ;;  %v1108_v30 = vld [vmem:[%s3761_s3 + $0x4b0] sm:$0xff] }
  0xb9   :  { %v1355_v45 = vadd.f32 %v1099_v33, %v843_v37  ;;  %v1356_v46 = vadd.f32 %v1100_v34, %v844_v38  ;;  %v1357_v47 = vadd.f32 %v1101_v35, %v845_v39  ;;  %v1606_v50 = vmax.f32 %v1350_v40, 0.0  ;;  %v1109_v31 = vld [vmem:[%s3761_s3 + $0x4b8] sm:$0xff] }
  0xba   :  { %v1607_v51 = vmax.f32 %v1351_v41, 0.0  ;;  %v1608_v52 = vmax.f32 %v1352_v42, 0.0  ;;  %v1609_v53 = vmax.f32 %v1353_v43, 0.0  ;;  %v1610_v56 = vmax.f32 %v1354_v44, 0.0  ;;  %v94_v44 = vld [vmem:[%s3758_s0 + $0x260] sm:$0xff] }
  0xbb   :  { %v1611_v57 = vmax.f32 %v1355_v45, 0.0  ;;  %v1612_v58 = vmax.f32 %v1356_v46, 0.0  ;;  %v1613_v59 = vmax.f32 %v1357_v47, 0.0  ;;  %1862 = vst [vmem:[#allocation2 + $0x440] sm:$0xff] %v1606_v50  ;;  %v291_v61 = vunpack.c.h.bf16 %v90_v48  ;;  %v95_v45 = vld [vmem:[%s3758_s0 + $0x268] sm:$0xff]  ;;  %v96_v50 = vld [vmem:[%s3758_s0 + $0x270] sm:$0xff] }
  0xbc   :  { %1863 = vst [vmem:[#allocation2 + $0x448] sm:$0xff] %v1607_v51  ;;  %1864 = vst [vmem:[#allocation2 + $0x450] sm:$0xff] %v1608_v52  ;;  %v292_v62 = vunpack.c.l.bf16 %v91_v49  ;;  %v293_v63 = vunpack.c.h.bf16 %v91_v49  ;;  %v294_v0 = vunpack.c.l.bf16 %v92_v54  ;;  %v295_v1 = vunpack.c.h.bf16 %v92_v54  ;;  %v97_v51 = vld [vmem:[%s3758_s0 + $0x278] sm:$0xff] }
  0xbd   :  { %1865 = vst [vmem:[#allocation2 + $0x458] sm:$0xff] %v1609_v53  ;;  %1866 = vst [vmem:[#allocation2 + $0x460] sm:$0xff] %v1610_v56  ;;  %v296_v2 = vunpack.c.l.bf16 %v93_v55  ;;  %v297_v3 = vunpack.c.h.bf16 %v93_v55  ;;  %v568_v4 = vmul.f32 %v2071_v20, %v290_v60  ;;  %v569_v6 = vmul.f32 %v2075_v22, %v291_v61 }
  0xbe   :  { %1867 = vst [vmem:[#allocation2 + $0x468] sm:$0xff] %v1611_v57  ;;  %1868 = vst [vmem:[#allocation2 + $0x470] sm:$0xff] %v1612_v58  ;;  %v570_v8 = vmul.f32 %v2079_v24, %v292_v62  ;;  %v571_v9 = vmul.f32 %v2083_v26, %v293_v63  ;;  %v572_v12 = vmul.f32 %v2071_v20, %v294_v0  ;;  %v298_v56 = vunpack.c.l.bf16 %v94_v44 }
  0xbf   :  { %1869 = vst [vmem:[#allocation2 + $0x478] sm:$0xff] %v1613_v59  ;;  %v573_v14 = vmul.f32 %v2075_v22, %v295_v1  ;;  %v574_v15 = vmul.f32 %v2079_v24, %v296_v2  ;;  %v575_v16 = vmul.f32 %v2083_v26, %v297_v3  ;;  %v846_v17 = vadd.f32 %v2073_v21, %v568_v4  ;;  %v1110_v1 = vld [vmem:[%s3761_s3 + $0x4c0] sm:$0xff]  ;;  %v1111_v3 = vld [vmem:[%s3761_s3 + $0x4c8] sm:$0xff] }
  0xc0   :  { %v847_v18 = vadd.f32 %v2077_v23, %v569_v6  ;;  %v848_v19 = vadd.f32 %v2081_v25, %v570_v8  ;;  %v849_v28 = vadd.f32 %v2085_v27, %v571_v9  ;;  %v850_v32 = vadd.f32 %v2073_v21, %v572_v12  ;;  %v1112_v6 = vld [vmem:[%s3761_s3 + $0x4d0] sm:$0xff]  ;;  %v1114_v9 = vld [vmem:[%s3761_s3 + $0x4e0] sm:$0xff] }
  0xc1   :  { %v851_v33 = vadd.f32 %v2077_v23, %v573_v14  ;;  %v852_v34 = vadd.f32 %v2081_v25, %v574_v15  ;;  %v853_v35 = vadd.f32 %v2085_v27, %v575_v16  ;;  %v1358_v36 = vadd.f32 %v1102_v5, %v846_v17  ;;  %v1115_v17 = vld [vmem:[%s3761_s3 + $0x4e8] sm:$0xff] }
  0xc2   :  { %v1359_v37 = vadd.f32 %v1103_v7, %v847_v18  ;;  %v1360_v38 = vadd.f32 %v1104_v10, %v848_v19  ;;  %v1361_v39 = vadd.f32 %v1105_v11, %v849_v28  ;;  %v1362_v40 = vadd.f32 %v1106_v13, %v850_v32  ;;  %v1113_v7 = vld [vmem:[%s3761_s3 + $0x4d8] sm:$0xff]  ;;  %v1116_v18 = vld [vmem:[%s3761_s3 + $0x4f0] sm:$0xff] }
  0xc3   :  { %v1363_v41 = vadd.f32 %v1107_v29, %v851_v33  ;;  %v1364_v42 = vadd.f32 %v1108_v30, %v852_v34  ;;  %v1365_v43 = vadd.f32 %v1109_v31, %v853_v35  ;;  %v1614_v46 = vmax.f32 %v1358_v36, 0.0  ;;  %v1117_v19 = vld [vmem:[%s3761_s3 + $0x4f8] sm:$0xff] }
  0xc4   :  { %v1615_v47 = vmax.f32 %v1359_v37, 0.0  ;;  %v1616_v48 = vmax.f32 %v1360_v38, 0.0  ;;  %v1617_v49 = vmax.f32 %v1361_v39, 0.0  ;;  %v1618_v52 = vmax.f32 %v1362_v40, 0.0  ;;  %v98_v40 = vld [vmem:[%s3758_s0 + $0x280] sm:$0xff] }
  0xc5   :  { %v1619_v53 = vmax.f32 %v1363_v41, 0.0  ;;  %v1620_v54 = vmax.f32 %v1364_v42, 0.0  ;;  %v1621_v55 = vmax.f32 %v1365_v43, 0.0  ;;  %1870 = vst [vmem:[#allocation2 + $0x480] sm:$0xff] %v1614_v46  ;;  %v299_v57 = vunpack.c.h.bf16 %v94_v44  ;;  %v99_v41 = vld [vmem:[%s3758_s0 + $0x288] sm:$0xff]  ;;  %v100_v46 = vld [vmem:[%s3758_s0 + $0x290] sm:$0xff] }
  0xc6   :  { %1871 = vst [vmem:[#allocation2 + $0x488] sm:$0xff] %v1615_v47  ;;  %1872 = vst [vmem:[#allocation2 + $0x490] sm:$0xff] %v1616_v48  ;;  %v300_v58 = vunpack.c.l.bf16 %v95_v45  ;;  %v301_v59 = vunpack.c.h.bf16 %v95_v45  ;;  %v302_v60 = vunpack.c.l.bf16 %v96_v50  ;;  %v303_v61 = vunpack.c.h.bf16 %v96_v50  ;;  %v101_v47 = vld [vmem:[%s3758_s0 + $0x298] sm:$0xff] }
  0xc7   :  { %1873 = vst [vmem:[#allocation2 + $0x498] sm:$0xff] %v1617_v49  ;;  %1874 = vst [vmem:[#allocation2 + $0x4a0] sm:$0xff] %v1618_v52  ;;  %v304_v62 = vunpack.c.l.bf16 %v97_v51  ;;  %v305_v63 = vunpack.c.h.bf16 %v97_v51  ;;  %v576_v0 = vmul.f32 %v2071_v20, %v298_v56  ;;  %v577_v2 = vmul.f32 %v2075_v22, %v299_v57 }
  0xc8   :  { %1875 = vst [vmem:[#allocation2 + $0x4a8] sm:$0xff] %v1619_v53  ;;  %1876 = vst [vmem:[#allocation2 + $0x4b0] sm:$0xff] %v1620_v54  ;;  %v578_v4 = vmul.f32 %v2079_v24, %v300_v58  ;;  %v579_v5 = vmul.f32 %v2083_v26, %v301_v59  ;;  %v580_v8 = vmul.f32 %v2071_v20, %v302_v60  ;;  %v306_v52 = vunpack.c.l.bf16 %v98_v40 }
  0xc9   :  { %1877 = vst [vmem:[#allocation2 + $0x4b8] sm:$0xff] %v1621_v55  ;;  %v581_v10 = vmul.f32 %v2075_v22, %v303_v61  ;;  %v582_v11 = vmul.f32 %v2079_v24, %v304_v62  ;;  %v583_v12 = vmul.f32 %v2083_v26, %v305_v63  ;;  %v854_v13 = vadd.f32 %v2073_v21, %v576_v0  ;;  %v1118_v61 = vld [vmem:[%s3761_s3 + $0x500] sm:$0xff]  ;;  %v1119_v63 = vld [vmem:[%s3761_s3 + $0x508] sm:$0xff] }
  0xca   :  { %v855_v14 = vadd.f32 %v2077_v23, %v577_v2  ;;  %v856_v15 = vadd.f32 %v2081_v25, %v578_v4  ;;  %v857_v16 = vadd.f32 %v2085_v27, %v579_v5  ;;  %v858_v28 = vadd.f32 %v2073_v21, %v580_v8  ;;  %v1120_v2 = vld [vmem:[%s3761_s3 + $0x510] sm:$0xff]  ;;  %v1122_v5 = vld [vmem:[%s3761_s3 + $0x520] sm:$0xff] }
  0xcb   :  { %v859_v29 = vadd.f32 %v2077_v23, %v581_v10  ;;  %v860_v30 = vadd.f32 %v2081_v25, %v582_v11  ;;  %v861_v31 = vadd.f32 %v2085_v27, %v583_v12  ;;  %v1366_v32 = vadd.f32 %v1110_v1, %v854_v13  ;;  %v1123_v13 = vld [vmem:[%s3761_s3 + $0x528] sm:$0xff] }
  0xcc   :  { %v1367_v33 = vadd.f32 %v1111_v3, %v855_v14  ;;  %v1368_v34 = vadd.f32 %v1112_v6, %v856_v15  ;;  %v1369_v35 = vadd.f32 %v1113_v7, %v857_v16  ;;  %v1370_v36 = vadd.f32 %v1114_v9, %v858_v28  ;;  %v1121_v3 = vld [vmem:[%s3761_s3 + $0x518] sm:$0xff]  ;;  %v1124_v14 = vld [vmem:[%s3761_s3 + $0x530] sm:$0xff] }
  0xcd   :  { %v1371_v37 = vadd.f32 %v1115_v17, %v859_v29  ;;  %v1372_v38 = vadd.f32 %v1116_v18, %v860_v30  ;;  %v1373_v39 = vadd.f32 %v1117_v19, %v861_v31  ;;  %v1622_v42 = vmax.f32 %v1366_v32, 0.0  ;;  %v1125_v15 = vld [vmem:[%s3761_s3 + $0x538] sm:$0xff] }
  0xce   :  { %v1623_v43 = vmax.f32 %v1367_v33, 0.0  ;;  %v1624_v44 = vmax.f32 %v1368_v34, 0.0  ;;  %v1625_v45 = vmax.f32 %v1369_v35, 0.0  ;;  %v1626_v48 = vmax.f32 %v1370_v36, 0.0  ;;  %v102_v36 = vld [vmem:[%s3758_s0 + $0x2a0] sm:$0xff] }
  0xcf   :  { %v1627_v49 = vmax.f32 %v1371_v37, 0.0  ;;  %v1628_v50 = vmax.f32 %v1372_v38, 0.0  ;;  %v1629_v51 = vmax.f32 %v1373_v39, 0.0  ;;  %1878 = vst [vmem:[#allocation2 + $0x4c0] sm:$0xff] %v1622_v42  ;;  %v307_v53 = vunpack.c.h.bf16 %v98_v40  ;;  %v103_v37 = vld [vmem:[%s3758_s0 + $0x2a8] sm:$0xff]  ;;  %v104_v42 = vld [vmem:[%s3758_s0 + $0x2b0] sm:$0xff] }
  0xd0   :  { %1879 = vst [vmem:[#allocation2 + $0x4c8] sm:$0xff] %v1623_v43  ;;  %1880 = vst [vmem:[#allocation2 + $0x4d0] sm:$0xff] %v1624_v44  ;;  %v308_v54 = vunpack.c.l.bf16 %v99_v41  ;;  %v309_v55 = vunpack.c.h.bf16 %v99_v41  ;;  %v310_v56 = vunpack.c.l.bf16 %v100_v46  ;;  %v311_v57 = vunpack.c.h.bf16 %v100_v46  ;;  %v105_v43 = vld [vmem:[%s3758_s0 + $0x2b8] sm:$0xff] }
  0xd1   :  { %1881 = vst [vmem:[#allocation2 + $0x4d8] sm:$0xff] %v1625_v45  ;;  %1882 = vst [vmem:[#allocation2 + $0x4e0] sm:$0xff] %v1626_v48  ;;  %v312_v58 = vunpack.c.l.bf16 %v101_v47  ;;  %v313_v59 = vunpack.c.h.bf16 %v101_v47  ;;  %v584_v60 = vmul.f32 %v2071_v20, %v306_v52  ;;  %v585_v62 = vmul.f32 %v2075_v22, %v307_v53 }
  0xd2   :  { %1883 = vst [vmem:[#allocation2 + $0x4e8] sm:$0xff] %v1627_v49  ;;  %1884 = vst [vmem:[#allocation2 + $0x4f0] sm:$0xff] %v1628_v50  ;;  %v586_v0 = vmul.f32 %v2079_v24, %v308_v54  ;;  %v587_v1 = vmul.f32 %v2083_v26, %v309_v55  ;;  %v588_v4 = vmul.f32 %v2071_v20, %v310_v56  ;;  %v314_v48 = vunpack.c.l.bf16 %v102_v36 }
  0xd3   :  { %1885 = vst [vmem:[#allocation2 + $0x4f8] sm:$0xff] %v1629_v51  ;;  %v589_v6 = vmul.f32 %v2075_v22, %v311_v57  ;;  %v590_v7 = vmul.f32 %v2079_v24, %v312_v58  ;;  %v591_v8 = vmul.f32 %v2083_v26, %v313_v59  ;;  %v862_v9 = vadd.f32 %v2073_v21, %v584_v60  ;;  %v1126_v57 = vld [vmem:[%s3761_s3 + $0x540] sm:$0xff]  ;;  %v1127_v59 = vld [vmem:[%s3761_s3 + $0x548] sm:$0xff] }
  0xd4   :  { %v863_v10 = vadd.f32 %v2077_v23, %v585_v62  ;;  %v864_v11 = vadd.f32 %v2081_v25, %v586_v0  ;;  %v865_v12 = vadd.f32 %v2085_v27, %v587_v1  ;;  %v866_v16 = vadd.f32 %v2073_v21, %v588_v4  ;;  %v1128_v62 = vld [vmem:[%s3761_s3 + $0x550] sm:$0xff]  ;;  %v1130_v1 = vld [vmem:[%s3761_s3 + $0x560] sm:$0xff] }
  0xd5   :  { %v867_v17 = vadd.f32 %v2077_v23, %v589_v6  ;;  %v868_v18 = vadd.f32 %v2081_v25, %v590_v7  ;;  %v869_v19 = vadd.f32 %v2085_v27, %v591_v8  ;;  %v1374_v28 = vadd.f32 %v1118_v61, %v862_v9  ;;  %v1131_v9 = vld [vmem:[%s3761_s3 + $0x568] sm:$0xff] }
  0xd6   :  { %v1375_v29 = vadd.f32 %v1119_v63, %v863_v10  ;;  %v1376_v30 = vadd.f32 %v1120_v2, %v864_v11  ;;  %v1377_v31 = vadd.f32 %v1121_v3, %v865_v12  ;;  %v1378_v32 = vadd.f32 %v1122_v5, %v866_v16  ;;  %v1129_v63 = vld [vmem:[%s3761_s3 + $0x558] sm:$0xff]  ;;  %v1132_v10 = vld [vmem:[%s3761_s3 + $0x570] sm:$0xff] }
  0xd7   :  { %v1379_v33 = vadd.f32 %v1123_v13, %v867_v17  ;;  %v1380_v34 = vadd.f32 %v1124_v14, %v868_v18  ;;  %v1381_v35 = vadd.f32 %v1125_v15, %v869_v19  ;;  %v1630_v38 = vmax.f32 %v1374_v28, 0.0  ;;  %v1133_v11 = vld [vmem:[%s3761_s3 + $0x578] sm:$0xff] }
  0xd8   :  { %v1631_v39 = vmax.f32 %v1375_v29, 0.0  ;;  %v1632_v40 = vmax.f32 %v1376_v30, 0.0  ;;  %v1633_v41 = vmax.f32 %v1377_v31, 0.0  ;;  %v1634_v44 = vmax.f32 %v1378_v32, 0.0  ;;  %v106_v32 = vld [vmem:[%s3758_s0 + $0x2c0] sm:$0xff] }
  0xd9   :  { %v1635_v45 = vmax.f32 %v1379_v33, 0.0  ;;  %v1636_v46 = vmax.f32 %v1380_v34, 0.0  ;;  %v1637_v47 = vmax.f32 %v1381_v35, 0.0  ;;  %1886 = vst [vmem:[#allocation2 + $0x500] sm:$0xff] %v1630_v38  ;;  %v315_v49 = vunpack.c.h.bf16 %v102_v36  ;;  %v107_v33 = vld [vmem:[%s3758_s0 + $0x2c8] sm:$0xff]  ;;  %v108_v38 = vld [vmem:[%s3758_s0 + $0x2d0] sm:$0xff] }
  0xda   :  { %1887 = vst [vmem:[#allocation2 + $0x508] sm:$0xff] %v1631_v39  ;;  %1888 = vst [vmem:[#allocation2 + $0x510] sm:$0xff] %v1632_v40  ;;  %v316_v50 = vunpack.c.l.bf16 %v103_v37  ;;  %v317_v51 = vunpack.c.h.bf16 %v103_v37  ;;  %v318_v52 = vunpack.c.l.bf16 %v104_v42  ;;  %v319_v53 = vunpack.c.h.bf16 %v104_v42  ;;  %v109_v39 = vld [vmem:[%s3758_s0 + $0x2d8] sm:$0xff] }
  0xdb   :  { %1889 = vst [vmem:[#allocation2 + $0x518] sm:$0xff] %v1633_v41  ;;  %1890 = vst [vmem:[#allocation2 + $0x520] sm:$0xff] %v1634_v44  ;;  %v320_v54 = vunpack.c.l.bf16 %v105_v43  ;;  %v321_v55 = vunpack.c.h.bf16 %v105_v43  ;;  %v592_v56 = vmul.f32 %v2071_v20, %v314_v48  ;;  %v593_v58 = vmul.f32 %v2075_v22, %v315_v49 }
  0xdc   :  { %1891 = vst [vmem:[#allocation2 + $0x528] sm:$0xff] %v1635_v45  ;;  %1892 = vst [vmem:[#allocation2 + $0x530] sm:$0xff] %v1636_v46  ;;  %v594_v60 = vmul.f32 %v2079_v24, %v316_v50  ;;  %v595_v61 = vmul.f32 %v2083_v26, %v317_v51  ;;  %v596_v0 = vmul.f32 %v2071_v20, %v318_v52  ;;  %v322_v44 = vunpack.c.l.bf16 %v106_v32 }
  0xdd   :  { %1893 = vst [vmem:[#allocation2 + $0x538] sm:$0xff] %v1637_v47  ;;  %v597_v2 = vmul.f32 %v2075_v22, %v319_v53  ;;  %v598_v3 = vmul.f32 %v2079_v24, %v320_v54  ;;  %v599_v4 = vmul.f32 %v2083_v26, %v321_v55  ;;  %v870_v5 = vadd.f32 %v2073_v21, %v592_v56  ;;  %v1134_v53 = vld [vmem:[%s3761_s3 + $0x580] sm:$0xff]  ;;  %v1135_v55 = vld [vmem:[%s3761_s3 + $0x588] sm:$0xff] }
  0xde   :  { %v871_v6 = vadd.f32 %v2077_v23, %v593_v58  ;;  %v872_v7 = vadd.f32 %v2081_v25, %v594_v60  ;;  %v873_v8 = vadd.f32 %v2085_v27, %v595_v61  ;;  %v874_v12 = vadd.f32 %v2073_v21, %v596_v0  ;;  %v1136_v58 = vld [vmem:[%s3761_s3 + $0x590] sm:$0xff]  ;;  %v1138_v61 = vld [vmem:[%s3761_s3 + $0x5a0] sm:$0xff] }
  0xdf   :  { %v875_v13 = vadd.f32 %v2077_v23, %v597_v2  ;;  %v876_v14 = vadd.f32 %v2081_v25, %v598_v3  ;;  %v877_v15 = vadd.f32 %v2085_v27, %v599_v4  ;;  %v1382_v16 = vadd.f32 %v1126_v57, %v870_v5  ;;  %v1139_v5 = vld [vmem:[%s3761_s3 + $0x5a8] sm:$0xff] }
  0xe0   :  { %v1383_v17 = vadd.f32 %v1127_v59, %v871_v6  ;;  %v1384_v18 = vadd.f32 %v1128_v62, %v872_v7  ;;  %v1385_v19 = vadd.f32 %v1129_v63, %v873_v8  ;;  %v1386_v28 = vadd.f32 %v1130_v1, %v874_v12  ;;  %v1137_v59 = vld [vmem:[%s3761_s3 + $0x598] sm:$0xff]  ;;  %v1140_v6 = vld [vmem:[%s3761_s3 + $0x5b0] sm:$0xff] }
  0xe1   :  { %v1387_v29 = vadd.f32 %v1131_v9, %v875_v13  ;;  %v1388_v30 = vadd.f32 %v1132_v10, %v876_v14  ;;  %v1389_v31 = vadd.f32 %v1133_v11, %v877_v15  ;;  %v1638_v34 = vmax.f32 %v1382_v16, 0.0  ;;  %v1141_v7 = vld [vmem:[%s3761_s3 + $0x5b8] sm:$0xff] }
  0xe2   :  { %v1639_v35 = vmax.f32 %v1383_v17, 0.0  ;;  %v1640_v36 = vmax.f32 %v1384_v18, 0.0  ;;  %v1641_v37 = vmax.f32 %v1385_v19, 0.0  ;;  %v1642_v40 = vmax.f32 %v1386_v28, 0.0  ;;  %v110_v28 = vld [vmem:[%s3758_s0 + $0x2e0] sm:$0xff] }
  0xe3   :  { %v1643_v41 = vmax.f32 %v1387_v29, 0.0  ;;  %v1644_v42 = vmax.f32 %v1388_v30, 0.0  ;;  %v1645_v43 = vmax.f32 %v1389_v31, 0.0  ;;  %1894 = vst [vmem:[#allocation2 + $0x540] sm:$0xff] %v1638_v34  ;;  %v323_v45 = vunpack.c.h.bf16 %v106_v32  ;;  %v111_v29 = vld [vmem:[%s3758_s0 + $0x2e8] sm:$0xff]  ;;  %v112_v34 = vld [vmem:[%s3758_s0 + $0x2f0] sm:$0xff] }
  0xe4   :  { %1895 = vst [vmem:[#allocation2 + $0x548] sm:$0xff] %v1639_v35  ;;  %1896 = vst [vmem:[#allocation2 + $0x550] sm:$0xff] %v1640_v36  ;;  %v324_v46 = vunpack.c.l.bf16 %v107_v33  ;;  %v325_v47 = vunpack.c.h.bf16 %v107_v33  ;;  %v326_v48 = vunpack.c.l.bf16 %v108_v38  ;;  %v327_v49 = vunpack.c.h.bf16 %v108_v38  ;;  %v113_v35 = vld [vmem:[%s3758_s0 + $0x2f8] sm:$0xff] }
  0xe5   :  { %1897 = vst [vmem:[#allocation2 + $0x558] sm:$0xff] %v1641_v37  ;;  %1898 = vst [vmem:[#allocation2 + $0x560] sm:$0xff] %v1642_v40  ;;  %v328_v50 = vunpack.c.l.bf16 %v109_v39  ;;  %v329_v51 = vunpack.c.h.bf16 %v109_v39  ;;  %v600_v52 = vmul.f32 %v2071_v20, %v322_v44  ;;  %v601_v54 = vmul.f32 %v2075_v22, %v323_v45 }
  0xe6   :  { %1899 = vst [vmem:[#allocation2 + $0x568] sm:$0xff] %v1643_v41  ;;  %1900 = vst [vmem:[#allocation2 + $0x570] sm:$0xff] %v1644_v42  ;;  %v602_v56 = vmul.f32 %v2079_v24, %v324_v46  ;;  %v603_v57 = vmul.f32 %v2083_v26, %v325_v47  ;;  %v604_v60 = vmul.f32 %v2071_v20, %v326_v48  ;;  %v330_v40 = vunpack.c.l.bf16 %v110_v28 }
  0xe7   :  { %1901 = vst [vmem:[#allocation2 + $0x578] sm:$0xff] %v1645_v43  ;;  %v605_v62 = vmul.f32 %v2075_v22, %v327_v49  ;;  %v606_v63 = vmul.f32 %v2079_v24, %v328_v50  ;;  %v607_v0 = vmul.f32 %v2083_v26, %v329_v51  ;;  %v878_v1 = vadd.f32 %v2073_v21, %v600_v52  ;;  %v1142_v49 = vld [vmem:[%s3761_s3 + $0x5c0] sm:$0xff]  ;;  %v1143_v51 = vld [vmem:[%s3761_s3 + $0x5c8] sm:$0xff] }
  0xe8   :  { %v879_v2 = vadd.f32 %v2077_v23, %v601_v54  ;;  %v880_v3 = vadd.f32 %v2081_v25, %v602_v56  ;;  %v881_v4 = vadd.f32 %v2085_v27, %v603_v57  ;;  %v882_v8 = vadd.f32 %v2073_v21, %v604_v60  ;;  %v1144_v54 = vld [vmem:[%s3761_s3 + $0x5d0] sm:$0xff]  ;;  %v1146_v57 = vld [vmem:[%s3761_s3 + $0x5e0] sm:$0xff] }
  0xe9   :  { %v883_v9 = vadd.f32 %v2077_v23, %v605_v62  ;;  %v884_v10 = vadd.f32 %v2081_v25, %v606_v63  ;;  %v885_v11 = vadd.f32 %v2085_v27, %v607_v0  ;;  %v1390_v12 = vadd.f32 %v1134_v53, %v878_v1  ;;  %v1147_v1 = vld [vmem:[%s3761_s3 + $0x5e8] sm:$0xff] }
  0xea   :  { %v1391_v13 = vadd.f32 %v1135_v55, %v879_v2  ;;  %v1392_v14 = vadd.f32 %v1136_v58, %v880_v3  ;;  %v1393_v15 = vadd.f32 %v1137_v59, %v881_v4  ;;  %v1394_v16 = vadd.f32 %v1138_v61, %v882_v8  ;;  %v1145_v55 = vld [vmem:[%s3761_s3 + $0x5d8] sm:$0xff]  ;;  %v1148_v2 = vld [vmem:[%s3761_s3 + $0x5f0] sm:$0xff] }
  0xeb   :  { %v1395_v17 = vadd.f32 %v1139_v5, %v883_v9  ;;  %v1396_v18 = vadd.f32 %v1140_v6, %v884_v10  ;;  %v1397_v19 = vadd.f32 %v1141_v7, %v885_v11  ;;  %v1646_v30 = vmax.f32 %v1390_v12, 0.0  ;;  %v1149_v3 = vld [vmem:[%s3761_s3 + $0x5f8] sm:$0xff] }
  0xec   :  { %v1647_v31 = vmax.f32 %v1391_v13, 0.0  ;;  %v1648_v32 = vmax.f32 %v1392_v14, 0.0  ;;  %v1649_v33 = vmax.f32 %v1393_v15, 0.0  ;;  %v1650_v36 = vmax.f32 %v1394_v16, 0.0  ;;  %v114_v16 = vld [vmem:[%s3758_s0 + $0x300] sm:$0xff] }
  0xed   :  { %v1651_v37 = vmax.f32 %v1395_v17, 0.0  ;;  %v1652_v38 = vmax.f32 %v1396_v18, 0.0  ;;  %v1653_v39 = vmax.f32 %v1397_v19, 0.0  ;;  %1902 = vst [vmem:[#allocation2 + $0x580] sm:$0xff] %v1646_v30  ;;  %v331_v41 = vunpack.c.h.bf16 %v110_v28  ;;  %v115_v17 = vld [vmem:[%s3758_s0 + $0x308] sm:$0xff]  ;;  %v116_v30 = vld [vmem:[%s3758_s0 + $0x310] sm:$0xff] }
  0xee   :  { %1903 = vst [vmem:[#allocation2 + $0x588] sm:$0xff] %v1647_v31  ;;  %1904 = vst [vmem:[#allocation2 + $0x590] sm:$0xff] %v1648_v32  ;;  %v332_v42 = vunpack.c.l.bf16 %v111_v29  ;;  %v333_v43 = vunpack.c.h.bf16 %v111_v29  ;;  %v334_v44 = vunpack.c.l.bf16 %v112_v34  ;;  %v335_v45 = vunpack.c.h.bf16 %v112_v34  ;;  %v117_v31 = vld [vmem:[%s3758_s0 + $0x318] sm:$0xff] }
  0xef   :  { %1905 = vst [vmem:[#allocation2 + $0x598] sm:$0xff] %v1649_v33  ;;  %1906 = vst [vmem:[#allocation2 + $0x5a0] sm:$0xff] %v1650_v36  ;;  %v336_v46 = vunpack.c.l.bf16 %v113_v35  ;;  %v337_v47 = vunpack.c.h.bf16 %v113_v35  ;;  %v608_v48 = vmul.f32 %v2071_v20, %v330_v40  ;;  %v609_v50 = vmul.f32 %v2075_v22, %v331_v41 }
  0xf0   :  { %1907 = vst [vmem:[#allocation2 + $0x5a8] sm:$0xff] %v1651_v37  ;;  %1908 = vst [vmem:[#allocation2 + $0x5b0] sm:$0xff] %v1652_v38  ;;  %v610_v52 = vmul.f32 %v2079_v24, %v332_v42  ;;  %v611_v53 = vmul.f32 %v2083_v26, %v333_v43  ;;  %v612_v56 = vmul.f32 %v2071_v20, %v334_v44  ;;  %v338_v36 = vunpack.c.l.bf16 %v114_v16 }
  0xf1   :  { %1909 = vst [vmem:[#allocation2 + $0x5b8] sm:$0xff] %v1653_v39  ;;  %v613_v58 = vmul.f32 %v2075_v22, %v335_v45  ;;  %v614_v59 = vmul.f32 %v2079_v24, %v336_v46  ;;  %v615_v60 = vmul.f32 %v2083_v26, %v337_v47  ;;  %v886_v61 = vadd.f32 %v2073_v21, %v608_v48  ;;  %v1150_v45 = vld [vmem:[%s3761_s3 + $0x600] sm:$0xff]  ;;  %v1151_v47 = vld [vmem:[%s3761_s3 + $0x608] sm:$0xff] }
  0xf2   :  { %v887_v62 = vadd.f32 %v2077_v23, %v609_v50  ;;  %v888_v63 = vadd.f32 %v2081_v25, %v610_v52  ;;  %v889_v0 = vadd.f32 %v2085_v27, %v611_v53  ;;  %v890_v4 = vadd.f32 %v2073_v21, %v612_v56  ;;  %v1152_v50 = vld [vmem:[%s3761_s3 + $0x610] sm:$0xff]  ;;  %v1154_v53 = vld [vmem:[%s3761_s3 + $0x620] sm:$0xff] }
  0xf3   :  { %v891_v5 = vadd.f32 %v2077_v23, %v613_v58  ;;  %v892_v6 = vadd.f32 %v2081_v25, %v614_v59  ;;  %v893_v7 = vadd.f32 %v2085_v27, %v615_v60  ;;  %v1398_v8 = vadd.f32 %v1142_v49, %v886_v61  ;;  %v1155_v61 = vld [vmem:[%s3761_s3 + $0x628] sm:$0xff] }
  0xf4   :  { %v1399_v9 = vadd.f32 %v1143_v51, %v887_v62  ;;  %v1400_v10 = vadd.f32 %v1144_v54, %v888_v63  ;;  %v1401_v11 = vadd.f32 %v1145_v55, %v889_v0  ;;  %v1402_v12 = vadd.f32 %v1146_v57, %v890_v4  ;;  %v1153_v51 = vld [vmem:[%s3761_s3 + $0x618] sm:$0xff]  ;;  %v1156_v62 = vld [vmem:[%s3761_s3 + $0x630] sm:$0xff] }
  0xf5   :  { %v1403_v13 = vadd.f32 %v1147_v1, %v891_v5  ;;  %v1404_v14 = vadd.f32 %v1148_v2, %v892_v6  ;;  %v1405_v15 = vadd.f32 %v1149_v3, %v893_v7  ;;  %v1654_v18 = vmax.f32 %v1398_v8, 0.0  ;;  %v1157_v63 = vld [vmem:[%s3761_s3 + $0x638] sm:$0xff] }
  0xf6   :  { %v1655_v19 = vmax.f32 %v1399_v9, 0.0  ;;  %v1656_v28 = vmax.f32 %v1400_v10, 0.0  ;;  %v1657_v29 = vmax.f32 %v1401_v11, 0.0  ;;  %v1658_v32 = vmax.f32 %v1402_v12, 0.0  ;;  %v118_v12 = vld [vmem:[%s3758_s0 + $0x320] sm:$0xff] }
  0xf7   :  { %v1659_v33 = vmax.f32 %v1403_v13, 0.0  ;;  %v1660_v34 = vmax.f32 %v1404_v14, 0.0  ;;  %v1661_v35 = vmax.f32 %v1405_v15, 0.0  ;;  %1910 = vst [vmem:[#allocation2 + $0x5c0] sm:$0xff] %v1654_v18  ;;  %v339_v37 = vunpack.c.h.bf16 %v114_v16  ;;  %v119_v13 = vld [vmem:[%s3758_s0 + $0x328] sm:$0xff]  ;;  %v120_v18 = vld [vmem:[%s3758_s0 + $0x330] sm:$0xff] }
  0xf8   :  { %1911 = vst [vmem:[#allocation2 + $0x5c8] sm:$0xff] %v1655_v19  ;;  %1912 = vst [vmem:[#allocation2 + $0x5d0] sm:$0xff] %v1656_v28  ;;  %v340_v38 = vunpack.c.l.bf16 %v115_v17  ;;  %v341_v39 = vunpack.c.h.bf16 %v115_v17  ;;  %v342_v40 = vunpack.c.l.bf16 %v116_v30  ;;  %v343_v41 = vunpack.c.h.bf16 %v116_v30  ;;  %v121_v19 = vld [vmem:[%s3758_s0 + $0x338] sm:$0xff] }
  0xf9   :  { %1913 = vst [vmem:[#allocation2 + $0x5d8] sm:$0xff] %v1657_v29  ;;  %1914 = vst [vmem:[#allocation2 + $0x5e0] sm:$0xff] %v1658_v32  ;;  %v344_v42 = vunpack.c.l.bf16 %v117_v31  ;;  %v345_v43 = vunpack.c.h.bf16 %v117_v31  ;;  %v616_v44 = vmul.f32 %v2071_v20, %v338_v36  ;;  %v617_v46 = vmul.f32 %v2075_v22, %v339_v37 }
  0xfa   :  { %1915 = vst [vmem:[#allocation2 + $0x5e8] sm:$0xff] %v1659_v33  ;;  %1916 = vst [vmem:[#allocation2 + $0x5f0] sm:$0xff] %v1660_v34  ;;  %v618_v48 = vmul.f32 %v2079_v24, %v340_v38  ;;  %v619_v49 = vmul.f32 %v2083_v26, %v341_v39  ;;  %v620_v52 = vmul.f32 %v2071_v20, %v342_v40  ;;  %v346_v32 = vunpack.c.l.bf16 %v118_v12 }
  0xfb   :  { %1917 = vst [vmem:[#allocation2 + $0x5f8] sm:$0xff] %v1661_v35  ;;  %v621_v54 = vmul.f32 %v2075_v22, %v343_v41  ;;  %v622_v55 = vmul.f32 %v2079_v24, %v344_v42  ;;  %v623_v56 = vmul.f32 %v2083_v26, %v345_v43  ;;  %v894_v57 = vadd.f32 %v2073_v21, %v616_v44  ;;  %v1158_v41 = vld [vmem:[%s3761_s3 + $0x640] sm:$0xff]  ;;  %v1159_v43 = vld [vmem:[%s3761_s3 + $0x648] sm:$0xff] }
  0xfc   :  { %v895_v58 = vadd.f32 %v2077_v23, %v617_v46  ;;  %v896_v59 = vadd.f32 %v2081_v25, %v618_v48  ;;  %v897_v60 = vadd.f32 %v2085_v27, %v619_v49  ;;  %v898_v0 = vadd.f32 %v2073_v21, %v620_v52  ;;  %v1160_v46 = vld [vmem:[%s3761_s3 + $0x650] sm:$0xff]  ;;  %v1162_v49 = vld [vmem:[%s3761_s3 + $0x660] sm:$0xff] }
  0xfd   :  { %v899_v1 = vadd.f32 %v2077_v23, %v621_v54  ;;  %v900_v2 = vadd.f32 %v2081_v25, %v622_v55  ;;  %v901_v3 = vadd.f32 %v2085_v27, %v623_v56  ;;  %v1406_v4 = vadd.f32 %v1150_v45, %v894_v57  ;;  %v1163_v57 = vld [vmem:[%s3761_s3 + $0x668] sm:$0xff] }
  0xfe   :  { %v1407_v5 = vadd.f32 %v1151_v47, %v895_v58  ;;  %v1408_v6 = vadd.f32 %v1152_v50, %v896_v59  ;;  %v1409_v7 = vadd.f32 %v1153_v51, %v897_v60  ;;  %v1410_v8 = vadd.f32 %v1154_v53, %v898_v0  ;;  %v1161_v47 = vld [vmem:[%s3761_s3 + $0x658] sm:$0xff]  ;;  %v1164_v58 = vld [vmem:[%s3761_s3 + $0x670] sm:$0xff] }
  0xff   :  { %v1411_v9 = vadd.f32 %v1155_v61, %v899_v1  ;;  %v1412_v10 = vadd.f32 %v1156_v62, %v900_v2  ;;  %v1413_v11 = vadd.f32 %v1157_v63, %v901_v3  ;;  %v1662_v14 = vmax.f32 %v1406_v4, 0.0  ;;  %v1165_v59 = vld [vmem:[%s3761_s3 + $0x678] sm:$0xff] }
 0x100   :  { %v1663_v15 = vmax.f32 %v1407_v5, 0.0  ;;  %v1664_v16 = vmax.f32 %v1408_v6, 0.0  ;;  %v1665_v17 = vmax.f32 %v1409_v7, 0.0  ;;  %v1666_v28 = vmax.f32 %v1410_v8, 0.0  ;;  %v122_v8 = vld [vmem:[%s3758_s0 + $0x340] sm:$0xff] }
 0x101   :  { %v1667_v29 = vmax.f32 %v1411_v9, 0.0  ;;  %v1668_v30 = vmax.f32 %v1412_v10, 0.0  ;;  %v1669_v31 = vmax.f32 %v1413_v11, 0.0  ;;  %1918 = vst [vmem:[#allocation2 + $0x600] sm:$0xff] %v1662_v14  ;;  %v347_v33 = vunpack.c.h.bf16 %v118_v12  ;;  %v123_v9 = vld [vmem:[%s3758_s0 + $0x348] sm:$0xff]  ;;  %v124_v14 = vld [vmem:[%s3758_s0 + $0x350] sm:$0xff] }
 0x102   :  { %1919 = vst [vmem:[#allocation2 + $0x608] sm:$0xff] %v1663_v15  ;;  %1920 = vst [vmem:[#allocation2 + $0x610] sm:$0xff] %v1664_v16  ;;  %v348_v34 = vunpack.c.l.bf16 %v119_v13  ;;  %v349_v35 = vunpack.c.h.bf16 %v119_v13  ;;  %v350_v36 = vunpack.c.l.bf16 %v120_v18  ;;  %v351_v37 = vunpack.c.h.bf16 %v120_v18  ;;  %v125_v15 = vld [vmem:[%s3758_s0 + $0x358] sm:$0xff] }
 0x103   :  { %1921 = vst [vmem:[#allocation2 + $0x618] sm:$0xff] %v1665_v17  ;;  %1922 = vst [vmem:[#allocation2 + $0x620] sm:$0xff] %v1666_v28  ;;  %v352_v38 = vunpack.c.l.bf16 %v121_v19  ;;  %v353_v39 = vunpack.c.h.bf16 %v121_v19  ;;  %v624_v40 = vmul.f32 %v2071_v20, %v346_v32  ;;  %v625_v42 = vmul.f32 %v2075_v22, %v347_v33 }
 0x104   :  { %1923 = vst [vmem:[#allocation2 + $0x628] sm:$0xff] %v1667_v29  ;;  %1924 = vst [vmem:[#allocation2 + $0x630] sm:$0xff] %v1668_v30  ;;  %v626_v44 = vmul.f32 %v2079_v24, %v348_v34  ;;  %v627_v45 = vmul.f32 %v2083_v26, %v349_v35  ;;  %v628_v48 = vmul.f32 %v2071_v20, %v350_v36  ;;  %v354_v28 = vunpack.c.l.bf16 %v122_v8 }
 0x105   :  { %1925 = vst [vmem:[#allocation2 + $0x638] sm:$0xff] %v1669_v31  ;;  %v629_v50 = vmul.f32 %v2075_v22, %v351_v37  ;;  %v630_v51 = vmul.f32 %v2079_v24, %v352_v38  ;;  %v631_v52 = vmul.f32 %v2083_v26, %v353_v39  ;;  %v902_v53 = vadd.f32 %v2073_v21, %v624_v40  ;;  %v1166_v37 = vld [vmem:[%s3761_s3 + $0x680] sm:$0xff]  ;;  %v1167_v39 = vld [vmem:[%s3761_s3 + $0x688] sm:$0xff] }
 0x106   :  { %v903_v54 = vadd.f32 %v2077_v23, %v625_v42  ;;  %v904_v55 = vadd.f32 %v2081_v25, %v626_v44  ;;  %v905_v56 = vadd.f32 %v2085_v27, %v627_v45  ;;  %v906_v60 = vadd.f32 %v2073_v21, %v628_v48  ;;  %v1168_v42 = vld [vmem:[%s3761_s3 + $0x690] sm:$0xff]  ;;  %v1170_v45 = vld [vmem:[%s3761_s3 + $0x6a0] sm:$0xff] }
 0x107   :  { %v907_v61 = vadd.f32 %v2077_v23, %v629_v50  ;;  %v908_v62 = vadd.f32 %v2081_v25, %v630_v51  ;;  %v909_v63 = vadd.f32 %v2085_v27, %v631_v52  ;;  %v1414_v0 = vadd.f32 %v1158_v41, %v902_v53  ;;  %v1171_v53 = vld [vmem:[%s3761_s3 + $0x6a8] sm:$0xff] }
 0x108   :  { %v1415_v1 = vadd.f32 %v1159_v43, %v903_v54  ;;  %v1416_v2 = vadd.f32 %v1160_v46, %v904_v55  ;;  %v1417_v3 = vadd.f32 %v1161_v47, %v905_v56  ;;  %v1418_v4 = vadd.f32 %v1162_v49, %v906_v60  ;;  %v1169_v43 = vld [vmem:[%s3761_s3 + $0x698] sm:$0xff]  ;;  %v1172_v54 = vld [vmem:[%s3761_s3 + $0x6b0] sm:$0xff] }
 0x109   :  { %v1419_v5 = vadd.f32 %v1163_v57, %v907_v61  ;;  %v1420_v6 = vadd.f32 %v1164_v58, %v908_v62  ;;  %v1421_v7 = vadd.f32 %v1165_v59, %v909_v63  ;;  %v1670_v10 = vmax.f32 %v1414_v0, 0.0  ;;  %v1173_v55 = vld [vmem:[%s3761_s3 + $0x6b8] sm:$0xff] }
 0x10a   :  { %v1671_v11 = vmax.f32 %v1415_v1, 0.0  ;;  %v1672_v12 = vmax.f32 %v1416_v2, 0.0  ;;  %v1673_v13 = vmax.f32 %v1417_v3, 0.0  ;;  %v1674_v16 = vmax.f32 %v1418_v4, 0.0  ;;  %v126_v4 = vld [vmem:[%s3758_s0 + $0x360] sm:$0xff] }
 0x10b   :  { %v1675_v17 = vmax.f32 %v1419_v5, 0.0  ;;  %v1676_v18 = vmax.f32 %v1420_v6, 0.0  ;;  %v1677_v19 = vmax.f32 %v1421_v7, 0.0  ;;  %1926 = vst [vmem:[#allocation2 + $0x640] sm:$0xff] %v1670_v10  ;;  %v355_v29 = vunpack.c.h.bf16 %v122_v8  ;;  %v127_v5 = vld [vmem:[%s3758_s0 + $0x368] sm:$0xff]  ;;  %v128_v10 = vld [vmem:[%s3758_s0 + $0x370] sm:$0xff] }
 0x10c   :  { %1927 = vst [vmem:[#allocation2 + $0x648] sm:$0xff] %v1671_v11  ;;  %1928 = vst [vmem:[#allocation2 + $0x650] sm:$0xff] %v1672_v12  ;;  %v356_v30 = vunpack.c.l.bf16 %v123_v9  ;;  %v357_v31 = vunpack.c.h.bf16 %v123_v9  ;;  %v358_v32 = vunpack.c.l.bf16 %v124_v14  ;;  %v359_v33 = vunpack.c.h.bf16 %v124_v14  ;;  %v129_v11 = vld [vmem:[%s3758_s0 + $0x378] sm:$0xff] }
 0x10d   :  { %1929 = vst [vmem:[#allocation2 + $0x658] sm:$0xff] %v1673_v13  ;;  %1930 = vst [vmem:[#allocation2 + $0x660] sm:$0xff] %v1674_v16  ;;  %v360_v34 = vunpack.c.l.bf16 %v125_v15  ;;  %v361_v35 = vunpack.c.h.bf16 %v125_v15  ;;  %v632_v36 = vmul.f32 %v2071_v20, %v354_v28  ;;  %v633_v38 = vmul.f32 %v2075_v22, %v355_v29 }
 0x10e   :  { %1931 = vst [vmem:[#allocation2 + $0x668] sm:$0xff] %v1675_v17  ;;  %1932 = vst [vmem:[#allocation2 + $0x670] sm:$0xff] %v1676_v18  ;;  %v634_v40 = vmul.f32 %v2079_v24, %v356_v30  ;;  %v635_v41 = vmul.f32 %v2083_v26, %v357_v31  ;;  %v636_v44 = vmul.f32 %v2071_v20, %v358_v32  ;;  %v362_v16 = vunpack.c.l.bf16 %v126_v4 }
 0x10f   :  { %1933 = vst [vmem:[#allocation2 + $0x678] sm:$0xff] %v1677_v19  ;;  %v637_v46 = vmul.f32 %v2075_v22, %v359_v33  ;;  %v638_v47 = vmul.f32 %v2079_v24, %v360_v34  ;;  %v639_v48 = vmul.f32 %v2083_v26, %v361_v35  ;;  %v910_v49 = vadd.f32 %v2073_v21, %v632_v36  ;;  %v1174_v33 = vld [vmem:[%s3761_s3 + $0x6c0] sm:$0xff]  ;;  %v1175_v35 = vld [vmem:[%s3761_s3 + $0x6c8] sm:$0xff] }
 0x110   :  { %v911_v50 = vadd.f32 %v2077_v23, %v633_v38  ;;  %v912_v51 = vadd.f32 %v2081_v25, %v634_v40  ;;  %v913_v52 = vadd.f32 %v2085_v27, %v635_v41  ;;  %v914_v56 = vadd.f32 %v2073_v21, %v636_v44  ;;  %v1176_v38 = vld [vmem:[%s3761_s3 + $0x6d0] sm:$0xff]  ;;  %v1178_v41 = vld [vmem:[%s3761_s3 + $0x6e0] sm:$0xff] }
 0x111   :  { %v915_v57 = vadd.f32 %v2077_v23, %v637_v46  ;;  %v916_v58 = vadd.f32 %v2081_v25, %v638_v47  ;;  %v917_v59 = vadd.f32 %v2085_v27, %v639_v48  ;;  %v1422_v60 = vadd.f32 %v1166_v37, %v910_v49  ;;  %v1179_v49 = vld [vmem:[%s3761_s3 + $0x6e8] sm:$0xff] }
 0x112   :  { %v1423_v61 = vadd.f32 %v1167_v39, %v911_v50  ;;  %v1424_v62 = vadd.f32 %v1168_v42, %v912_v51  ;;  %v1425_v63 = vadd.f32 %v1169_v43, %v913_v52  ;;  %v1426_v0 = vadd.f32 %v1170_v45, %v914_v56  ;;  %v1177_v39 = vld [vmem:[%s3761_s3 + $0x6d8] sm:$0xff]  ;;  %v1180_v50 = vld [vmem:[%s3761_s3 + $0x6f0] sm:$0xff] }
 0x113   :  { %v1427_v1 = vadd.f32 %v1171_v53, %v915_v57  ;;  %v1428_v2 = vadd.f32 %v1172_v54, %v916_v58  ;;  %v1429_v3 = vadd.f32 %v1173_v55, %v917_v59  ;;  %v1678_v6 = vmax.f32 %v1422_v60, 0.0  ;;  %v1181_v51 = vld [vmem:[%s3761_s3 + $0x6f8] sm:$0xff] }
 0x114   :  { %v1679_v7 = vmax.f32 %v1423_v61, 0.0  ;;  %v1680_v8 = vmax.f32 %v1424_v62, 0.0  ;;  %v1681_v9 = vmax.f32 %v1425_v63, 0.0  ;;  %v1682_v12 = vmax.f32 %v1426_v0, 0.0  ;;  %v130_v0 = vld [vmem:[%s3758_s0 + $0x380] sm:$0xff] }
 0x115   :  { %v1683_v13 = vmax.f32 %v1427_v1, 0.0  ;;  %v1684_v14 = vmax.f32 %v1428_v2, 0.0  ;;  %v1685_v15 = vmax.f32 %v1429_v3, 0.0  ;;  %1934 = vst [vmem:[#allocation2 + $0x680] sm:$0xff] %v1678_v6  ;;  %v363_v17 = vunpack.c.h.bf16 %v126_v4  ;;  %v131_v1 = vld [vmem:[%s3758_s0 + $0x388] sm:$0xff]  ;;  %v132_v6 = vld [vmem:[%s3758_s0 + $0x390] sm:$0xff] }
 0x116   :  { %1935 = vst [vmem:[#allocation2 + $0x688] sm:$0xff] %v1679_v7  ;;  %1936 = vst [vmem:[#allocation2 + $0x690] sm:$0xff] %v1680_v8  ;;  %v364_v18 = vunpack.c.l.bf16 %v127_v5  ;;  %v365_v19 = vunpack.c.h.bf16 %v127_v5  ;;  %v366_v28 = vunpack.c.l.bf16 %v128_v10  ;;  %v367_v29 = vunpack.c.h.bf16 %v128_v10  ;;  %v133_v7 = vld [vmem:[%s3758_s0 + $0x398] sm:$0xff] }
 0x117   :  { %1937 = vst [vmem:[#allocation2 + $0x698] sm:$0xff] %v1681_v9  ;;  %1938 = vst [vmem:[#allocation2 + $0x6a0] sm:$0xff] %v1682_v12  ;;  %v368_v30 = vunpack.c.l.bf16 %v129_v11  ;;  %v369_v31 = vunpack.c.h.bf16 %v129_v11  ;;  %v640_v32 = vmul.f32 %v2071_v20, %v362_v16  ;;  %v641_v34 = vmul.f32 %v2075_v22, %v363_v17 }
 0x118   :  { %1939 = vst [vmem:[#allocation2 + $0x6a8] sm:$0xff] %v1683_v13  ;;  %1940 = vst [vmem:[#allocation2 + $0x6b0] sm:$0xff] %v1684_v14  ;;  %v642_v36 = vmul.f32 %v2079_v24, %v364_v18  ;;  %v643_v37 = vmul.f32 %v2083_v26, %v365_v19  ;;  %v644_v40 = vmul.f32 %v2071_v20, %v366_v28  ;;  %v370_v12 = vunpack.c.l.bf16 %v130_v0 }
 0x119   :  { %1941 = vst [vmem:[#allocation2 + $0x6b8] sm:$0xff] %v1685_v15  ;;  %v645_v42 = vmul.f32 %v2075_v22, %v367_v29  ;;  %v646_v43 = vmul.f32 %v2079_v24, %v368_v30  ;;  %v647_v44 = vmul.f32 %v2083_v26, %v369_v31  ;;  %v918_v45 = vadd.f32 %v2073_v21, %v640_v32  ;;  %v1182_v29 = vld [vmem:[%s3761_s3 + $0x700] sm:$0xff]  ;;  %v1183_v31 = vld [vmem:[%s3761_s3 + $0x708] sm:$0xff] }
 0x11a   :  { %v919_v46 = vadd.f32 %v2077_v23, %v641_v34  ;;  %v920_v47 = vadd.f32 %v2081_v25, %v642_v36  ;;  %v921_v48 = vadd.f32 %v2085_v27, %v643_v37  ;;  %v922_v52 = vadd.f32 %v2073_v21, %v644_v40  ;;  %v1184_v34 = vld [vmem:[%s3761_s3 + $0x710] sm:$0xff]  ;;  %v1186_v37 = vld [vmem:[%s3761_s3 + $0x720] sm:$0xff] }
 0x11b   :  { %v923_v53 = vadd.f32 %v2077_v23, %v645_v42  ;;  %v924_v54 = vadd.f32 %v2081_v25, %v646_v43  ;;  %v925_v55 = vadd.f32 %v2085_v27, %v647_v44  ;;  %v1430_v56 = vadd.f32 %v1174_v33, %v918_v45  ;;  %v1187_v45 = vld [vmem:[%s3761_s3 + $0x728] sm:$0xff] }
 0x11c   :  { %v1431_v57 = vadd.f32 %v1175_v35, %v919_v46  ;;  %v1432_v58 = vadd.f32 %v1176_v38, %v920_v47  ;;  %v1433_v59 = vadd.f32 %v1177_v39, %v921_v48  ;;  %v1434_v60 = vadd.f32 %v1178_v41, %v922_v52  ;;  %v1185_v35 = vld [vmem:[%s3761_s3 + $0x718] sm:$0xff]  ;;  %v1188_v46 = vld [vmem:[%s3761_s3 + $0x730] sm:$0xff] }
 0x11d   :  { %v1435_v61 = vadd.f32 %v1179_v49, %v923_v53  ;;  %v1436_v62 = vadd.f32 %v1180_v50, %v924_v54  ;;  %v1437_v63 = vadd.f32 %v1181_v51, %v925_v55  ;;  %v1686_v2 = vmax.f32 %v1430_v56, 0.0  ;;  %v1189_v47 = vld [vmem:[%s3761_s3 + $0x738] sm:$0xff] }
 0x11e   :  { %v1687_v3 = vmax.f32 %v1431_v57, 0.0  ;;  %v1688_v4 = vmax.f32 %v1432_v58, 0.0  ;;  %v1689_v5 = vmax.f32 %v1433_v59, 0.0  ;;  %v1690_v8 = vmax.f32 %v1434_v60, 0.0  ;;  %v134_v60 = vld [vmem:[%s3758_s0 + $0x3a0] sm:$0xff] }
 0x11f   :  { %v1691_v9 = vmax.f32 %v1435_v61, 0.0  ;;  %v1692_v10 = vmax.f32 %v1436_v62, 0.0  ;;  %v1693_v11 = vmax.f32 %v1437_v63, 0.0  ;;  %1942 = vst [vmem:[#allocation2 + $0x6c0] sm:$0xff] %v1686_v2  ;;  %v371_v13 = vunpack.c.h.bf16 %v130_v0  ;;  %v135_v61 = vld [vmem:[%s3758_s0 + $0x3a8] sm:$0xff]  ;;  %v136_v2 = vld [vmem:[%s3758_s0 + $0x3b0] sm:$0xff] }
 0x120   :  { %1943 = vst [vmem:[#allocation2 + $0x6c8] sm:$0xff] %v1687_v3  ;;  %1944 = vst [vmem:[#allocation2 + $0x6d0] sm:$0xff] %v1688_v4  ;;  %v372_v14 = vunpack.c.l.bf16 %v131_v1  ;;  %v373_v15 = vunpack.c.h.bf16 %v131_v1  ;;  %v374_v16 = vunpack.c.l.bf16 %v132_v6  ;;  %v375_v17 = vunpack.c.h.bf16 %v132_v6  ;;  %v137_v3 = vld [vmem:[%s3758_s0 + $0x3b8] sm:$0xff] }
 0x121   :  { %1945 = vst [vmem:[#allocation2 + $0x6d8] sm:$0xff] %v1689_v5  ;;  %1946 = vst [vmem:[#allocation2 + $0x6e0] sm:$0xff] %v1690_v8  ;;  %v376_v18 = vunpack.c.l.bf16 %v133_v7  ;;  %v377_v19 = vunpack.c.h.bf16 %v133_v7  ;;  %v648_v28 = vmul.f32 %v2071_v20, %v370_v12  ;;  %v649_v30 = vmul.f32 %v2075_v22, %v371_v13 }
 0x122   :  { %1947 = vst [vmem:[#allocation2 + $0x6e8] sm:$0xff] %v1691_v9  ;;  %1948 = vst [vmem:[#allocation2 + $0x6f0] sm:$0xff] %v1692_v10  ;;  %v650_v32 = vmul.f32 %v2079_v24, %v372_v14  ;;  %v651_v33 = vmul.f32 %v2083_v26, %v373_v15  ;;  %v652_v36 = vmul.f32 %v2071_v20, %v374_v16  ;;  %v378_v8 = vunpack.c.l.bf16 %v134_v60 }
 0x123   :  { %1949 = vst [vmem:[#allocation2 + $0x6f8] sm:$0xff] %v1693_v11  ;;  %v653_v38 = vmul.f32 %v2075_v22, %v375_v17  ;;  %v654_v39 = vmul.f32 %v2079_v24, %v376_v18  ;;  %v655_v40 = vmul.f32 %v2083_v26, %v377_v19  ;;  %v926_v41 = vadd.f32 %v2073_v21, %v648_v28  ;;  %v1190_v17 = vld [vmem:[%s3761_s3 + $0x740] sm:$0xff]  ;;  %v1191_v19 = vld [vmem:[%s3761_s3 + $0x748] sm:$0xff] }
 0x124   :  { %v927_v42 = vadd.f32 %v2077_v23, %v649_v30  ;;  %v928_v43 = vadd.f32 %v2081_v25, %v650_v32  ;;  %v929_v44 = vadd.f32 %v2085_v27, %v651_v33  ;;  %v930_v48 = vadd.f32 %v2073_v21, %v652_v36  ;;  %v1192_v30 = vld [vmem:[%s3761_s3 + $0x750] sm:$0xff]  ;;  %v1194_v33 = vld [vmem:[%s3761_s3 + $0x760] sm:$0xff] }
 0x125   :  { %v931_v49 = vadd.f32 %v2077_v23, %v653_v38  ;;  %v932_v50 = vadd.f32 %v2081_v25, %v654_v39  ;;  %v933_v51 = vadd.f32 %v2085_v27, %v655_v40  ;;  %v1438_v52 = vadd.f32 %v1182_v29, %v926_v41  ;;  %v1195_v41 = vld [vmem:[%s3761_s3 + $0x768] sm:$0xff] }
 0x126   :  { %v1439_v53 = vadd.f32 %v1183_v31, %v927_v42  ;;  %v1440_v54 = vadd.f32 %v1184_v34, %v928_v43  ;;  %v1441_v55 = vadd.f32 %v1185_v35, %v929_v44  ;;  %v1442_v56 = vadd.f32 %v1186_v37, %v930_v48  ;;  %v1193_v31 = vld [vmem:[%s3761_s3 + $0x758] sm:$0xff]  ;;  %v1196_v42 = vld [vmem:[%s3761_s3 + $0x770] sm:$0xff] }
 0x127   :  { %v1443_v57 = vadd.f32 %v1187_v45, %v931_v49  ;;  %v1444_v58 = vadd.f32 %v1188_v46, %v932_v50  ;;  %v1445_v59 = vadd.f32 %v1189_v47, %v933_v51  ;;  %v1694_v62 = vmax.f32 %v1438_v52, 0.0  ;;  %v1197_v43 = vld [vmem:[%s3761_s3 + $0x778] sm:$0xff] }
 0x128   :  { %v1695_v63 = vmax.f32 %v1439_v53, 0.0  ;;  %v1696_v0 = vmax.f32 %v1440_v54, 0.0  ;;  %v1697_v1 = vmax.f32 %v1441_v55, 0.0  ;;  %v1698_v4 = vmax.f32 %v1442_v56, 0.0  ;;  %v138_v56 = vld [vmem:[%s3758_s0 + $0x3c0] sm:$0xff] }
 0x129   :  { %v1699_v5 = vmax.f32 %v1443_v57, 0.0  ;;  %v1700_v6 = vmax.f32 %v1444_v58, 0.0  ;;  %v1701_v7 = vmax.f32 %v1445_v59, 0.0  ;;  %1950 = vst [vmem:[#allocation2 + $0x700] sm:$0xff] %v1694_v62  ;;  %v379_v9 = vunpack.c.h.bf16 %v134_v60  ;;  %v139_v57 = vld [vmem:[%s3758_s0 + $0x3c8] sm:$0xff]  ;;  %v140_v62 = vld [vmem:[%s3758_s0 + $0x3d0] sm:$0xff] }
 0x12a   :  { %1951 = vst [vmem:[#allocation2 + $0x708] sm:$0xff] %v1695_v63  ;;  %1952 = vst [vmem:[#allocation2 + $0x710] sm:$0xff] %v1696_v0  ;;  %v380_v10 = vunpack.c.l.bf16 %v135_v61  ;;  %v381_v11 = vunpack.c.h.bf16 %v135_v61  ;;  %v382_v12 = vunpack.c.l.bf16 %v136_v2  ;;  %v383_v13 = vunpack.c.h.bf16 %v136_v2  ;;  %v141_v63 = vld [vmem:[%s3758_s0 + $0x3d8] sm:$0xff] }
 0x12b   :  { %1953 = vst [vmem:[#allocation2 + $0x718] sm:$0xff] %v1697_v1  ;;  %1954 = vst [vmem:[#allocation2 + $0x720] sm:$0xff] %v1698_v4  ;;  %v384_v14 = vunpack.c.l.bf16 %v137_v3  ;;  %v385_v15 = vunpack.c.h.bf16 %v137_v3  ;;  %v656_v16 = vmul.f32 %v2071_v20, %v378_v8  ;;  %v657_v18 = vmul.f32 %v2075_v22, %v379_v9 }
 0x12c   :  { %1955 = vst [vmem:[#allocation2 + $0x728] sm:$0xff] %v1699_v5  ;;  %1956 = vst [vmem:[#allocation2 + $0x730] sm:$0xff] %v1700_v6  ;;  %v658_v28 = vmul.f32 %v2079_v24, %v380_v10  ;;  %v659_v29 = vmul.f32 %v2083_v26, %v381_v11  ;;  %v660_v32 = vmul.f32 %v2071_v20, %v382_v12  ;;  %v386_v4 = vunpack.c.l.bf16 %v138_v56 }
 0x12d   :  { %1957 = vst [vmem:[#allocation2 + $0x738] sm:$0xff] %v1701_v7  ;;  %v661_v34 = vmul.f32 %v2075_v22, %v383_v13  ;;  %v662_v35 = vmul.f32 %v2079_v24, %v384_v14  ;;  %v663_v36 = vmul.f32 %v2083_v26, %v385_v15  ;;  %v934_v37 = vadd.f32 %v2073_v21, %v656_v16  ;;  %v1198_v13 = vld [vmem:[%s3761_s3 + $0x780] sm:$0xff]  ;;  %v1199_v15 = vld [vmem:[%s3761_s3 + $0x788] sm:$0xff] }
 0x12e   :  { %v935_v38 = vadd.f32 %v2077_v23, %v657_v18  ;;  %v936_v39 = vadd.f32 %v2081_v25, %v658_v28  ;;  %v937_v40 = vadd.f32 %v2085_v27, %v659_v29  ;;  %v938_v44 = vadd.f32 %v2073_v21, %v660_v32  ;;  %v1200_v18 = vld [vmem:[%s3761_s3 + $0x790] sm:$0xff]  ;;  %v1202_v29 = vld [vmem:[%s3761_s3 + $0x7a0] sm:$0xff] }
 0x12f   :  { %v939_v45 = vadd.f32 %v2077_v23, %v661_v34  ;;  %v940_v46 = vadd.f32 %v2081_v25, %v662_v35  ;;  %v941_v47 = vadd.f32 %v2085_v27, %v663_v36  ;;  %v1446_v48 = vadd.f32 %v1190_v17, %v934_v37  ;;  %v1203_v37 = vld [vmem:[%s3761_s3 + $0x7a8] sm:$0xff] }
 0x130   :  { %v1447_v49 = vadd.f32 %v1191_v19, %v935_v38  ;;  %v1448_v50 = vadd.f32 %v1192_v30, %v936_v39  ;;  %v1449_v51 = vadd.f32 %v1193_v31, %v937_v40  ;;  %v1450_v52 = vadd.f32 %v1194_v33, %v938_v44  ;;  %v1201_v19 = vld [vmem:[%s3761_s3 + $0x798] sm:$0xff]  ;;  %v1204_v38 = vld [vmem:[%s3761_s3 + $0x7b0] sm:$0xff] }
 0x131   :  { %v1451_v53 = vadd.f32 %v1195_v41, %v939_v45  ;;  %v1452_v54 = vadd.f32 %v1196_v42, %v940_v46  ;;  %v1453_v55 = vadd.f32 %v1197_v43, %v941_v47  ;;  %v1702_v58 = vmax.f32 %v1446_v48, 0.0  ;;  %v1205_v39 = vld [vmem:[%s3761_s3 + $0x7b8] sm:$0xff] }
 0x132   :  { %v1703_v59 = vmax.f32 %v1447_v49, 0.0  ;;  %v1704_v60 = vmax.f32 %v1448_v50, 0.0  ;;  %v1705_v61 = vmax.f32 %v1449_v51, 0.0  ;;  %v1706_v0 = vmax.f32 %v1450_v52, 0.0  ;;  %v142_v52 = vld [vmem:[%s3758_s0 + $0x3e0] sm:$0xff] }
 0x133   :  { %v1707_v1 = vmax.f32 %v1451_v53, 0.0  ;;  %v1708_v2 = vmax.f32 %v1452_v54, 0.0  ;;  %v1709_v3 = vmax.f32 %v1453_v55, 0.0  ;;  %1958 = vst [vmem:[#allocation2 + $0x740] sm:$0xff] %v1702_v58  ;;  %v387_v5 = vunpack.c.h.bf16 %v138_v56  ;;  %v143_v53 = vld [vmem:[%s3758_s0 + $0x3e8] sm:$0xff]  ;;  %v144_v58 = vld [vmem:[%s3758_s0 + $0x3f0] sm:$0xff] }
 0x134   :  { %1959 = vst [vmem:[#allocation2 + $0x748] sm:$0xff] %v1703_v59  ;;  %1960 = vst [vmem:[#allocation2 + $0x750] sm:$0xff] %v1704_v60  ;;  %v388_v6 = vunpack.c.l.bf16 %v139_v57  ;;  %v389_v7 = vunpack.c.h.bf16 %v139_v57  ;;  %v390_v8 = vunpack.c.l.bf16 %v140_v62  ;;  %v391_v9 = vunpack.c.h.bf16 %v140_v62  ;;  %v145_v59 = vld [vmem:[%s3758_s0 + $0x3f8] sm:$0xff] }
 0x135   :  { %1961 = vst [vmem:[#allocation2 + $0x758] sm:$0xff] %v1705_v61  ;;  %1962 = vst [vmem:[#allocation2 + $0x760] sm:$0xff] %v1706_v0  ;;  %v392_v10 = vunpack.c.l.bf16 %v141_v63  ;;  %v393_v11 = vunpack.c.h.bf16 %v141_v63  ;;  %v664_v12 = vmul.f32 %v2071_v20, %v386_v4  ;;  %v665_v14 = vmul.f32 %v2075_v22, %v387_v5 }
 0x136   :  { %1963 = vst [vmem:[#allocation2 + $0x768] sm:$0xff] %v1707_v1  ;;  %1964 = vst [vmem:[#allocation2 + $0x770] sm:$0xff] %v1708_v2  ;;  %v666_v16 = vmul.f32 %v2079_v24, %v388_v6  ;;  %v667_v17 = vmul.f32 %v2083_v26, %v389_v7  ;;  %v668_v28 = vmul.f32 %v2071_v20, %v390_v8  ;;  %v394_v0 = vunpack.c.l.bf16 %v142_v52 }
 0x137   :  { %1965 = vst [vmem:[#allocation2 + $0x778] sm:$0xff] %v1709_v3  ;;  %v669_v30 = vmul.f32 %v2075_v22, %v391_v9  ;;  %v670_v31 = vmul.f32 %v2079_v24, %v392_v10  ;;  %v671_v32 = vmul.f32 %v2083_v26, %v393_v11  ;;  %v942_v33 = vadd.f32 %v2073_v21, %v664_v12  ;;  %v1206_v9 = vld [vmem:[%s3761_s3 + $0x7c0] sm:$0xff]  ;;  %v1207_v11 = vld [vmem:[%s3761_s3 + $0x7c8] sm:$0xff] }
 0x138   :  { %v943_v34 = vadd.f32 %v2077_v23, %v665_v14  ;;  %v944_v35 = vadd.f32 %v2081_v25, %v666_v16  ;;  %v945_v36 = vadd.f32 %v2085_v27, %v667_v17  ;;  %v946_v40 = vadd.f32 %v2073_v21, %v668_v28  ;;  %v1208_v14 = vld [vmem:[%s3761_s3 + $0x7d0] sm:$0xff]  ;;  %v1210_v17 = vld [vmem:[%s3761_s3 + $0x7e0] sm:$0xff] }
 0x139   :  { %v947_v41 = vadd.f32 %v2077_v23, %v669_v30  ;;  %v948_v42 = vadd.f32 %v2081_v25, %v670_v31  ;;  %v949_v43 = vadd.f32 %v2085_v27, %v671_v32  ;;  %v1454_v44 = vadd.f32 %v1198_v13, %v942_v33 }
 0x13a   :  { %v1455_v45 = vadd.f32 %v1199_v15, %v943_v34  ;;  %v1456_v46 = vadd.f32 %v1200_v18, %v944_v35  ;;  %v1457_v47 = vadd.f32 %v1201_v19, %v945_v36  ;;  %v1458_v48 = vadd.f32 %v1202_v29, %v946_v40  ;;  %v1209_v15 = vld [vmem:[%s3761_s3 + $0x7d8] sm:$0xff] }
 0x13b   :  { %v1459_v49 = vadd.f32 %v1203_v37, %v947_v41  ;;  %v1460_v50 = vadd.f32 %v1204_v38, %v948_v42  ;;  %v1461_v51 = vadd.f32 %v1205_v39, %v949_v43  ;;  %v1710_v54 = vmax.f32 %v1454_v44, 0.0 }
 0x13c   :  { %v1711_v55 = vmax.f32 %v1455_v45, 0.0  ;;  %v1712_v56 = vmax.f32 %v1456_v46, 0.0  ;;  %v1713_v57 = vmax.f32 %v1457_v47, 0.0  ;;  %v1714_v60 = vmax.f32 %v1458_v48, 0.0 }
 0x13d   :  { %v1715_v61 = vmax.f32 %v1459_v49, 0.0  ;;  %v1716_v62 = vmax.f32 %v1460_v50, 0.0  ;;  %v1717_v63 = vmax.f32 %v1461_v51, 0.0  ;;  %1966 = vst [vmem:[#allocation2 + $0x780] sm:$0xff] %v1710_v54  ;;  %v395_v1 = vunpack.c.h.bf16 %v142_v52 }
 0x13e   :  { %1967 = vst [vmem:[#allocation2 + $0x788] sm:$0xff] %v1711_v55  ;;  %1968 = vst [vmem:[#allocation2 + $0x790] sm:$0xff] %v1712_v56  ;;  %v396_v2 = vunpack.c.l.bf16 %v143_v53  ;;  %v397_v3 = vunpack.c.h.bf16 %v143_v53  ;;  %v398_v4 = vunpack.c.l.bf16 %v144_v58  ;;  %v399_v5 = vunpack.c.h.bf16 %v144_v58 }
 0x13f   :  { %1969 = vst [vmem:[#allocation2 + $0x798] sm:$0xff] %v1713_v57  ;;  %1970 = vst [vmem:[#allocation2 + $0x7a0] sm:$0xff] %v1714_v60  ;;  %v400_v6 = vunpack.c.l.bf16 %v145_v59  ;;  %v401_v7 = vunpack.c.h.bf16 %v145_v59  ;;  %v672_v8 = vmul.f32 %v2071_v20, %v394_v0  ;;  %v673_v10 = vmul.f32 %v2075_v22, %v395_v1 }
 0x140   :  { %1971 = vst [vmem:[#allocation2 + $0x7a8] sm:$0xff] %v1715_v61  ;;  %1972 = vst [vmem:[#allocation2 + $0x7b0] sm:$0xff] %v1716_v62  ;;  %v674_v12 = vmul.f32 %v2079_v24, %v396_v2  ;;  %v675_v13 = vmul.f32 %v2083_v26, %v397_v3  ;;  %v676_v16 = vmul.f32 %v2071_v20, %v398_v4  ;;  %v1211_v20 = vld [vmem:[%s3761_s3 + $0x7e8] sm:$0xff] }
 0x141   :  { %1973 = vst [vmem:[#allocation2 + $0x7b8] sm:$0xff] %v1717_v63  ;;  %v677_v18 = vmul.f32 %v2075_v22, %v399_v5  ;;  %v678_v19 = vmul.f32 %v2079_v24, %v400_v6  ;;  %v679_v28 = vmul.f32 %v2083_v26, %v401_v7  ;;  %v950_v29 = vadd.f32 %v2073_v21, %v672_v8  ;;  %v1212_v22 = vld [vmem:[%s3761_s3 + $0x7f0] sm:$0xff]  ;;  %v1213_v24 = vld [vmem:[%s3761_s3 + $0x7f8] sm:$0xff]  ;;  %s2001_s3 = scalar_lea.vmem %s3739_s29, 32768 }
 0x142   :  { %v951_v30 = vadd.f32 %v2077_v23, %v673_v10  ;;  %v952_v31 = vadd.f32 %v2081_v25, %v674_v12  ;;  %v953_v32 = vadd.f32 %v2085_v27, %v675_v13  ;;  %v954_v26 = vadd.f32 %v2073_v21, %v676_v16  ;;  %p2002_p0 = scmp.ne.s32.totalorder %s3739_s29, %s2001_s3  ;;  %p2007_p2 = scmp.lt.s32.totalorder %s2001_s3, %s2001_s3 }
 0x143   :  { %v955_v33 = vadd.f32 %v2077_v23, %v677_v18  ;;  %v956_v34 = vadd.f32 %v2081_v25, %v678_v19  ;;  %v957_v35 = vadd.f32 %v2085_v27, %v679_v28  ;;  %v1462_v36 = vadd.f32 %v1206_v9, %v950_v29 }
 0x144   :  { %v1463_v37 = vadd.f32 %v1207_v11, %v951_v30  ;;  %v1464_v38 = vadd.f32 %v1208_v14, %v952_v31  ;;  %v1465_v39 = vadd.f32 %v1209_v15, %v953_v32  ;;  %v1466_v40 = vadd.f32 %v1210_v17, %v954_v26  ;;  %p2008_p3 = por %p2007_p2, %p2006_p1 }
 0x145   :  { %v1467_v41 = vadd.f32 %v1211_v20, %v955_v33  ;;  %v1468_v42 = vadd.f32 %v1212_v22, %v956_v34  ;;  %v1469_v43 = vadd.f32 %v1213_v24, %v957_v35  ;;  %v1718_v44 = vmax.f32 %v1462_v36, 0.0 }
 0x146   :  { %v1719_v45 = vmax.f32 %v1463_v37, 0.0  ;;  %v1720_v46 = vmax.f32 %v1464_v38, 0.0  ;;  %v1721_v21 = vmax.f32 %v1465_v39, 0.0  ;;  %v1722_v23 = vmax.f32 %v1466_v40, 0.0  ;;  %p2009_p4 = pnand %p2008_p3, %p2002_p0 }
 0x147   :  { %v1723_v25 = vmax.f32 %v1467_v41, 0.0  ;;  %v1724_v27 = vmax.f32 %v1468_v42, 0.0  ;;  %v1725_v47 = vmax.f32 %v1469_v43, 0.0  ;;  %1974 = vst [vmem:[#allocation2 + $0x7c0] sm:$0xff] %v1718_v44 }
 0x148   :  { %1975 = vst [vmem:[#allocation2 + $0x7c8] sm:$0xff] %v1719_v45  ;;  %1976 = vst [vmem:[#allocation2 + $0x7d0] sm:$0xff] %v1720_v46 }
 0x149   :  { %1977 = vst [vmem:[#allocation2 + $0x7d8] sm:$0xff] %v1721_v21  ;;  %1978 = vst [vmem:[#allocation2 + $0x7e0] sm:$0xff] %v1722_v23 }
 0x14a   :  { %1979 = vst [vmem:[#allocation2 + $0x7e8] sm:$0xff] %v1723_v25  ;;  %1980 = vst [vmem:[#allocation2 + $0x7f0] sm:$0xff] %v1724_v27 }
 0x14b   :  { %1981 = vst [vmem:[#allocation2 + $0x7f8] sm:$0xff] %v1725_v47 }
 0x14c   :  { %2012 = shalt.err (!%p2009_p4)
}
 0x14d   :  { %s2013_s6 = scalar_lea.hbm %s3762_s4, 32768 }
 0x14e   :  { %p2014_p5 = scmp.ne.s32.totalorder %s3762_s4, %s2013_s6  ;;  %p2017_p6 = scmp.lt.u32.totalorder %s2013_s6, %s3762_s4 }
 0x150   :  { %p2019_p7 = pnand %p2017_p6, %p2014_p5 }
 0x152   :  { %2022 = shalt.err (!%p2019_p7)
}
 0x153   :  { %s2026_s11 = smov 512   ;;  %s2027_s12 = smov 32  }
 0x154   :  { %1993 = dma.vmem_to_hbm [thread:$0]  %s3739_s29, 32768, %s3762_s4, [#allocation3], %s2026_s11, %s2026_s11, %s2027_s12  }
 0x155   :  { %2023 = dma.done.wait [#allocation3], 32768  }
 0x156   :  { %2024 = vsyncadd [#allocation3], 4294934528 }
 0x157   :  { %1997 = vsyncpa [#allocation3], 1 }

// kernel: bottleneck_forward.5
= control target key start
LH: loop header
LB: loop body
LE: loop exit
PB: predicated region body
PF: predicated region fallthrough
CT: control target
= control target key end

     0   :  { %s5313_s12 = smov 0   ;;  %s6763_s0 = inlined_call_operand.vmem [shape: bf16[1,2,18,18,128], index: 0, kind: input, shape index: {}]   ;;  %s6764_s1 = inlined_call_operand.vmem [shape: bf16[3,384,128], index: 1, kind: input, shape index: {}]   ;;  %s6765_s2 = inlined_call_operand.vmem [shape: bf16[2,16,16,128], index: 2, kind: output, shape index: {0}]   ;;  %s6766_s3 = inlined_call_operand.vmem [shape: f32[2,2,128], index: 3, kind: output, shape index: {1}]  }
   0x1 LB: > { %s3702_s13 = sadd.s32 4294967295, %s5291_s12   ;;  %p3706_p0 = scmp.ge.s32.totalorder %s5291_s12, 1  ;;  %s5291_s12 = sphi %s5313_s12, %s14_s12  }
   0x2   : > { %p140_p1 = scmp.lt.s32.totalorder %s5291_s12, 3 }
   0x4   : > { %p141_p2 = pnand %p3706_p0, %p140_p1 }
   0x6   : > { %144 = sbr.rel (%p141_p2) target bundleno = 572 (0x23c), region = 28 }
   0xd   : > { %v5050_v0 = vld [vmem:[%s6764_s1 + $0x100] sm:$0xff]   ;;  %v5053_v3 = vld [vmem:[%s6764_s1 + $0x108] sm:$0xff]   ;;  %v5056_v6 = vld [vmem:[%s6764_s1 + $0x110] sm:$0xff]   ;;  %p168_p3 = scmp.lt.s32.totalorder %s3702_s13, 1  ;;  %vm648_vm0 = vcmask 1046528   ;;  %vm3613_vm2 = vcmask 1040384  }
   0xe   : > { %v5327_v1 = vld [vmem:[%s6764_s1 + $0x140] sm:$0xff]   ;;  %4313 = vmatprep.subr.bf16.mxu0 %v5050_v0  ;;  %v5340_v4 = vld [vmem:[%s6764_s1 + $0x148] sm:$0xff]   ;;  %v5352_v7 = vld [vmem:[%s6764_s1 + $0x150] sm:$0xff]   ;;  %vm391_vm1 = vsmask.f32 7424 }
   0xf   : > { %v5052_v2 = vld [vmem:[%s6764_s1 + $0xc0] sm:$0xff]   ;;  %4865 = vmatprep.subr.bf16.mxu1 %v5327_v1  ;;  %v5055_v5 = vld [vmem:[%s6764_s1 + $0xc8] sm:$0xff]   ;;  %v5058_v8 = vld [vmem:[%s6764_s1 + $0xd0] sm:$0xff]   ;;  %s6770_s13 = smov (!%p168_p3, %s3702_s13), 1 }
  0x10   : > { %4314 = vmatpush3.bf16.msra.mxu0 %v5052_v2  ;;  %4873 = vmatpush3.bf16.msra.mxu1 %v5327_v1  ;;  %v5059_v9 = vld [vmem:[%s6764_s1 + $0x118] sm:$0xff]   ;;  %v5062_v12 = vld [vmem:[%s6764_s1 + $0x120] sm:$0xff]   ;;  %v5065_v15 = vld [vmem:[%s6764_s1 + $0x128] sm:$0xff]   ;;  %s5041_s23 = smul.u32 216, %s6770_s13  ;;  %s3710_s19 = sshll.u32 %s6770_s13, 1 }
  0x11   : > { %4315 = vmatprep.subr.bf16.mxu0 %v5053_v3  ;;  %4866 = vmatprep.subr.bf16.mxu1 %v5340_v4  ;;  %v5367_v10 = vld [vmem:[%s6764_s1 + $0x158] sm:$0xff]   ;;  %v5380_v13 = vld [vmem:[%s6764_s1 + $0x160] sm:$0xff]   ;;  %v5397_v16 = vld [vmem:[%s6764_s1 + $0x168] sm:$0xff]   ;;  %s181_s22 = scalar_lea.vmem %s6766_s3, %s3710_s19 }
  0x12   : > { %v5061_v11 = vld [vmem:[%s6764_s1 + $0xd8] sm:$0xff]   ;;  %v5064_v14 = vld [vmem:[%s6764_s1 + $0xe0] sm:$0xff]   ;;  %v5067_v17 = vld [vmem:[%s6764_s1 + $0xe8] sm:$0xff]   ;;  %s5416_s5 = scalar_lea.vmem %s6763_s0, %s5041_s23 }
  0x13   : > { %v5068_v18 = vld [vmem:[%s6764_s1 + $0x130] sm:$0xff]   ;;  %v5071_v21 = vld [vmem:[%s6764_s1 + $0x138] sm:$0xff]   ;;  %v3759_v22 = vld [vmem:[%s5416_s5 + $0xc] sm:$0xf] }
  0x14   : > { %4316 = vmatpush3.bf16.msra.mxu0 %v5055_v5  ;;  %4874 = vmatpush3.bf16.msra.mxu1 %v5340_v4  ;;  %v5411_v19 = vld [vmem:[%s6764_s1 + $0x170] sm:$0xff]   ;;  %v5431_v24 = vld [vmem:[%s6764_s1 + $0x178] sm:$0xff]   ;;  %v3815_v32 = vld [vmem:[%s5416_s5 + $0x6c] sm:$0xe] }
  0x15   : > { %4317 = vmatprep.subr.bf16.mxu0 %v5056_v6  ;;  %4867 = vmatprep.subr.bf16.mxu1 %v5352_v7  ;;  %v5070_v20 = vld [vmem:[%s6764_s1 + $0xf0] sm:$0xff]   ;;  %v5073_v28 = vld [vmem:[%s6764_s1 + $0xf8] sm:$0xff]   ;;  %v5082_v35 = vld [vmem:[%s6764_s1 + $0x40] sm:$0xff]  }
  0x16   : > { %v3760_v23 = vld [vmem:[%s5416_s5 + $0x10] sm:$0xf]  ;;  %v5075_v26 = vld [vmem:[%s5416_s5 + $0x14] ss:$0 sps:$4 sm:$0x11]   ;;  %v5083_v45 = vld [vmem:[%s6764_s1] sm:$0xff]  }
  0x17   : > { %v3823_v25 = vcombine.low %v3759_v22, %v3760_v23  ;;  %v5435_v27 = vld [vmem:[%s5416_s5 + $0x70] sm:$0xf]  ;;  %v978_v31 = vshll.u32 %v5075_v26, 16  ;;  %v5443_v33 = vld [vmem:[%s5416_s5 + $0x74] ss:$0 sps:$4 sm:$0x11]  }
  0x18   : > { %4318 = vmatpush3.bf16.msra.mxu0 %v5058_v8  ;;  %4875 = vmatpush3.bf16.msra.mxu1 %v5352_v7  ;;  %v3863_v34 = vcombine.low %v3815_v32, %v5435_v27  ;;  %v5451_v38 = vld [vmem:[%s5416_s5 + $0x7c] sm:$0xf]  ;;  %v1251_v40 = vrot.slane %v5443_v33, 1  ;;  %v3816_v41 = vld [vmem:[%s5416_s5 + $0x78] sm:$0xe]  ;;  %v5084_v47 = vld [vmem:[%s6764_s1 + $0x48] sm:$0xff]  }
  0x19   : > { %4319 = vmatprep.subr.bf16.mxu0 %v5059_v9  ;;  %4868 = vmatprep.subr.bf16.mxu1 %v5367_v10  ;;  %v971_v29 = vshrl.u32 %v3823_v25, 16  ;;  %v973_v30 = vshll.u32 %v3823_v25, 16  ;;  %v980_v37 = vrot.slane %v978_v31, 1  ;;  %v5456_v43 = vld [vmem:[%s5416_s5 + $0x80] ss:$0 sps:$4 sm:$0x11]   ;;  %v3864_v44 = vcombine.low %v3816_v41, %v5451_v38 }
  0x1a   : > { %v1250_v39 = vrot.slane %v3863_v34, 1  ;;  %v1254_v50 = vrot.slane %v5456_v43, 1  ;;  %v3761_v51 = vld [vmem:[%s5416_s5 + $0x18] sm:$0xf]  ;;  %v3762_v52 = vld [vmem:[%s5416_s5 + $0x1c] sm:$0xf] }
  0x1b   : > { %v975_v36 = vrot.slane %v973_v30, 1  ;;  %v1253_v49 = vrot.slane %v3864_v44, 1  ;;  %v3824_v54 = vcombine.low %v3761_v51, %v3762_v52  ;;  %v5087_v55 = vld [vmem:[%s5416_s5 + $0x20] ss:$0 sps:$4 sm:$0x11]   ;;  %v5085_v57 = vld [vmem:[%s6764_s1 + $0x8] sm:$0xff]  }
  0x1c   : > { %4320 = vmatpush3.bf16.msra.mxu0 %v5061_v11  ;;  %4876 = vmatpush3.bf16.msra.mxu1 %v5367_v10  ;;  %v1252_v46 = vsel %vm648_vm0, %v1250_v39, %v1251_v40  ;;  %v5476_v56 = vld [vmem:[%s5416_s5 + $0x88] sm:$0xf]  ;;  %v990_v60 = vshll.u32 %v5087_v55, 16  ;;  %v3817_v61 = vld [vmem:[%s5416_s5 + $0x84] sm:$0xe]  ;;  %v5094_v0 = vld [vmem:[%s6764_s1 + $0x50] sm:$0xff]  }
  0x1d   : > { %4321 = vmatprep.subr.bf16.mxu0 %v5062_v12  ;;  %4869 = vmatprep.subr.bf16.mxu1 %v5380_v13  ;;  %v976_v42 = vor.u32 %v975_v36, %v971_v29  ;;  %v1255_v53 = vsel %vm648_vm0, %v1253_v49, %v1254_v50  ;;  %v983_v58 = vshrl.u32 %v3824_v54, 16  ;;  %v985_v59 = vshll.u32 %v3824_v54, 16  ;;  %v5484_v62 = vld [vmem:[%s5416_s5 + $0x8c] ss:$0 sps:$4 sm:$0x11]   ;;  %v5095_v5 = vld [vmem:[%s6764_s1 + $0x10] sm:$0xff]  }
  0x1e   : > { %4753 = vmatprep.mubr.bf16.mxu1 %v1252_v46  ;;  %v3865_v63 = vcombine.low %v3817_v61, %v5476_v56  ;;  %v992_v2 = vrot.slane %v990_v60, 1  ;;  %v5491_v3 = vld [vmem:[%s5416_s5 + $0x94] sm:$0xf]  ;;  %v1257_v8 = vrot.slane %v5484_v62, 1  ;;  %v3818_v9 = vld [vmem:[%s5416_s5 + $0x90] sm:$0xe] }
  0x1f   : > { %v981_v48 = vsel %vm391_vm1, %v976_v42, %v980_v37  ;;  %v5500_v12 = vld [vmem:[%s5416_s5 + $0x98] ss:$0 sps:$4 sm:$0x11]   ;;  %v3764_v22 = vld [vmem:[%s5416_s5 + $0x28] sm:$0xf]  ;;  %v5107_v37 = vld [vmem:[%s6764_s1 + $0x20] sm:$0xff]  }
  0x20   : > { %4322 = vmatpush3.bf16.msra.mxu0 %v5064_v14  ;;  %4877 = vmatpush3.bf16.msra.mxu1 %v5380_v13  ;;  %v1256_v6 = vrot.slane %v3865_v63, 1  ;;  %v3866_v14 = vcombine.low %v3818_v9, %v5491_v3  ;;  %v5519_v29 = vld [vmem:[%s5416_s5 + $0xa0] sm:$0xf]  ;;  %v3819_v34 = vld [vmem:[%s5416_s5 + $0x9c] sm:$0xe]  ;;  %v5108_v39 = vld [vmem:[%s6764_s1 + $0x68] sm:$0xff]  }
  0x21   : > { %4323 = vmatprep.subr.bf16.mxu0 %v5065_v15  ;;  %4870 = vmatprep.subr.bf16.mxu1 %v5397_v16  ;;  %v5096_v15 = vld [vmem:[%s6764_s1 + $0x58] sm:$0xff]   ;;  %v3867_v36 = vcombine.low %v3819_v34, %v5519_v29  ;;  %v5538_v42 = vld [vmem:[%s5416_s5 + $0xac] sm:$0xf]  ;;  %v3820_v46 = vld [vmem:[%s5416_s5 + $0xa8] sm:$0xe] }
  0x22   : > { %1515 = vmatprep.mubr.bf16.mxu0 %v981_v48  ;;  %v5544_v48 = vld [vmem:[%s5416_s5 + $0xb0] ss:$0 sps:$4 sm:$0x11]   ;;  %v3868_v49 = vcombine.low %v3820_v46, %v5538_v42  ;;  %v3766_v55 = vld [vmem:[%s5416_s5 + $0x34] sm:$0xf] }
  0x23   : > { %v1262_v44 = vrot.slane %v3867_v36, 1  ;;  %v5563_v60 = vld [vmem:[%s5416_s5 + $0xb8] sm:$0xf]  ;;  %v183_v34 = vld [vmem:[%s5416_s5] sm:$0xf] }
  0x24   : > { %4324 = vmatpush3.bf16.msra.mxu0 %v5067_v17  ;;  %4878 = vmatpush3.bf16.msra.mxu1 %v5397_v16  ;;  %v1258_v17 = vsel %vm648_vm0, %v1256_v6, %v1257_v8  ;;  %v1265_v52 = vrot.slane %v3868_v49, 1  ;;  %v184_v36 = vld [vmem:[%s5416_s5 + $0x4] sm:$0xf] }
  0x25   : > { %4325 = vmatprep.subr.bf16.mxu0 %v5068_v18  ;;  %4871 = vmatprep.subr.bf16.mxu1 %v5411_v19 }
  0x28   : > { %4326 = vmatpush3.bf16.msra.mxu0 %v5070_v20  ;;  %4879 = vmatpush3.bf16.msra.mxu1 %v5411_v19  ;;  %v1260_v20 = vrot.slane %v5500_v12, 1 }
  0x29   : > { %4327 = vmatprep.subr.bf16.mxu0 %v5071_v21  ;;  %4872 = vmatprep.subr.bf16.mxu1 %v5431_v24  ;;  %v3763_v21 = vld [vmem:[%s5416_s5 + $0x24] sm:$0xf] }
  0x2a   : > { %v3825_v26 = vcombine.low %v3763_v21, %v3764_v22  ;;  %v5121_v21 = vld [vmem:[%s6764_s1 + $0x38] sm:$0xff]  }
  0x2c   : > { %4328 = vmatpush3.bf16.msra.mxu0 %v5073_v28  ;;  %4880 = vmatpush3.bf16.msra.mxu1 %v5431_v24  ;;  %v5099_v28 = vld [vmem:[%s5416_s5 + $0x2c] ss:$0 sps:$4 sm:$0x11]   ;;  %v995_v30 = vshrl.u32 %v3825_v26, 16  ;;  %v997_v31 = vshll.u32 %v3825_v26, 16 }
  0x2d   : > { %4721 = vmatprep.subr.bf16.mxu0 %v5327_v1  ;;  %4449 = vmatprep.subr.bf16.mxu1 %v5082_v35  ;;  %v1002_v32 = vshll.u32 %v5099_v28, 16  ;;  %v5527_v35 = vld [vmem:[%s5416_s5 + $0xa4] ss:$0 sps:$4 sm:$0x11]   ;;  %v5597_v28 = vld [vmem:[%s5416_s5 + $0x40] sm:$0xf] }
  0x2e   : > { %v999_v40 = vrot.slane %v997_v31, 1  ;;  %v5123_v31 = vld [vmem:[%s5416_s5 + $0x44] ss:$0 sps:$4 sm:$0x11]  }
  0x2f   : > { %1516 = vmatmul.mubr.bf16.vlgmr.msra.gmra.mrb[0].mxu0 %v3823_v25  ;;  %4754 = vmatmul.mubr.bf16.vlgmr.msra.gmra.mrb[0].mxu1 %v1255_v53  ;;  %v5097_v25 = vld [vmem:[%s6764_s1 + $0x18] sm:$0xff]   ;;  %v1004_v41 = vrot.slane %v1002_v32, 1  ;;  %v1266_v53 = vrot.slane %v5544_v48, 1  ;;  %v5126_v32 = vld [vmem:[%s6764_s1 + $0x80] sm:$0xff]  }
  0x30   : > { %4722 = vmatpush3.bf16.msra.mxu0 %v5327_v1  ;;  %4450 = vmatpush3.bf16.msra.mxu1 %v5083_v45  ;;  %v987_v1 = vrot.slane %v985_v59, 1  ;;  %v1263_v45 = vrot.slane %v5527_v35, 1  ;;  %v5111_v59 = vld [vmem:[%s5416_s5 + $0x38] ss:$0 sps:$4 sm:$0x11]  }
  0x31   : > { %4723 = vmatprep.subr.bf16.mxu0 %v5340_v4  ;;  %4451 = vmatprep.subr.bf16.mxu1 %v5084_v47  ;;  %v1000_v47 = vor.u32 %v999_v40, %v995_v30  ;;  %v3711_v40 = vcombine.low %v183_v34, %v184_v36  ;;  %v5134_v36 = vld [vmem:[%s5416_s5 + $0x20] ss:$0 sps:$4 sm:$0x11]  }
  0x32   : > { %v988_v11 = vor.u32 %v987_v1, %v983_v58  ;;  %4757 = vmatprep.mubr.bf16.mxu1 %v1258_v17  ;;  %v1264_v50 = vsel %vm648_vm0, %v1262_v44, %v1263_v45  ;;  %v3821_v1 = vld [vmem:[%s5416_s5 + $0xb4] sm:$0xe]  ;;  %v3822_v17 = vld [vmem:[%s5416_s5 + $0xc0] sm:$0xe]  ;;  %v3769_v44 = vld [vmem:[%s5416_s5 + $0x48] sm:$0xf] }
  0x33   : > { %v1005_v51 = vsel %vm391_vm1, %v1000_v47, %v1004_v41  ;;  %v3869_v6 = vcombine.low %v3821_v1, %v5563_v60  ;;  %v5125_v41 = vld [vmem:[%s5416_s5 + $0x8] ss:$0 sps:$4 sm:$0x11]   ;;  %v393_v47 = vshrl.u32 %v3711_v40, 16  ;;  %v395_v49 = vshll.u32 %v3711_v40, 16 }
  0x34   : > { %4724 = vmatpush3.bf16.msra.mxu0 %v5340_v4  ;;  %4452 = vmatpush3.bf16.msra.mxu1 %v5085_v57  ;;  %v993_v18 = vsel %vm391_vm1, %v988_v11, %v992_v2  ;;  %v1259_v4 = vrot.slane %v3866_v14, 1  ;;  %v1267_v57 = vsel %vm648_vm0, %v1265_v52, %v1266_v53  ;;  %v5119_v2 = vld [vmem:[%s6764_s1 + $0x30] sm:$0xff]   ;;  %v5579_v11 = vld [vmem:[%s5416_s5 + $0xc4] sm:$0xf] }
  0x35   : > { %4725 = vmatprep.subr.bf16.mxu0 %v5352_v7  ;;  %4453 = vmatprep.subr.bf16.mxu1 %v5094_v0  ;;  %v1014_v0 = vshll.u32 %v5111_v59, 16  ;;  %v1268_v14 = vrot.slane %v3869_v6, 1  ;;  %v5617_v52 = vld [vmem:[%s5416_s5 + $0x50] ss:$0 sps:$4 sm:$0x11]  }
  0x36   : > { %1523 = vmatprep.mubr.bf16.mxu0 %v993_v18  ;;  %v1261_v23 = vsel %vm648_vm0, %v1259_v4, %v1260_v20  ;;  %v5585_v4 = vld [vmem:[%s5416_s5 + $0xc8] ss:$0 sps:$4 sm:$0x11]   ;;  %v3870_v20 = vcombine.low %v3822_v17, %v5579_v11  ;;  %v5130_v6 = vld [vmem:[%s5416_s5 + $0x14] ss:$0 sps:$4 sm:$0x11]  }
  0x37   : > { %1524 = vmatmul.mubr.bf16.gmra.mrb[4].mxu0 %v3824_v54  ;;  %4758 = vmatmul.mubr.bf16.gmra.mrb[4].mxu1 %v1261_v23  ;;  %v3765_v54 = vld [vmem:[%s5416_s5 + $0x30] sm:$0xf]  ;;  %v1016_v9 = vrot.slane %v1014_v0, 1 }
  0x38   : > { %4726 = vmatpush3.bf16.msra.mxu0 %v5352_v7  ;;  %4454 = vmatpush3.bf16.msra.mxu1 %v5095_v5  ;;  %v5106_v7 = vld [vmem:[%s6764_s1 + $0x60] sm:$0xff]   ;;  %v3826_v58 = vcombine.low %v3765_v54, %v3766_v55  ;;  %v5572_v5 = vld [vmem:[%s5416_s5 + $0xbc] ss:$0 sps:$4 sm:$0x11]   ;;  %v397_v54 = vrot.slane %v395_v49, 1 }
  0x39   : > { %4455 = vmatprep.subr.bf16.mxu1 %v5096_v15  ;;  %4727 = vmatprep.subr.bf16.mxu0 %v5367_v10  ;;  %v1269_v15 = vrot.slane %v5572_v5, 1  ;;  %v185_v55 = vld [vmem:[%s5416_s5 + $0xc] sm:$0xf] }
  0x3a   : > { %4761 = vmatprep.mubr.bf16.mxu1 %v1264_v50  ;;  %1531 = vmatprep.mubr.bf16.mxu0 %v1005_v51  ;;  %v1007_v61 = vshrl.u32 %v3826_v58, 16  ;;  %v1009_v63 = vshll.u32 %v3826_v58, 16  ;;  %v400_v50 = vshll.u32 %v5125_v41, 16  ;;  %v398_v1 = vor.u32 %v397_v54, %v393_v47 }
  0x3b   : > { %v1270_v22 = vsel %vm648_vm0, %v1268_v14, %v1269_v15  ;;  %v5634_v15 = vld [vmem:[%s5416_s5 + $0x58] sm:$0xf] }
  0x3c   : > { %4728 = vmatpush3.bf16.msra.mxu0 %v5367_v10  ;;  %4456 = vmatpush3.bf16.msra.mxu1 %v5097_v25  ;;  %v5109_v10 = vld [vmem:[%s6764_s1 + $0x28] sm:$0xff]   ;;  %v1011_v8 = vrot.slane %v1009_v63, 1  ;;  %v1272_v25 = vrot.slane %v5585_v4, 1 }
  0x3d   : > { %4729 = vmatprep.subr.bf16.mxu0 %v5380_v13  ;;  %4457 = vmatprep.subr.bf16.mxu1 %v5106_v7  ;;  %v3775_v63 = vld [vmem:[%s5416_s5 + $0x6c] sm:$0xf] }
  0x3e   : > { %v1012_v18 = vor.u32 %v1011_v8, %v1007_v61  ;;  %v1038_v61 = vshll.u32 %v5617_v52, 16  ;;  %v5135_v8 = vld [vmem:[%s6764_s1 + $0x88] sm:$0xff]  }
  0x3f   : > { %1532 = vmatmul.mubr.bf16.gmra.mrb[8].mxu0 %v3825_v26  ;;  %4762 = vmatmul.mubr.bf16.gmra.mrb[8].mxu1 %v1267_v57  ;;  %v3767_v26 = vld [vmem:[%s5416_s5 + $0x3c] sm:$0xf]  ;;  %v186_v57 = vld [vmem:[%s5416_s5 + $0x10] sm:$0xf] }
  0x40   : > { %4730 = vmatpush3.bf16.msra.mxu0 %v5380_v13  ;;  %4458 = vmatpush3.bf16.msra.mxu1 %v5107_v37  ;;  %v5118_v13 = vld [vmem:[%s6764_s1 + $0x70] sm:$0xff]   ;;  %v1017_v23 = vsel %vm391_vm1, %v1012_v18, %v1016_v9  ;;  %v3827_v30 = vcombine.low %v3767_v26, %v5597_v28  ;;  %v1040_v14 = vrot.slane %v1038_v61, 1  ;;  %v188_v26 = vld [vmem:[%s5416_s5 + $0x1c] sm:$0xf] }
  0x41   : > { %4459 = vmatprep.subr.bf16.mxu1 %v5108_v39  ;;  %4731 = vmatprep.subr.bf16.mxu0 %v5397_v16 }
  0x42   : > { %4765 = vmatprep.mubr.bf16.mxu1 %v1270_v22  ;;  %1539 = vmatprep.mubr.bf16.mxu0 %v1017_v23  ;;  %v1019_v37 = vshrl.u32 %v3827_v30, 16  ;;  %v1021_v39 = vshll.u32 %v3827_v30, 16  ;;  %v5640_v22 = vld [vmem:[%s5416_s5 + $0x5c] ss:$0 sps:$4 sm:$0x11]  }
  0x44   : > { %4732 = vmatpush3.bf16.msra.mxu0 %v5397_v16  ;;  %4460 = vmatpush3.bf16.msra.mxu1 %v5109_v10  ;;  %v5120_v16 = vld [vmem:[%s6764_s1 + $0x78] sm:$0xff]   ;;  %v1023_v45 = vrot.slane %v1021_v39, 1  ;;  %v5611_v10 = vld [vmem:[%s5416_s5 + $0x4c] sm:$0xf] }
  0x45   : > { %4733 = vmatprep.subr.bf16.mxu0 %v5411_v19  ;;  %4461 = vmatprep.subr.bf16.mxu1 %v5118_v13  ;;  %v5614_v51 = vcombine.low %v3769_v44, %v5611_v10 }
  0x46   : > { %v1024_v53 = vor.u32 %v1023_v45, %v1019_v37  ;;  %v5652_v37 = vcombine.low %v3775_v63, %v5435_v27  ;;  %v3773_v27 = vld [vmem:[%s5416_s5 + $0x60] sm:$0xf]  ;;  %v190_v63 = vld [vmem:[%s5416_s5 + $0x28] sm:$0xf] }
  0x47   : > { %1540 = vmatmul.mubr.bf16.gmra.mrb[12].mxu0 %v3826_v58  ;;  %v402_v58 = vrot.slane %v400_v50, 1  ;;  %v1031_v59 = vshrl.u32 %v5614_v51, 16  ;;  %v1033_v13 = vshll.u32 %v5614_v51, 16  ;;  %v424_v50 = vshll.u32 %v5134_v36, 16 }
  0x48   : > { %4734 = vmatpush3.bf16.msra.mxu0 %v5411_v19  ;;  %4462 = vmatpush3.bf16.msra.mxu1 %v5119_v2  ;;  %v1271_v19 = vrot.slane %v3870_v20, 1  ;;  %v5626_v2 = vcombine.low %v185_v55, %v186_v57 }
  0x49   : > { %4735 = vmatprep.subr.bf16.mxu0 %v5431_v24  ;;  %4463 = vmatprep.subr.bf16.mxu1 %v5120_v16  ;;  %v3771_v16 = vld [vmem:[%s5416_s5 + $0x54] sm:$0xf]  ;;  %v1035_v9 = vrot.slane %v1033_v13, 1  ;;  %v403_v17 = vsel %vm391_vm1, %v398_v1, %v402_v58  ;;  %v5672_v58 = vld [vmem:[%s5416_s5 + $0x68] ss:$0 sps:$4 sm:$0x11]  }
  0x4a   : > { %v1273_v7 = vsel %vm648_vm0, %v1271_v19, %v1272_v25  ;;  %v405_v18 = vshrl.u32 %v5626_v2, 16  ;;  %v407_v20 = vshll.u32 %v5626_v2, 16  ;;  %v5643_v19 = vcombine.low %v3771_v16, %v5634_v15  ;;  %v187_v25 = vld [vmem:[%s5416_s5 + $0x18] sm:$0xf] }
  0x4b   : > { %4766 = vmatmul.mubr.bf16.gmra.mrb[12].mxu1 %v1273_v7  ;;  %v1036_v23 = vor.u32 %v1035_v9, %v1031_v59  ;;  %v5648_v34 = vcombine.low %v187_v25, %v188_v26  ;;  %v189_v59 = vld [vmem:[%s5416_s5 + $0x24] sm:$0xf]  ;;  %v426_v61 = vrot.slane %v424_v50, 1  ;;  %v1062_v9 = vshll.u32 %v5672_v58, 16 }
  0x4c   : > { %4736 = vmatpush3.bf16.msra.mxu0 %v5431_v24  ;;  %4464 = vmatpush3.bf16.msra.mxu1 %v5121_v21  ;;  %v1026_v24 = vshll.u32 %v5123_v31, 16  ;;  %v412_v21 = vshll.u32 %v5130_v6, 16  ;;  %v409_v7 = vrot.slane %v407_v20, 1  ;;  %v1045_v41 = vshll.u32 %v5643_v19, 16 }
  0x4d   : > { %4769 = vmatprep.subr.bf16.mxu1 %v5126_v32  ;;  %1981 = vmatprep.mubr.bf16.mxu1 %v403_v17  ;;  %v1041_v39 = vsel %vm391_vm1, %v1036_v23, %v1040_v14  ;;  %v419_v47 = vshll.u32 %v5648_v34, 16  ;;  %v5139_v14 = vld [vmem:[%s5416_s5 + $0x2c] ss:$0 sps:$4 sm:$0x11]   ;;  %v5687_v20 = vcombine.low %v189_v59, %v190_v63  ;;  %v192_v23 = vld [vmem:[%s5416_s5 + $0x34] sm:$0xf] }
  0x4e   : > { %v1028_v46 = vrot.slane %v1026_v24, 1  ;;  %v414_v31 = vrot.slane %v412_v21, 1  ;;  %v1043_v24 = vshrl.u32 %v5643_v19, 16  ;;  %v410_v44 = vor.u32 %v409_v7, %v405_v18  ;;  %v3779_v18 = vld [vmem:[%s5416_s5 + $0x84] sm:$0xf] }
  0x4f   : > { %v1047_v49 = vrot.slane %v1045_v41, 1  ;;  %v421_v55 = vrot.slane %v419_v47, 1  ;;  %v191_v21 = vld [vmem:[%s5416_s5 + $0x30] sm:$0xf]  ;;  %v1064_v7 = vrot.slane %v1062_v9, 1  ;;  %v431_v36 = vshll.u32 %v5687_v20, 16 }
  0x50   : > { %v1029_v0 = vsel %vm391_vm1, %v1024_v53, %v1028_v46  ;;  %v417_v46 = vshrl.u32 %v5648_v34, 16  ;;  %v5665_v53 = vld [vmem:[%s5416_s5 + $0x64] sm:$0xf]  ;;  %v415_v54 = vsel %vm391_vm1, %v410_v44, %v414_v31  ;;  %v436_v31 = vshll.u32 %v5139_v14, 16  ;;  %v3781_v59 = vld [vmem:[%s5416_s5 + $0x90] sm:$0xf] }
  0x51   : > { %1547 = vmatprep.mubr.bf16.mxu0 %v1029_v0  ;;  %v5669_v57 = vcombine.low %v3773_v27, %v5665_v53  ;;  %v1048_v13 = vor.u32 %v1047_v49, %v1043_v24  ;;  %v1069_v0 = vshll.u32 %v5652_v37, 16  ;;  %v5141_v24 = vld [vmem:[%s5416_s5 + $0x38] ss:$0 sps:$4 sm:$0x11]   ;;  %v5701_v44 = vcombine.low %v191_v21, %v192_v23  ;;  %v193_v27 = vld [vmem:[%s5416_s5 + $0x3c] sm:$0xf] }
  0x52   : > { %1548 = vmatmul.mubr.bf16.gmra.mrb[16].mxu0 %v3827_v30  ;;  %v1050_v30 = vshll.u32 %v5640_v22, 16  ;;  %v422_v1 = vor.u32 %v421_v55, %v417_v46  ;;  %v438_v41 = vrot.slane %v436_v31, 1  ;;  %v5152_v49 = vld [vmem:[%s6764_s1 + $0xa0] sm:$0xff]  }
  0x53   : > { %1982 = vmatmul.mubr.bf16.vlgmr.msra.gmra.mrb[16].mxu1 %v3711_v40  ;;  %v3777_v40 = vld [vmem:[%s5416_s5 + $0x78] sm:$0xf]  ;;  %1555 = vmatprep.mubr.bf16.mxu0 %v1041_v39  ;;  %v1055_v6 = vshrl.u32 %v5669_v57, 16  ;;  %v1057_v16 = vshll.u32 %v5669_v57, 16  ;;  %v1071_v39 = vrot.slane %v1069_v0, 1 }
  0x54   : > { %4770 = vmatpush3.bf16.msra.mxu1 %v5126_v32  ;;  %v1052_v45 = vrot.slane %v1050_v30, 1  ;;  %v5142_v32 = vld [vmem:[%s6764_s1 + $0x90] sm:$0xff]   ;;  %1989 = vmatprep.mubr.bf16.mxu1 %v415_v54  ;;  %v5683_v17 = vcombine.low %v3777_v40, %v5451_v38  ;;  %v427_v25 = vsel %vm391_vm1, %v422_v1, %v426_v61  ;;  %v5147_v38 = vld [vmem:[%s6764_s1 + $0x98] sm:$0xff]   ;;  %v429_v30 = vshrl.u32 %v5687_v20, 16  ;;  %v5716_v55 = vld [vmem:[%s5416_s5 + $0x40] sm:$0xf] }
  0x55   : > { %4771 = vmatprep.subr.bf16.mxu1 %v5135_v8  ;;  %v1059_v26 = vrot.slane %v1057_v16, 1  ;;  %v1074_v40 = vshll.u32 %v5443_v33, 16  ;;  %v443_v33 = vshll.u32 %v5701_v44, 16  ;;  %v1086_v54 = vshll.u32 %v5456_v43, 16  ;;  %v5157_v43 = vld [vmem:[%s6764_s1 + $0xa8] sm:$0xff]  }
  0x56   : > { %v1079_v46 = vshrl.u32 %v5683_v17, 16  ;;  %v1081_v47 = vshll.u32 %v5683_v17, 16  ;;  %v5720_v63 = vcombine.low %v193_v27, %v5716_v55  ;;  %v448_v1 = vshll.u32 %v5141_v24, 16  ;;  %v3783_v16 = vld [vmem:[%s5416_s5 + $0x9c] sm:$0xf] }
  0x57   : > { %v445_v0 = vrot.slane %v443_v33, 1  ;;  %v5734_v21 = vld [vmem:[%s5416_s5 + $0x44] ss:$0 sps:$4 sm:$0x11]  }
  0x58   : > { %4772 = vmatpush3.bf16.msra.mxu1 %v5135_v8  ;;  %v1053_v8 = vsel %vm391_vm1, %v1048_v13, %v1052_v45  ;;  %v433_v45 = vrot.slane %v431_v36, 1  ;;  %v1083_v61 = vrot.slane %v1081_v47, 1  ;;  %v455_v31 = vshll.u32 %v5720_v63, 16  ;;  %v5745_v36 = vld [vmem:[%s5416_s5 + $0x4c] sm:$0xf] }
  0x59   : > { %4773 = vmatprep.subr.bf16.mxu1 %v5142_v32  ;;  %v3785_v47 = vld [vmem:[%s5416_s5 + $0xa8] sm:$0xf]  ;;  %v453_v27 = vshrl.u32 %v5720_v63, 16 }
  0x5a   : > { %1556 = vmatmul.mubr.bf16.gmra.mrb[20].mxu0 %v5614_v51  ;;  %v1067_v51 = vshrl.u32 %v5652_v37, 16  ;;  %v434_v13 = vor.u32 %v433_v45, %v429_v30 }
  0x5b   : > { %1990 = vmatmul.mubr.bf16.gmra.mrb[20].mxu1 %v5626_v2  ;;  %1563 = vmatprep.mubr.bf16.mxu0 %v1053_v8  ;;  %v1060_v2 = vor.u32 %v1059_v26, %v1055_v6  ;;  %v1088_v6 = vrot.slane %v1086_v54, 1  ;;  %v1084_v8 = vor.u32 %v1083_v61, %v1079_v46  ;;  %v1098_v26 = vshll.u32 %v5484_v62, 16  ;;  %v5164_v62 = vld [vmem:[%s6764_s1 + $0xb0] sm:$0xff]  }
  0x5c   : > { %1997 = vmatprep.mubr.bf16.mxu1 %v427_v25  ;;  %4774 = vmatpush3.bf16.msra.mxu1 %v5142_v32  ;;  %v5710_v32 = vcombine.low %v3779_v18, %v5476_v56  ;;  %v441_v56 = vshrl.u32 %v5701_v44, 16  ;;  %v439_v9 = vsel %vm391_vm1, %v434_v13, %v438_v41  ;;  %v1072_v14 = vor.u32 %v1071_v39, %v1067_v51  ;;  %v3787_v13 = vld [vmem:[%s5416_s5 + $0xb4] sm:$0xf] }
  0x5d   : > { %4775 = vmatprep.subr.bf16.mxu1 %v5147_v38  ;;  %v1065_v50 = vsel %vm391_vm1, %v1060_v2, %v1064_v7  ;;  %v1076_v18 = vrot.slane %v1074_v40, 1  ;;  %v195_v7 = vld [vmem:[%s5416_s5 + $0x48] sm:$0xf]  ;;  %v5741_v51 = vsel %vm391_vm1, %v1084_v8, %v1088_v6  ;;  %v1100_v30 = vrot.slane %v1098_v26, 1  ;;  %v5165_v2 = vld [vmem:[%s6764_s1 + $0x1c0] sm:$0xff]  }
  0x5e   : > { %v1091_v23 = vshrl.u32 %v5710_v32, 16  ;;  %v1093_v25 = vshll.u32 %v5710_v32, 16  ;;  %v5751_v39 = vcombine.low %v3783_v16, %v5519_v29  ;;  %v1110_v46 = vshll.u32 %v5500_v12, 16  ;;  %4585 = vmatprep.subr.bf16.mxu0 %v5165_v2  ;;  %v5788_v8 = vld [vmem:[%s5416_s5 + $0x58] sm:$0xf] }
  0x5f   : > { %v1077_v24 = vsel %vm391_vm1, %v1072_v14, %v1076_v18  ;;  %v460_v29 = vshll.u32 %v5734_v21, 16  ;;  %v1122_v6 = vshll.u32 %v5527_v35, 16  ;;  %v3789_v26 = vld [vmem:[%s5416_s5 + $0xc0] sm:$0xf] }
  0x60   : > { %4776 = vmatpush3.bf16.msra.mxu1 %v5147_v38  ;;  %v450_v38 = vrot.slane %v448_v1, 1  ;;  %v1115_v61 = vshrl.u32 %v5751_v39, 16 }
  0x61   : > { %4777 = vmatprep.subr.bf16.mxu1 %v5152_v49 }
  0x62   : > { %1564 = vmatmul.mubr.bf16.gmra.mrb[24].mxu0 %v5643_v19  ;;  %v5730_v19 = vcombine.low %v3781_v59, %v5491_v3  ;;  %v446_v3 = vor.u32 %v445_v0, %v441_v56  ;;  %v1112_v59 = vrot.slane %v1110_v46, 1  ;;  %v1117_v56 = vshll.u32 %v5751_v39, 16 }
  0x63   : > { %1571 = vmatprep.mubr.bf16.mxu0 %v1065_v50  ;;  %1998 = vmatmul.mubr.bf16.gmra.mrb[24].mxu1 %v5648_v34  ;;  %v1095_v34 = vrot.slane %v1093_v25, 1  ;;  %v5764_v50 = vcombine.low %v195_v7, %v5745_v36  ;;  %v5775_v0 = vcombine.low %v3785_v47, %v5538_v42  ;;  %v197_v42 = vld [vmem:[%s5416_s5 + $0x54] sm:$0xf] }
  0x64   : > { %2005 = vmatprep.mubr.bf16.mxu1 %v439_v9  ;;  %4778 = vmatpush3.bf16.msra.mxu1 %v5152_v49  ;;  %v1103_v40 = vshrl.u32 %v5730_v19, 16  ;;  %v1105_v45 = vshll.u32 %v5730_v19, 16  ;;  %v457_v49 = vrot.slane %v455_v31, 1  ;;  %v451_v33 = vsel %vm391_vm1, %v446_v3, %v450_v38 }
  0x65   : > { %4779 = vmatprep.subr.bf16.mxu1 %v5157_v43  ;;  %v1096_v41 = vor.u32 %v1095_v34, %v1091_v23  ;;  %v1119_v16 = vrot.slane %v1117_v56, 1  ;;  %v467_v14 = vshll.u32 %v5764_v50, 16  ;;  %v5791_v23 = vcombine.low %v3787_v13, %v5563_v60 }
  0x66   : > { %v1107_v12 = vrot.slane %v1105_v45, 1  ;;  %v458_v9 = vor.u32 %v457_v49, %v453_v27  ;;  %v1127_v35 = vshrl.u32 %v5775_v0, 16  ;;  %v1129_v7 = vshll.u32 %v5775_v0, 16 }
  0x67   : > { %v5769_v54 = vsel %vm391_vm1, %v1096_v41, %v1100_v30  ;;  %v1120_v25 = vor.u32 %v1119_v16, %v1115_v61  ;;  %v1134_v31 = vshll.u32 %v5544_v48, 16  ;;  %v465_v3 = vshrl.u32 %v5764_v50, 16 }
  0x68   : > { %4780 = vmatpush3.bf16.msra.mxu1 %v5157_v43  ;;  %v1108_v1 = vor.u32 %v1107_v12, %v1103_v40  ;;  %v462_v43 = vrot.slane %v460_v29, 1  ;;  %v5800_v34 = vcombine.low %v197_v42, %v5788_v8  ;;  %v5808_v48 = vcombine.low %v3789_v26, %v5579_v11 }
  0x69   : > { %4781 = vmatprep.subr.bf16.mxu1 %v5164_v62  ;;  %v1136_v2 = vrot.slane %v1134_v31, 1  ;;  %v1139_v41 = vshrl.u32 %v5791_v23, 16  ;;  %v1141_v40 = vshll.u32 %v5791_v23, 16  ;;  %v1146_v45 = vshll.u32 %v5572_v5, 16 }
  0x6a   : > { %1572 = vmatmul.mubr.bf16.gmra.mrb[28].mxu0 %v5669_v57  ;;  %v5779_v57 = vld [vmem:[%s5416_s5 + $0x50] ss:$0 sps:$4 sm:$0x11]   ;;  %v5784_v18 = vsel %vm391_vm1, %v1108_v1, %v1112_v59  ;;  %v463_v60 = vsel %vm391_vm1, %v458_v9, %v462_v43  ;;  %v479_v11 = vshll.u32 %v5800_v34, 16  ;;  %v1151_v5 = vshrl.u32 %v5808_v48, 16 }
  0x6b   : > { %1579 = vmatprep.mubr.bf16.mxu0 %v1077_v24  ;;  %2006 = vmatmul.mubr.bf16.gmra.mrb[28].mxu1 %v5687_v20  ;;  %v1124_v20 = vrot.slane %v1122_v6, 1  ;;  %v472_v38 = vshll.u32 %v5779_v57, 16  ;;  %v1131_v24 = vrot.slane %v1129_v7, 1  ;;  %v1143_v47 = vrot.slane %v1141_v40, 1  ;;  %v201_v7 = vld [vmem:[%s5416_s5 + $0x6c] sm:$0xf] }
  0x6c   : > { %2013 = vmatprep.mubr.bf16.mxu1 %v451_v33  ;;  %4782 = vmatpush3.bf16.msra.mxu1 %v5164_v62  ;;  %v469_v62 = vrot.slane %v467_v14, 1  ;;  %v1148_v27 = vrot.slane %v1146_v45, 1  ;;  %v199_v33 = vld [vmem:[%s5416_s5 + $0x60] sm:$0xf]  ;;  %v1158_v13 = vshll.u32 %v5585_v4, 16  ;;  %v477_v9 = vshrl.u32 %v5800_v34, 16 }
  0x6d   : > { %v5803_v30 = vsel %vm391_vm1, %v1120_v25, %v1124_v20  ;;  %v1132_v46 = vor.u32 %v1131_v24, %v1127_v35  ;;  %v474_v29 = vrot.slane %v472_v38, 1  ;;  %v1144_v59 = vor.u32 %v1143_v47, %v1139_v41  ;;  %v5181_v4 = vld [vmem:[%s6764_s1 + $0xb8] sm:$0xff]   ;;  %v5845_v20 = vld [vmem:[%s5416_s5 + $0x68] ss:$0 sps:$4 sm:$0x11]  }
  0x6e   : > { %v470_v49 = vor.u32 %v469_v62, %v465_v3  ;;  %v1160_v43 = vrot.slane %v1158_v13, 1  ;;  %v481_v14 = vrot.slane %v479_v11, 1  ;;  %4783 = vmatprep.subr.bf16.mxu1 %v5181_v4  ;;  %v496_v3 = vshll.u32 %v5845_v20, 16  ;;  %v5864_v62 = vld [vmem:[%s5416_s5 + $0x74] ss:$0 sps:$4 sm:$0x11]  }
  0x6f   : > { %v5824_v12 = vsel %vm391_vm1, %v1132_v46, %v1136_v2  ;;  %v5834_v1 = vsel %vm391_vm1, %v1144_v59, %v1148_v27  ;;  %v203_v41 = vld [vmem:[%s5416_s5 + $0x78] sm:$0xf]  ;;  %v3812_v47 = vld [vmem:[%s5416_s5 + $0x48] sm:$0xe]  ;;  %v205_v59 = vld [vmem:[%s5416_s5 + $0x84] sm:$0xf] }
  0x70   : > { %v475_v16 = vsel %vm391_vm1, %v470_v49, %v474_v29  ;;  %4784 = vmatpush3.bf16.msra.mxu1 %v5181_v4  ;;  %v482_v35 = vor.u32 %v481_v14, %v477_v9  ;;  %v498_v2 = vrot.slane %v496_v3, 1  ;;  %v3860_v49 = vcombine.low %v3812_v47, %v5611_v10  ;;  %v5885_v11 = vld [vmem:[%s5416_s5 + $0x80] ss:$0 sps:$4 sm:$0x11]   ;;  %v5893_v10 = vld [vmem:[%s5416_s5 + $0x88] sm:$0xf] }
  0x71   : > { %v1242_v29 = vrot.slane %v5617_v52, 1  ;;  %v1248_v9 = vrot.slane %v5672_v58, 1  ;;  %v5946_v47 = vld [vmem:[%s5416_s5 + $0x98] ss:$0 sps:$4 sm:$0x11]  }
  0x72   : > { %1580 = vmatmul.mubr.bf16.gmra.mrb[32].mxu0 %v5652_v37  ;;  %v5816_v37 = vld [vmem:[%s5416_s5 + $0x5c] ss:$0 sps:$4 sm:$0x11]  }
  0x73   : > { %1587 = vmatprep.mubr.bf16.mxu0 %v5741_v51  ;;  %2014 = vmatmul.mubr.bf16.gmra.mrb[32].mxu1 %v5701_v44  ;;  %v5821_v51 = vld [vmem:[%s5416_s5 + $0x64] sm:$0xf]  ;;  %v1153_v44 = vshll.u32 %v5808_v48, 16  ;;  %v484_v61 = vshll.u32 %v5816_v37, 16 }
  0x74   : > { %2021 = vmatprep.mubr.bf16.mxu1 %v463_v60  ;;  %v5831_v56 = vcombine.low %v199_v33, %v5821_v51  ;;  %v1241_v33 = vrot.slane %v3860_v49, 1 }
  0x75   : > { %v1155_v6 = vrot.slane %v1153_v44, 1 }
  0x76   : > { %v491_v25 = vshll.u32 %v5831_v56, 16  ;;  %v5890_v13 = vsel %vm648_vm0, %v1241_v33, %v1242_v29  ;;  %v3808_v33 = vld [vmem:[%s5416_s5 + $0x18] sm:$0xe] }
  0x77   : > { %v1156_v42 = vor.u32 %v1155_v6, %v1151_v5 }
  0x78   : > { %v493_v31 = vrot.slane %v491_v25, 1  ;;  %v5917_v25 = vld [vmem:[%s5416_s5 + $0x8c] ss:$0 sps:$4 sm:$0x11]  }
  0x79   : > { %v5849_v26 = vsel %vm391_vm1, %v1156_v42, %v1160_v43  ;;  %v520_v43 = vshll.u32 %v5885_v11, 16 }
  0x7a   : > { %1588 = vmatmul.mubr.bf16.gmra.mrb[36].mxu0 %v5683_v17  ;;  %v486_v17 = vrot.slane %v484_v61, 1  ;;  %v3813_v61 = vld [vmem:[%s5416_s5 + $0x54] sm:$0xe] }
  0x7b   : > { %1595 = vmatprep.mubr.bf16.mxu0 %v5769_v54  ;;  %2022 = vmatmul.mubr.bf16.gmra.mrb[36].mxu1 %v5720_v63  ;;  %v5853_v54 = vld [vmem:[%s5416_s5 + $0x70] sm:$0xf]  ;;  %v489_v63 = vshrl.u32 %v5831_v56, 16  ;;  %v3861_v52 = vcombine.low %v3813_v61, %v5634_v15  ;;  %v5906_v15 = vcombine.low %v205_v59, %v5893_v10  ;;  %v544_v61 = vshll.u32 %v5946_v47, 16 }
  0x7c   : > { %2029 = vmatprep.mubr.bf16.mxu1 %v475_v16  ;;  %v487_v38 = vsel %vm391_vm1, %v482_v35, %v486_v17  ;;  %v5860_v60 = vcombine.low %v201_v7, %v5853_v54  ;;  %v522_v17 = vrot.slane %v520_v43, 1  ;;  %v5922_v7 = vld [vmem:[%s5416_s5 + $0x94] sm:$0xf]  ;;  %v237_v43 = vld [vmem:[%s5416_s5 + $0x48] sm:$0xe] }
  0x7d   : > { %v494_v24 = vor.u32 %v493_v31, %v489_v63  ;;  %v527_v35 = vshll.u32 %v5906_v15, 16  ;;  %v525_v63 = vshrl.u32 %v5906_v15, 16 }
  0x7e   : > { %v503_v40 = vshll.u32 %v5860_v60, 16  ;;  %v501_v46 = vshrl.u32 %v5860_v60, 16 }
  0x7f   : > { %v499_v45 = vsel %vm391_vm1, %v494_v24, %v498_v2  ;;  %v529_v3 = vrot.slane %v527_v35, 1  ;;  %v3807_v24 = vld [vmem:[%s5416_s5 + $0xc] sm:$0xe]  ;;  %v5269_v35 = vld [vmem:[%s5416_s5 + $0x28] sm:$0xf] }
  0x82   : > { %1596 = vmatmul.mubr.bf16.gmra.mrb[40].mxu0 %v5710_v32  ;;  %v5870_v32 = vld [vmem:[%s5416_s5 + $0x7c] sm:$0xf] }
  0x83   : > { %1603 = vmatprep.mubr.bf16.mxu0 %v5784_v18  ;;  %2030 = vmatmul.mubr.bf16.gmra.mrb[40].mxu1 %v5764_v50  ;;  %v508_v18 = vshll.u32 %v5864_v62, 16  ;;  %v505_v50 = vrot.slane %v503_v40, 1  ;;  %v5878_v27 = vcombine.low %v203_v41, %v5870_v32  ;;  %v209_v41 = vld [vmem:[%s5416_s5 + $0x9c] sm:$0xf] }
  0x84   : > { %2037 = vmatprep.mubr.bf16.mxu1 %v487_v38  ;;  %v532_v38 = vshll.u32 %v5917_v25, 16 }
  0x85   : > { %v510_v5 = vrot.slane %v508_v18, 1  ;;  %v515_v44 = vshll.u32 %v5878_v27, 16  ;;  %v513_v6 = vshrl.u32 %v5878_v27, 16 }
  0x86   : > { %v534_v18 = vrot.slane %v532_v38, 1 }
  0x87   : > { %v517_v4 = vrot.slane %v515_v44, 1 }
  0x8a   : > { %1604 = vmatmul.mubr.bf16.gmra.mrb[44].mxu0 %v5730_v19  ;;  %v506_v19 = vor.u32 %v505_v50, %v501_v46  ;;  %v530_v46 = vor.u32 %v529_v3, %v525_v63  ;;  %v671_v63 = vrot.slane %v5816_v37, 1 }
  0x8b   : > { %1611 = vmatprep.mubr.bf16.mxu0 %v5803_v30  ;;  %2038 = vmatmul.mubr.bf16.gmra.mrb[44].mxu1 %v5800_v34  ;;  %v1245_v30 = vrot.slane %v5640_v22, 1  ;;  %v3814_v34 = vld [vmem:[%s5416_s5 + $0x60] sm:$0xe]  ;;  %v1244_v22 = vrot.slane %v3861_v52, 1 }
  0x8c   : > { %2045 = vmatprep.mubr.bf16.mxu1 %v499_v45  ;;  %v3862_v16 = vcombine.low %v3814_v34, %v5665_v53  ;;  %v511_v14 = vsel %vm391_vm1, %v506_v19, %v510_v5  ;;  %v5943_v45 = vld [vmem:[%s5416_s5 + $0xa0] sm:$0xf]  ;;  %v665_v19 = vrot.slane %v5734_v21, 1  ;;  %v535_v5 = vsel %vm391_vm1, %v530_v46, %v534_v18  ;;  %v5267_v52 = vld [vmem:[%s5416_s5 + $0x14] ss:$0 sps:$4 sm:$0x11]  }
  0x8d   : > { %v5911_v53 = vsel %vm648_vm0, %v1244_v22, %v1245_v30  ;;  %v5950_v49 = vcombine.low %v209_v41, %v5943_v45  ;;  %v1227_v30 = vrot.slane %v5267_v52, 1  ;;  %v3809_v34 = vld [vmem:[%s5416_s5 + $0x24] sm:$0xe]  ;;  %v5268_v22 = vld [vmem:[%s5416_s5 + $0x1c] sm:$0xf] }
  0x8e   : > { %v1247_v42 = vrot.slane %v3862_v16, 1  ;;  %v668_v16 = vrot.slane %v5779_v57, 1  ;;  %v239_v41 = vld [vmem:[%s5416_s5 + $0x60] sm:$0xe]  ;;  %v3811_v52 = vld [vmem:[%s5416_s5 + $0x3c] sm:$0xe] }
  0x8f   : > { %v551_v21 = vshll.u32 %v5950_v49, 16  ;;  %v3751_v18 = vcombine.low %v239_v41, %v5821_v51  ;;  %v5168_v41 = vld [vmem:[%s6764_s1 + $0x188] sm:$0xff]  }
  0x90   : > { %v5914_v58 = vsel %vm648_vm0, %v1247_v42, %v1248_v9 }
  0x91   : > { %v553_v3 = vrot.slane %v551_v21, 1  ;;  %v5166_v21 = vld [vmem:[%s6764_s1 + $0x180] sm:$0xff]  }
  0x92   : > { %1612 = vmatmul.mubr.bf16.gmra.mrb[48].mxu0 %v5751_v39  ;;  %v518_v39 = vor.u32 %v517_v4, %v513_v6  ;;  %v546_v4 = vrot.slane %v544_v61, 1 }
  0x93   : > { %1619 = vmatprep.mubr.bf16.mxu0 %v5824_v12  ;;  %2046 = vmatmul.mubr.bf16.gmra.mrb[48].mxu1 %v5831_v56  ;;  %v207_v12 = vld [vmem:[%s5416_s5 + $0x90] sm:$0xf]  ;;  %v5927_v56 = vld [vmem:[%s6764_s1 + $0x200] sm:$0xff]  }
  0x94   : > { %2053 = vmatprep.mubr.bf16.mxu1 %v511_v14  ;;  %v523_v31 = vsel %vm391_vm1, %v518_v39, %v522_v17  ;;  %v5935_v2 = vcombine.low %v207_v12, %v5922_v7  ;;  %4817 = vmatprep.subr.bf16.mxu1 %v5927_v56  ;;  %v238_v39 = vld [vmem:[%s5416_s5 + $0x54] sm:$0xe]  ;;  %v3857_v12 = vcombine.low %v3809_v34, %v5269_v35  ;;  %v6010_v34 = vld [vmem:[%s5416_s5 + $0xb0] ss:$0 sps:$4 sm:$0x11]  }
  0x95   : > { %v3750_v57 = vcombine.low %v238_v39, %v5788_v8  ;;  %v674_v8 = vrot.slane %v5845_v20, 1  ;;  %v673_v20 = vrot.slane %v3751_v18, 1  ;;  %v5167_v39 = vld [vmem:[%s6764_s1 + $0x1c8] sm:$0xff]   ;;  %v686_v18 = vrot.slane %v5946_v47, 1  ;;  %v3968_v47 = vld [vmem:[%s5416_s5 + $0x1c] sm:$0xf] }
  0x96   : > { %v539_v50 = vshll.u32 %v5935_v2, 16  ;;  %v537_v29 = vshrl.u32 %v5935_v2, 16 }
  0x97   : > { %v670_v46 = vrot.slane %v3750_v57, 1 }
  0x98   : > { %v541_v44 = vrot.slane %v539_v50, 1 }
  0x99   : > { %v6002_v51 = vsel %vm648_vm0, %v670_v46, %v671_v63  ;;  %v3859_v63 = vcombine.low %v3811_v52, %v5597_v28  ;;  %v5173_v28 = vld [vmem:[%s6764_s1 + $0x1d0] sm:$0xff]  }
  0x9a   : > { %1620 = vmatmul.mubr.bf16.gmra.mrb[52].mxu0 %v5775_v0  ;;  %v5266_v0 = vld [vmem:[%s5416_s5 + $0x10] sm:$0xf]  ;;  %v542_v14 = vor.u32 %v541_v44, %v537_v29 }
  0x9b   : > { %1627 = vmatprep.mubr.bf16.mxu0 %v5834_v1  ;;  %2054 = vmatmul.mubr.bf16.gmra.mrb[52].mxu1 %v5860_v60  ;;  %v3855_v40 = vcombine.low %v3807_v24, %v5266_v0  ;;  %v236_v1 = vld [vmem:[%s5416_s5 + $0x3c] sm:$0xe]  ;;  %v5270_v0 = vld [vmem:[%s5416_s5 + $0x20] ss:$0 sps:$4 sm:$0x11]  }
  0x9c   : > { %2061 = vmatprep.mubr.bf16.mxu1 %v523_v31  ;;  %v3748_v59 = vcombine.low %v236_v1, %v5716_v55  ;;  %v5966_v55 = vld [vmem:[%s5416_s5 + $0xa4] ss:$0 sps:$4 sm:$0x11]   ;;  %v549_v31 = vshrl.u32 %v5950_v49, 16  ;;  %v547_v37 = vsel %vm391_vm1, %v542_v14, %v546_v4  ;;  %v3810_v29 = vld [vmem:[%s5416_s5 + $0x30] sm:$0xe] }
  0x9d   : > { %v1226_v60 = vrot.slane %v3855_v40, 1  ;;  %v556_v38 = vshll.u32 %v5966_v55, 16  ;;  %v1230_v40 = vrot.slane %v5270_v0, 1  ;;  %v5271_v1 = vld [vmem:[%s5416_s5 + $0x2c] ss:$0 sps:$4 sm:$0x11]  }
  0x9e   : > { %v664_v6 = vrot.slane %v3748_v59, 1  ;;  %v240_v59 = vld [vmem:[%s5416_s5 + $0x6c] sm:$0xe]  ;;  %v554_v44 = vor.u32 %v553_v3, %v549_v31  ;;  %v242_v14 = vld [vmem:[%s5416_s5 + $0x84] sm:$0xe]  ;;  %v568_v3 = vshll.u32 %v6010_v34, 16 }
  0x9f   : > { %v1228_v17 = vsel %vm648_vm0, %v1226_v60, %v1227_v30  ;;  %v1233_v60 = vrot.slane %v5271_v1, 1  ;;  %v558_v61 = vrot.slane %v556_v38, 1  ;;  %v241_v30 = vld [vmem:[%s5416_s5 + $0x78] sm:$0xe]  ;;  %v213_v4 = vld [vmem:[%s5416_s5 + $0xb4] sm:$0xf] }
  0xa0   : > { %v5973_v9 = vsel %vm648_vm0, %v664_v6, %v665_v19  ;;  %v677_v19 = vrot.slane %v5864_v62, 1  ;;  %v6013_v6 = vsel %vm648_vm0, %v673_v20, %v674_v8  ;;  %v680_v62 = vrot.slane %v5885_v11, 1  ;;  %v243_v38 = vld [vmem:[%s5416_s5 + $0x90] sm:$0xe]  ;;  %v3967_v1 = vld [vmem:[%s5416_s5 + $0x18] sm:$0xf] }
  0xa1   : > { %v559_v35 = vsel %vm391_vm1, %v554_v44, %v558_v61  ;;  %v3755_v46 = vcombine.low %v243_v38, %v5922_v7  ;;  %v244_v7 = vld [vmem:[%s5416_s5 + $0x9c] sm:$0xe]  ;;  %v570_v20 = vrot.slane %v568_v3, 1  ;;  %v5188_v44 = vld [vmem:[%s5416_s5 + $0xbc] ss:$0 sps:$4 sm:$0x11]  }
  0xa2   : > { %1628 = vmatmul.mubr.bf16.gmra.mrb[56].mxu0 %v5791_v23  ;;  %v3749_v23 = vcombine.low %v237_v43, %v5745_v36  ;;  %v5980_v36 = vld [vmem:[%s5416_s5 + $0xac] sm:$0xf]  ;;  %v3753_v43 = vcombine.low %v241_v30, %v5870_v32  ;;  %v4016_v38 = vld [vmem:[%s5416_s5 + $0x24] sm:$0xe] }
  0xa3   : > { %1635 = vmatprep.mubr.bf16.mxu0 %v5849_v26  ;;  %2062 = vmatmul.mubr.bf16.gmra.mrb[56].mxu1 %v5878_v27  ;;  %v211_v26 = vld [vmem:[%s5416_s5 + $0xa8] sm:$0xf]  ;;  %v3856_v27 = vcombine.low %v3808_v33, %v5268_v22  ;;  %v6026_v22 = vld [vmem:[%s5416_s5 + $0xb8] sm:$0xf] }
  0xa4   : > { %2069 = vmatprep.mubr.bf16.mxu1 %v535_v5  ;;  %v667_v42 = vrot.slane %v3749_v23, 1  ;;  %v5998_v33 = vcombine.low %v211_v26, %v5980_v36  ;;  %v1232_v5 = vrot.slane %v3857_v12, 1  ;;  %v5272_v23 = vld [vmem:[%s5416_s5 + $0x34] sm:$0xf]  ;;  %v679_v11 = vrot.slane %v3753_v43, 1 }
  0xa5   : > { %v1229_v50 = vrot.slane %v3856_v27, 1  ;;  %v3754_v27 = vcombine.low %v242_v14, %v5893_v10  ;;  %v5273_v12 = vld [vmem:[%s5416_s5 + $0x38] ss:$0 sps:$4 sm:$0x11]  }
  0xa6   : > { %v5987_v24 = vsel %vm648_vm0, %v667_v42, %v668_v16  ;;  %v3858_v16 = vcombine.low %v3810_v29, %v5272_v23  ;;  %v563_v26 = vshll.u32 %v5998_v33, 16  ;;  %v683_v42 = vrot.slane %v5917_v25, 1  ;;  %v246_v23 = vld [vmem:[%s5416_s5 + $0xb4] sm:$0xe] }
  0xa7   : > { %v1236_v57 = vrot.slane %v5273_v12, 1  ;;  %v561_v31 = vshrl.u32 %v5998_v33, 16  ;;  %v6043_v10 = vsel %vm648_vm0, %v679_v11, %v680_v62  ;;  %v682_v25 = vrot.slane %v3754_v27, 1  ;;  %v5175_v62 = vld [vmem:[%s6764_s1 + $0x1d8] sm:$0xff]   ;;  %v5182_v11 = vld [vmem:[%s6764_s1 + $0x1e0] sm:$0xff]  }
  0xa8   : > { %v565_v0 = vrot.slane %v563_v26, 1  ;;  %v1235_v8 = vrot.slane %v3858_v16, 1  ;;  %v1238_v29 = vrot.slane %v3859_v63, 1  ;;  %v3758_v14 = vcombine.low %v246_v23, %v6026_v22  ;;  %v6106_v63 = vld [vmem:[%s5416_s5 + $0x2c] ss:$0 sps:$4 sm:$0x11]  }
  0xa9   : > { %v232_v23 = vld [vmem:[%s5416_s5 + $0xc] sm:$0xe] }
  0xaa   : > { %1636 = vmatmul.mubr.bf16.gmra.mrb[60].mxu0 %v5808_v48  ;;  %v3752_v48 = vcombine.low %v240_v59, %v5853_v54  ;;  %v685_v59 = vrot.slane %v3755_v46, 1  ;;  %v1237_v30 = vsel %vm648_vm0, %v1235_v8, %v1236_v57  ;;  %v3969_v57 = vld [vmem:[%s5416_s5 + $0x24] sm:$0xf] }
  0xab   : > { %4737 = vmatprep.mubr.bf16.mxu0 %v1228_v17  ;;  %2070 = vmatmul.mubr.bf16.gmra.mrb[60].mxu1 %v5906_v15  ;;  %v1231_v15 = vsel %vm648_vm0, %v1229_v50, %v1230_v40  ;;  %v1234_v17 = vsel %vm648_vm0, %v1232_v5, %v1233_v60  ;;  %v6053_v40 = vcombine.low %v213_v4, %v6026_v22  ;;  %v580_v22 = vshll.u32 %v5188_v44, 16 }
  0xac   : > { %2077 = vmatprep.mubr.bf16.mxu1 %v547_v37  ;;  %v676_v54 = vrot.slane %v3752_v48, 1  ;;  %v5274_v37 = vld [vmem:[%s5416_s5 + $0x44] ss:$0 sps:$4 sm:$0x11]   ;;  %v6060_v60 = vsel %vm648_vm0, %v682_v25, %v683_v42  ;;  %v3756_v48 = vcombine.low %v244_v7, %v5943_v45  ;;  %v566_v5 = vor.u32 %v565_v0, %v561_v31  ;;  %v3970_v31 = vld [vmem:[%s5416_s5 + $0x28] sm:$0xf] }
  0xad   : > { %v1239_v50 = vrot.slane %v5274_v37, 1  ;;  %v575_v61 = vshll.u32 %v6053_v40, 16  ;;  %v6070_v52 = vsel %vm648_vm0, %v685_v59, %v686_v18  ;;  %v573_v27 = vshrl.u32 %v6053_v40, 16  ;;  %v4015_v25 = vld [vmem:[%s5416_s5 + $0x18] sm:$0xe] }
  0xae   : > { %v6029_v32 = vsel %vm648_vm0, %v676_v54, %v677_v19  ;;  %v689_v19 = vrot.slane %v5966_v55, 1  ;;  %v5174_v54 = vld [vmem:[%s6764_s1 + $0x190] sm:$0xff]   ;;  %v688_v43 = vrot.slane %v3756_v48, 1  ;;  %v692_v55 = vrot.slane %v6010_v34, 1  ;;  %v5176_v34 = vld [vmem:[%s6764_s1 + $0x198] sm:$0xff]  }
  0xaf   : > { %v571_v4 = vsel %vm391_vm1, %v566_v5, %v570_v20  ;;  %v577_v42 = vrot.slane %v575_v61, 1  ;;  %v582_v0 = vrot.slane %v580_v22, 1  ;;  %v4063_v46 = vcombine.low %v4015_v25, %v3968_v47  ;;  %v6172_v25 = vld [vmem:[%s5416_s5 + $0x38] ss:$0 sps:$4 sm:$0x11]  }
  0xb0   : > { %v6087_v16 = vsel %vm648_vm0, %v688_v43, %v689_v19  ;;  %v4064_v8 = vcombine.low %v4016_v38, %v3970_v31  ;;  %v2740_v37 = vrot.slane %v6106_v63, 1  ;;  %v6123_v7 = vcombine.low %v3969_v57, %v3970_v31  ;;  %v5275_v19 = vld [vmem:[%s5416_s5 + $0x4] sm:$0xf]  ;;  %v5193_v57 = vld [vmem:[%s6764_s1 + $0x1b8] sm:$0xff]  }
  0xb1   : > { %v2736_v20 = vrot.slane %v4063_v46, 1  ;;  %v6178_v46 = vld [vmem:[%s5416_s5 + $0x40] sm:$0xf] }
  0xb2   : > { %4738 = vmatmul.mubr.bf16.vlgmr.msra.gmra.mrb[64].mxu0 %v1231_v15  ;;  %v1240_v15 = vsel %vm648_vm0, %v1238_v29, %v1239_v50  ;;  %v5184_v50 = vld [vmem:[%s6764_s1 + $0x1e8] sm:$0xff]   ;;  %v2739_v48 = vrot.slane %v4064_v8, 1  ;;  %v2495_v43 = vshll.u32 %v6123_v7, 16  ;;  %v5280_v8 = vld [vmem:[%s5416_s5 + $0x20] ss:$0 sps:$4 sm:$0x11]  }
  0xb3   : > { %4586 = vmatpush3.bf16.msra.mxu0 %v5166_v21  ;;  %4741 = vmatprep.mubr.bf16.mxu0 %v1234_v17  ;;  %v6083_v21 = vcombine.low %v3967_v1, %v3968_v47 }
  0xb4   : > { %2078 = vmatmul.mubr.bf16.gmra.mrb[64].mxu1 %v5935_v2  ;;  %4587 = vmatprep.subr.bf16.mxu0 %v5167_v39  ;;  %v245_v2 = vld [vmem:[%s5416_s5 + $0xa8] sm:$0xe]  ;;  %v5196_v39 = vld [vmem:[%s5416_s5 + $0x20] ss:$0 sps:$4 sm:$0x11]  }
  0xb5   : > { %2085 = vmatprep.mubr.bf16.mxu1 %v559_v35  ;;  %v3757_v45 = vcombine.low %v245_v2, %v5980_v36  ;;  %v695_v36 = vrot.slane %v5188_v44, 1  ;;  %v694_v35 = vrot.slane %v3758_v14, 1  ;;  %v2483_v12 = vshll.u32 %v6083_v21, 16  ;;  %v5185_v44 = vld [vmem:[%s6764_s1 + $0x1a8] sm:$0xff]   ;;  %v5190_v2 = vld [vmem:[%s6764_s1 + $0x1f0] sm:$0xff]  }
  0xb6   : > { %v2737_v18 = vrot.slane %v5196_v39, 1  ;;  %v2481_v1 = vshrl.u32 %v6083_v21, 16  ;;  %v2488_v59 = vshll.u32 %v5196_v39, 16  ;;  %v2493_v14 = vshrl.u32 %v6123_v7, 16 }
  0xb7   : > { %4588 = vmatpush3.bf16.msra.mxu0 %v5168_v41  ;;  %v691_v26 = vrot.slane %v3757_v45, 1  ;;  %v6110_v3 = vsel %vm648_vm0, %v694_v35, %v695_v36  ;;  %v5183_v41 = vld [vmem:[%s6764_s1 + $0x1a0] sm:$0xff]   ;;  %v2485_v29 = vrot.slane %v2483_v12, 1  ;;  %v6145_v45 = vld [vmem:[%s5416_s5 + $0x34] sm:$0xf]  ;;  %v5192_v36 = vld [vmem:[%s6764_s1 + $0x1f8] sm:$0xff]  }
  0xb8   : > { %4589 = vmatprep.subr.bf16.mxu0 %v5173_v28  ;;  %v578_v28 = vor.u32 %v577_v42, %v573_v27  ;;  %v6133_v61 = vsel %vm648_vm0, %v2736_v20, %v2737_v18  ;;  %v5277_v42 = vld [vmem:[%s5416_s5 + $0x10] sm:$0xf]  ;;  %v5278_v35 = vld [vmem:[%s5416_s5 + $0x1c] sm:$0xf] }
  0xb9   : > { %v6100_v17 = vsel %vm648_vm0, %v691_v26, %v692_v55  ;;  %v233_v26 = vld [vmem:[%s5416_s5 + $0x18] sm:$0xe]  ;;  %v3744_v22 = vcombine.low %v232_v23, %v5277_v42  ;;  %v3975_v23 = vld [vmem:[%s5416_s5 + $0x48] sm:$0xf] }
  0xba   : > { %4742 = vmatmul.mubr.bf16.gmra.mrb[68].mxu0 %v1237_v30  ;;  %v583_v47 = vsel %vm391_vm1, %v578_v28, %v582_v0  ;;  %v2486_v30 = vor.u32 %v2485_v29, %v2481_v1  ;;  %v3745_v12 = vcombine.low %v233_v26, %v5278_v35  ;;  %v5279_v28 = vld [vmem:[%s5416_s5 + $0x14] ss:$0 sps:$4 sm:$0x11]   ;;  %v235_v1 = vld [vmem:[%s5416_s5 + $0x30] sm:$0xe] }
  0xbb   : > { %4590 = vmatpush3.bf16.msra.mxu0 %v5174_v54  ;;  %4745 = vmatprep.mubr.bf16.mxu0 %v1240_v15  ;;  %v2490_v54 = vrot.slane %v2488_v59, 1  ;;  %v653_v0 = vrot.slane %v5279_v28, 1 }
  0xbc   : > { %2086 = vmatmul.mubr.bf16.gmra.mrb[68].mxu1 %v5950_v49  ;;  %4591 = vmatprep.subr.bf16.mxu0 %v5175_v62  ;;  %v231_v49 = vld [vmem:[%s5416_s5] sm:$0xe]  ;;  %v5276_v62 = vld [vmem:[%s5416_s5 + $0x8] ss:$0 sps:$4 sm:$0x11]   ;;  %v655_v18 = vrot.slane %v3745_v12, 1 }
  0xbd   : > { %2093 = vmatprep.mubr.bf16.mxu1 %v571_v4  ;;  %v3743_v5 = vcombine.low %v231_v49, %v5275_v19  ;;  %v650_v15 = vrot.slane %v5276_v62, 1  ;;  %v2497_v4 = vrot.slane %v2495_v43, 1  ;;  %v3973_v49 = vld [vmem:[%s5416_s5 + $0x3c] sm:$0xf] }
  0xbe   : > { %v5213_v12 = vld [vmem:[%s6764_s1 + $0x218] sm:$0xff]  }
  0xbf   : > { %4592 = vmatpush3.bf16.msra.mxu0 %v5176_v34  ;;  %v649_v55 = vrot.slane %v3743_v5, 1  ;;  %v2491_v34 = vsel %vm391_vm1, %v2486_v30, %v2490_v54  ;;  %v5283_v54 = vld [vmem:[%s5416_s5 + $0x2c] ss:$0 sps:$4 sm:$0x11]  }
  0xc0   : > { %4593 = vmatprep.subr.bf16.mxu0 %v5182_v11  ;;  %v2500_v11 = vshll.u32 %v6106_v63, 16  ;;  %v234_v63 = vld [vmem:[%s5416_s5 + $0x24] sm:$0xe]  ;;  %v659_v43 = vrot.slane %v5283_v54, 1 }
  0xc1   : > { %v651_v39 = vsel %vm648_vm0, %v649_v55, %v650_v15  ;;  %v6198_v15 = vld [vmem:[%s5416_s5 + $0x44] ss:$0 sps:$4 sm:$0x11]   ;;  %v6262_v54 = vld [vmem:[%s5416_s5 + $0x68] ss:$0 sps:$4 sm:$0x11]  }
  0xc2   : > { %4746 = vmatmul.mubr.bf16.gmra.mrb[72].mxu0 %v5890_v13  ;;  %v6136_v13 = vsel %vm648_vm0, %v2739_v48, %v2740_v37  ;;  %v2502_v31 = vrot.slane %v2500_v11, 1  ;;  %v5281_v37 = vld [vmem:[%s5416_s5 + $0x28] sm:$0xf]  ;;  %v2512_v48 = vshll.u32 %v6172_v25, 16 }
  0xc3   : > { %4594 = vmatpush3.bf16.msra.mxu0 %v5183_v41  ;;  %4749 = vmatprep.mubr.bf16.mxu0 %v5911_v53  ;;  %v3971_v53 = vld [vmem:[%s5416_s5 + $0x30] sm:$0xf]  ;;  %v652_v41 = vrot.slane %v3744_v22, 1 }
  0xc4   : > { %2094 = vmatmul.mubr.bf16.gmra.mrb[72].mxu1 %v5998_v33  ;;  %4595 = vmatprep.subr.bf16.mxu0 %v5184_v50  ;;  %v5191_v33 = vld [vmem:[%s6764_s1 + $0x1b0] sm:$0xff]   ;;  %v6160_v27 = vcombine.low %v3971_v53, %v6145_v45  ;;  %v3746_v50 = vcombine.low %v234_v63, %v5281_v37  ;;  %v2514_v62 = vrot.slane %v2512_v48, 1 }
  0xc5   : > { %2101 = vmatprep.mubr.bf16.mxu1 %v583_v47  ;;  %v6187_v47 = vcombine.low %v3973_v49, %v6178_v46  ;;  %v654_v19 = vsel %vm648_vm0, %v652_v41, %v653_v0  ;;  %v6228_v41 = vld [vmem:[%s5416_s5 + $0x58] sm:$0xf] }
  0xc6   : > { %v2507_v38 = vshll.u32 %v6160_v27, 16  ;;  %v2505_v29 = vshrl.u32 %v6160_v27, 16  ;;  %v658_v53 = vrot.slane %v3746_v50, 1 }
  0xc7   : > { %4596 = vmatpush3.bf16.msra.mxu0 %v5185_v44  ;;  %v5203_v44 = vld [vmem:[%s6764_s1 + $0x208] sm:$0xff]  }
  0xc8   : > { %4597 = vmatprep.subr.bf16.mxu0 %v5190_v2  ;;  %v2509_v20 = vrot.slane %v2507_v38, 1  ;;  %v5282_v2 = vld [vmem:[%s5416_s5 + $0x34] sm:$0xf] }
  0xc9   : > { %v3747_v30 = vcombine.low %v235_v1, %v5282_v2  ;;  %v3977_v38 = vld [vmem:[%s5416_s5 + $0x54] sm:$0xf]  ;;  %v6243_v1 = vld [vmem:[%s5416_s5 + $0x5c] ss:$0 sps:$4 sm:$0x11]  }
  0xca   : > { %4750 = vmatmul.mubr.bf16.gmra.mrb[76].mxu0 %v5914_v58  ;;  %v2498_v58 = vor.u32 %v2497_v4, %v2493_v14  ;;  %v2510_v55 = vor.u32 %v2509_v20, %v2505_v29  ;;  %v5284_v14 = vld [vmem:[%s5416_s5 + $0x38] ss:$0 sps:$4 sm:$0x11]   ;;  %v2517_v4 = vshrl.u32 %v6187_v47, 16  ;;  %v6248_v20 = vld [vmem:[%s5416_s5 + $0x64] sm:$0xf] }
  0xcb   : > { %4598 = vmatpush3.bf16.msra.mxu0 %v5191_v33  ;;  %3025 = vmatprep.mubr.bf16.mxu0 %v2491_v34  ;;  %v6204_v33 = vld [vmem:[%s5416_s5 + $0x4c] sm:$0xf]  ;;  %v661_v26 = vrot.slane %v3747_v30, 1  ;;  %v5208_v34 = vld [vmem:[%s6764_s1 + $0x210] sm:$0xff]  }
  0xcc   : > { %2102 = vmatmul.mubr.bf16.gmra.mrb[76].mxu1 %v6053_v40  ;;  %4599 = vmatprep.subr.bf16.mxu0 %v5192_v36  ;;  %v656_v40 = vrot.slane %v5280_v8, 1  ;;  %v2503_v59 = vsel %vm391_vm1, %v2498_v58, %v2502_v31  ;;  %v662_v36 = vrot.slane %v5284_v14, 1  ;;  %v2515_v11 = vsel %vm391_vm1, %v2510_v55, %v2514_v62  ;;  %v6223_v58 = vld [vmem:[%s5416_s5 + $0x50] ss:$0 sps:$4 sm:$0x11]  }
  0xcd   : > { %4785 = vmatprep.mubr.bf16.mxu1 %v651_v39  ;;  %v6214_v22 = vcombine.low %v3975_v23, %v6204_v33  ;;  %v660_v39 = vsel %vm648_vm0, %v658_v53, %v659_v43  ;;  %v4036_v8 = vcombine.low %v3977_v38, %v6228_v41  ;;  %v3981_v53 = vld [vmem:[%s5416_s5 + $0x6c] sm:$0xf]  ;;  %v6267_v55 = vld [vmem:[%s5416_s5 + $0x70] sm:$0xf] }
  0xce   : > { %v657_v5 = vsel %vm648_vm0, %v655_v18, %v656_v40  ;;  %v663_v35 = vsel %vm648_vm0, %v661_v26, %v662_v36  ;;  %v2536_v18 = vshll.u32 %v6223_v58, 16  ;;  %v5223_v40 = vld [vmem:[%s6764_s1 + $0x228] sm:$0xff]   ;;  %v4038_v23 = vcombine.low %v3981_v53, %v6267_v55  ;;  %v6275_v14 = vld [vmem:[%s5416_s5 + $0x74] ss:$0 sps:$4 sm:$0x11]  }
  0xcf   : > { %4600 = vmatpush3.bf16.msra.mxu0 %v5193_v57  ;;  %v2531_v31 = vshll.u32 %v6214_v22, 16  ;;  %v2529_v28 = vshrl.u32 %v6214_v22, 16  ;;  %v2543_v29 = vshll.u32 %v4036_v8, 16  ;;  %v2541_v48 = vshrl.u32 %v4036_v8, 16 }
  0xd0   : > { %v2538_v50 = vrot.slane %v2536_v18, 1  ;;  %v2567_v36 = vshll.u32 %v4038_v23, 16 }
  0xd1   : > { %v2533_v49 = vrot.slane %v2531_v31, 1  ;;  %v6295_v31 = vld [vmem:[%s5416_s5 + $0x88] sm:$0xf] }
  0xd2   : > { %3026 = vmatmul.mubr.bf16.vlgmr.msra.gmra.mrb[80].mxu0 %v6083_v21  ;;  %v2519_v21 = vshll.u32 %v6187_v47, 16 }
  0xd3   : > { %3033 = vmatprep.mubr.bf16.mxu0 %v2503_v59  ;;  %v2534_v37 = vor.u32 %v2533_v49, %v2529_v28  ;;  %v3979_v59 = vld [vmem:[%s5416_s5 + $0x60] sm:$0xf] }
  0xd4   : > { %4786 = vmatmul.mubr.bf16.vlgmr.msra.gmra.mrb[80].mxu1 %v654_v19  ;;  %v2521_v42 = vrot.slane %v2519_v21, 1  ;;  %v2545_v19 = vrot.slane %v2543_v29, 1  ;;  %v6309_v29 = vld [vmem:[%s5416_s5 + $0x8c] ss:$0 sps:$4 sm:$0x11]  }
  0xd5   : > { %4818 = vmatpush3.bf16.msra.mxu1 %v5927_v56  ;;  %4789 = vmatprep.mubr.bf16.mxu1 %v657_v5  ;;  %v2524_v56 = vshll.u32 %v6198_v15, 16  ;;  %v2548_v5 = vshll.u32 %v6243_v1, 16 }
  0xd6   : > { %4819 = vmatprep.subr.bf16.mxu1 %v5203_v44  ;;  %v2522_v57 = vor.u32 %v2521_v42, %v2517_v4  ;;  %v2546_v2 = vor.u32 %v2545_v19, %v2541_v48  ;;  %v6280_v4 = vld [vmem:[%s5416_s5 + $0x7c] sm:$0xf]  ;;  %v6315_v48 = vld [vmem:[%s5416_s5 + $0x94] sm:$0xf] }
  0xd7   : > { %v2526_v63 = vrot.slane %v2524_v56, 1  ;;  %v2550_v30 = vrot.slane %v2548_v5, 1  ;;  %v2569_v56 = vrot.slane %v2567_v36, 1  ;;  %v4017_v5 = vld [vmem:[%s5416_s5 + $0x30] sm:$0xe] }
  0xd8   : > { %v3989_v36 = vld [vmem:[%s5416_s5 + $0x9c] sm:$0xf] }
  0xd9   : > { %4820 = vmatpush3.bf16.msra.mxu1 %v5203_v44  ;;  %v2527_v0 = vsel %vm391_vm1, %v2522_v57, %v2526_v63  ;;  %v5233_v44 = vld [vmem:[%s6764_s1 + $0x238] sm:$0xff]   ;;  %v2551_v62 = vsel %vm391_vm1, %v2546_v2, %v2550_v30  ;;  %v3985_v63 = vld [vmem:[%s5416_s5 + $0x84] sm:$0xf]  ;;  %v2596_v2 = vshll.u32 %v6309_v29, 16 }
  0xda   : > { %3034 = vmatmul.mubr.bf16.gmra.mrb[84].mxu0 %v6123_v7  ;;  %4821 = vmatprep.subr.bf16.mxu1 %v5208_v34  ;;  %v5218_v7 = vld [vmem:[%s6764_s1 + $0x220] sm:$0xff]  }
  0xdb   : > { %3041 = vmatprep.mubr.bf16.mxu0 %v2515_v11  ;;  %v2565_v11 = vshrl.u32 %v4038_v23, 16 }
  0xdc   : > { %4790 = vmatmul.mubr.bf16.gmra.mrb[84].mxu1 %v660_v39 }
  0xdd   : > { %4793 = vmatprep.mubr.bf16.mxu1 %v663_v35  ;;  %4822 = vmatpush3.bf16.msra.mxu1 %v5208_v34  ;;  %v3983_v34 = vld [vmem:[%s5416_s5 + $0x78] sm:$0xf]  ;;  %v2570_v39 = vor.u32 %v2569_v56, %v2565_v11  ;;  %v6289_v35 = vld [vmem:[%s5416_s5 + $0x80] ss:$0 sps:$4 sm:$0x11]   ;;  %v2743_v11 = vrot.slane %v6172_v25, 1 }
  0xde   : > { %4823 = vmatprep.subr.bf16.mxu1 %v5213_v12  ;;  %v4019_v56 = vld [vmem:[%s5416_s5 + $0x48] sm:$0xe] }
  0xe1   : > { %4824 = vmatpush3.bf16.msra.mxu1 %v5213_v12 }
  0xe2   : > { %3042 = vmatmul.mubr.bf16.gmra.mrb[88].mxu0 %v6160_v27  ;;  %4825 = vmatprep.subr.bf16.mxu1 %v5218_v7  ;;  %v5228_v27 = vld [vmem:[%s6764_s1 + $0x230] sm:$0xff]  }
  0xe3   : > { %3049 = vmatprep.mubr.bf16.mxu0 %v2527_v0 }
  0xe4   : > { %4794 = vmatmul.mubr.bf16.gmra.mrb[88].mxu1 %v5973_v9  ;;  %v2539_v9 = vsel %vm391_vm1, %v2534_v37, %v2538_v50 }
  0xe5   : > { %4797 = vmatprep.mubr.bf16.mxu1 %v5987_v24  ;;  %4826 = vmatpush3.bf16.msra.mxu1 %v5218_v7  ;;  %v4037_v24 = vcombine.low %v3979_v59, %v6248_v20 }
  0xe6   : > { %4827 = vmatprep.subr.bf16.mxu1 %v5223_v40 }
  0xe7   : > { %v2555_v43 = vshll.u32 %v4037_v24, 16 }
  0xe9   : > { %4828 = vmatpush3.bf16.msra.mxu1 %v5223_v40  ;;  %v2557_v21 = vrot.slane %v2555_v43, 1 }
  0xea   : > { %3050 = vmatmul.mubr.bf16.gmra.mrb[92].mxu0 %v6187_v47  ;;  %4829 = vmatprep.subr.bf16.mxu1 %v5228_v27  ;;  %v2553_v47 = vshrl.u32 %v4037_v24, 16 }
  0xeb   : > { %3057 = vmatprep.mubr.bf16.mxu0 %v2539_v9 }
  0xec   : > { %4798 = vmatmul.mubr.bf16.gmra.mrb[92].mxu1 %v6002_v51  ;;  %v2560_v51 = vshll.u32 %v6262_v54, 16 }
  0xed   : > { %4801 = vmatprep.mubr.bf16.mxu1 %v6013_v6  ;;  %4830 = vmatpush3.bf16.msra.mxu1 %v5228_v27  ;;  %v2558_v6 = vor.u32 %v2557_v21, %v2553_v47  ;;  %v3987_v27 = vld [vmem:[%s5416_s5 + $0x90] sm:$0xf]  ;;  %v4065_v47 = vcombine.low %v4017_v5, %v6145_v45  ;;  %v4018_v45 = vld [vmem:[%s5416_s5 + $0x3c] sm:$0xe] }
  0xee   : > { %4831 = vmatprep.subr.bf16.mxu1 %v5233_v44  ;;  %v2562_v26 = vrot.slane %v2560_v51, 1  ;;  %v6322_v30 = vcombine.low %v3987_v27, %v6315_v48  ;;  %v2598_v51 = vrot.slane %v2596_v2, 1  ;;  %v2749_v27 = vrot.slane %v6223_v58, 1 }
  0xf0   : > { %v2563_v42 = vsel %vm391_vm1, %v2558_v6, %v2562_v26  ;;  %v6331_v6 = vld [vmem:[%s5416_s5 + $0x98] ss:$0 sps:$4 sm:$0x11]   ;;  %v2603_v26 = vshll.u32 %v6322_v30, 16 }
  0xf1   : > { %4832 = vmatpush3.bf16.msra.mxu1 %v5233_v44 }
  0xf2   : > { %3058 = vmatmul.mubr.bf16.gmra.mrb[96].mxu0 %v6214_v22  ;;  %v2572_v22 = vshll.u32 %v6275_v14, 16 }
  0xf3   : > { %3065 = vmatprep.mubr.bf16.mxu0 %v2551_v62 }
  0xf4   : > { %4802 = vmatmul.mubr.bf16.gmra.mrb[0].mxu1 %v6029_v32  ;;  %v6285_v32 = vcombine.low %v3983_v34, %v6280_v4  ;;  %v6337_v34 = vld [vmem:[%s5416_s5 + $0xa0] sm:$0xf] }
  0xf5   : > { %4805 = vmatprep.mubr.bf16.mxu1 %v6043_v10  ;;  %v2574_v10 = vrot.slane %v2572_v22, 1  ;;  %v2605_v22 = vrot.slane %v2603_v26, 1 }
  0xf6   : > { %v2579_v12 = vshll.u32 %v6285_v32, 16 }
  0xf7   : > { %v2575_v49 = vsel %vm391_vm1, %v2570_v39, %v2574_v10  ;;  %v2608_v39 = vshll.u32 %v6331_v6, 16  ;;  %v6346_v10 = vcombine.low %v3989_v36, %v6337_v34 }
  0xf8   : > { %v2581_v18 = vrot.slane %v2579_v12, 1  ;;  %v4066_v12 = vcombine.low %v4018_v45, %v6178_v46  ;;  %v3993_v45 = vld [vmem:[%s5416_s5 + $0xb4] sm:$0xf] }
  0xfa   : > { %3066 = vmatmul.mubr.bf16.gmra.mrb[100].mxu0 %v4036_v8  ;;  %v6303_v8 = vcombine.low %v3985_v63, %v6295_v31  ;;  %v4067_v63 = vcombine.low %v4019_v56, %v6204_v33  ;;  %v2746_v33 = vrot.slane %v6198_v15, 1 }
  0xfb   : > { %3073 = vmatprep.mubr.bf16.mxu0 %v2563_v42  ;;  %v2601_v42 = vshrl.u32 %v6322_v30, 16 }
  0xfc   : > { %4806 = vmatmul.mubr.bf16.gmra.mrb[4].mxu1 %v6060_v60  ;;  %v2577_v60 = vshrl.u32 %v6285_v32, 16  ;;  %v2591_v59 = vshll.u32 %v6303_v8, 16  ;;  %v2589_v19 = vshrl.u32 %v6303_v8, 16 }
  0xfd   : > { %4809 = vmatprep.mubr.bf16.mxu1 %v6070_v52  ;;  %v2584_v52 = vshll.u32 %v6289_v35, 16 }
  0xfe   : > { %v2582_v37 = vor.u32 %v2581_v18, %v2577_v60  ;;  %v6355_v60 = vld [vmem:[%s5416_s5 + $0xa4] ss:$0 sps:$4 sm:$0x11]  }
  0xff   : > { %v2586_v50 = vrot.slane %v2584_v52, 1  ;;  %v2745_v52 = vrot.slane %v4066_v12, 1  ;;  %v4023_v12 = vld [vmem:[%s5416_s5 + $0x78] sm:$0xe] }
 0x101   : > { %v2587_v44 = vsel %vm391_vm1, %v2582_v37, %v2586_v50  ;;  %v3991_v37 = vld [vmem:[%s5416_s5 + $0xa8] sm:$0xf]  ;;  %v6364_v50 = vld [vmem:[%s5416_s5 + $0xac] sm:$0xf]  ;;  %v2747_v15 = vsel %vm648_vm0, %v2745_v52, %v2746_v33 }
 0x102   : > { %v4329_v57 = vpop.f32.mrb[0].mxu0  ;;  %3074 = vmatmul.mubr.bf16.gmra.mrb[104].mxu0 %v4037_v24 }
 0x103   : > { %v4330_v38 = vpop.f32.mrb[1].mxu0  ;;  %3081 = vmatprep.mubr.bf16.mxu0 %v2575_v49  ;;  %v2615_v49 = vshll.u32 %v6346_v10, 16 }
 0x104   : > { %v6297_v7 = vadd.f32 %v4330_v38, %v4329_v57  ;;  %v4332_v28 = vpop.f32.mrb[2].mxu0  ;;  %4810 = vmatmul.mubr.bf16.gmra.mrb[8].mxu1 %v6087_v16  ;;  %v2593_v16 = vrot.slane %v2591_v59, 1  ;;  %v2748_v59 = vrot.slane %v4067_v63, 1 }
 0x105   : > { %v4333_v0 = vpop.f32.mrb[3].mxu0  ;;  %4813 = vmatprep.mubr.bf16.mxu1 %v6100_v17 }
 0x106   : > { %v6305_v40 = vadd.f32 %v4333_v0, %v4332_v28  ;;  %v2594_v21 = vor.u32 %v2593_v16, %v2589_v19  ;;  %v2606_v0 = vor.u32 %v2605_v22, %v2601_v42  ;;  %v4021_v19 = vld [vmem:[%s5416_s5 + $0x60] sm:$0xe]  ;;  %v6373_v16 = vcombine.low %v3991_v37, %v6364_v50  ;;  %v6390_v42 = vld [vmem:[%s5416_s5 + $0xb8] sm:$0xf] }
 0x107   : > { %v2750_v58 = vsel %vm648_vm0, %v2748_v59, %v2749_v27  ;;  %v2755_v22 = vrot.slane %v6262_v54, 1  ;;  %v2758_v59 = vrot.slane %v6275_v14, 1  ;;  %v6414_v27 = vld [vmem:[%s5416_s5 + $0xc4] sm:$0xf] }
 0x10a   : > { %v4335_v9 = vpop.f32.mrb[4].mxu0  ;;  %3082 = vmatmul.mubr.bf16.gmra.mrb[108].mxu0 %v4038_v23  ;;  %v2742_v23 = vrot.slane %v4065_v47, 1  ;;  %v6381_v47 = vld [vmem:[%s5416_s5 + $0xb0] ss:$0 sps:$4 sm:$0x11]  }
 0x10b   : > { %v4336_v24 = vpop.f32.mrb[5].mxu0  ;;  %3089 = vmatprep.mubr.bf16.mxu0 %v2587_v44  ;;  %v2617_v44 = vrot.slane %v2615_v49, 1 }
 0x10c   : > { %v6324_v17 = vadd.f32 %v4336_v24, %v4335_v9  ;;  %v4338_v43 = vpop.f32.mrb[6].mxu0  ;;  %4814 = vmatmul.mubr.bf16.gmra.mrb[12].mxu1 %v6110_v3  ;;  %v2599_v3 = vsel %vm391_vm1, %v2594_v21, %v2598_v51  ;;  %v2744_v25 = vsel %vm648_vm0, %v2742_v23, %v2743_v11  ;;  %v4020_v9 = vld [vmem:[%s5416_s5 + $0x54] sm:$0xe]  ;;  %v2613_v24 = vshrl.u32 %v6346_v10, 16 }
 0x10d   : > { %v4339_v53 = vpop.f32.mrb[7].mxu0  ;;  %4833 = vmatprep.mubr.bf16.mxu1 %v6133_v61  ;;  %v4068_v2 = vcombine.low %v4020_v9, %v6228_v41  ;;  %v2752_v51 = vrot.slane %v6243_v1, 1  ;;  %v4022_v41 = vld [vmem:[%s5416_s5 + $0x6c] sm:$0xe] }
 0x10e   : > { %v6327_v62 = vadd.f32 %v4339_v53, %v4338_v43  ;;  %v4069_v43 = vcombine.low %v4021_v19, %v6248_v20  ;;  %v2618_v26 = vor.u32 %v2617_v44, %v2613_v24  ;;  %v4024_v19 = vld [vmem:[%s5416_s5 + $0x84] sm:$0xe] }
 0x10f   : > { %v2751_v20 = vrot.slane %v4068_v2, 1  ;;  %v4025_v2 = vld [vmem:[%s5416_s5 + $0x90] sm:$0xe] }
 0x112   : > { %v4341_v61 = vpop.f32.mrb[8].mxu0  ;;  %3090 = vmatmul.mubr.bf16.gmra.mrb[112].mxu0 %v6285_v32  ;;  %v2610_v32 = vrot.slane %v2608_v39, 1  ;;  %v4070_v39 = vcombine.low %v4022_v41, %v6267_v55  ;;  %v4071_v55 = vcombine.low %v4023_v12, %v6280_v4 }
 0x113   : > { %v4342_v57 = vpop.f32.mrb[9].mxu0  ;;  %3097 = vmatprep.mubr.bf16.mxu0 %v2599_v3  ;;  %v2754_v3 = vrot.slane %v4069_v43, 1 }
 0x114   : > { %v6352_v38 = vadd.f32 %v4342_v57, %v4341_v61  ;;  %v4344_v28 = vpop.f32.mrb[10].mxu0  ;;  %4834 = vmatmul.mubr.bf16.vlgmr.msra.gmra.mrb[80].mxu1 %v6136_v13  ;;  %v2620_v13 = vshll.u32 %v6355_v60, 16  ;;  %v2611_v5 = vsel %vm391_vm1, %v2606_v0, %v2610_v32  ;;  %v2632_v61 = vshll.u32 %v6381_v47, 16  ;;  %v6408_v0 = vld [vmem:[%s5416_s5 + $0xbc] ss:$0 sps:$4 sm:$0x11]  }
 0x115   : > { %v4345_v46 = vpop.f32.mrb[11].mxu0  ;;  %4837 = vmatprep.mubr.bf16.mxu1 %v2744_v25  ;;  %v2625_v25 = vshrl.u32 %v6373_v16, 16  ;;  %v2756_v54 = vsel %vm648_vm0, %v2754_v3, %v2755_v22  ;;  %v2757_v32 = vrot.slane %v4070_v39, 1  ;;  %v2760_v4 = vrot.slane %v4071_v55, 1 }
 0x116   : > { %v6359_v18 = vadd.f32 %v4345_v46, %v4344_v28  ;;  %v2622_v36 = vrot.slane %v2620_v13, 1  ;;  %v6401_v28 = vcombine.low %v3993_v45, %v6390_v42  ;;  %v2753_v46 = vsel %vm648_vm0, %v2751_v20, %v2752_v51  ;;  %v6439_v3 = vld [vmem:[%s5416_s5 + $0xc8] ss:$0 sps:$4 sm:$0x11]  }
 0x117   : > { %v2634_v52 = vrot.slane %v2632_v61, 1  ;;  %v2761_v13 = vrot.slane %v6289_v35, 1  ;;  %v2759_v41 = vsel %vm648_vm0, %v2757_v32, %v2758_v59  ;;  %v4073_v45 = vcombine.low %v4025_v2, %v6315_v48 }
 0x118   : > { %v2623_v57 = vsel %vm391_vm1, %v2618_v26, %v2622_v36  ;;  %v2639_v33 = vshll.u32 %v6401_v28, 16  ;;  %v2764_v22 = vrot.slane %v6309_v29, 1 }
 0x119   : > { %v2762_v20 = vsel %vm648_vm0, %v2760_v4, %v2761_v13 }
 0x11a   : > { %3098 = vmatmul.mubr.bf16.gmra.mrb[116].mxu0 %v6303_v8  ;;  %v4347_v53 = vpop.f32.mrb[12].mxu0  ;;  %v2627_v8 = vshll.u32 %v6373_v16, 16 }
 0x11b   : > { %3105 = vmatprep.mubr.bf16.mxu0 %v2611_v5  ;;  %v4348_v21 = vpop.f32.mrb[13].mxu0 }
 0x11c   : > { %4838 = vmatmul.mubr.bf16.gmra.mrb[84].mxu1 %v2747_v15  ;;  %v6386_v23 = vadd.f32 %v4348_v21, %v4347_v53  ;;  %v4350_v11 = vpop.f32.mrb[14].mxu0  ;;  %v2629_v63 = vrot.slane %v2627_v8, 1  ;;  %v2644_v15 = vshll.u32 %v6408_v0, 16  ;;  %v2637_v53 = vshrl.u32 %v6401_v28, 16 }
 0x11d   : > { %4841 = vmatprep.mubr.bf16.mxu1 %v2750_v58  ;;  %v4351_v56 = vpop.f32.mrb[15].mxu0  ;;  %v2641_v21 = vrot.slane %v2639_v33, 1  ;;  %v4072_v8 = vcombine.low %v4024_v19, %v6295_v31 }
 0x11e   : > { %v6393_v1 = vadd.f32 %v4351_v56, %v4350_v11  ;;  %v2630_v49 = vor.u32 %v2629_v63, %v2625_v25  ;;  %v2646_v31 = vrot.slane %v2644_v15, 1  ;;  %v6445_v25 = vld [vmem:[%s5416_s5 + $0xd0] sm:$0xf]  ;;  %v2766_v63 = vrot.slane %v4073_v45, 1 }
 0x11f   : > { %v2642_v39 = vor.u32 %v2641_v21, %v2637_v53  ;;  %v6470_v21 = vld [vmem:[%s5416_s5 + $0xd4] ss:$0 sps:$4 sm:$0x11]  }
 0x120   : > { %v2635_v14 = vsel %vm391_vm1, %v2630_v49, %v2634_v52  ;;  %v2656_v49 = vshll.u32 %v6439_v3, 16  ;;  %v4027_v52 = vld [vmem:[%s5416_s5 + $0xa8] sm:$0xe] }
 0x121   : > { %v2647_v59 = vsel %vm391_vm1, %v2642_v39, %v2646_v31  ;;  %v4029_v31 = vld [vmem:[%s5416_s5 + $0xc0] sm:$0xe] }
 0x122   : > { %3106 = vmatmul.mubr.bf16.gmra.mrb[120].mxu0 %v6322_v30  ;;  %v3995_v30 = vld [vmem:[%s5416_s5 + $0xc0] sm:$0xf]  ;;  %v2658_v53 = vrot.slane %v2656_v49, 1 }
 0x123   : > { %3113 = vmatprep.mubr.bf16.mxu0 %v2623_v57  ;;  %v6425_v51 = vcombine.low %v3995_v30, %v6414_v27  ;;  %v3997_v57 = vld [vmem:[%s5416_s5 + $0xcc] sm:$0xf] }
 0x124   : > { %4842 = vmatmul.mubr.bf16.gmra.mrb[88].mxu1 %v2753_v46  ;;  %v2767_v46 = vrot.slane %v6331_v6, 1  ;;  %v6456_v4 = vcombine.low %v3997_v57, %v6445_v25 }
 0x125   : > { %v4353_v37 = vpop.f32.mrb[16].mxu0  ;;  %4845 = vmatprep.mubr.bf16.mxu1 %v2756_v54  ;;  %v2651_v61 = vshll.u32 %v6425_v51, 16  ;;  %v4026_v54 = vld [vmem:[%s5416_s5 + $0x9c] sm:$0xe]  ;;  %v2649_v30 = vshrl.u32 %v6425_v51, 16 }
 0x126   : > { %v4354_v9 = vpop.f32.mrb[17].mxu0  ;;  %v4465_v5 = vpop.f32.mrb[16].mxu1  ;;  %v2768_v2 = vsel %vm648_vm0, %v2766_v63, %v2767_v46  ;;  %v2661_v57 = vshrl.u32 %v6456_v4, 16  ;;  %v2668_v63 = vshll.u32 %v6470_v21, 16 }
 0x127   : > { %v6418_v24 = vadd.f32 %v4354_v9, %v4353_v37  ;;  %v4356_v44 = vpop.f32.mrb[18].mxu0  ;;  %v4466_v58 = vpop.f32.mrb[17].mxu1  ;;  %v2653_v9 = vrot.slane %v2651_v61, 1 }
 0x128   : > { %v4357_v43 = vpop.f32.mrb[19].mxu0  ;;  %v6427_v35 = vadd.f32 %v4466_v58, %v4465_v5  ;;  %v4468_v26 = vpop.f32.mrb[18].mxu1  ;;  %v4075_v58 = vcombine.low %v4027_v52, %v6364_v50  ;;  %v2773_v50 = vrot.slane %v6381_v47, 1  ;;  %v4077_v52 = vcombine.low %v4029_v31, %v6414_v27 }
 0x129   : > { %v6429_v36 = vadd.f32 %v4357_v43, %v4356_v44  ;;  %v4469_v11 = vpop.f32.mrb[19].mxu1  ;;  %v4074_v44 = vcombine.low %v4026_v54, %v6337_v34 }
 0x12a   : > { %3114 = vmatmul.mubr.bf16.gmra.mrb[124].mxu0 %v6346_v10  ;;  %v6436_v56 = vadd.f32 %v4469_v11, %v4468_v26  ;;  %v2763_v10 = vrot.slane %v4072_v8, 1  ;;  %v2663_v26 = vshll.u32 %v6456_v4, 16  ;;  %v2772_v11 = vrot.slane %v4075_v58, 1 }
 0x12b   : > { %3121 = vmatprep.mubr.bf16.mxu0 %v2635_v14  ;;  %v2654_v14 = vor.u32 %v2653_v9, %v2649_v30 }
 0x12c   : > { %4846 = vmatmul.mubr.bf16.gmra.mrb[92].mxu1 %v2759_v41  ;;  %v2765_v5 = vsel %vm648_vm0, %v2763_v10, %v2764_v22  ;;  %v2769_v41 = vrot.slane %v4074_v44, 1  ;;  %v2774_v49 = vsel %vm648_vm0, %v2772_v11, %v2773_v50  ;;  %v2779_v44 = vrot.slane %v6439_v3, 1 }
 0x12d   : > { %v4359_v12 = vpop.f32.mrb[20].mxu0  ;;  %4849 = vmatprep.mubr.bf16.mxu1 %v2762_v20  ;;  %v4028_v20 = vld [vmem:[%s5416_s5 + $0xb4] sm:$0xe]  ;;  %v2659_v10 = vsel %vm391_vm1, %v2654_v14, %v2658_v53 }
 0x12e   : > { %v4360_v48 = vpop.f32.mrb[21].mxu0  ;;  %v4471_v55 = vpop.f32.mrb[20].mxu1 }
 0x12f   : > { %v6449_v32 = vadd.f32 %v4360_v48, %v4359_v12  ;;  %v4362_v29 = vpop.f32.mrb[22].mxu0  ;;  %v4472_v33 = vpop.f32.mrb[21].mxu1  ;;  %v2665_v48 = vrot.slane %v2663_v26, 1 }
 0x130   : > { %v4363_v37 = vpop.f32.mrb[23].mxu0  ;;  %v6458_v6 = vadd.f32 %v4472_v33, %v4471_v55  ;;  %v4474_v13 = vpop.f32.mrb[22].mxu1  ;;  %v4076_v55 = vcombine.low %v4028_v20, %v6390_v42 }
 0x131   : > { %v6460_v19 = vadd.f32 %v4363_v37, %v4362_v29  ;;  %v4475_v15 = vpop.f32.mrb[23].mxu1  ;;  %v2666_v37 = vor.u32 %v2665_v48, %v2661_v57 }
 0x132   : > { %3122 = vmatmul.mubr.bf16.gmra.mrb[128].mxu0 %v6373_v16  ;;  %v6467_v43 = vadd.f32 %v4475_v15, %v4474_v13  ;;  %v2770_v16 = vrot.slane %v6355_v60, 1  ;;  %v2775_v9 = vrot.slane %v4076_v55, 1  ;;  %v2776_v13 = vrot.slane %v6408_v0, 1 }
 0x133   : > { %3129 = vmatprep.mubr.bf16.mxu0 %v2647_v59  ;;  %v2670_v59 = vrot.slane %v2668_v63, 1 }
 0x134   : > { %4850 = vmatmul.mubr.bf16.gmra.mrb[0].mxu1 %v2765_v5  ;;  %v2771_v47 = vsel %vm648_vm0, %v2769_v41, %v2770_v16  ;;  %v2778_v5 = vrot.slane %v4077_v52, 1  ;;  %v2777_v0 = vsel %vm648_vm0, %v2775_v9, %v2776_v13 }
 0x135   : > { %v4365_v34 = vpop.f32.mrb[24].mxu0  ;;  %4853 = vmatprep.mubr.bf16.mxu1 %v2768_v2  ;;  %v2671_v53 = vsel %vm391_vm1, %v2666_v37, %v2670_v59 }
 0x136   : > { %v4366_v8 = vpop.f32.mrb[25].mxu0  ;;  %v4477_v45 = vpop.f32.mrb[24].mxu1  ;;  %v2780_v3 = vsel %vm648_vm0, %v2778_v5, %v2779_v44 }
 0x137   : > { %v6476_v22 = vadd.f32 %v4366_v8, %v4365_v34  ;;  %v4368_v39 = vpop.f32.mrb[26].mxu0  ;;  %v4478_v61 = vpop.f32.mrb[25].mxu1 }
 0x138   : > { %v4369_v12 = vpop.f32.mrb[27].mxu0  ;;  %v6482_v60 = vadd.f32 %v4478_v61, %v4477_v45  ;;  %v4480_v46 = vpop.f32.mrb[26].mxu1  ;;  %v2782_v45 = vrot.slane %v6470_v21, 1 }
 0x139   : > { %v6484_v54 = vadd.f32 %v4369_v12, %v4368_v39  ;;  %v4481_v29 = vpop.f32.mrb[27].mxu1 }
 0x13a   : > { %3130 = vmatmul.mubr.bf16.gmra.mrb[132].mxu0 %v6401_v28  ;;  %v6491_v33 = vadd.f32 %v4481_v29, %v4480_v46  ;;  %v4030_v28 = vld [vmem:[%s5416_s5 + $0xcc] sm:$0xe]  ;;  %s4185_s5 = sshll.u32 %s6770_s13, 7 }
 0x13b   : > { %3137 = vmatprep.mubr.bf16.mxu0 %v2659_v10  ;;  %v4078_v16 = vcombine.low %v4030_v28, %v6445_v25  ;;  %s6694_s18 = scalar_lea.vmem %s6765_s2, %s4185_s5 }
 0x13c   : > { %4854 = vmatmul.mubr.bf16.gmra.mrb[4].mxu1 %v2771_v47 }
 0x13d   : > { %v4371_v30 = vpop.f32.mrb[28].mxu0  ;;  %4857 = vmatprep.mubr.bf16.mxu1 %v2774_v49  ;;  %v2781_v20 = vrot.slane %v4078_v16, 1 }
 0x13e   : > { %v4372_v42 = vpop.f32.mrb[29].mxu0  ;;  %v4483_v15 = vpop.f32.mrb[28].mxu1 }
 0x13f   : > { %v6496_v2 = vadd.f32 %v4372_v42, %v4371_v30  ;;  %v4374_v27 = vpop.f32.mrb[30].mxu0  ;;  %v4484_v58 = vpop.f32.mrb[29].mxu1  ;;  %v2783_v63 = vsel %vm648_vm0, %v2781_v20, %v2782_v45 }
 0x140   : > { %v4375_v14 = vpop.f32.mrb[31].mxu0  ;;  %v6499_v26 = vadd.f32 %v4484_v58, %v4483_v15  ;;  %v4486_v34 = vpop.f32.mrb[30].mxu1 }
 0x141   : > { %v6501_v41 = vadd.f32 %v4375_v14, %v4374_v27  ;;  %v4487_v8 = vpop.f32.mrb[31].mxu1 }
 0x142   : > { %3138 = vmatmul.mubr.bf16.gmra.mrb[136].mxu0 %v6425_v51  ;;  %v6507_v11 = vadd.f32 %v4487_v8, %v4486_v34 }
 0x143   : > { %3145 = vmatprep.mubr.bf16.mxu0 %v2671_v53 }
 0x144   : > { %4858 = vmatmul.mubr.bf16.gmra.mrb[8].mxu1 %v2777_v0 }
 0x145   : > { %v4377_v50 = vpop.f32.mrb[32].mxu0  ;;  %4861 = vmatprep.mubr.bf16.mxu1 %v2780_v3 }
 0x146   : > { %v4378_v39 = vpop.f32.mrb[33].mxu0  ;;  %v4489_v31 = vpop.f32.mrb[32].mxu1 }
 0x147   : > { %v4379_v61 = vadd.f32 %v4378_v39, %v4377_v50  ;;  %v4380_v12 = vpop.f32.mrb[34].mxu0  ;;  %v4490_v10 = vpop.f32.mrb[33].mxu1 }
 0x148   : > { %v4381_v25 = vpop.f32.mrb[35].mxu0  ;;  %v6510_v57 = vadd.f32 %v4490_v10, %v4489_v31  ;;  %v4492_v51 = vpop.f32.mrb[34].mxu1 }
 0x149   : > { %v4382_v48 = vadd.f32 %v4381_v25, %v4380_v12  ;;  %v4493_v46 = vpop.f32.mrb[35].mxu1 }
 0x14a   : > { %3146 = vmatmul.mubr.bf16.gmra.mrb[140].mxu0 %v6456_v4  ;;  %v6514_v47 = vadd.f32 %v4493_v46, %v4492_v51 }
 0x14c   : > { %4862 = vmatmul.mubr.bf16.gmra.mrb[12].mxu1 %v2783_v63 }
 0x14d   : > { %v4383_v55 = vpop.f32.mrb[36].mxu0 }
 0x14e   : > { %v4384_v21 = vpop.f32.mrb[37].mxu0  ;;  %v4495_v29 = vpop.f32.mrb[36].mxu1 }
 0x14f   : > { %v4385_v49 = vadd.f32 %v4384_v21, %v4383_v55  ;;  %v4386_v52 = vpop.f32.mrb[38].mxu0  ;;  %v4496_v37 = vpop.f32.mrb[37].mxu1 }
 0x150   : > { %v4387_v59 = vpop.f32.mrb[39].mxu0  ;;  %v6516_v30 = vadd.f32 %v4496_v37, %v4495_v29  ;;  %v4498_v9 = vpop.f32.mrb[38].mxu1 }
 0x151   : > { %v4388_v13 = vadd.f32 %v4387_v59, %v4386_v52  ;;  %v4499_v42 = vpop.f32.mrb[39].mxu1 }
 0x152   : > { %v6518_v5 = vadd.f32 %v4499_v42, %v4498_v9 }
 0x155   : > { %v4389_v44 = vpop.f32.mrb[40].mxu0 }
 0x156   : > { %v4390_v28 = vpop.f32.mrb[41].mxu0  ;;  %v4501_v4 = vpop.f32.mrb[40].mxu1 }
 0x157   : > { %v4391_v15 = vadd.f32 %v4390_v28, %v4389_v44  ;;  %v4392_v27 = vpop.f32.mrb[42].mxu0  ;;  %v4502_v58 = vpop.f32.mrb[41].mxu1 }
 0x158   : > { %v4393_v14 = vpop.f32.mrb[43].mxu0  ;;  %v6520_v53 = vadd.f32 %v4502_v58, %v4501_v4  ;;  %v4504_v34 = vpop.f32.mrb[42].mxu1 }
 0x159   : > { %v4394_v0 = vadd.f32 %v4393_v14, %v4392_v27  ;;  %v4505_v16 = vpop.f32.mrb[43].mxu1 }
 0x15a   : > { %v6522_v8 = vadd.f32 %v4505_v16, %v4504_v34 }
 0x15d   : > { %v4395_v3 = vpop.f32.mrb[44].mxu0 }
 0x15e   : > { %v4396_v50 = vpop.f32.mrb[45].mxu0  ;;  %v4507_v20 = vpop.f32.mrb[44].mxu1 }
 0x15f   : > { %v4397_v45 = vadd.f32 %v4396_v50, %v4395_v3  ;;  %v4398_v39 = vpop.f32.mrb[46].mxu0  ;;  %v4508_v31 = vpop.f32.mrb[45].mxu1 }
 0x160   : > { %v4399_v12 = vpop.f32.mrb[47].mxu0  ;;  %v6524_v10 = vadd.f32 %v4508_v31, %v4507_v20  ;;  %v4510_v25 = vpop.f32.mrb[46].mxu1 }
 0x161   : > { %v4400_v51 = vadd.f32 %v4399_v12, %v4398_v39  ;;  %v4511_v63 = vpop.f32.mrb[47].mxu1 }
 0x162   : > { %v6526_v46 = vadd.f32 %v4511_v63, %v4510_v25 }
 0x165   : > { %v4401_v55 = vpop.f32.mrb[48].mxu0 }
 0x166   : > { %v4402_v21 = vpop.f32.mrb[49].mxu0  ;;  %v4513_v29 = vpop.f32.mrb[48].mxu1 }
 0x167   : > { %v6528_v52 = vadd.f32 %v4402_v21, %v4401_v55  ;;  %v4404_v37 = vpop.f32.mrb[50].mxu0  ;;  %v4514_v59 = vpop.f32.mrb[49].mxu1 }
 0x168   : > { %v4405_v9 = vpop.f32.mrb[51].mxu0  ;;  %v4515_v42 = vadd.f32 %v4514_v59, %v4513_v29  ;;  %v4516_v44 = vpop.f32.mrb[50].mxu1 }
 0x169   : > { %v6530_v28 = vadd.f32 %v4405_v9, %v4404_v37  ;;  %v4517_v4 = vpop.f32.mrb[51].mxu1 }
 0x16a   : > { %v6532_v27 = vadd.f32 %v4515_v42, %v4379_v61  ;;  %v4518_v58 = vadd.f32 %v4517_v4, %v4516_v44 }
 0x16c   : > { %v6534_v14 = vadd.f32 %v4518_v58, %v4382_v48 }
 0x16d   : > { %v4407_v34 = vpop.f32.mrb[52].mxu0 }
 0x16e   : > { %v4408_v16 = vpop.f32.mrb[53].mxu0  ;;  %v4519_v3 = vpop.f32.mrb[52].mxu1 }
 0x16f   : > { %v6536_v50 = vadd.f32 %v4408_v16, %v4407_v34  ;;  %v4410_v20 = vpop.f32.mrb[54].mxu0  ;;  %v4520_v39 = vpop.f32.mrb[53].mxu1 }
 0x170   : > { %v4411_v31 = vpop.f32.mrb[55].mxu0  ;;  %v4521_v12 = vadd.f32 %v4520_v39, %v4519_v3  ;;  %v4522_v25 = vpop.f32.mrb[54].mxu1 }
 0x171   : > { %v6538_v63 = vadd.f32 %v4411_v31, %v4410_v20  ;;  %v4523_v55 = vpop.f32.mrb[55].mxu1 }
 0x172   : > { %v6540_v21 = vadd.f32 %v4521_v12, %v4385_v49  ;;  %v4524_v61 = vadd.f32 %v4523_v55, %v4522_v25 }
 0x174   : > { %v6542_v29 = vadd.f32 %v4524_v61, %v4388_v13 }
 0x175   : > { %v4413_v48 = vpop.f32.mrb[56].mxu0 }
 0x176   : > { %6767 = vst [vmem:[#allocation2_spill] sm:$0xff] %v6542_v29  ;;  %v4414_v37 = vpop.f32.mrb[57].mxu0  ;;  %v4525_v59 = vpop.f32.mrb[56].mxu1 }
 0x177   : > { %v6544_v9 = vadd.f32 %v4414_v37, %v4413_v48  ;;  %v4416_v42 = vpop.f32.mrb[58].mxu0  ;;  %v4526_v44 = vpop.f32.mrb[57].mxu1 }
 0x178   : > { %v4417_v4 = vpop.f32.mrb[59].mxu0  ;;  %v4527_v58 = vadd.f32 %v4526_v44, %v4525_v59  ;;  %v4528_v34 = vpop.f32.mrb[58].mxu1 }
 0x179   : > { %v6546_v16 = vadd.f32 %v4417_v4, %v4416_v42  ;;  %v4529_v3 = vpop.f32.mrb[59].mxu1 }
 0x17a   : > { %v6548_v20 = vadd.f32 %v4527_v58, %v4391_v15  ;;  %v4530_v49 = vadd.f32 %v4529_v3, %v4528_v34 }
 0x17c   : > { %v6550_v39 = vadd.f32 %v4530_v49, %v4394_v0 }
 0x17d   : > { %v4419_v13 = vpop.f32.mrb[60].mxu0 }
 0x17e   : > { %v4420_v31 = vpop.f32.mrb[61].mxu0  ;;  %v4531_v12 = vpop.f32.mrb[60].mxu1 }
 0x17f   : > { %v6552_v25 = vadd.f32 %v4420_v31, %v4419_v13  ;;  %v4422_v55 = vpop.f32.mrb[62].mxu0  ;;  %v4532_v61 = vpop.f32.mrb[61].mxu1 }
 0x180   : > { %v4423_v48 = vpop.f32.mrb[63].mxu0  ;;  %v4533_v37 = vadd.f32 %v4532_v61, %v4531_v12  ;;  %v4534_v29 = vpop.f32.mrb[62].mxu1 }
 0x181   : > { %v6554_v59 = vadd.f32 %v4423_v48, %v4422_v55  ;;  %v4535_v42 = vpop.f32.mrb[63].mxu1 }
 0x182   : > { %v6556_v44 = vadd.f32 %v4533_v37, %v4397_v45  ;;  %v4536_v15 = vadd.f32 %v4535_v42, %v4534_v29 }
 0x184   : > { %v6558_v4 = vadd.f32 %v4536_v15, %v4400_v51 }
 0x185   : > { %v4739_v0 = vpop.f32.mrb[64].mxu0 }
 0x186   : > { %v1687_v58 = vadd.f32 %v4739_v0, %v6324_v17  ;;  %v1678_v34 = vpop.f32.mrb[65].mxu0 }
 0x187   : > { %v4537_v3 = vpop.f32.mrb[64].mxu1  ;;  %v1679_v49 = vadd.f32 %v6297_v7, %v1678_v34  ;;  %v4740_v13 = vpop.f32.mrb[66].mxu0 }
 0x188   : > { %v6563_v31 = vadd.f32 %v6458_v6, %v1687_v58  ;;  %v4538_v12 = vpop.f32.mrb[65].mxu1  ;;  %v1690_v55 = vadd.f32 %v4740_v13, %v6327_v62  ;;  %v1681_v61 = vpop.f32.mrb[67].mxu0 }
 0x189   : > { %v6567_v45 = vadd.f32 %v6427_v35, %v1679_v49  ;;  %v4539_v51 = vadd.f32 %v4538_v12, %v4537_v3  ;;  %v4540_v29 = vpop.f32.mrb[66].mxu1  ;;  %v1682_v48 = vadd.f32 %v6305_v40, %v1681_v61 }
 0x18a   : > { %v6571_v17 = vadd.f32 %v6467_v43, %v1690_v55  ;;  %v4541_v37 = vpop.f32.mrb[67].mxu1 }
 0x18b   : > { %v6574_v7 = vadd.f32 %v4539_v51, %v6528_v52  ;;  %v6577_v6 = vadd.f32 %v6436_v56, %v1682_v48  ;;  %v4542_v42 = vadd.f32 %v4541_v37, %v4540_v29 }
 0x18d   : > { %v6580_v62 = vadd.f32 %v4542_v42, %v6530_v28  ;;  %v4743_v35 = vpop.f32.mrb[68].mxu0 }
 0x18e   : > { %v1703_v15 = vadd.f32 %v4743_v35, %v6386_v23  ;;  %v1694_v0 = vpop.f32.mrb[69].mxu0 }
 0x18f   : > { %v4543_v58 = vpop.f32.mrb[68].mxu1  ;;  %v1695_v40 = vadd.f32 %v6352_v38, %v1694_v0  ;;  %v4744_v43 = vpop.f32.mrb[70].mxu0 }
 0x190   : > { %v6585_v34 = vadd.f32 %v6499_v26, %v1703_v15  ;;  %v4544_v52 = vpop.f32.mrb[69].mxu1  ;;  %v1706_v3 = vadd.f32 %v4744_v43, %v6393_v1  ;;  %v1697_v56 = vpop.f32.mrb[71].mxu0 }
 0x191   : > { %v6589_v49 = vadd.f32 %v6482_v60, %v1695_v40  ;;  %v4545_v28 = vadd.f32 %v4544_v52, %v4543_v58  ;;  %v4546_v13 = vpop.f32.mrb[70].mxu1  ;;  %v1698_v12 = vadd.f32 %v6359_v18, %v1697_v56 }
 0x192   : > { %v6593_v23 = vadd.f32 %v6507_v11, %v1706_v3  ;;  %v4547_v55 = vpop.f32.mrb[71].mxu1 }
 0x193   : > { %v6596_v38 = vadd.f32 %v4545_v28, %v6536_v50  ;;  %v6599_v26 = vadd.f32 %v6491_v33, %v1698_v12  ;;  %v4548_v61 = vadd.f32 %v4547_v55, %v4546_v13 }
 0x195   : > { %v6602_v1 = vadd.f32 %v4548_v61, %v6538_v63  ;;  %v4747_v60 = vpop.f32.mrb[72].mxu0 }
 0x196   : > { %v1719_v51 = vadd.f32 %v4747_v60, %v6449_v32  ;;  %v1710_v29 = vpop.f32.mrb[73].mxu0 }
 0x197   : > { %v4549_v48 = vpop.f32.mrb[72].mxu1  ;;  %v1711_v18 = vadd.f32 %v6418_v24, %v1710_v29  ;;  %v4748_v11 = vpop.f32.mrb[74].mxu0 }
 0x198   : > { %v6607_v37 = vadd.f32 %v6516_v30, %v1719_v51  ;;  %v4550_v50 = vpop.f32.mrb[73].mxu1  ;;  %v1722_v42 = vadd.f32 %v4748_v11, %v6460_v19  ;;  %v1713_v33 = vpop.f32.mrb[75].mxu0 }
 0x199   : > { %v6611_v35 = vadd.f32 %v6510_v57, %v1711_v18  ;;  %v4551_v63 = vadd.f32 %v4550_v50, %v4549_v48  ;;  %v4552_v15 = vpop.f32.mrb[74].mxu1  ;;  %v1714_v0 = vadd.f32 %v6429_v36, %v1713_v33 }
 0x19a   : > { %v6615_v32 = vadd.f32 %v6518_v5, %v1722_v42  ;;  %v4553_v58 = vpop.f32.mrb[75].mxu1 }
 0x19b   : > { %v6618_v24 = vadd.f32 %v4551_v63, %v6544_v9  ;;  %v2019_v30 = vadd.f32 %v6514_v47, %v1714_v0  ;;  %v4554_v40 = vadd.f32 %v4553_v58, %v4552_v15 }
 0x19d   : > { %v6622_v19 = vadd.f32 %v4554_v40, %v6546_v16  ;;  %v4751_v43 = vpop.f32.mrb[76].mxu0 }
 0x19e   : > { %v1735_v57 = vadd.f32 %v4751_v43, %v6496_v2  ;;  %v1726_v52 = vpop.f32.mrb[77].mxu0 }
 0x19f   : > { %v4555_v3 = vpop.f32.mrb[76].mxu1  ;;  %v1727_v36 = vadd.f32 %v6476_v22, %v1726_v52  ;;  %v4752_v56 = vpop.f32.mrb[78].mxu0 }
 0x1a0   : > { %v6627_v5 = vadd.f32 %v6524_v10, %v1735_v57  ;;  %v4556_v28 = vpop.f32.mrb[77].mxu1  ;;  %v1738_v9 = vadd.f32 %v4752_v56, %v6501_v41  ;;  %v1729_v13 = vpop.f32.mrb[79].mxu0 }
 0x1a1   : > { %v6631_v47 = vadd.f32 %v6520_v53, %v1727_v36  ;;  %v4557_v16 = vadd.f32 %v4556_v28, %v4555_v3  ;;  %v4558_v12 = vpop.f32.mrb[78].mxu1  ;;  %v1730_v55 = vadd.f32 %v6484_v54, %v1729_v13 }
 0x1a2   : > { %v6635_v2 = vadd.f32 %v6526_v46, %v1738_v9  ;;  %v4559_v61 = vpop.f32.mrb[79].mxu1 }
 0x1a3   : > { %v6638_v22 = vadd.f32 %v4557_v16, %v6552_v25  ;;  %v2035_v10 = vadd.f32 %v6522_v8, %v1730_v55  ;;  %v4560_v60 = vadd.f32 %v4559_v61, %v4558_v12 }
 0x1a5   : > { %v6642_v41 = vadd.f32 %v4560_v60, %v6554_v59  ;;  %v4601_v51 = vpop.f32.mrb[80].mxu0 }
 0x1a6   : > { %v4602_v53 = vpop.f32.mrb[81].mxu0 }
 0x1a7   : > { %v4603_v29 = vadd.f32 %v4602_v53, %v4601_v51  ;;  %v4604_v48 = vpop.f32.mrb[82].mxu0 }
 0x1a8   : > { %v4605_v18 = vpop.f32.mrb[83].mxu0 }
 0x1a9   : > { %v4606_v11 = vadd.f32 %v4605_v18, %v4604_v48  ;;  %v6645_v54 = vadd.f32 %v4603_v29, %v6567_v45 }
 0x1ab   : > { %v6648_v46 = vadd.f32 %v4606_v11, %v6577_v6 }
 0x1ad   : > { %v4607_v25 = vpop.f32.mrb[84].mxu0 }
 0x1ae   : > { %v4608_v50 = vpop.f32.mrb[85].mxu0 }
 0x1af   : > { %v4609_v42 = vadd.f32 %v4608_v50, %v4607_v25  ;;  %v4610_v8 = vpop.f32.mrb[86].mxu0 }
 0x1b0   : > { %v4611_v33 = vpop.f32.mrb[87].mxu0 }
 0x1b1   : > { %v4612_v63 = vadd.f32 %v4611_v33, %v4610_v8  ;;  %v4883_v59 = vadd.f32 %v4609_v42, %v6563_v31 }
 0x1b3   : > { %v4891_v15 = vadd.f32 %v4612_v63, %v6571_v17 }
 0x1b5   : > { %v4613_v0 = vpop.f32.mrb[88].mxu0 }
 0x1b6   : > { %v4614_v58 = vpop.f32.mrb[89].mxu0 }
 0x1b7   : > { %v4615_v40 = vadd.f32 %v4614_v58, %v4613_v0  ;;  %v4616_v43 = vpop.f32.mrb[90].mxu0 }
 0x1b8   : > { %v4617_v57 = vpop.f32.mrb[91].mxu0 }
 0x1b9   : > { %v4618_v45 = vadd.f32 %v4617_v57, %v4616_v43  ;;  %v6653_v52 = vadd.f32 %v4615_v40, %v6589_v49 }
 0x1bb   : > { %v6656_v6 = vadd.f32 %v4618_v45, %v6599_v26 }
 0x1bd   : > { %v4619_v3 = vpop.f32.mrb[92].mxu0 }
 0x1be   : > { %v4620_v36 = vpop.f32.mrb[93].mxu0 }
 0x1bf   : > { %v4621_v56 = vadd.f32 %v4620_v36, %v4619_v3  ;;  %v4622_v28 = vpop.f32.mrb[94].mxu0 }
 0x1c0   : > { %v4623_v9 = vpop.f32.mrb[95].mxu0 }
 0x1c1   : > { %v4624_v31 = vadd.f32 %v4623_v9, %v4622_v28  ;;  %v6659_v17 = vadd.f32 %v4621_v56, %v6585_v34 }
 0x1c3   : > { %v6662_v13 = vadd.f32 %v4624_v31, %v6593_v23 }
 0x1c5   : > { %v4625_v16 = vpop.f32.mrb[96].mxu0 }
 0x1c6   : > { %v4626_v12 = vpop.f32.mrb[97].mxu0 }
 0x1c7   : > { %v4627_v55 = vadd.f32 %v4626_v12, %v4625_v16  ;;  %v4628_v49 = vpop.f32.mrb[98].mxu0 }
 0x1c8   : > { %v4629_v61 = vpop.f32.mrb[99].mxu0 }
 0x1c9   : > { %v4630_v60 = vadd.f32 %v4629_v61, %v4628_v49  ;;  %v6665_v26 = vadd.f32 %v4627_v55, %v6611_v35 }
 0x1cb   : > { %v6667_v51 = vadd.f32 %v4630_v60, %v2019_v30 }
 0x1cd   : > { %v4631_v53 = vpop.f32.mrb[100].mxu0 }
 0x1ce   : > { %v4632_v29 = vpop.f32.mrb[101].mxu0 }
 0x1cf   : > { %v4633_v48 = vadd.f32 %v4632_v29, %v4631_v53  ;;  %v4634_v18 = vpop.f32.mrb[102].mxu0 }
 0x1d0   : > { %v4635_v34 = vpop.f32.mrb[103].mxu0 }
 0x1d1   : > { %v4636_v11 = vadd.f32 %v4635_v34, %v4634_v18  ;;  %v6670_v23 = vadd.f32 %v4633_v48, %v6607_v37 }
 0x1d3   : > { %v6673_v25 = vadd.f32 %v4636_v11, %v6615_v32 }
 0x1d5   : > { %v4637_v50 = vpop.f32.mrb[104].mxu0 }
 0x1d6   : > { %v4638_v42 = vpop.f32.mrb[105].mxu0 }
 0x1d7   : > { %v4639_v8 = vadd.f32 %v4638_v42, %v4637_v50  ;;  %v4640_v33 = vpop.f32.mrb[106].mxu0 }
 0x1d8   : > { %v4641_v35 = vpop.f32.mrb[107].mxu0 }
 0x1d9   : > { %v4642_v63 = vadd.f32 %v4641_v35, %v4640_v33  ;;  %v6676_v30 = vadd.f32 %v4639_v8, %v6631_v47 }
 0x1db   : > { %v6678_v0 = vadd.f32 %v4642_v63, %v2035_v10 }
 0x1dd   : > { %v4643_v58 = vpop.f32.mrb[108].mxu0 }
 0x1de   : > { %v4644_v40 = vpop.f32.mrb[109].mxu0 }
 0x1df   : > { %v4645_v43 = vadd.f32 %v4644_v40, %v4643_v58  ;;  %v4646_v37 = vpop.f32.mrb[110].mxu0 }
 0x1e0   : > { %v4647_v57 = vpop.f32.mrb[111].mxu0 }
 0x1e1   : > { %v4648_v45 = vadd.f32 %v4647_v57, %v4646_v37  ;;  %v6681_v32 = vadd.f32 %v4645_v43, %v6627_v5 }
 0x1e3   : > { %v6684_v3 = vadd.f32 %v4648_v45, %v6635_v2 }
 0x1e5   : > { %v4649_v36 = vpop.f32.mrb[112].mxu0 }
 0x1e6   : > { %v4650_v56 = vpop.f32.mrb[113].mxu0 }
 0x1e7   : > { %v4835_v28 = vpop.f32.mrb[80].mxu1  ;;  %v4651_v47 = vadd.f32 %v4650_v56, %v4649_v36  ;;  %v4652_v9 = vpop.f32.mrb[114].mxu0 }
 0x1e8   : > { %v4884_v10 = vadd.f32 %v4883_v59, %v4835_v28  ;;  %v3188_v31 = vpop.f32.mrb[81].mxu1  ;;  %v4653_v16 = vpop.f32.mrb[115].mxu0 }
 0x1e9   : > { %v4888_v12 = vadd.f32 %v6645_v54, %v3188_v31  ;;  %v4836_v55 = vpop.f32.mrb[82].mxu1  ;;  %v4654_v49 = vadd.f32 %v4653_v16, %v4652_v9  ;;  %v6689_v61 = vadd.f32 %v6532_v27, %v4651_v47  ;;  %v6768_v31 = vld [vmem:[#allocation2_spill] sm:$0xff] }
 0x1ea   : > { %v4892_v5 = vadd.f32 %v4891_v15, %v4836_v55  ;;  %v3191_v60 = vpop.f32.mrb[83].mxu1  ;;  %v3546_v34 = vmul.f32 %v4884_v10, %v4884_v10 }
 0x1eb   : > { %v4896_v2 = vadd.f32 %v6648_v46, %v3191_v60  ;;  %v6698_v59 = vadd.f32 %v6534_v14, %v4654_v49  ;;  %v3544_v53 = vmul.f32 %v4888_v12, %v4888_v12 }
 0x1ec   : > { %v4226_v54 = vpack.c.bf16 %v4892_v5, %v4884_v10  ;;  %v3547_v35 = vmul.f32 %v4892_v5, %v4892_v5 }
 0x1ed   : > { %v4221_v29 = vpack.c.bf16 %v4896_v2, %v4888_v12  ;;  %v3507_v48 = vadd.f32 %v4896_v2, %v4888_v12  ;;  %v3545_v27 = vmul.f32 %v4896_v2, %v4896_v2  ;;  %v4655_v18 = vpop.f32.mrb[116].mxu0 }
 0x1ee   : > { %4298 = vst [vmem:[%s6694_s18 + $0x8] sm:$0xff] %v4226_v54   ;;  %v4656_v15 = vpop.f32.mrb[117].mxu0 }
 0x1ef   : > { %4222 = vst [vmem:[%s6694_s18] sm:$0xff] %v4221_v29   ;;  %v3508_v11 = vadd.f32 %v4884_v10, %v3507_v48  ;;  %v3576_v50 = vadd.f32 %v3545_v27, %v3544_v53  ;;  %v4839_v42 = vpop.f32.mrb[84].mxu1  ;;  %v4657_v8 = vadd.f32 %v4656_v15, %v4655_v18  ;;  %v4658_v33 = vpop.f32.mrb[118].mxu0 }
 0x1f0   : > { %v4900_v46 = vadd.f32 %v6659_v17, %v4839_v42  ;;  %v3204_v14 = vpop.f32.mrb[85].mxu1  ;;  %v4659_v63 = vpop.f32.mrb[119].mxu0 }
 0x1f1   : > { %v3577_v58 = vadd.f32 %v3576_v50, %v3546_v34  ;;  %v4904_v40 = vadd.f32 %v6653_v52, %v3204_v14  ;;  %v3509_v43 = vadd.f32 %v4892_v5, %v3508_v11  ;;  %v4840_v37 = vpop.f32.mrb[86].mxu1  ;;  %v4660_v57 = vadd.f32 %v4659_v63, %v4658_v33 }
 0x1f2   : > { %v4908_v45 = vadd.f32 %v6662_v13, %v4840_v37  ;;  %v3207_v36 = vpop.f32.mrb[87].mxu1  ;;  %v6706_v56 = vadd.f32 %v6540_v21, %v4657_v8  ;;  %v3550_v60 = vmul.f32 %v4900_v46, %v4900_v46 }
 0x1f3   : > { %v3510_v28 = vadd.f32 %v4904_v40, %v3509_v43  ;;  %v3548_v47 = vmul.f32 %v4904_v40, %v4904_v40  ;;  %v3578_v9 = vadd.f32 %v3577_v58, %v3547_v35  ;;  %v4912_v17 = vadd.f32 %v6656_v6, %v3207_v36 }
 0x1f4   : > { %v4236_v10 = vpack.c.bf16 %v4908_v45, %v4900_v46  ;;  %v6710_v16 = vadd.f32 %v6768_v31, %v4660_v57  ;;  %v3551_v48 = vmul.f32 %v4908_v45, %v4908_v45 }
 0x1f5   : > { %v3579_v52 = vadd.f32 %v3578_v9, %v3548_v47  ;;  %v4231_v12 = vpack.c.bf16 %v4912_v17, %v4904_v40  ;;  %v3511_v55 = vadd.f32 %v4912_v17, %v3510_v28  ;;  %v3549_v49 = vmul.f32 %v4912_v17, %v4912_v17  ;;  %v4661_v5 = vpop.f32.mrb[120].mxu0 }
 0x1f6   : > { %4300 = vst [vmem:[%s6694_s18 + $0x18] sm:$0xff] %v4236_v10   ;;  %v4662_v13 = vpop.f32.mrb[121].mxu0 }
 0x1f7   : > { %4299 = vst [vmem:[%s6694_s18 + $0x10] sm:$0xff] %v4231_v12   ;;  %v3512_v21 = vadd.f32 %v4900_v46, %v3511_v55  ;;  %v3580_v2 = vadd.f32 %v3579_v52, %v3549_v49  ;;  %v4843_v54 = vpop.f32.mrb[88].mxu1  ;;  %v4663_v53 = vadd.f32 %v4662_v13, %v4661_v5  ;;  %v4664_v29 = vpop.f32.mrb[122].mxu0 }
 0x1f8   : > { %v4916_v6 = vadd.f32 %v6670_v23, %v4843_v54  ;;  %v3220_v27 = vpop.f32.mrb[89].mxu1  ;;  %v4665_v18 = vpop.f32.mrb[123].mxu0 }
 0x1f9   : > { %v3581_v15 = vadd.f32 %v3580_v2, %v3550_v60  ;;  %v4920_v34 = vadd.f32 %v6665_v26, %v3220_v27  ;;  %v3513_v11 = vadd.f32 %v4908_v45, %v3512_v21  ;;  %v4844_v50 = vpop.f32.mrb[90].mxu1  ;;  %v4666_v42 = vadd.f32 %v4665_v18, %v4664_v29 }
 0x1fa   : > { %v4924_v8 = vadd.f32 %v6673_v25, %v4844_v50  ;;  %v3223_v33 = vpop.f32.mrb[91].mxu1  ;;  %v6718_v35 = vadd.f32 %v6548_v20, %v4663_v53  ;;  %v3554_v36 = vmul.f32 %v4916_v6, %v4916_v6 }
 0x1fb   : > { %v3514_v46 = vadd.f32 %v4920_v34, %v3513_v11  ;;  %v3552_v14 = vmul.f32 %v4920_v34, %v4920_v34  ;;  %v3582_v63 = vadd.f32 %v3581_v15, %v3551_v48  ;;  %v4928_v23 = vadd.f32 %v6667_v51, %v3223_v33 }
 0x1fc   : > { %v4246_v58 = vpack.c.bf16 %v4924_v8, %v4916_v6  ;;  %v6722_v40 = vadd.f32 %v6550_v39, %v4666_v42  ;;  %v3555_v10 = vmul.f32 %v4924_v8, %v4924_v8 }
 0x1fd   : > { %v3583_v26 = vadd.f32 %v3582_v63, %v3552_v14  ;;  %v4241_v43 = vpack.c.bf16 %v4928_v23, %v4920_v34  ;;  %v3515_v37 = vadd.f32 %v4928_v23, %v3514_v46  ;;  %v3553_v57 = vmul.f32 %v4928_v23, %v4928_v23  ;;  %v4667_v45 = vpop.f32.mrb[124].mxu0 }
 0x1fe   : > { %4302 = vst [vmem:[%s6694_s18 + $0x28] sm:$0xff] %v4246_v58   ;;  %v4668_v25 = vpop.f32.mrb[125].mxu0 }
 0x1ff   : > { %4301 = vst [vmem:[%s6694_s18 + $0x20] sm:$0xff] %v4241_v43   ;;  %v3516_v20 = vadd.f32 %v4916_v6, %v3515_v37  ;;  %v3584_v28 = vadd.f32 %v3583_v26, %v3553_v57  ;;  %v4847_v47 = vpop.f32.mrb[92].mxu1  ;;  %v4669_v9 = vadd.f32 %v4668_v25, %v4667_v45  ;;  %v4670_v17 = vpop.f32.mrb[126].mxu0 }
 0x200   : > { %v4932_v51 = vadd.f32 %v6681_v32, %v4847_v47  ;;  %v3236_v31 = vpop.f32.mrb[93].mxu1  ;;  %v4671_v39 = vpop.f32.mrb[127].mxu0 }
 0x201   : > { %v3585_v52 = vadd.f32 %v3584_v28, %v3554_v36  ;;  %v4936_v12 = vadd.f32 %v6676_v30, %v3236_v31  ;;  %v3517_v55 = vadd.f32 %v4924_v8, %v3516_v20  ;;  %v4848_v49 = vpop.f32.mrb[94].mxu1  ;;  %v4672_v5 = vadd.f32 %v4671_v39, %v4670_v17 }
 0x202   : > { %v4940_v13 = vadd.f32 %v6684_v3, %v4848_v49  ;;  %v3239_v60 = vpop.f32.mrb[95].mxu1  ;;  %v4958_v21 = vadd.f32 %v6556_v44, %v4669_v9  ;;  %v3558_v3 = vmul.f32 %v4932_v51, %v4932_v51 }
 0x203   : > { %v3518_v2 = vadd.f32 %v4936_v12, %v3517_v55  ;;  %v3556_v54 = vmul.f32 %v4936_v12, %v4936_v12  ;;  %v3586_v53 = vadd.f32 %v3585_v52, %v3555_v10  ;;  %v4944_v32 = vadd.f32 %v6678_v0, %v3239_v60 }
 0x204   : > { %v4256_v29 = vpack.c.bf16 %v4940_v13, %v4932_v51  ;;  %v4964_v48 = vadd.f32 %v6558_v4, %v4672_v5  ;;  %v3559_v33 = vmul.f32 %v4940_v13, %v4940_v13 }
 0x205   : > { %v3587_v6 = vadd.f32 %v3586_v53, %v3556_v54  ;;  %v4251_v30 = vpack.c.bf16 %v4944_v32, %v4936_v12  ;;  %v3519_v27 = vadd.f32 %v4944_v32, %v3518_v2  ;;  %v3557_v18 = vmul.f32 %v4944_v32, %v4944_v32  ;;  %v4673_v15 = vpop.f32.mrb[128].mxu0 }
 0x206   : > { %4304 = vst [vmem:[%s6694_s18 + $0x38] sm:$0xff] %v4256_v29   ;;  %v4674_v34 = vpop.f32.mrb[129].mxu0 }
 0x207   : > { %4303 = vst [vmem:[%s6694_s18 + $0x30] sm:$0xff] %v4251_v30   ;;  %v3520_v11 = vadd.f32 %v4932_v51, %v3519_v27  ;;  %v3588_v50 = vadd.f32 %v3587_v6, %v3557_v18  ;;  %v4851_v44 = vpop.f32.mrb[0].mxu1  ;;  %v4675_v42 = vadd.f32 %v4674_v34, %v4673_v15  ;;  %v4676_v8 = vpop.f32.mrb[130].mxu0 }
 0x208   : > { %v4947_v0 = vadd.f32 %v6706_v56, %v4851_v44  ;;  %v3252_v46 = vpop.f32.mrb[1].mxu1  ;;  %v4677_v14 = vpop.f32.mrb[131].mxu0 }
 0x209   : > { %v3589_v4 = vadd.f32 %v3588_v50, %v3558_v3  ;;  %v4950_v63 = vadd.f32 %v6689_v61, %v3252_v46  ;;  %v3521_v23 = vadd.f32 %v4940_v13, %v3520_v11  ;;  %v4852_v58 = vpop.f32.mrb[2].mxu1  ;;  %v4678_v26 = vadd.f32 %v4677_v14, %v4676_v8 }
 0x20a   : > { %v4953_v43 = vadd.f32 %v6710_v16, %v4852_v58  ;;  %v3255_v37 = vpop.f32.mrb[3].mxu1  ;;  %v4973_v57 = vadd.f32 %v6574_v7, %v4675_v42  ;;  %v3562_v16 = vmul.f32 %v4947_v0, %v4947_v0 }
 0x20b   : > { %v3522_v45 = vadd.f32 %v4950_v63, %v3521_v23  ;;  %v3560_v25 = vmul.f32 %v4950_v63, %v4950_v63  ;;  %v3590_v36 = vadd.f32 %v3589_v4, %v3559_v33  ;;  %v4956_v56 = vadd.f32 %v6698_v59, %v3255_v37 }
 0x20c   : > { %v4266_v20 = vpack.c.bf16 %v4953_v43, %v4947_v0  ;;  %v4979_v28 = vadd.f32 %v6580_v62, %v4678_v26  ;;  %v3563_v55 = vmul.f32 %v4953_v43, %v4953_v43 }
 0x20d   : > { %v3591_v47 = vadd.f32 %v3590_v36, %v3560_v25  ;;  %v4261_v61 = vpack.c.bf16 %v4956_v56, %v4950_v63  ;;  %v3523_v9 = vadd.f32 %v4956_v56, %v3522_v45  ;;  %v3561_v17 = vmul.f32 %v4956_v56, %v4956_v56  ;;  %v4679_v10 = vpop.f32.mrb[132].mxu0 }
 0x20e   : > { %4306 = vst [vmem:[%s6694_s18 + $0x48] sm:$0xff] %v4266_v20   ;;  %v4680_v51 = vpop.f32.mrb[133].mxu0 }
 0x20f   : > { %4305 = vst [vmem:[%s6694_s18 + $0x40] sm:$0xff] %v4261_v61   ;;  %v3524_v31 = vadd.f32 %v4947_v0, %v3523_v9  ;;  %v3592_v39 = vadd.f32 %v3591_v47, %v3561_v17  ;;  %v4855_v7 = vpop.f32.mrb[4].mxu1  ;;  %v4681_v52 = vadd.f32 %v4680_v51, %v4679_v10  ;;  %v4682_v12 = vpop.f32.mrb[134].mxu0 }
 0x210   : > { %v4959_v49 = vadd.f32 %v4958_v21, %v4855_v7  ;;  %v3268_v59 = vpop.f32.mrb[5].mxu1  ;;  %v4683_v5 = vpop.f32.mrb[135].mxu0 }
 0x211   : > { %v3593_v13 = vadd.f32 %v3592_v39, %v3562_v16  ;;  %v4962_v62 = vadd.f32 %v6718_v35, %v3268_v59  ;;  %v3525_v60 = vadd.f32 %v4953_v43, %v3524_v31  ;;  %v4856_v2 = vpop.f32.mrb[6].mxu1  ;;  %v4684_v54 = vadd.f32 %v4683_v5, %v4682_v12 }
 0x212   : > { %v4965_v53 = vadd.f32 %v4964_v48, %v4856_v2  ;;  %v3271_v32 = vpop.f32.mrb[7].mxu1  ;;  %v4970_v29 = vadd.f32 %v6596_v38, %v4681_v52  ;;  %v3566_v48 = vmul.f32 %v4959_v49, %v4959_v49 }
 0x213   : > { %v3526_v6 = vadd.f32 %v4962_v62, %v3525_v60  ;;  %v3564_v30 = vmul.f32 %v4962_v62, %v4962_v62  ;;  %v3594_v27 = vadd.f32 %v3593_v13, %v3563_v55  ;;  %v4968_v18 = vadd.f32 %v6722_v40, %v3271_v32 }
 0x214   : > { %v4276_v21 = vpack.c.bf16 %v4965_v53, %v4959_v49  ;;  %v4976_v15 = vadd.f32 %v6602_v1, %v4684_v54  ;;  %v3567_v46 = vmul.f32 %v4965_v53, %v4965_v53 }
 0x215   : > { %v3595_v34 = vadd.f32 %v3594_v27, %v3564_v30  ;;  %v4271_v3 = vpack.c.bf16 %v4968_v18, %v4962_v62  ;;  %v3527_v35 = vadd.f32 %v4968_v18, %v3526_v6  ;;  %v3565_v11 = vmul.f32 %v4968_v18, %v4968_v18  ;;  %v4685_v50 = vpop.f32.mrb[136].mxu0 }
 0x216   : > { %4308 = vst [vmem:[%s6694_s18 + $0x58] sm:$0xff] %v4276_v21   ;;  %v4686_v44 = vpop.f32.mrb[137].mxu0 }
 0x217   : > { %4307 = vst [vmem:[%s6694_s18 + $0x50] sm:$0xff] %v4271_v3   ;;  %v3528_v42 = vadd.f32 %v4959_v49, %v3527_v35  ;;  %v3596_v8 = vadd.f32 %v3595_v34, %v3565_v11  ;;  %v4859_v38 = vpop.f32.mrb[8].mxu1  ;;  %v4687_v33 = vadd.f32 %v4686_v44, %v4685_v50  ;;  %v4688_v0 = vpop.f32.mrb[138].mxu0 }
 0x218   : > { %v4971_v14 = vadd.f32 %v4970_v29, %v4859_v38  ;;  %v3284_v40 = vpop.f32.mrb[9].mxu1  ;;  %v4689_v4 = vpop.f32.mrb[139].mxu0 }
 0x219   : > { %v3597_v63 = vadd.f32 %v3596_v8, %v3566_v48  ;;  %v4974_v1 = vadd.f32 %v4973_v57, %v3284_v40  ;;  %v3529_v23 = vadd.f32 %v4965_v53, %v3528_v42  ;;  %v4860_v58 = vpop.f32.mrb[10].mxu1  ;;  %v4690_v26 = vadd.f32 %v4689_v4, %v4688_v0 }
 0x21a   : > { %v4977_v43 = vadd.f32 %v4976_v15, %v4860_v58  ;;  %v3287_v37 = vpop.f32.mrb[11].mxu1  ;;  %v4985_v45 = vadd.f32 %v6618_v24, %v4687_v33  ;;  %v3570_v31 = vmul.f32 %v4971_v14, %v4971_v14 }
 0x21b   : > { %v3530_v25 = vadd.f32 %v4974_v1, %v3529_v23  ;;  %v3568_v36 = vmul.f32 %v4974_v1, %v4974_v1  ;;  %v3598_v56 = vadd.f32 %v3597_v63, %v3567_v46  ;;  %v4980_v20 = vadd.f32 %v4979_v28, %v3287_v37 }
 0x21c   : > { %v4286_v47 = vpack.c.bf16 %v4977_v43, %v4971_v14  ;;  %v4991_v61 = vadd.f32 %v6622_v19, %v4690_v26  ;;  %v3571_v55 = vmul.f32 %v4977_v43, %v4977_v43 }
 0x21d   : > { %v3599_v9 = vadd.f32 %v3598_v56, %v3568_v36  ;;  %v4281_v17 = vpack.c.bf16 %v4980_v20, %v4974_v1  ;;  %v3531_v10 = vadd.f32 %v4980_v20, %v3530_v25  ;;  %v3569_v57 = vmul.f32 %v4980_v20, %v4980_v20  ;;  %v4691_v51 = vpop.f32.mrb[140].mxu0 }
 0x21e   : > { %4310 = vst [vmem:[%s6694_s18 + $0x68] sm:$0xff] %v4286_v47   ;;  %v4692_v16 = vpop.f32.mrb[141].mxu0 }
 0x21f   : > { %4309 = vst [vmem:[%s6694_s18 + $0x60] sm:$0xff] %v4281_v17   ;;  %v3532_v39 = vadd.f32 %v4971_v14, %v3531_v10  ;;  %v3600_v7 = vadd.f32 %v3599_v9, %v3569_v57  ;;  %v4863_v52 = vpop.f32.mrb[12].mxu1  ;;  %v4693_v24 = vadd.f32 %v4692_v16, %v4691_v51  ;;  %v4694_v12 = vpop.f32.mrb[142].mxu0 }
 0x220   : > { %v3300_v49 = vpop.f32.mrb[13].mxu1  ;;  %v4695_v28 = vpop.f32.mrb[143].mxu0 }
 0x221   : > { %v3601_v59 = vadd.f32 %v3600_v7, %v3570_v31  ;;  %v4982_v19 = vadd.f32 %v6638_v22, %v4693_v24  ;;  %v4986_v5 = vadd.f32 %v4985_v45, %v3300_v49  ;;  %v3533_v13 = vadd.f32 %v4977_v43, %v3532_v39  ;;  %v4864_v62 = vpop.f32.mrb[14].mxu1 }
 0x222   : > { %v4696_v60 = vadd.f32 %v4695_v28, %v4694_v12  ;;  %v3303_v2 = vpop.f32.mrb[15].mxu1 }
 0x223   : > { %v4983_v54 = vadd.f32 %v4982_v19, %v4863_v52  ;;  %v3534_v53 = vadd.f32 %v4986_v5, %v3533_v13  ;;  %v3572_v32 = vmul.f32 %v4986_v5, %v4986_v5  ;;  %v3602_v29 = vadd.f32 %v3601_v59, %v3571_v55 }
 0x224   : > { %v4988_v6 = vadd.f32 %v6642_v41, %v4696_v60  ;;  %v4992_v30 = vadd.f32 %v4991_v61, %v3303_v2 }
 0x225   : > { %v3574_v27 = vmul.f32 %v4983_v54, %v4983_v54  ;;  %v3603_v18 = vadd.f32 %v3602_v29, %v3572_v32 }
 0x226   : > { %v4989_v21 = vadd.f32 %v4988_v6, %v4864_v62  ;;  %v4291_v15 = vpack.c.bf16 %v4992_v30, %v4986_v5  ;;  %v3535_v34 = vadd.f32 %v4992_v30, %v3534_v53  ;;  %v3573_v22 = vmul.f32 %v4992_v30, %v4992_v30 }
 0x228   : > { %v4296_v3 = vpack.c.bf16 %v4989_v21, %v4983_v54  ;;  %v3575_v35 = vmul.f32 %v4989_v21, %v4989_v21  ;;  %4311 = vst [vmem:[%s6694_s18 + $0x70] sm:$0xff] %v4291_v15   ;;  %v3536_v11 = vadd.f32 %v4983_v54, %v3535_v34  ;;  %v3604_v50 = vadd.f32 %v3603_v18, %v3573_v22 }
 0x22a   : > { %4312 = vst [vmem:[%s6694_s18 + $0x78] sm:$0xff] %v4296_v3   ;;  %v3537_v44 = vadd.f32 %v4989_v21, %v3536_v11  ;;  %v3605_v48 = vadd.f32 %v3604_v50, %v3574_v27 }
 0x22c   : > { %v3538_v42 = vrot.slane %v3537_v44, 4  ;;  %v3606_v8 = vadd.f32 %v3605_v48, %v3575_v35 }
 0x22e   : > { %v3539_v38 = vadd.f32 %v3538_v42, %v3537_v44  ;;  %v3607_v41 = vrot.slane %v3606_v8, 4 }
 0x230   : > { %v3540_v33 = vrot.slane %v3539_v38, 2  ;;  %v3608_v0 = vadd.f32 %v3607_v41, %v3606_v8 }
 0x232   : > { %v3541_v46 = vadd.f32 %v3540_v33, %v3539_v38  ;;  %v3609_v14 = vrot.slane %v3608_v0, 2 }
 0x234   : > { %v3542_v40 = vrot.slane %v3541_v46, 1  ;;  %v3610_v4 = vadd.f32 %v3609_v14, %v3608_v0 }
 0x236   : > { %v3611_v63 = vrot.slane %v3610_v4, 1  ;;  %v3543_v1 = vadd.f32 %v3542_v40, %v3541_v46 }
 0x238   : > { %v3612_v23 = vadd.f32 %v3611_v63, %v3610_v4 }
 0x23a   : > { %v3614_v58 = vsel %vm3613_vm2, %v3543_v1, %v3612_v23 }
 0x23b   : > { %3615 = vst [vmem:[%s181_s22] sm:$0x3] %v3614_v58 }
 0x23c PF: > { %s14_s12 = sadd.s32 1, %s5291_s12  }
 0x23d   : > { %p11_p4 = scmp.ge.s32.totalorder %s14_s12, 4  }
 0x23f   :  { %13 = sbr.rel (!%p11_p4) target bundleno = 1 (0x1), region = 74 }

</bundles_post_ra>
